<compile_context>
chip_gen: v7x
topology: tpu7x:2x2x1
jax: 0.10.0
libtpu: 0.0.40
codegen_flags: <defaults>
</compile_context>

<pallas_src>
import jax
import jax.numpy as jnp
from jax.experimental import pallas as pl
from jax.experimental.pallas import tpu as pltpu

NUM_SUBSET = 3
TCN_KS = (1, 3, 7)
MAX_PAD = 3          # (7 - 1) // 2: shared temporal halo for all branches
BN_EPS = 1e-5


def _bn_train(y, gamma, beta):
    """Training-mode BatchNorm with centered (two-pass) variance."""
    mean = jnp.mean(y, axis=0, keepdims=True)
    d = y - mean
    var = jnp.mean(d * d, axis=0, keepdims=True)
    return d * (gamma * jax.lax.rsqrt(var + BN_EPS)) + beta


def _make_unit_kernel(*, n, t, v, c_in, c_out, inter, identity_res):
    m = n * t * v
    nt = n * t
    mid = c_out // 3
    c3 = 3 * c_out
    scale = 1.0 / float(inter * t)

    # column offsets inside the fused pointwise GEMM output
    off_a = 0
    off_b = 3 * inter
    off_d = 6 * inter
    off_down = off_d + 3 * c_out      # only present when in_channels != out_channels
    off_res = off_down + c_out

    def kern(x_ref, wcat_ref, bcat_ref, adjt_ref, g_gcn_ref, be_gcn_ref,
             w1_ref, b1_ref, wk1_ref, wk3_ref, wk7_ref, b2_ref,
             g_tcn_ref, be_tcn_ref, *rest):
        if identity_res:
            (o_ref, hp_ref) = rest
        else:
            (g_dn_ref, be_dn_ref, g_rs_ref, be_rs_ref, o_ref, hp_ref) = rest

        xf = x_ref[...]                                  # (m, c_in) f32, rows (n, t, v)
        xb = xf.astype(jnp.bfloat16)                     # cast once (hoisted out of loops)

        # ---- fused pointwise GEMM: conv_a/conv_b/conv_d for all subsets (+ down/res)
        abd = jnp.dot(xb, wcat_ref[...].astype(jnp.bfloat16),
                      preferred_element_type=jnp.float32) + bcat_ref[...]

        # ---- unit_gcn: 3 adjacency subsets, accumulated in registers
        y_gcn = jnp.zeros((nt, v, c_out), jnp.float32)
        for i in range(NUM_SUBSET):
            a3 = abd[:, off_a + i * inter: off_a + (i + 1) * inter].reshape(nt, v, inter)
            b3 = abd[:, off_b + i * inter: off_b + (i + 1) * inter].reshape(nt, v, inter)
            # scores (stored transposed): st[n, w, v] = sum_{t,c} b[n,c,t,w] * a[n,c,t,v]
            stp = jnp.einsum("bwc,bvc->bwv",
                             b3.astype(jnp.bfloat16), a3.astype(jnp.bfloat16),
                             preferred_element_type=jnp.float32)       # (n*t, v, v)
            st = jnp.sum(stp.reshape(n, t, v, v), axis=1) * scale      # (n, v, v)
            # softmax over the original dim -2 (== last dim in transposed form)
            mx = jnp.max(st, axis=-1, keepdims=True)
            e = jnp.exp(st - mx)
            inv = pl.reciprocal(jnp.sum(e, axis=-1, keepdims=True), approx=True)
            att_t = e * inv + adjt_ref[i]                # att_t[n, w, v] = att[n, v, w]

            # conv_d(x) then aggregate over joints (conv_d commutes with the joint agg;
            # its bias is 0 at init and is kept 0 in the packed bias -> exact).
            xd3 = abd[:, off_d + i * c_out: off_d + (i + 1) * c_out] \
                .astype(jnp.bfloat16).reshape(nt, v, c_out)
            att_b = jnp.broadcast_to(att_t.astype(jnp.bfloat16)[:, None, :, :],
                                     (n, t, v, v)).reshape(nt, v, v)
            y_gcn = y_gcn + jnp.einsum("bwv,bvo->bwo", att_b, xd3,
                                       preferred_element_type=jnp.float32)

        y_gcn = y_gcn.reshape(m, c_out)

        # unit_gcn epilogue: training-mode BN + down(x) + ReLU
        if identity_res:
            res_gcn = xf
            res_fin = xf
        else:
            res_gcn = _bn_train(abd[:, off_down: off_down + c_out],
                                g_dn_ref[...], be_dn_ref[...])
            res_fin = _bn_train(abd[:, off_res: off_res + c_out],
                                g_rs_ref[...], be_rs_ref[...])
        gcn_out = jnp.maximum(_bn_train(y_gcn, g_gcn_ref[...], be_gcn_ref[...]) + res_gcn,
                              0.0)

        # ---- unit_tcn_m: three branch 1x1 convs as one wide GEMM
        h = jnp.dot(gcn_out.astype(jnp.bfloat16), w1_ref[...].astype(jnp.bfloat16),
                    preferred_element_type=jnp.float32) + b1_ref[...]   # (m, 3*c_out)
        hb = h.astype(jnp.bfloat16)

        # temporal halo buffer: zero ONLY the halo rows, write the body once
        hp_ref[:, :MAX_PAD] = jnp.zeros((n, MAX_PAD, v, c3), jnp.bfloat16)
        hp_ref[:, MAX_PAD + t:] = jnp.zeros((n, MAX_PAD, v, c3), jnp.bfloat16)
        hp_ref[:, MAX_PAD:MAX_PAD + t] = hb.reshape(n, t, v, c3)

        # per-branch temporal conv (only the useful taps), register accumulation,
        # BN + residual + ReLU epilogue done per branch (the concat is free: each
        # branch owns a disjoint channel slice of the output).
        for j, k in enumerate(TCN_KS):
            pad = (k - 1) // 2
            c_lo = j * c_out
            if k == 1:
                yj = jnp.dot(hb[:, c_lo:c_lo + c_out], wk1_ref[...].astype(jnp.bfloat16),
                             preferred_element_type=jnp.float32)
            else:
                wk_ref = wk3_ref if k == 3 else wk7_ref
                yj = jnp.zeros((m, mid), jnp.float32)
                for kk in range(k):
                    dt = kk - pad
                    xs = hp_ref[:, MAX_PAD + dt: MAX_PAD + dt + t, :, c_lo:c_lo + c_out]
                    yj = yj + jnp.dot(xs.reshape(m, c_out),
                                      wk_ref[kk].astype(jnp.bfloat16),
                                      preferred_element_type=jnp.float32)
            yj = yj + b2_ref[:, j * mid:(j + 1) * mid]
            ybn = _bn_train(yj, g_tcn_ref[:, j * mid:(j + 1) * mid],
                            be_tcn_ref[:, j * mid:(j + 1) * mid])
            # TODO(synk): at realistic c_out make this store lane-dense (M on lanes).
            o_ref[:, j * mid:(j + 1) * mid] = jnp.maximum(
                ybn + res_fin[:, j * mid:(j + 1) * mid], 0.0)

    return kern


# ----------------------------------------------------------------------------
# Wrapper
# ----------------------------------------------------------------------------
def tcn_gcn_unit_forward(x, params):
    n, c_in, t, v = x.shape                         # PyTorch NCHW: (N, C_in, T, V)
    c_out = params["g_gcn"].shape[-1]
    inter = c_out // 4
    m = n * t * v
    identity = (c_in == c_out)

    # rows ordered (N, T, V), channels last
    x_flat = jnp.transpose(x, (0, 2, 3, 1)).reshape(m, c_in)
    adj_t = jnp.transpose(params["A"] + params["PA"], (0, 2, 1))   # (A + PA)[i]^T

    kern = _make_unit_kernel(n=n, t=t, v=v, c_in=c_in, c_out=c_out,
                             inter=inter, identity_res=identity)

    vspec = pl.BlockSpec(memory_space=pltpu.MemorySpace.VMEM)
    args = [x_flat, params["w_cat"], params["b_cat"], adj_t,
            params["g_gcn"], params["be_gcn"],
            params["w1_cat"], params["b1_cat"],
            params["wk1"], params["wk3"], params["wk7"], params["b2"],
            params["g_tcn"], params["be_tcn"]]
    if not identity:
        args += [params["g_down"], params["be_down"],
                 params["g_res"], params["be_res"]]

    out_flat = pl.pallas_call(
        kern,
        out_shape=jax.ShapeDtypeStruct((m, c_out), jnp.float32),
        in_specs=[vspec] * len(args),
        out_specs=vspec,
        scratch_shapes=[pltpu.VMEM((n, t + 2 * MAX_PAD, v, 3 * c_out), jnp.bfloat16)],
    )(*args)

    return jnp.transpose(out_flat.reshape(n, t, v, c_out), (0, 3, 1, 2))   # NCHW out


# ----------------------------------------------------------------------------
# Parameter initialization (deterministic, synthetic, pre-packed for the kernel)
# ----------------------------------------------------------------------------
def init_params(key, c_in, c_out, v):
    assert c_out % 4 == 0 and c_out % 3 == 0
    inter = c_out // 4
    mid = c_out // 3
    keys = iter(jax.random.split(key, 32))

    def nrm(shape, std):
        return std * jax.random.normal(next(keys), shape, dtype=jnp.float32)

    p = {}
    p["A"] = jax.random.uniform(next(keys), (NUM_SUBSET, v, v), jnp.float32) * 0.1
    p["PA"] = jnp.full((NUM_SUBSET, v, v), 1e-6, jnp.float32)

    # fused pointwise GEMM: [a0 a1 a2 | b0 b1 b2 | d0 d1 d2 | (down) | (res)]
    wa = [nrm((c_in, inter), (2.0 / inter) ** 0.5) for _ in range(NUM_SUBSET)]
    wb = [nrm((c_in, inter), (2.0 / inter) ** 0.5) for _ in range(NUM_SUBSET)]
    wd = [nrm((c_in, c_out), (2.0 / (c_out * c_in * NUM_SUBSET)) ** 0.5)
          for _ in range(NUM_SUBSET)]
    blocks = wa + wb + wd
    if c_in != c_out:
        blocks.append(nrm((c_in, c_out), (2.0 / c_out) ** 0.5))   # down 1x1 conv
        blocks.append(nrm((c_in, c_out), (2.0 / c_out) ** 0.5))   # residual unit_tcn conv
        p["g_down"] = jnp.ones((1, c_out), jnp.float32)
        p["be_down"] = jnp.zeros((1, c_out), jnp.float32)
        p["g_res"] = jnp.ones((1, c_out), jnp.float32)
        p["be_res"] = jnp.zeros((1, c_out), jnp.float32)
    p["w_cat"] = jnp.concatenate(blocks, axis=1)
    # All packed biases are 0 at init (conv_init / conv_branch_init). The conv_d bias
    # block must stay 0 here because conv_d is applied before the joint aggregation.
    p["b_cat"] = jnp.zeros((1, p["w_cat"].shape[1]), jnp.float32)

    p["g_gcn"] = jnp.full((1, c_out), 1e-6, jnp.float32)          # bn_init(self.bn, 1e-6)
    p["be_gcn"] = jnp.zeros((1, c_out), jnp.float32)

    # unit_tcn_m: conv11/21/31 concatenated; conv12/22/32 as per-tap (c_out, mid) weights
    w1 = [nrm((c_out, c_out), (2.0 / c_out) ** 0.5) for _ in range(3)]
    p["w1_cat"] = jnp.concatenate(w1, axis=1)                      # (c_out, 3*c_out)
    p["b1_cat"] = jnp.zeros((1, 3 * c_out), jnp.float32)
    p["wk1"] = nrm((c_out, mid), (2.0 / (mid * 1)) ** 0.5)
    p["wk3"] = nrm((3, c_out, mid), (2.0 / (mid * 3)) ** 0.5)
    p["wk7"] = nrm((7, c_out, mid), (2.0 / (mid * 7)) ** 0.5)
    p["b2"] = jnp.zeros((1, c_out), jnp.float32)
    p["g_tcn"] = jnp.ones((1, c_out), jnp.float32)
    p["be_tcn"] = jnp.zeros((1, c_out), jnp.float32)
    return p


# ----------------------------------------------------------------------------
if __name__ == "__main__":
    N, C, T, V = 2, 12, 8, 16        # C_in == C_out == 12 (must be divisible by 3 and 4)
    key = jax.random.PRNGKey(0)
    kx, kp = jax.random.split(key)
    x = jax.random.normal(kx, (N, C, T, V), dtype=jnp.float32)
    params = init_params(kp, C, C, V)

    fwd = jax.jit(tcn_gcn_unit_forward)
    out = jax.block_until_ready(fwd(x, params))
    assert out.shape == (N, C, T, V)
    assert bool(jnp.all(jnp.isfinite(out))) and bool(jnp.all(out >= 0.0))
    print("KERNEL_OK")
</pallas_src>

<mosaic_0001>
module attributes {stable_mosaic.version = 11 : i64} {
  func.func @kern(%arg0: memref<256x12xf32, #tpu.memory_space<vmem>>, %arg1: memref<12x54xf32, #tpu.memory_space<vmem>>, %arg2: memref<1x54xf32, #tpu.memory_space<vmem>>, %arg3: memref<3x16x16xf32, #tpu.memory_space<vmem>>, %arg4: memref<1x12xf32, #tpu.memory_space<vmem>>, %arg5: memref<1x12xf32, #tpu.memory_space<vmem>>, %arg6: memref<12x36xf32, #tpu.memory_space<vmem>>, %arg7: memref<1x36xf32, #tpu.memory_space<vmem>>, %arg8: memref<12x4xf32, #tpu.memory_space<vmem>>, %arg9: memref<3x12x4xf32, #tpu.memory_space<vmem>>, %arg10: memref<7x12x4xf32, #tpu.memory_space<vmem>>, %arg11: memref<1x12xf32, #tpu.memory_space<vmem>>, %arg12: memref<1x12xf32, #tpu.memory_space<vmem>>, %arg13: memref<1x12xf32, #tpu.memory_space<vmem>>, %arg14: memref<256x12xf32, #tpu.memory_space<vmem>>, %arg15: memref<2x14x16x36xbf16, #tpu.memory_space<vmem>>) attributes {dimension_semantics = [], scalar_prefetch = 0 : i64, scratch_operands = 1 : i64, tpu.core_type = #tpu.core_type<tc>} {
    %c0 = arith.constant 0 : index
    %c0_0 = arith.constant 0 : index
    %0 = vector.load %arg0[%c0, %c0_0] : memref<256x12xf32, #tpu.memory_space<vmem>>, vector<256x12xf32>
    %1 = arith.truncf %0 : vector<256x12xf32> to vector<256x12xbf16>
    %c0_1 = arith.constant 0 : index
    %c0_2 = arith.constant 0 : index
    %2 = vector.load %arg1[%c0_1, %c0_2] : memref<12x54xf32, #tpu.memory_space<vmem>>, vector<12x54xf32>
    %3 = arith.truncf %2 : vector<12x54xf32> to vector<12x54xbf16>
    %cst = arith.constant dense<0.000000e+00> : vector<256x54xf32>
    %4 = tpu.matmul %1, %3, %cst {dimension_numbers = #tpu.dot_dimension_numbers<[1], [0], [0], [1], [0, 0, 1, 1], [], []>} : vector<256x12xbf16>, vector<12x54xbf16>, vector<256x54xf32> -> vector<256x54xf32>
    %c0_3 = arith.constant 0 : index
    %c0_4 = arith.constant 0 : index
    %5 = vector.load %arg2[%c0_3, %c0_4] : memref<1x54xf32, #tpu.memory_space<vmem>>, vector<1x54xf32>
    %6 = vector.broadcast %5 : vector<1x54xf32> to vector<256x54xf32>
    %7 = arith.addf %4, %6 : vector<256x54xf32>
    %cst_5 = arith.constant 0.000000e+00 : f32
    %8 = vector.broadcast %cst_5 : f32 to vector<16x16x12xf32>
    %9 = vector.extract_strided_slice %7 {offsets = [0, 0], sizes = [256, 3], strides = [1, 1]} : vector<256x54xf32> to vector<256x3xf32>
    %10 = vector.shape_cast %9 : vector<256x3xf32> to vector<16x16x3xf32>
    %11 = vector.extract_strided_slice %7 {offsets = [0, 9], sizes = [256, 3], strides = [1, 1]} : vector<256x54xf32> to vector<256x3xf32>
    %12 = vector.shape_cast %11 : vector<256x3xf32> to vector<16x16x3xf32>
    %13 = arith.truncf %12 : vector<16x16x3xf32> to vector<16x16x3xbf16>
    %14 = arith.truncf %10 : vector<16x16x3xf32> to vector<16x16x3xbf16>
    "tpu.trace_start"() <{level = 10 : i32, message = "bwc,bvc->bwv"}> : () -> ()
    %cst_6 = arith.constant dense<0.000000e+00> : vector<16x16x16xf32>
    %15 = tpu.matmul %13, %14, %cst_6 {dimension_numbers = #tpu.dot_dimension_numbers<[2], [2], [1], [1], [0, 0, 0, 1, 1, 1], [0], [0]>} : vector<16x16x3xbf16>, vector<16x16x3xbf16>, vector<16x16x16xf32> -> vector<16x16x16xf32>
    "tpu.trace_stop"() : () -> ()
    %16 = vector.shape_cast %15 : vector<16x16x16xf32> to vector<2x8x16x16xf32>
    %cst_7 = arith.constant dense<0.000000e+00> : vector<2x16x16xf32>
    %17 = vector.multi_reduction <add>, %16, %cst_7 [1] : vector<2x8x16x16xf32> to vector<2x16x16xf32>
    %cst_8 = arith.constant 0.0416666679 : f32
    %18 = vector.broadcast %cst_8 : f32 to vector<2x16x16xf32>
    %19 = arith.mulf %17, %18 : vector<2x16x16xf32>
    %cst_9 = arith.constant dense<0xFF800000> : vector<2x16xf32>
    %20 = vector.multi_reduction <maximumf>, %19, %cst_9 [2] : vector<2x16x16xf32> to vector<2x16xf32>
    %21 = vector.shape_cast %20 : vector<2x16xf32> to vector<2x16x1xf32>
    %22 = vector.broadcast %21 : vector<2x16x1xf32> to vector<2x16x16xf32>
    %23 = arith.subf %19, %22 : vector<2x16x16xf32>
    %24 = math.exp %23 : vector<2x16x16xf32>
    %cst_10 = arith.constant dense<0.000000e+00> : vector<2x16xf32>
    %25 = vector.multi_reduction <add>, %24, %cst_10 [2] : vector<2x16x16xf32> to vector<2x16xf32>
    %26 = vector.shape_cast %25 : vector<2x16xf32> to vector<2x16x1xf32>
    %27 = tpu.reciprocal %26 {approx = true} : vector<2x16x1xf32> -> vector<2x16x1xf32>
    %28 = vector.broadcast %27 : vector<2x16x1xf32> to vector<2x16x16xf32>
    %29 = arith.mulf %24, %28 : vector<2x16x16xf32>
    %c0_11 = arith.constant 0 : index
    %c0_12 = arith.constant 0 : index
    %c0_13 = arith.constant 0 : index
    %30 = vector.load %arg3[%c0_11, %c0_12, %c0_13] : memref<3x16x16xf32, #tpu.memory_space<vmem>>, vector<1x16x16xf32>
    %31 = vector.shape_cast %30 : vector<1x16x16xf32> to vector<16x16xf32>
    %32 = vector.shape_cast %31 : vector<16x16xf32> to vector<1x16x16xf32>
    %33 = vector.broadcast %32 : vector<1x16x16xf32> to vector<2x16x16xf32>
    %34 = arith.addf %29, %33 : vector<2x16x16xf32>
    %35 = vector.extract_strided_slice %7 {offsets = [0, 18], sizes = [256, 12], strides = [1, 1]} : vector<256x54xf32> to vector<256x12xf32>
    %36 = arith.truncf %35 : vector<256x12xf32> to vector<256x12xbf16>
    %37 = vector.shape_cast %36 : vector<256x12xbf16> to vector<16x16x12xbf16>
    %38 = arith.truncf %34 : vector<2x16x16xf32> to vector<2x16x16xbf16>
    %39 = vector.shape_cast %38 : vector<2x16x16xbf16> to vector<2x1x16x16xbf16>
    %40 = vector.shape_cast %39 : vector<2x1x16x16xbf16> to vector<2x1x16x16xbf16>
    %41 = vector.broadcast %40 : vector<2x1x16x16xbf16> to vector<2x8x16x16xbf16>
    %42 = vector.shape_cast %41 : vector<2x8x16x16xbf16> to vector<16x16x16xbf16>
    "tpu.trace_start"() <{level = 10 : i32, message = "bwv,bvo->bwo"}> : () -> ()
    %cst_14 = arith.constant dense<0.000000e+00> : vector<16x16x12xf32>
    %43 = tpu.matmul %42, %37, %cst_14 {dimension_numbers = #tpu.dot_dimension_numbers<[2], [1], [1], [2], [0, 0, 0, 1, 1, 2], [0], [0]>} : vector<16x16x16xbf16>, vector<16x16x12xbf16>, vector<16x16x12xf32> -> vector<16x16x12xf32>
    "tpu.trace_stop"() : () -> ()
    %44 = arith.addf %8, %43 : vector<16x16x12xf32>
    %45 = vector.extract_strided_slice %7 {offsets = [0, 3], sizes = [256, 3], strides = [1, 1]} : vector<256x54xf32> to vector<256x3xf32>
    %46 = vector.shape_cast %45 : vector<256x3xf32> to vector<16x16x3xf32>
    %47 = vector.extract_strided_slice %7 {offsets = [0, 12], sizes = [256, 3], strides = [1, 1]} : vector<256x54xf32> to vector<256x3xf32>
    %48 = vector.shape_cast %47 : vector<256x3xf32> to vector<16x16x3xf32>
    %49 = arith.truncf %48 : vector<16x16x3xf32> to vector<16x16x3xbf16>
    %50 = arith.truncf %46 : vector<16x16x3xf32> to vector<16x16x3xbf16>
    "tpu.trace_start"() <{level = 10 : i32, message = "bwc,bvc->bwv"}> : () -> ()
    %cst_15 = arith.constant dense<0.000000e+00> : vector<16x16x16xf32>
    %51 = tpu.matmul %49, %50, %cst_15 {dimension_numbers = #tpu.dot_dimension_numbers<[2], [2], [1], [1], [0, 0, 0, 1, 1, 1], [0], [0]>} : vector<16x16x3xbf16>, vector<16x16x3xbf16>, vector<16x16x16xf32> -> vector<16x16x16xf32>
    "tpu.trace_stop"() : () -> ()
    %52 = vector.shape_cast %51 : vector<16x16x16xf32> to vector<2x8x16x16xf32>
    %cst_16 = arith.constant dense<0.000000e+00> : vector<2x16x16xf32>
    %53 = vector.multi_reduction <add>, %52, %cst_16 [1] : vector<2x8x16x16xf32> to vector<2x16x16xf32>
    %cst_17 = arith.constant 0.0416666679 : f32
    %54 = vector.broadcast %cst_17 : f32 to vector<2x16x16xf32>
    %55 = arith.mulf %53, %54 : vector<2x16x16xf32>
    %cst_18 = arith.constant dense<0xFF800000> : vector<2x16xf32>
    %56 = vector.multi_reduction <maximumf>, %55, %cst_18 [2] : vector<2x16x16xf32> to vector<2x16xf32>
    %57 = vector.shape_cast %56 : vector<2x16xf32> to vector<2x16x1xf32>
    %58 = vector.broadcast %57 : vector<2x16x1xf32> to vector<2x16x16xf32>
    %59 = arith.subf %55, %58 : vector<2x16x16xf32>
    %60 = math.exp %59 : vector<2x16x16xf32>
    %cst_19 = arith.constant dense<0.000000e+00> : vector<2x16xf32>
    %61 = vector.multi_reduction <add>, %60, %cst_19 [2] : vector<2x16x16xf32> to vector<2x16xf32>
    %62 = vector.shape_cast %61 : vector<2x16xf32> to vector<2x16x1xf32>
    %63 = tpu.reciprocal %62 {approx = true} : vector<2x16x1xf32> -> vector<2x16x1xf32>
    %64 = vector.broadcast %63 : vector<2x16x1xf32> to vector<2x16x16xf32>
    %65 = arith.mulf %60, %64 : vector<2x16x16xf32>
    %c1 = arith.constant 1 : index
    %c0_20 = arith.constant 0 : index
    %c0_21 = arith.constant 0 : index
    %66 = vector.load %arg3[%c1, %c0_20, %c0_21] : memref<3x16x16xf32, #tpu.memory_space<vmem>>, vector<1x16x16xf32>
    %67 = vector.shape_cast %66 : vector<1x16x16xf32> to vector<16x16xf32>
    %68 = vector.shape_cast %67 : vector<16x16xf32> to vector<1x16x16xf32>
    %69 = vector.broadcast %68 : vector<1x16x16xf32> to vector<2x16x16xf32>
    %70 = arith.addf %65, %69 : vector<2x16x16xf32>
    %71 = vector.extract_strided_slice %7 {offsets = [0, 30], sizes = [256, 12], strides = [1, 1]} : vector<256x54xf32> to vector<256x12xf32>
    %72 = arith.truncf %71 : vector<256x12xf32> to vector<256x12xbf16>
    %73 = vector.shape_cast %72 : vector<256x12xbf16> to vector<16x16x12xbf16>
    %74 = arith.truncf %70 : vector<2x16x16xf32> to vector<2x16x16xbf16>
    %75 = vector.shape_cast %74 : vector<2x16x16xbf16> to vector<2x1x16x16xbf16>
    %76 = vector.shape_cast %75 : vector<2x1x16x16xbf16> to vector<2x1x16x16xbf16>
    %77 = vector.broadcast %76 : vector<2x1x16x16xbf16> to vector<2x8x16x16xbf16>
    %78 = vector.shape_cast %77 : vector<2x8x16x16xbf16> to vector<16x16x16xbf16>
    "tpu.trace_start"() <{level = 10 : i32, message = "bwv,bvo->bwo"}> : () -> ()
    %cst_22 = arith.constant dense<0.000000e+00> : vector<16x16x12xf32>
    %79 = tpu.matmul %78, %73, %cst_22 {dimension_numbers = #tpu.dot_dimension_numbers<[2], [1], [1], [2], [0, 0, 0, 1, 1, 2], [0], [0]>} : vector<16x16x16xbf16>, vector<16x16x12xbf16>, vector<16x16x12xf32> -> vector<16x16x12xf32>
    "tpu.trace_stop"() : () -> ()
    %80 = arith.addf %44, %79 : vector<16x16x12xf32>
    %81 = vector.extract_strided_slice %7 {offsets = [0, 6], sizes = [256, 3], strides = [1, 1]} : vector<256x54xf32> to vector<256x3xf32>
    %82 = vector.shape_cast %81 : vector<256x3xf32> to vector<16x16x3xf32>
    %83 = vector.extract_strided_slice %7 {offsets = [0, 15], sizes = [256, 3], strides = [1, 1]} : vector<256x54xf32> to vector<256x3xf32>
    %84 = vector.shape_cast %83 : vector<256x3xf32> to vector<16x16x3xf32>
    %85 = arith.truncf %84 : vector<16x16x3xf32> to vector<16x16x3xbf16>
    %86 = arith.truncf %82 : vector<16x16x3xf32> to vector<16x16x3xbf16>
    "tpu.trace_start"() <{level = 10 : i32, message = "bwc,bvc->bwv"}> : () -> ()
    %cst_23 = arith.constant dense<0.000000e+00> : vector<16x16x16xf32>
    %87 = tpu.matmul %85, %86, %cst_23 {dimension_numbers = #tpu.dot_dimension_numbers<[2], [2], [1], [1], [0, 0, 0, 1, 1, 1], [0], [0]>} : vector<16x16x3xbf16>, vector<16x16x3xbf16>, vector<16x16x16xf32> -> vector<16x16x16xf32>
    "tpu.trace_stop"() : () -> ()
    %88 = vector.shape_cast %87 : vector<16x16x16xf32> to vector<2x8x16x16xf32>
    %cst_24 = arith.constant dense<0.000000e+00> : vector<2x16x16xf32>
    %89 = vector.multi_reduction <add>, %88, %cst_24 [1] : vector<2x8x16x16xf32> to vector<2x16x16xf32>
    %cst_25 = arith.constant 0.0416666679 : f32
    %90 = vector.broadcast %cst_25 : f32 to vector<2x16x16xf32>
    %91 = arith.mulf %89, %90 : vector<2x16x16xf32>
    %cst_26 = arith.constant dense<0xFF800000> : vector<2x16xf32>
    %92 = vector.multi_reduction <maximumf>, %91, %cst_26 [2] : vector<2x16x16xf32> to vector<2x16xf32>
    %93 = vector.shape_cast %92 : vector<2x16xf32> to vector<2x16x1xf32>
    %94 = vector.broadcast %93 : vector<2x16x1xf32> to vector<2x16x16xf32>
    %95 = arith.subf %91, %94 : vector<2x16x16xf32>
    %96 = math.exp %95 : vector<2x16x16xf32>
    %cst_27 = arith.constant dense<0.000000e+00> : vector<2x16xf32>
    %97 = vector.multi_reduction <add>, %96, %cst_27 [2] : vector<2x16x16xf32> to vector<2x16xf32>
    %98 = vector.shape_cast %97 : vector<2x16xf32> to vector<2x16x1xf32>
    %99 = tpu.reciprocal %98 {approx = true} : vector<2x16x1xf32> -> vector<2x16x1xf32>
    %100 = vector.broadcast %99 : vector<2x16x1xf32> to vector<2x16x16xf32>
    %101 = arith.mulf %96, %100 : vector<2x16x16xf32>
    %c2 = arith.constant 2 : index
    %c0_28 = arith.constant 0 : index
    %c0_29 = arith.constant 0 : index
    %102 = vector.load %arg3[%c2, %c0_28, %c0_29] : memref<3x16x16xf32, #tpu.memory_space<vmem>>, vector<1x16x16xf32>
    %103 = vector.shape_cast %102 : vector<1x16x16xf32> to vector<16x16xf32>
    %104 = vector.shape_cast %103 : vector<16x16xf32> to vector<1x16x16xf32>
    %105 = vector.broadcast %104 : vector<1x16x16xf32> to vector<2x16x16xf32>
    %106 = arith.addf %101, %105 : vector<2x16x16xf32>
    %107 = vector.extract_strided_slice %7 {offsets = [0, 42], sizes = [256, 12], strides = [1, 1]} : vector<256x54xf32> to vector<256x12xf32>
    %108 = arith.truncf %107 : vector<256x12xf32> to vector<256x12xbf16>
    %109 = vector.shape_cast %108 : vector<256x12xbf16> to vector<16x16x12xbf16>
    %110 = arith.truncf %106 : vector<2x16x16xf32> to vector<2x16x16xbf16>
    %111 = vector.shape_cast %110 : vector<2x16x16xbf16> to vector<2x1x16x16xbf16>
    %112 = vector.shape_cast %111 : vector<2x1x16x16xbf16> to vector<2x1x16x16xbf16>
    %113 = vector.broadcast %112 : vector<2x1x16x16xbf16> to vector<2x8x16x16xbf16>
    %114 = vector.shape_cast %113 : vector<2x8x16x16xbf16> to vector<16x16x16xbf16>
    "tpu.trace_start"() <{level = 10 : i32, message = "bwv,bvo->bwo"}> : () -> ()
    %cst_30 = arith.constant dense<0.000000e+00> : vector<16x16x12xf32>
    %115 = tpu.matmul %114, %109, %cst_30 {dimension_numbers = #tpu.dot_dimension_numbers<[2], [1], [1], [2], [0, 0, 0, 1, 1, 2], [0], [0]>} : vector<16x16x16xbf16>, vector<16x16x12xbf16>, vector<16x16x12xf32> -> vector<16x16x12xf32>
    "tpu.trace_stop"() : () -> ()
    %116 = arith.addf %80, %115 : vector<16x16x12xf32>
    %117 = vector.shape_cast %116 : vector<16x16x12xf32> to vector<256x12xf32>
    %c0_31 = arith.constant 0 : index
    %c0_32 = arith.constant 0 : index
    %118 = vector.load %arg4[%c0_31, %c0_32] : memref<1x12xf32, #tpu.memory_space<vmem>>, vector<1x12xf32>
    %c0_33 = arith.constant 0 : index
    %c0_34 = arith.constant 0 : index
    %119 = vector.load %arg5[%c0_33, %c0_34] : memref<1x12xf32, #tpu.memory_space<vmem>>, vector<1x12xf32>
    %cst_35 = arith.constant dense<0.000000e+00> : vector<12xf32>
    %120 = vector.multi_reduction <add>, %117, %cst_35 [0] : vector<256x12xf32> to vector<12xf32>
    %121 = vector.shape_cast %120 : vector<12xf32> to vector<1x12xf32>
    %cst_36 = arith.constant 2.560000e+02 : f32
    %122 = vector.broadcast %cst_36 : f32 to vector<1x12xf32>
    %123 = arith.divf %121, %122 : vector<1x12xf32>
    %124 = vector.broadcast %123 : vector<1x12xf32> to vector<256x12xf32>
    %125 = arith.subf %117, %124 : vector<256x12xf32>
    %126 = arith.mulf %125, %125 : vector<256x12xf32>
    %cst_37 = arith.constant dense<0.000000e+00> : vector<12xf32>
    %127 = vector.multi_reduction <add>, %126, %cst_37 [0] : vector<256x12xf32> to vector<12xf32>
    %128 = vector.shape_cast %127 : vector<12xf32> to vector<1x12xf32>
    %cst_38 = arith.constant 2.560000e+02 : f32
    %129 = vector.broadcast %cst_38 : f32 to vector<1x12xf32>
    %130 = arith.divf %128, %129 : vector<1x12xf32>
    %cst_39 = arith.constant 9.99999974E-6 : f32
    %131 = vector.broadcast %cst_39 : f32 to vector<1x12xf32>
    %132 = arith.addf %130, %131 : vector<1x12xf32>
    %133 = math.rsqrt %132 : vector<1x12xf32>
    %134 = arith.mulf %118, %133 : vector<1x12xf32>
    %135 = vector.broadcast %134 : vector<1x12xf32> to vector<256x12xf32>
    %136 = arith.mulf %125, %135 : vector<256x12xf32>
    %137 = vector.broadcast %119 : vector<1x12xf32> to vector<256x12xf32>
    %138 = arith.addf %136, %137 : vector<256x12xf32>
    %139 = arith.addf %138, %0 : vector<256x12xf32>
    %cst_40 = arith.constant 0.000000e+00 : f32
    %140 = vector.broadcast %cst_40 : f32 to vector<256x12xf32>
    %141 = arith.maximumf %139, %140 : vector<256x12xf32>
    %142 = arith.truncf %141 : vector<256x12xf32> to vector<256x12xbf16>
    %c0_41 = arith.constant 0 : index
    %c0_42 = arith.constant 0 : index
    %143 = vector.load %arg6[%c0_41, %c0_42] : memref<12x36xf32, #tpu.memory_space<vmem>>, vector<12x36xf32>
    %144 = arith.truncf %143 : vector<12x36xf32> to vector<12x36xbf16>
    %cst_43 = arith.constant dense<0.000000e+00> : vector<256x36xf32>
    %145 = tpu.matmul %142, %144, %cst_43 {dimension_numbers = #tpu.dot_dimension_numbers<[1], [0], [0], [1], [0, 0, 1, 1], [], []>} : vector<256x12xbf16>, vector<12x36xbf16>, vector<256x36xf32> -> vector<256x36xf32>
    %c0_44 = arith.constant 0 : index
    %c0_45 = arith.constant 0 : index
    %146 = vector.load %arg7[%c0_44, %c0_45] : memref<1x36xf32, #tpu.memory_space<vmem>>, vector<1x36xf32>
    %147 = vector.broadcast %146 : vector<1x36xf32> to vector<256x36xf32>
    %148 = arith.addf %145, %147 : vector<256x36xf32>
    %149 = arith.truncf %148 : vector<256x36xf32> to vector<256x36xbf16>
    %cst_46 = arith.constant 0.000000e+00 : bf16
    %150 = vector.broadcast %cst_46 : bf16 to vector<2x3x16x36xbf16>
    %c0_47 = arith.constant 0 : index
    %c0_48 = arith.constant 0 : index
    %c0_49 = arith.constant 0 : index
    %c0_50 = arith.constant 0 : index
    %151 = vector.load %arg15[%c0_47, %c0_48, %c0_49, %c0_50] : memref<2x14x16x36xbf16, #tpu.memory_space<vmem>>, vector<2x3x16x36xbf16>
    tpu.vector_store %arg15[%c0_47, %c0_48, %c0_49, %c0_50], %150 {strides = array<i32>} : memref<2x14x16x36xbf16, #tpu.memory_space<vmem>>, vector<2x3x16x36xbf16>,
    %cst_51 = arith.constant 0.000000e+00 : bf16
    %152 = vector.broadcast %cst_51 : bf16 to vector<2x3x16x36xbf16>
    %c0_52 = arith.constant 0 : index
    %c11 = arith.constant 11 : index
    %c0_53 = arith.constant 0 : index
    %c0_54 = arith.constant 0 : index
    %153 = vector.load %arg15[%c0_52, %c11, %c0_53, %c0_54] : memref<2x14x16x36xbf16, #tpu.memory_space<vmem>>, vector<2x3x16x36xbf16>
    tpu.vector_store %arg15[%c0_52, %c11, %c0_53, %c0_54], %152 {strides = array<i32>} : memref<2x14x16x36xbf16, #tpu.memory_space<vmem>>, vector<2x3x16x36xbf16>,
    %154 = vector.shape_cast %149 : vector<256x36xbf16> to vector<2x8x16x36xbf16>
    %c0_55 = arith.constant 0 : index
    %c3 = arith.constant 3 : index
    %c0_56 = arith.constant 0 : index
    %c0_57 = arith.constant 0 : index
    %155 = vector.load %arg15[%c0_55, %c3, %c0_56, %c0_57] : memref<2x14x16x36xbf16, #tpu.memory_space<vmem>>, vector<2x8x16x36xbf16>
    tpu.vector_store %arg15[%c0_55, %c3, %c0_56, %c0_57], %154 {strides = array<i32>} : memref<2x14x16x36xbf16, #tpu.memory_space<vmem>>, vector<2x8x16x36xbf16>,
    %156 = vector.extract_strided_slice %149 {offsets = [0, 0], sizes = [256, 12], strides = [1, 1]} : vector<256x36xbf16> to vector<256x12xbf16>
    %c0_58 = arith.constant 0 : index
    %c0_59 = arith.constant 0 : index
    %157 = vector.load %arg8[%c0_58, %c0_59] : memref<12x4xf32, #tpu.memory_space<vmem>>, vector<12x4xf32>
    %158 = arith.truncf %157 : vector<12x4xf32> to vector<12x4xbf16>
    %cst_60 = arith.constant dense<0.000000e+00> : vector<256x4xf32>
    %159 = tpu.matmul %156, %158, %cst_60 {dimension_numbers = #tpu.dot_dimension_numbers<[1], [0], [0], [1], [0, 0, 1, 1], [], []>} : vector<256x12xbf16>, vector<12x4xbf16>, vector<256x4xf32> -> vector<256x4xf32>
    %c0_61 = arith.constant 0 : index
    %c0_62 = arith.constant 0 : index
    %160 = vector.load %arg11[%c0_61, %c0_62] : memref<1x12xf32, #tpu.memory_space<vmem>>, vector<1x4xf32>
    %161 = vector.broadcast %160 : vector<1x4xf32> to vector<256x4xf32>
    %162 = arith.addf %159, %161 : vector<256x4xf32>
    %c0_63 = arith.constant 0 : index
    %c0_64 = arith.constant 0 : index
    %163 = vector.load %arg12[%c0_63, %c0_64] : memref<1x12xf32, #tpu.memory_space<vmem>>, vector<1x4xf32>
    %c0_65 = arith.constant 0 : index
    %c0_66 = arith.constant 0 : index
    %164 = vector.load %arg13[%c0_65, %c0_66] : memref<1x12xf32, #tpu.memory_space<vmem>>, vector<1x4xf32>
    %cst_67 = arith.constant dense<0.000000e+00> : vector<4xf32>
    %165 = vector.multi_reduction <add>, %162, %cst_67 [0] : vector<256x4xf32> to vector<4xf32>
    %166 = vector.shape_cast %165 : vector<4xf32> to vector<1x4xf32>
    %cst_68 = arith.constant 2.560000e+02 : f32
    %167 = vector.broadcast %cst_68 : f32 to vector<1x4xf32>
    %168 = arith.divf %166, %167 : vector<1x4xf32>
    %169 = vector.broadcast %168 : vector<1x4xf32> to vector<256x4xf32>
    %170 = arith.subf %162, %169 : vector<256x4xf32>
    %171 = arith.mulf %170, %170 : vector<256x4xf32>
    %cst_69 = arith.constant dense<0.000000e+00> : vector<4xf32>
    %172 = vector.multi_reduction <add>, %171, %cst_69 [0] : vector<256x4xf32> to vector<4xf32>
    %173 = vector.shape_cast %172 : vector<4xf32> to vector<1x4xf32>
    %cst_70 = arith.constant 2.560000e+02 : f32
    %174 = vector.broadcast %cst_70 : f32 to vector<1x4xf32>
    %175 = arith.divf %173, %174 : vector<1x4xf32>
    %cst_71 = arith.constant 9.99999974E-6 : f32
    %176 = vector.broadcast %cst_71 : f32 to vector<1x4xf32>
    %177 = arith.addf %175, %176 : vector<1x4xf32>
    %178 = math.rsqrt %177 : vector<1x4xf32>
    %179 = arith.mulf %163, %178 : vector<1x4xf32>
    %180 = vector.broadcast %179 : vector<1x4xf32> to vector<256x4xf32>
    %181 = arith.mulf %170, %180 : vector<256x4xf32>
    %182 = vector.broadcast %164 : vector<1x4xf32> to vector<256x4xf32>
    %183 = arith.addf %181, %182 : vector<256x4xf32>
    %184 = vector.extract_strided_slice %0 {offsets = [0, 0], sizes = [256, 4], strides = [1, 1]} : vector<256x12xf32> to vector<256x4xf32>
    %185 = arith.addf %183, %184 : vector<256x4xf32>
    %cst_72 = arith.constant 0.000000e+00 : f32
    %186 = vector.broadcast %cst_72 : f32 to vector<256x4xf32>
    %187 = arith.maximumf %185, %186 : vector<256x4xf32>
    %c0_73 = arith.constant 0 : index
    %c0_74 = arith.constant 0 : index
    %188 = vector.load %arg14[%c0_73, %c0_74] : memref<256x12xf32, #tpu.memory_space<vmem>>, vector<256x4xf32>
    tpu.vector_store %arg14[%c0_73, %c0_74], %187 {strides = array<i32>} : memref<256x12xf32, #tpu.memory_space<vmem>>, vector<256x4xf32>,
    %cst_75 = arith.constant 0.000000e+00 : f32
    %189 = vector.broadcast %cst_75 : f32 to vector<256x4xf32>
    %c0_76 = arith.constant 0 : index
    %c2_77 = arith.constant 2 : index
    %c0_78 = arith.constant 0 : index
    %c12 = arith.constant 12 : index
    %190 = vector.load %arg15[%c0_76, %c2_77, %c0_78, %c12] : memref<2x14x16x36xbf16, #tpu.memory_space<vmem>>, vector<2x8x16x12xbf16>
    %191 = vector.shape_cast %190 : vector<2x8x16x12xbf16> to vector<256x12xbf16>
    %c0_79 = arith.constant 0 : index
    %c0_80 = arith.constant 0 : index
    %c0_81 = arith.constant 0 : index
    %192 = vector.load %arg9[%c0_79, %c0_80, %c0_81] : memref<3x12x4xf32, #tpu.memory_space<vmem>>, vector<1x12x4xf32>
    %193 = vector.shape_cast %192 : vector<1x12x4xf32> to vector<12x4xf32>
    %194 = arith.truncf %193 : vector<12x4xf32> to vector<12x4xbf16>
    %cst_82 = arith.constant dense<0.000000e+00> : vector<256x4xf32>
    %195 = tpu.matmul %191, %194, %cst_82 {dimension_numbers = #tpu.dot_dimension_numbers<[1], [0], [0], [1], [0, 0, 1, 1], [], []>} : vector<256x12xbf16>, vector<12x4xbf16>, vector<256x4xf32> -> vector<256x4xf32>
    %196 = arith.addf %189, %195 : vector<256x4xf32>
    %c0_83 = arith.constant 0 : index
    %c3_84 = arith.constant 3 : index
    %c0_85 = arith.constant 0 : index
    %c12_86 = arith.constant 12 : index
    %197 = vector.load %arg15[%c0_83, %c3_84, %c0_85, %c12_86] : memref<2x14x16x36xbf16, #tpu.memory_space<vmem>>, vector<2x8x16x12xbf16>
    %198 = vector.shape_cast %197 : vector<2x8x16x12xbf16> to vector<256x12xbf16>
    %c1_87 = arith.constant 1 : index
    %c0_88 = arith.constant 0 : index
    %c0_89 = arith.constant 0 : index
    %199 = vector.load %arg9[%c1_87, %c0_88, %c0_89] : memref<3x12x4xf32, #tpu.memory_space<vmem>>, vector<1x12x4xf32>
    %200 = vector.shape_cast %199 : vector<1x12x4xf32> to vector<12x4xf32>
    %201 = arith.truncf %200 : vector<12x4xf32> to vector<12x4xbf16>
    %cst_90 = arith.constant dense<0.000000e+00> : vector<256x4xf32>
    %202 = tpu.matmul %198, %201, %cst_90 {dimension_numbers = #tpu.dot_dimension_numbers<[1], [0], [0], [1], [0, 0, 1, 1], [], []>} : vector<256x12xbf16>, vector<12x4xbf16>, vector<256x4xf32> -> vector<256x4xf32>
    %203 = arith.addf %196, %202 : vector<256x4xf32>
    %c0_91 = arith.constant 0 : index
    %c4 = arith.constant 4 : index
    %c0_92 = arith.constant 0 : index
    %c12_93 = arith.constant 12 : index
    %204 = vector.load %arg15[%c0_91, %c4, %c0_92, %c12_93] : memref<2x14x16x36xbf16, #tpu.memory_space<vmem>>, vector<2x8x16x12xbf16>
    %205 = vector.shape_cast %204 : vector<2x8x16x12xbf16> to vector<256x12xbf16>
    %c2_94 = arith.constant 2 : index
    %c0_95 = arith.constant 0 : index
    %c0_96 = arith.constant 0 : index
    %206 = vector.load %arg9[%c2_94, %c0_95, %c0_96] : memref<3x12x4xf32, #tpu.memory_space<vmem>>, vector<1x12x4xf32>
    %207 = vector.shape_cast %206 : vector<1x12x4xf32> to vector<12x4xf32>
    %208 = arith.truncf %207 : vector<12x4xf32> to vector<12x4xbf16>
    %cst_97 = arith.constant dense<0.000000e+00> : vector<256x4xf32>
    %209 = tpu.matmul %205, %208, %cst_97 {dimension_numbers = #tpu.dot_dimension_numbers<[1], [0], [0], [1], [0, 0, 1, 1], [], []>} : vector<256x12xbf16>, vector<12x4xbf16>, vector<256x4xf32> -> vector<256x4xf32>
    %210 = arith.addf %203, %209 : vector<256x4xf32>
    %c0_98 = arith.constant 0 : index
    %c4_99 = arith.constant 4 : index
    %211 = vector.load %arg11[%c0_98, %c4_99] : memref<1x12xf32, #tpu.memory_space<vmem>>, vector<1x4xf32>
    %212 = vector.broadcast %211 : vector<1x4xf32> to vector<256x4xf32>
    %213 = arith.addf %210, %212 : vector<256x4xf32>
    %c0_100 = arith.constant 0 : index
    %c4_101 = arith.constant 4 : index
    %214 = vector.load %arg12[%c0_100, %c4_101] : memref<1x12xf32, #tpu.memory_space<vmem>>, vector<1x4xf32>
    %c0_102 = arith.constant 0 : index
    %c4_103 = arith.constant 4 : index
    %215 = vector.load %arg13[%c0_102, %c4_103] : memref<1x12xf32, #tpu.memory_space<vmem>>, vector<1x4xf32>
    %cst_104 = arith.constant dense<0.000000e+00> : vector<4xf32>
    %216 = vector.multi_reduction <add>, %213, %cst_104 [0] : vector<256x4xf32> to vector<4xf32>
    %217 = vector.shape_cast %216 : vector<4xf32> to vector<1x4xf32>
    %cst_105 = arith.constant 2.560000e+02 : f32
    %218 = vector.broadcast %cst_105 : f32 to vector<1x4xf32>
    %219 = arith.divf %217, %218 : vector<1x4xf32>
    %220 = vector.broadcast %219 : vector<1x4xf32> to vector<256x4xf32>
    %221 = arith.subf %213, %220 : vector<256x4xf32>
    %222 = arith.mulf %221, %221 : vector<256x4xf32>
    %cst_106 = arith.constant dense<0.000000e+00> : vector<4xf32>
    %223 = vector.multi_reduction <add>, %222, %cst_106 [0] : vector<256x4xf32> to vector<4xf32>
    %224 = vector.shape_cast %223 : vector<4xf32> to vector<1x4xf32>
    %cst_107 = arith.constant 2.560000e+02 : f32
    %225 = vector.broadcast %cst_107 : f32 to vector<1x4xf32>
    %226 = arith.divf %224, %225 : vector<1x4xf32>
    %cst_108 = arith.constant 9.99999974E-6 : f32
    %227 = vector.broadcast %cst_108 : f32 to vector<1x4xf32>
    %228 = arith.addf %226, %227 : vector<1x4xf32>
    %229 = math.rsqrt %228 : vector<1x4xf32>
    %230 = arith.mulf %214, %229 : vector<1x4xf32>
    %231 = vector.broadcast %230 : vector<1x4xf32> to vector<256x4xf32>
    %232 = arith.mulf %221, %231 : vector<256x4xf32>
    %233 = vector.broadcast %215 : vector<1x4xf32> to vector<256x4xf32>
    %234 = arith.addf %232, %233 : vector<256x4xf32>
    %235 = vector.extract_strided_slice %0 {offsets = [0, 4], sizes = [256, 4], strides = [1, 1]} : vector<256x12xf32> to vector<256x4xf32>
    %236 = arith.addf %234, %235 : vector<256x4xf32>
    %cst_109 = arith.constant 0.000000e+00 : f32
    %237 = vector.broadcast %cst_109 : f32 to vector<256x4xf32>
    %238 = arith.maximumf %236, %237 : vector<256x4xf32>
    %c0_110 = arith.constant 0 : index
    %c4_111 = arith.constant 4 : index
    %239 = vector.load %arg14[%c0_110, %c4_111] : memref<256x12xf32, #tpu.memory_space<vmem>>, vector<256x4xf32>
    tpu.vector_store %arg14[%c0_110, %c4_111], %238 {strides = array<i32>} : memref<256x12xf32, #tpu.memory_space<vmem>>, vector<256x4xf32>,
    %cst_112 = arith.constant 0.000000e+00 : f32
    %240 = vector.broadcast %cst_112 : f32 to vector<256x4xf32>
    %c0_113 = arith.constant 0 : index
    %c0_114 = arith.constant 0 : index
    %c0_115 = arith.constant 0 : index
    %c24 = arith.constant 24 : index
    %241 = vector.load %arg15[%c0_113, %c0_114, %c0_115, %c24] : memref<2x14x16x36xbf16, #tpu.memory_space<vmem>>, vector<2x8x16x12xbf16>
    %242 = vector.shape_cast %241 : vector<2x8x16x12xbf16> to vector<256x12xbf16>
    %c0_116 = arith.constant 0 : index
    %c0_117 = arith.constant 0 : index
    %c0_118 = arith.constant 0 : index
    %243 = vector.load %arg10[%c0_116, %c0_117, %c0_118] : memref<7x12x4xf32, #tpu.memory_space<vmem>>, vector<1x12x4xf32>
    %244 = vector.shape_cast %243 : vector<1x12x4xf32> to vector<12x4xf32>
    %245 = arith.truncf %244 : vector<12x4xf32> to vector<12x4xbf16>
    %cst_119 = arith.constant dense<0.000000e+00> : vector<256x4xf32>
    %246 = tpu.matmul %242, %245, %cst_119 {dimension_numbers = #tpu.dot_dimension_numbers<[1], [0], [0], [1], [0, 0, 1, 1], [], []>} : vector<256x12xbf16>, vector<12x4xbf16>, vector<256x4xf32> -> vector<256x4xf32>
    %247 = arith.addf %240, %246 : vector<256x4xf32>
    %c0_120 = arith.constant 0 : index
    %c1_121 = arith.constant 1 : index
    %c0_122 = arith.constant 0 : index
    %c24_123 = arith.constant 24 : index
    %248 = vector.load %arg15[%c0_120, %c1_121, %c0_122, %c24_123] : memref<2x14x16x36xbf16, #tpu.memory_space<vmem>>, vector<2x8x16x12xbf16>
    %249 = vector.shape_cast %248 : vector<2x8x16x12xbf16> to vector<256x12xbf16>
    %c1_124 = arith.constant 1 : index
    %c0_125 = arith.constant 0 : index
    %c0_126 = arith.constant 0 : index
    %250 = vector.load %arg10[%c1_124, %c0_125, %c0_126] : memref<7x12x4xf32, #tpu.memory_space<vmem>>, vector<1x12x4xf32>
    %251 = vector.shape_cast %250 : vector<1x12x4xf32> to vector<12x4xf32>
    %252 = arith.truncf %251 : vector<12x4xf32> to vector<12x4xbf16>
    %cst_127 = arith.constant dense<0.000000e+00> : vector<256x4xf32>
    %253 = tpu.matmul %249, %252, %cst_127 {dimension_numbers = #tpu.dot_dimension_numbers<[1], [0], [0], [1], [0, 0, 1, 1], [], []>} : vector<256x12xbf16>, vector<12x4xbf16>, vector<256x4xf32> -> vector<256x4xf32>
    %254 = arith.addf %247, %253 : vector<256x4xf32>
    %c0_128 = arith.constant 0 : index
    %c2_129 = arith.constant 2 : index
    %c0_130 = arith.constant 0 : index
    %c24_131 = arith.constant 24 : index
    %255 = vector.load %arg15[%c0_128, %c2_129, %c0_130, %c24_131] : memref<2x14x16x36xbf16, #tpu.memory_space<vmem>>, vector<2x8x16x12xbf16>
    %256 = vector.shape_cast %255 : vector<2x8x16x12xbf16> to vector<256x12xbf16>
    %c2_132 = arith.constant 2 : index
    %c0_133 = arith.constant 0 : index
    %c0_134 = arith.constant 0 : index
    %257 = vector.load %arg10[%c2_132, %c0_133, %c0_134] : memref<7x12x4xf32, #tpu.memory_space<vmem>>, vector<1x12x4xf32>
    %258 = vector.shape_cast %257 : vector<1x12x4xf32> to vector<12x4xf32>
    %259 = arith.truncf %258 : vector<12x4xf32> to vector<12x4xbf16>
    %cst_135 = arith.constant dense<0.000000e+00> : vector<256x4xf32>
    %260 = tpu.matmul %256, %259, %cst_135 {dimension_numbers = #tpu.dot_dimension_numbers<[1], [0], [0], [1], [0, 0, 1, 1], [], []>} : vector<256x12xbf16>, vector<12x4xbf16>, vector<256x4xf32> -> vector<256x4xf32>
    %261 = arith.addf %254, %260 : vector<256x4xf32>
    %c0_136 = arith.constant 0 : index
    %c3_137 = arith.constant 3 : index
    %c0_138 = arith.constant 0 : index
    %c24_139 = arith.constant 24 : index
    %262 = vector.load %arg15[%c0_136, %c3_137, %c0_138, %c24_139] : memref<2x14x16x36xbf16, #tpu.memory_space<vmem>>, vector<2x8x16x12xbf16>
    %263 = vector.shape_cast %262 : vector<2x8x16x12xbf16> to vector<256x12xbf16>
    %c3_140 = arith.constant 3 : index
    %c0_141 = arith.constant 0 : index
    %c0_142 = arith.constant 0 : index
    %264 = vector.load %arg10[%c3_140, %c0_141, %c0_142] : memref<7x12x4xf32, #tpu.memory_space<vmem>>, vector<1x12x4xf32>
    %265 = vector.shape_cast %264 : vector<1x12x4xf32> to vector<12x4xf32>
    %266 = arith.truncf %265 : vector<12x4xf32> to vector<12x4xbf16>
    %cst_143 = arith.constant dense<0.000000e+00> : vector<256x4xf32>
    %267 = tpu.matmul %263, %266, %cst_143 {dimension_numbers = #tpu.dot_dimension_numbers<[1], [0], [0], [1], [0, 0, 1, 1], [], []>} : vector<256x12xbf16>, vector<12x4xbf16>, vector<256x4xf32> -> vector<256x4xf32>
    %268 = arith.addf %261, %267 : vector<256x4xf32>
    %c0_144 = arith.constant 0 : index
    %c4_145 = arith.constant 4 : index
    %c0_146 = arith.constant 0 : index
    %c24_147 = arith.constant 24 : index
    %269 = vector.load %arg15[%c0_144, %c4_145, %c0_146, %c24_147] : memref<2x14x16x36xbf16, #tpu.memory_space<vmem>>, vector<2x8x16x12xbf16>
    %270 = vector.shape_cast %269 : vector<2x8x16x12xbf16> to vector<256x12xbf16>
    %c4_148 = arith.constant 4 : index
    %c0_149 = arith.constant 0 : index
    %c0_150 = arith.constant 0 : index
    %271 = vector.load %arg10[%c4_148, %c0_149, %c0_150] : memref<7x12x4xf32, #tpu.memory_space<vmem>>, vector<1x12x4xf32>
    %272 = vector.shape_cast %271 : vector<1x12x4xf32> to vector<12x4xf32>
    %273 = arith.truncf %272 : vector<12x4xf32> to vector<12x4xbf16>
    %cst_151 = arith.constant dense<0.000000e+00> : vector<256x4xf32>
    %274 = tpu.matmul %270, %273, %cst_151 {dimension_numbers = #tpu.dot_dimension_numbers<[1], [0], [0], [1], [0, 0, 1, 1], [], []>} : vector<256x12xbf16>, vector<12x4xbf16>, vector<256x4xf32> -> vector<256x4xf32>
    %275 = arith.addf %268, %274 : vector<256x4xf32>
    %c0_152 = arith.constant 0 : index
    %c5 = arith.constant 5 : index
    %c0_153 = arith.constant 0 : index
    %c24_154 = arith.constant 24 : index
    %276 = vector.load %arg15[%c0_152, %c5, %c0_153, %c24_154] : memref<2x14x16x36xbf16, #tpu.memory_space<vmem>>, vector<2x8x16x12xbf16>
    %277 = vector.shape_cast %276 : vector<2x8x16x12xbf16> to vector<256x12xbf16>
    %c5_155 = arith.constant 5 : index
    %c0_156 = arith.constant 0 : index
    %c0_157 = arith.constant 0 : index
    %278 = vector.load %arg10[%c5_155, %c0_156, %c0_157] : memref<7x12x4xf32, #tpu.memory_space<vmem>>, vector<1x12x4xf32>
    %279 = vector.shape_cast %278 : vector<1x12x4xf32> to vector<12x4xf32>
    %280 = arith.truncf %279 : vector<12x4xf32> to vector<12x4xbf16>
    %cst_158 = arith.constant dense<0.000000e+00> : vector<256x4xf32>
    %281 = tpu.matmul %277, %280, %cst_158 {dimension_numbers = #tpu.dot_dimension_numbers<[1], [0], [0], [1], [0, 0, 1, 1], [], []>} : vector<256x12xbf16>, vector<12x4xbf16>, vector<256x4xf32> -> vector<256x4xf32>
    %282 = arith.addf %275, %281 : vector<256x4xf32>
    %c0_159 = arith.constant 0 : index
    %c6 = arith.constant 6 : index
    %c0_160 = arith.constant 0 : index
    %c24_161 = arith.constant 24 : index
    %283 = vector.load %arg15[%c0_159, %c6, %c0_160, %c24_161] : memref<2x14x16x36xbf16, #tpu.memory_space<vmem>>, vector<2x8x16x12xbf16>
    %284 = vector.shape_cast %283 : vector<2x8x16x12xbf16> to vector<256x12xbf16>
    %c6_162 = arith.constant 6 : index
    %c0_163 = arith.constant 0 : index
    %c0_164 = arith.constant 0 : index
    %285 = vector.load %arg10[%c6_162, %c0_163, %c0_164] : memref<7x12x4xf32, #tpu.memory_space<vmem>>, vector<1x12x4xf32>
    %286 = vector.shape_cast %285 : vector<1x12x4xf32> to vector<12x4xf32>
    %287 = arith.truncf %286 : vector<12x4xf32> to vector<12x4xbf16>
    %cst_165 = arith.constant dense<0.000000e+00> : vector<256x4xf32>
    %288 = tpu.matmul %284, %287, %cst_165 {dimension_numbers = #tpu.dot_dimension_numbers<[1], [0], [0], [1], [0, 0, 1, 1], [], []>} : vector<256x12xbf16>, vector<12x4xbf16>, vector<256x4xf32> -> vector<256x4xf32>
    %289 = arith.addf %282, %288 : vector<256x4xf32>
    %c0_166 = arith.constant 0 : index
    %c8 = arith.constant 8 : index
    %290 = vector.load %arg11[%c0_166, %c8] : memref<1x12xf32, #tpu.memory_space<vmem>>, vector<1x4xf32>
    %291 = vector.broadcast %290 : vector<1x4xf32> to vector<256x4xf32>
    %292 = arith.addf %289, %291 : vector<256x4xf32>
    %c0_167 = arith.constant 0 : index
    %c8_168 = arith.constant 8 : index
    %293 = vector.load %arg12[%c0_167, %c8_168] : memref<1x12xf32, #tpu.memory_space<vmem>>, vector<1x4xf32>
    %c0_169 = arith.constant 0 : index
    %c8_170 = arith.constant 8 : index
    %294 = vector.load %arg13[%c0_169, %c8_170] : memref<1x12xf32, #tpu.memory_space<vmem>>, vector<1x4xf32>
    %cst_171 = arith.constant dense<0.000000e+00> : vector<4xf32>
    %295 = vector.multi_reduction <add>, %292, %cst_171 [0] : vector<256x4xf32> to vector<4xf32>
    %296 = vector.shape_cast %295 : vector<4xf32> to vector<1x4xf32>
    %cst_172 = arith.constant 2.560000e+02 : f32
    %297 = vector.broadcast %cst_172 : f32 to vector<1x4xf32>
    %298 = arith.divf %296, %297 : vector<1x4xf32>
    %299 = vector.broadcast %298 : vector<1x4xf32> to vector<256x4xf32>
    %300 = arith.subf %292, %299 : vector<256x4xf32>
    %301 = arith.mulf %300, %300 : vector<256x4xf32>
    %cst_173 = arith.constant dense<0.000000e+00> : vector<4xf32>
    %302 = vector.multi_reduction <add>, %301, %cst_173 [0] : vector<256x4xf32> to vector<4xf32>
    %303 = vector.shape_cast %302 : vector<4xf32> to vector<1x4xf32>
    %cst_174 = arith.constant 2.560000e+02 : f32
    %304 = vector.broadcast %cst_174 : f32 to vector<1x4xf32>
    %305 = arith.divf %303, %304 : vector<1x4xf32>
    %cst_175 = arith.constant 9.99999974E-6 : f32
    %306 = vector.broadcast %cst_175 : f32 to vector<1x4xf32>
    %307 = arith.addf %305, %306 : vector<1x4xf32>
    %308 = math.rsqrt %307 : vector<1x4xf32>
    %309 = arith.mulf %293, %308 : vector<1x4xf32>
    %310 = vector.broadcast %309 : vector<1x4xf32> to vector<256x4xf32>
    %311 = arith.mulf %300, %310 : vector<256x4xf32>
    %312 = vector.broadcast %294 : vector<1x4xf32> to vector<256x4xf32>
    %313 = arith.addf %311, %312 : vector<256x4xf32>
    %314 = vector.extract_strided_slice %0 {offsets = [0, 8], sizes = [256, 4], strides = [1, 1]} : vector<256x12xf32> to vector<256x4xf32>
    %315 = arith.addf %313, %314 : vector<256x4xf32>
    %cst_176 = arith.constant 0.000000e+00 : f32
    %316 = vector.broadcast %cst_176 : f32 to vector<256x4xf32>
    %317 = arith.maximumf %315, %316 : vector<256x4xf32>
    %c0_177 = arith.constant 0 : index
    %c8_178 = arith.constant 8 : index
    %318 = vector.load %arg14[%c0_177, %c8_178] : memref<256x12xf32, #tpu.memory_space<vmem>>, vector<256x4xf32>
    tpu.vector_store %arg14[%c0_177, %c8_178], %317 {strides = array<i32>} : memref<256x12xf32, #tpu.memory_space<vmem>>, vector<256x4xf32>,
    return
  }
}

</mosaic_0001>

<bundles_post_ra>
// kernel: tcn_gcn_unit_forward.1
= control target key start
LH: loop header
LB: loop body
LE: loop exit
PB: predicated region body
PF: predicated region fallthrough
CT: control target
= control target key end

     0   :  { %vm155_vm0 = vcmask 1045504   ;;  %vm106_vm1 = vcmask 97280   ;;  %v13204_v52 = vmov 0.0   ;;  %vm13205_vm2 = vmmov 0   ;;  %s13206_s15 = smov 119   ;;  %s13208_s16 = smov 116   ;;  %s18416_s1 = inlined_call_operand.vmem [shape: f32[12,54], index: 1, kind: input, shape index: {}]   ;;  %s18417_s0 = inlined_call_operand.vmem [shape: f32[256,12], index: 0, kind: input, shape index: {}]   ;;  %s18418_s2 = inlined_call_operand.vmem [shape: f32[1,54], index: 2, kind: input, shape index: {}]   ;;  %s18419_s3 = inlined_call_operand.vmem [shape: f32[3,16,16], index: 3, kind: input, shape index: {}]   ;;  %s18420_s6 = inlined_call_operand.vmem [shape: f32[12,36], index: 6, kind: input, shape index: {}]   ;;  %s18421_s4 = inlined_call_operand.vmem [shape: f32[1,12], index: 4, kind: input, shape index: {}]   ;;  %s18422_s5 = inlined_call_operand.vmem [shape: f32[1,12], index: 5, kind: input, shape index: {}]   ;;  %s18423_s8 = inlined_call_operand.vmem [shape: f32[12,4], index: 8, kind: input, shape index: {}]   ;;  %s18424_s10 = inlined_call_operand.vmem [shape: f32[7,12,4], index: 10, kind: input, shape index: {}]   ;;  %s18425_s7 = inlined_call_operand.vmem [shape: f32[1,36], index: 7, kind: input, shape index: {}]   ;;  %s18426_s9 = inlined_call_operand.vmem [shape: f32[3,12,4], index: 9, kind: input, shape index: {}]   ;;  %s18427_s11 = inlined_call_operand.vmem [shape: f32[1,12], index: 11, kind: input, shape index: {}]   ;;  %s18428_s12 = inlined_call_operand.vmem [shape: f32[1,12], index: 12, kind: input, shape index: {}]   ;;  %s18429_s13 = inlined_call_operand.vmem [shape: f32[1,12], index: 13, kind: input, shape index: {}]   ;;  %s18430_s14 = inlined_call_operand.vmem [shape: f32[256,12], index: 14, kind: output, shape index: {}]  }
   0x1   :  { %v96_v0 = vld [vmem:[%s18416_s1] sm:$0xff]  ;;  %v97_v1 = vld [vmem:[%s18416_s1 + $0x8] sm:$0xf]  ;;  %v50_v5 = vld [vmem:[%s18417_s0 + $0x10] sm:$0xff]  ;;  %11670 = vmatprep.subr.bf16.mxu1 %v13204_v52  ;;  %11672 = vmatprep.mubr.msk.bf16.mxu1 %vm13205_vm2, %v13204_v52  ;;  %vm339_vm3 = vcmask 23552   ;;  %s13209_s17 = smov 98  }
   0x2   :  { %v48_v2 = vld [vmem:[%s18417_s0] sm:$0xff]  ;;  %v98_v3 = vpack.c.bf16 %v97_v1, %v96_v0  ;;  %v49_v4 = vld [vmem:[%s18417_s0 + $0x8] sm:$0xff]  ;;  %v51_v6 = vld [vmem:[%s18417_s0 + $0x18] sm:$0xff]  ;;  %vm1137_vm4 = vcmask 130048   ;;  %s13210_s18 = smov 110   ;;  %s13211_s19 = smov 122  }
   0x3   :  { %v80_v7 = vpack.c.bf16 %v49_v4, %v48_v2  ;;  %v52_v8 = vld [vmem:[%s18417_s0 + $0x20] sm:$0xff]  ;;  %v53_v9 = vld [vmem:[%s18417_s0 + $0x28] sm:$0xff]  ;;  %v81_v11 = vpack.c.bf16 %v51_v6, %v50_v5  ;;  %v54_v13 = vld [vmem:[%s18417_s0 + $0x30] sm:$0xff]  ;;  %s13212_s24 = smov 113   ;;  %s13213_s28 = smov 86   ;;  %vm5886_vm5 = vcmask 293888  }
   0x4   :  { %13038 = vmatprep.subr.msk.bf16.mxu0 %vm155_vm0, %v98_v3  ;;  %v157_v10 = vsel %vm155_vm0, %v98_v3, 0  ;;  %v82_v12 = vpack.c.bf16 %v53_v9, %v52_v8  ;;  %v55_v14 = vld [vmem:[%s18417_s0 + $0x38] sm:$0xff]  ;;  %v56_v15 = vld [vmem:[%s18417_s0 + $0x40] sm:$0xff]  ;;  %v57_v16 = vld [vmem:[%s18417_s0 + $0x48] sm:$0xff]  ;;  %s13215_s25 = smov 104   ;;  %vm6141_vm6 = vcmask 31744  }
   0x5   :  { %11637 = vmatpush3.bf16.msra.mxu0 %v157_v10  ;;  %11638 = vmatprep.mubr.msk.bf16.mxu0 %vm106_vm1, %v80_v7  ;;  %v83_v17 = vpack.c.bf16 %v55_v14, %v54_v13  ;;  %v84_v18 = vpack.c.bf16 %v57_v16, %v56_v15  ;;  %v58_v19 = vld [vmem:[%s18417_s0 + $0x50] sm:$0xff]  ;;  %v59_v20 = vld [vmem:[%s18417_s0 + $0x58] sm:$0xff]  ;;  %v60_v21 = vld [vmem:[%s18417_s0 + $0x60] sm:$0xff]  ;;  %s13216_s1 = smov 124   ;;  %vm8062_vm7 = vcmask 64544   ;;  %vm10853_vm8 = vcmask 97344  }
   0x6   :  { %v61_v22 = vld [vmem:[%s18417_s0 + $0x68] sm:$0xff]  ;;  %v85_v23 = vpack.c.bf16 %v59_v20, %v58_v19  ;;  %v62_v25 = vld [vmem:[%s18417_s0 + $0x70] sm:$0xff]  ;;  %v63_v26 = vld [vmem:[%s18417_s0 + $0x78] sm:$0xff]  ;;  %11718 = vmatprep.subr.bf16.mxu0 %v13204_v52 }
   0x7   :  { %v86_v24 = vpack.c.bf16 %v61_v22, %v60_v21  ;;  %v64_v27 = vld [vmem:[%s18417_s0 + $0x80] sm:$0xff]  ;;  %v65_v28 = vld [vmem:[%s18417_s0 + $0x88] sm:$0xff]  ;;  %v87_v29 = vpack.c.bf16 %v63_v26, %v62_v25  ;;  %v66_v31 = vld [vmem:[%s18417_s0 + $0x90] sm:$0xff] }
   0x8   :  { %11639 = vmatmul.mubr.msk.bf16.vlgmr.msra.gmra.mrb[0].mxu0 %vm106_vm1, %v81_v11  ;;  %v88_v30 = vpack.c.bf16 %v65_v28, %v64_v27  ;;  %v67_v32 = vld [vmem:[%s18417_s0 + $0x98] sm:$0xff]  ;;  %v68_v33 = vld [vmem:[%s18417_s0 + $0xa0] sm:$0xff]  ;;  %v69_v34 = vld [vmem:[%s18417_s0 + $0xa8] sm:$0xff] }
   0x9   :  { %11642 = vmatprep.mubr.msk.bf16.mxu0 %vm106_vm1, %v82_v12  ;;  %v89_v35 = vpack.c.bf16 %v67_v32, %v66_v31  ;;  %v90_v36 = vpack.c.bf16 %v69_v34, %v68_v33  ;;  %v70_v37 = vld [vmem:[%s18417_s0 + $0xb0] sm:$0xff]  ;;  %v71_v38 = vld [vmem:[%s18417_s0 + $0xb8] sm:$0xff]  ;;  %v72_v39 = vld [vmem:[%s18417_s0 + $0xc0] sm:$0xff] }
   0xa   :  { %v73_v40 = vld [vmem:[%s18417_s0 + $0xc8] sm:$0xff]  ;;  %v91_v41 = vpack.c.bf16 %v71_v38, %v70_v37  ;;  %v74_v43 = vld [vmem:[%s18417_s0 + $0xd0] sm:$0xff]  ;;  %v75_v44 = vld [vmem:[%s18417_s0 + $0xd8] sm:$0xff] }
   0xb   :  { %v92_v42 = vpack.c.bf16 %v73_v40, %v72_v39  ;;  %v76_v45 = vld [vmem:[%s18417_s0 + $0xe0] sm:$0xff]  ;;  %v77_v46 = vld [vmem:[%s18417_s0 + $0xe8] sm:$0xff]  ;;  %v93_v47 = vpack.c.bf16 %v75_v44, %v74_v43  ;;  %v78_v49 = vld [vmem:[%s18417_s0 + $0xf0] sm:$0xff] }
   0xc   :  { %v94_v48 = vpack.c.bf16 %v77_v46, %v76_v45  ;;  %v79_v50 = vld [vmem:[%s18417_s0 + $0xf8] sm:$0xff]  ;;  %v13425_v54 = vld [vmem:[%s18418_s2] ss:$0 sm:$0xff]  ;;  %s13207_s2 = smov 125  }
   0xd   :  { %v95_v51 = vpack.c.bf16 %v79_v50, %v78_v49 }
  0x10   :  { %11643 = vmatmul.mubr.msk.bf16.gmra.mrb[4].mxu0 %vm106_vm1, %v83_v17 }
  0x11   :  { %11646 = vmatprep.mubr.msk.bf16.mxu0 %vm106_vm1, %v84_v18 }
  0x18   :  { %11647 = vmatmul.mubr.msk.bf16.gmra.mrb[8].mxu0 %vm106_vm1, %v85_v23 }
  0x19   :  { %11650 = vmatprep.mubr.msk.bf16.mxu0 %vm106_vm1, %v86_v24 }
  0x20   :  { %11651 = vmatmul.mubr.msk.bf16.gmra.mrb[12].mxu0 %vm106_vm1, %v87_v29 }
  0x21   :  { %11654 = vmatprep.mubr.msk.bf16.mxu0 %vm106_vm1, %v88_v30 }
  0x28   :  { %11655 = vmatmul.mubr.msk.bf16.gmra.mrb[16].mxu0 %vm106_vm1, %v89_v35 }
  0x29   :  { %11658 = vmatprep.mubr.msk.bf16.mxu0 %vm106_vm1, %v90_v36 }
  0x30   :  { %11659 = vmatmul.mubr.msk.bf16.gmra.mrb[20].mxu0 %vm106_vm1, %v91_v41 }
  0x31   :  { %11662 = vmatprep.mubr.msk.bf16.mxu0 %vm106_vm1, %v92_v42 }
  0x38   :  { %11663 = vmatmul.mubr.msk.bf16.gmra.mrb[24].mxu0 %vm106_vm1, %v93_v47 }
  0x39   :  { %11666 = vmatprep.mubr.msk.bf16.mxu0 %vm106_vm1, %v94_v48 }
  0x40   :  { %11667 = vmatmul.mubr.msk.bf16.gmra.mrb[28].mxu0 %vm106_vm1, %v95_v51 }
  0x41   :  { %11720 = vmatprep.mubr.msk.bf16.mxu0 %vm13205_vm2, %v13204_v52 }
  0xdb   :  { %v11640_v53 = vpop.f32.mrb[0].mxu0 }
  0xdc   :  { %v193_v55 = vpop.f32.mrb[1].mxu0  ;;  %v202_v57 = vadd.f32 %v11640_v53, %v13425_v54 }
  0xdd   :  { %v11641_v56 = vpop.f32.mrb[2].mxu0  ;;  %v194_v60 = vadd.f32 %v13425_v54, %v193_v55 }
  0xde   :  { %v205_v58 = vadd.f32 %v11641_v56, %v13425_v54  ;;  %v196_v59 = vpop.f32.mrb[3].mxu0 }
  0xdf   :  { %v197_v61 = vadd.f32 %v13425_v54, %v196_v59 }
  0xe0   :  { %v13431_v62 = vpack.c.bf16 %v205_v58, %v202_v57 }
  0xe1   :  { %v13433_v63 = vpack.c.bf16 %v197_v61, %v194_v60 }
  0xe3   :  { %337 = vrot.lane.b32.xlu0 %v13433_v63, %s13206_s15  ;;  %v11644_v0 = vpop.f32.mrb[4].mxu0  ;;  %v344_v1 = vsel %vm339_vm3, %v13433_v63, 0 }
  0xe4   :  { %v218_v2 = vadd.f32 %v11644_v0, %v13425_v54  ;;  %11671 = vmatpush3.bf16.xpose.msra.mxu1 %v344_v1  ;;  %v209_v3 = vpop.f32.mrb[5].mxu0 }
  0xe5   :  { %v210_v4 = vadd.f32 %v13425_v54, %v209_v3  ;;  %v11645_v5 = vpop.f32.mrb[6].mxu0  ;;  %11676 = vmatprep.subr.bf16.mxu1 %v13204_v52 }
  0xe6   :  { %v221_v6 = vadd.f32 %v11645_v5, %v13425_v54  ;;  %v212_v7 = vpop.f32.mrb[7].mxu0 }
  0xe7   :  { %v213_v8 = vadd.f32 %v13425_v54, %v212_v7  ;;  %388 = vrot.lane.b32.xlu0 %v13431_v62, %s13206_s15 }
  0xe8   :  { %v13446_v9 = vpack.c.bf16 %v221_v6, %v218_v2 }
  0xe9   :  { %v13448_v10 = vpack.c.bf16 %v213_v8, %v210_v4 }
  0xeb   :  { %438 = vrot.lane.b32.xlu1 %v13448_v10, %s13206_s15  ;;  %v11648_v11 = vpop.f32.mrb[8].mxu0 }
  0xec   :  { %v234_v12 = vadd.f32 %v11648_v11, %v13425_v54  ;;  %v225_v13 = vpop.f32.mrb[9].mxu0 }
  0xed   :  { %v226_v14 = vadd.f32 %v13425_v54, %v225_v13  ;;  %v11649_v15 = vpop.f32.mrb[10].mxu0 }
  0xee   :  { %v237_v16 = vadd.f32 %v11649_v15, %v13425_v54  ;;  %v228_v17 = vpop.f32.mrb[11].mxu0 }
  0xef   :  { %488 = vrot.lane.b32.xlu1 %v13446_v9, %s13206_s15  ;;  %v229_v18 = vadd.f32 %v13425_v54, %v228_v17 }
  0xf0   :  { %v13458_v19 = vpack.c.bf16 %v237_v16, %v234_v12  ;;  %v444_v16 = vsel %vm339_vm3, %v13448_v10, 0 }
  0xf1   :  { %v13460_v20 = vpack.c.bf16 %v229_v18, %v226_v14  ;;  %v394_v14 = vsel %vm339_vm3, %v13431_v62, 0  ;;  %v494_v18 = vsel %vm339_vm3, %v13446_v9, 0 }
  0xf3   :  { %v11652_v21 = vpop.f32.mrb[12].mxu0  ;;  %538 = vrot.lane.b32.xlu0 %v13460_v20, %s13206_s15  ;;  %588 = vrot.lane.b32.xlu1 %v13458_v19, %s13206_s15 }
  0xf4   :  { %v250_v22 = vadd.f32 %v11652_v21, %v13425_v54  ;;  %v241_v23 = vpop.f32.mrb[13].mxu0 }
  0xf5   :  { %v242_v24 = vadd.f32 %v13425_v54, %v241_v23  ;;  %v11653_v25 = vpop.f32.mrb[14].mxu0  ;;  %v544_v23 = vsel %vm339_vm3, %v13460_v20, 0 }
  0xf6   :  { %v253_v26 = vadd.f32 %v11653_v25, %v13425_v54  ;;  %v244_v27 = vpop.f32.mrb[15].mxu0 }
  0xf7   :  { %v245_v28 = vadd.f32 %v13425_v54, %v244_v27 }
  0xf8   :  { %v13470_v29 = vpack.c.bf16 %v253_v26, %v250_v22 }
  0xf9   :  { %v13472_v30 = vpack.c.bf16 %v245_v28, %v242_v24  ;;  %v594_v28 = vsel %vm339_vm3, %v13458_v19, 0 }
  0xfa   :  { %688 = vrot.lane.b32.xlu1 %v13470_v29, %s13206_s15 }
  0xfb   :  { %v11656_v31 = vpop.f32.mrb[16].mxu0  ;;  %638 = vrot.lane.b32.xlu0 %v13472_v30, %s13206_s15 }
  0xfc   :  { %v266_v32 = vadd.f32 %v11656_v31, %v13425_v54  ;;  %v257_v33 = vpop.f32.mrb[17].mxu0 }
  0xfd   :  { %v258_v34 = vadd.f32 %v13425_v54, %v257_v33  ;;  %v11657_v35 = vpop.f32.mrb[18].mxu0 }
  0xfe   :  { %v269_v36 = vadd.f32 %v11657_v35, %v13425_v54  ;;  %v260_v37 = vpop.f32.mrb[19].mxu0 }
  0xff   :  { %v261_v38 = vadd.f32 %v13425_v54, %v260_v37 }
 0x100   :  { %v13482_v39 = vpack.c.bf16 %v269_v36, %v266_v32 }
 0x101   :  { %v13484_v40 = vpack.c.bf16 %v261_v38, %v258_v34  ;;  %v644_v34 = vsel %vm339_vm3, %v13472_v30, 0 }
 0x102   :  { %788 = vrot.lane.b32.xlu1 %v13482_v39, %s13206_s15 }
 0x103   :  { %v11660_v41 = vpop.f32.mrb[20].mxu0  ;;  %738 = vrot.lane.b32.xlu0 %v13484_v40, %s13206_s15  ;;  %v744_v42 = vsel %vm339_vm3, %v13484_v40, 0 }
 0x104   :  { %v282_v43 = vadd.f32 %v11660_v41, %v13425_v54  ;;  %v273_v44 = vpop.f32.mrb[21].mxu0  ;;  %11719 = vmatpush3.bf16.xpose.msra.mxu0 %v744_v42  ;;  %v694_v41 = vsel %vm339_vm3, %v13470_v29, 0 }
 0x105   :  { %v274_v45 = vadd.f32 %v13425_v54, %v273_v44  ;;  %v11661_v46 = vpop.f32.mrb[22].mxu0  ;;  %11730 = vmatprep.subr.bf16.mxu0 %v13204_v52 }
 0x106   :  { %v285_v47 = vadd.f32 %v11661_v46, %v13425_v54  ;;  %v276_v48 = vpop.f32.mrb[23].mxu0 }
 0x107   :  { %v277_v49 = vadd.f32 %v13425_v54, %v276_v48 }
 0x108   :  { %v13497_v50 = vpack.c.bf16 %v285_v47, %v282_v43  ;;  %v794_v47 = vsel %vm339_vm3, %v13482_v39, 0 }
 0x109   :  { %v13499_v51 = vpack.c.bf16 %v277_v49, %v274_v45 }
 0x10a   :  { %888 = vrot.lane.b32.xlu1 %v13497_v50, %s13206_s15 }
 0x10b   :  { %v11664_v53 = vpop.f32.mrb[24].mxu0  ;;  %838 = vrot.lane.b32.xlu0 %v13499_v51, %s13206_s15  ;;  %v844_v31 = vsel %vm339_vm3, %v13499_v51, 0 }
 0x10c   :  { %v298_v55 = vadd.f32 %v11664_v53, %v13425_v54  ;;  %v289_v56 = vpop.f32.mrb[25].mxu0 }
 0x10d   :  { %v290_v57 = vadd.f32 %v13425_v54, %v289_v56  ;;  %v11665_v58 = vpop.f32.mrb[26].mxu0 }
 0x10e   :  { %v301_v59 = vadd.f32 %v11665_v58, %v13425_v54  ;;  %v292_v60 = vpop.f32.mrb[27].mxu0 }
 0x10f   :  { %v293_v61 = vadd.f32 %v13425_v54, %v292_v60 }
 0x110   :  { %v13509_v0 = vpack.c.bf16 %v301_v59, %v298_v55 }
 0x111   :  { %v13511_v1 = vpack.c.bf16 %v293_v61, %v290_v57  ;;  %v894_v57 = vsel %vm339_vm3, %v13497_v50, 0 }
 0x112   :  { %988 = vrot.lane.b32.xlu1 %v13509_v0, %s13206_s15 }
 0x113   :  { %v11668_v2 = vpop.f32.mrb[28].mxu0  ;;  %938 = vrot.lane.b32.xlu0 %v13511_v1, %s13206_s15  ;;  %v944_v35 = vsel %vm339_vm3, %v13511_v1, 0 }
 0x114   :  { %v314_v3 = vadd.f32 %v11668_v2, %v13425_v54  ;;  %v305_v4 = vpop.f32.mrb[29].mxu0 }
 0x115   :  { %v306_v5 = vadd.f32 %v13425_v54, %v305_v4  ;;  %v11669_v6 = vpop.f32.mrb[30].mxu0 }
 0x116   :  { %v317_v7 = vadd.f32 %v11669_v6, %v13425_v54  ;;  %v308_v8 = vpop.f32.mrb[31].mxu0  ;;  %1256 = vrot.lane.b32.xlu1 %v13433_v63, %s13207_s2 }
 0x117   :  { %v309_v11 = vadd.f32 %v13425_v54, %v308_v8 }
 0x118   :  { %v13523_v12 = vpack.c.bf16 %v317_v7, %v314_v3  ;;  %v994_v3 = vsel %vm339_vm3, %v13509_v0, 0 }
 0x119   :  { %v13525_v13 = vpack.c.bf16 %v309_v11, %v306_v5 }
 0x11a   :  { %1307 = vrot.lane.b32.xlu1 %v13431_v62, %s13207_s2  ;;  %v1094_v11 = vsel %vm339_vm3, %v13523_v12, 0 }
 0x11b   :  { %1038 = vrot.lane.b32.xlu0 %v13525_v13, %s13206_s15  ;;  %v1044_v42 = vsel %vm339_vm3, %v13525_v13, 0 }
 0x11e   :  { %1358 = vrot.lane.b32.xlu1 %v13448_v10, %s13207_s2 }
 0x11f   :  { %1088 = vrot.lane.b32.xlu0 %v13523_v12, %s13206_s15 }
 0x122   :  { %1409 = vrot.lane.b32.xlu1 %v13446_v9, %s13207_s2 }
 0x123   :  { %1254 = vrot.lane.b32.xlu0 %v13433_v63, %s13208_s16 }
 0x126   :  { %1460 = vrot.lane.b32.xlu1 %v13460_v20, %s13207_s2 }
 0x127   :  { %1305 = vrot.lane.b32.xlu0 %v13431_v62, %s13208_s16 }
 0x12a   :  { %1511 = vrot.lane.b32.xlu1 %v13458_v19, %s13207_s2 }
 0x12b   :  { %1356 = vrot.lane.b32.xlu0 %v13448_v10, %s13208_s16 }
 0x12e   :  { %1562 = vrot.lane.b32.xlu1 %v13472_v30, %s13207_s2 }
 0x12f   :  { %1407 = vrot.lane.b32.xlu0 %v13446_v9, %s13208_s16 }
 0x132   :  { %1613 = vrot.lane.b32.xlu1 %v13470_v29, %s13207_s2 }
 0x133   :  { %1458 = vrot.lane.b32.xlu0 %v13460_v20, %s13208_s16 }
 0x136   :  { %1664 = vrot.lane.b32.xlu1 %v13484_v40, %s13207_s2 }
 0x137   :  { %1509 = vrot.lane.b32.xlu0 %v13458_v19, %s13208_s16 }
 0x13a   :  { %1715 = vrot.lane.b32.xlu1 %v13482_v39, %s13207_s2 }
 0x13b   :  { %1560 = vrot.lane.b32.xlu0 %v13472_v30, %s13208_s16 }
 0x13e   :  { %1766 = vrot.lane.b32.xlu1 %v13499_v51, %s13207_s2 }
 0x13f   :  { %1611 = vrot.lane.b32.xlu0 %v13470_v29, %s13208_s16 }
 0x142   :  { %1817 = vrot.lane.b32.xlu1 %v13497_v50, %s13207_s2 }
 0x143   :  { %1662 = vrot.lane.b32.xlu0 %v13484_v40, %s13208_s16 }
 0x146   :  { %1868 = vrot.lane.b32.xlu1 %v13511_v1, %s13207_s2 }
 0x147   :  { %1713 = vrot.lane.b32.xlu0 %v13482_v39, %s13208_s16 }
 0x14a   :  { %1919 = vrot.lane.b32.xlu1 %v13509_v0, %s13207_s2 }
 0x14b   :  { %1764 = vrot.lane.b32.xlu0 %v13499_v51, %s13208_s16 }
 0x14e   :  { %1970 = vrot.lane.b32.xlu1 %v13525_v13, %s13207_s2 }
 0x14f   :  { %1815 = vrot.lane.b32.xlu0 %v13497_v50, %s13208_s16 }
 0x152   :  { %2021 = vrot.lane.b32.xlu1 %v13523_v12, %s13207_s2 }
 0x153   :  { %1866 = vrot.lane.b32.xlu0 %v13511_v1, %s13208_s16 }
 0x155   :  { %v338_v54 = vpop.permute.xlu0 %337 }
 0x156   :  { %2019 = vrot.lane.b32.xlu1 %v13523_v12, %s13208_s16  ;;  %11673 = vmatmul.mubr.msk.bf16.vlgmr.msra.gmra.mrb[0].mxu1 %vm339_vm3, %v338_v54 }
 0x157   :  { %11677 = vmatpush3.bf16.xpose.msra.mxu1 %v394_v14  ;;  %1917 = vrot.lane.b32.xlu0 %v13509_v0, %s13208_s16 }
 0x158   :  { %11678 = vmatprep.mubr.msk.bf16.mxu1 %vm13205_vm2, %v13204_v52  ;;  %11682 = vmatprep.subr.bf16.mxu1 %v13204_v52 }
 0x159   :  { %v389_v15 = vpop.permute.xlu0 %388 }
 0x15a   :  { %2187 = vrot.lane.b32.xlu1 %v13433_v63, %s13209_s17 }
 0x15b   :  { %1968 = vrot.lane.b32.xlu0 %v13525_v13, %s13208_s16 }
 0x15d   :  { %v439_v17 = vpop.permute.xlu1 %438 }
 0x15e   :  { %2278 = vrot.lane.b32.xlu1 %v13448_v10, %s13209_s17  ;;  %11679 = vmatmul.mubr.msk.bf16.vlgmr.msra.gmra.mrb[4].mxu1 %vm339_vm3, %v389_v15 }
 0x15f   :  { %11683 = vmatpush3.bf16.xpose.msra.mxu1 %v444_v16  ;;  %2234 = vrot.lane.b32.xlu0 %v13431_v62, %s13209_s17 }
 0x160   :  { %11684 = vmatprep.mubr.msk.bf16.mxu1 %vm13205_vm2, %v13204_v52  ;;  %11688 = vmatprep.subr.bf16.mxu1 %v13204_v52 }
 0x161   :  { %v489_v22 = vpop.permute.xlu1 %488 }
 0x162   :  { %2366 = vrot.lane.b32.xlu1 %v13460_v20, %s13209_s17 }
 0x163   :  { %2322 = vrot.lane.b32.xlu0 %v13446_v9, %s13209_s17 }
 0x165   :  { %v539_v21 = vpop.permute.xlu0 %538  ;;  %v589_v24 = vpop.permute.xlu1 %588 }
 0x166   :  { %2410 = vrot.lane.b32.xlu1 %v13458_v19, %s13209_s17  ;;  %11685 = vmatmul.mubr.msk.bf16.vlgmr.msra.gmra.mrb[8].mxu1 %vm339_vm3, %v439_v17 }
 0x167   :  { %11689 = vmatpush3.bf16.xpose.msra.mxu1 %v494_v18  ;;  %2454 = vrot.lane.b32.xlu0 %v13472_v30, %s13209_s17 }
 0x168   :  { %11690 = vmatprep.mubr.msk.bf16.mxu1 %vm13205_vm2, %v13204_v52  ;;  %11694 = vmatprep.subr.bf16.mxu1 %v13204_v52 }
 0x16a   :  { %2498 = vrot.lane.b32.xlu1 %v13470_v29, %s13209_s17 }
 0x16b   :  { %2542 = vrot.lane.b32.xlu0 %v13484_v40, %s13209_s17 }
 0x16c   :  { %v689_v26 = vpop.permute.xlu1 %688 }
 0x16d   :  { %v639_v25 = vpop.permute.xlu0 %638 }
 0x16e   :  { %2589 = vrot.lane.b32.xlu1 %v13482_v39, %s13209_s17  ;;  %11691 = vmatmul.mubr.msk.bf16.vlgmr.msra.gmra.mrb[12].mxu1 %vm339_vm3, %v489_v22 }
 0x16f   :  { %11695 = vmatpush3.bf16.xpose.msra.mxu1 %v544_v23  ;;  %2633 = vrot.lane.b32.xlu0 %v13499_v51, %s13209_s17 }
 0x170   :  { %11696 = vmatprep.mubr.msk.bf16.mxu1 %vm13205_vm2, %v13204_v52  ;;  %11700 = vmatprep.subr.bf16.mxu1 %v13204_v52 }
 0x172   :  { %2677 = vrot.lane.b32.xlu1 %v13497_v50, %s13209_s17 }
 0x174   :  { %v789_v32 = vpop.permute.xlu1 %788 }
 0x175   :  { %v739_v27 = vpop.permute.xlu0 %738 }
 0x176   :  { %11697 = vmatmul.mubr.msk.bf16.vlgmr.msra.gmra.mrb[16].mxu1 %vm339_vm3, %v539_v21  ;;  %11721 = vmatmul.mubr.msk.bf16.vlgmr.msra.gmra.mrb[32].mxu0 %vm339_vm3, %v739_v27 }
 0x177   :  { %11701 = vmatpush3.bf16.xpose.msra.mxu1 %v594_v28  ;;  %11731 = vmatpush3.bf16.xpose.msra.mxu0 %v844_v31 }
 0x178   :  { %11732 = vmatprep.mubr.msk.bf16.mxu0 %vm13205_vm2, %v13204_v52  ;;  %11742 = vmatprep.subr.bf16.mxu0 %v13204_v52 }
 0x179   :  { %11702 = vmatprep.mubr.msk.bf16.mxu1 %vm13205_vm2, %v13204_v52  ;;  %11706 = vmatprep.subr.bf16.mxu1 %v13204_v52 }
 0x17c   :  { %v889_v36 = vpop.permute.xlu1 %888 }
 0x17d   :  { %v839_v33 = vpop.permute.xlu0 %838 }
 0x17e   :  { %11703 = vmatmul.mubr.msk.bf16.vlgmr.msra.gmra.mrb[20].mxu1 %vm339_vm3, %v589_v24  ;;  %11733 = vmatmul.mubr.msk.bf16.vlgmr.msra.gmra.mrb[36].mxu0 %vm339_vm3, %v839_v33 }
 0x17f   :  { %11707 = vmatpush3.bf16.xpose.msra.mxu1 %v644_v34  ;;  %11743 = vmatpush3.bf16.xpose.msra.mxu0 %v944_v35 }
 0x180   :  { %11744 = vmatprep.mubr.msk.bf16.mxu0 %vm13205_vm2, %v13204_v52  ;;  %11754 = vmatprep.subr.bf16.mxu0 %v13204_v52 }
 0x181   :  { %11708 = vmatprep.mubr.msk.bf16.mxu1 %vm13205_vm2, %v13204_v52  ;;  %11712 = vmatprep.subr.bf16.mxu1 %v13204_v52 }
 0x184   :  { %v989_v37 = vpop.permute.xlu1 %988 }
 0x185   :  { %v939_v38 = vpop.permute.xlu0 %938 }
 0x186   :  { %11709 = vmatmul.mubr.msk.bf16.vlgmr.msra.gmra.mrb[24].mxu1 %vm339_vm3, %v639_v25  ;;  %11745 = vmatmul.mubr.msk.bf16.vlgmr.msra.gmra.mrb[40].mxu0 %vm339_vm3, %v939_v38 }
 0x187   :  { %11713 = vmatpush3.bf16.xpose.msra.mxu1 %v694_v41  ;;  %11755 = vmatpush3.bf16.xpose.msra.mxu0 %v1044_v42 }
 0x188   :  { %v1257_v43 = vpop.permute.xlu1 %1256  ;;  %11756 = vmatprep.mubr.msk.bf16.mxu0 %vm13205_vm2, %v13204_v52  ;;  %11766 = vmatprep.subr.bf16.mxu0 %v13204_v52 }
 0x189   :  { %11714 = vmatprep.mubr.msk.bf16.mxu1 %vm13205_vm2, %v13204_v52  ;;  %11724 = vmatprep.subr.bf16.mxu1 %v13204_v52  ;;  %v1262_v46 = vsel %vm339_vm3, %v1257_v43, 0 }
 0x18c   :  { %v1308_v44 = vpop.permute.xlu1 %1307 }
 0x18d   :  { %v1039_v45 = vpop.permute.xlu0 %1038  ;;  %v1313_v17 = vsel %vm339_vm3, %v1308_v44, 0 }
 0x18e   :  { %11715 = vmatmul.mubr.msk.bf16.vlgmr.msra.gmra.mrb[28].mxu1 %vm339_vm3, %v689_v26  ;;  %11757 = vmatmul.mubr.msk.bf16.vlgmr.msra.gmra.mrb[44].mxu0 %vm339_vm3, %v1039_v45 }
 0x18f   :  { %11725 = vmatpush3.bf16.xpose.msra.mxu1 %v794_v47  ;;  %11767 = vmatpush3.bf16.xpose.msra.mxu0 %v1262_v46 }
 0x190   :  { %v1359_v48 = vpop.permute.xlu1 %1358  ;;  %11768 = vmatprep.mubr.msk.bf16.mxu0 %vm13205_vm2, %v13204_v52  ;;  %11778 = vmatprep.subr.bf16.mxu0 %v13204_v52 }
 0x191   :  { %v1089_v49 = vpop.permute.xlu0 %1088  ;;  %11726 = vmatprep.mubr.msk.bf16.mxu1 %vm13205_vm2, %v13204_v52  ;;  %11736 = vmatprep.subr.bf16.mxu1 %v13204_v52  ;;  %v1364_v56 = vsel %vm339_vm3, %v1359_v48, 0 }
 0x194   :  { %v1410_v53 = vpop.permute.xlu1 %1409 }
 0x195   :  { %v1255_v55 = vpop.permute.xlu0 %1254  ;;  %v1415_v25 = vsel %vm339_vm3, %v1410_v53, 0 }
 0x196   :  { %11727 = vmatmul.mubr.msk.bf16.vlgmr.msra.gmra.mrb[32].mxu1 %vm339_vm3, %v789_v32  ;;  %11769 = vmatmul.mubr.msk.bf16.vlgmr.msra.gmra.mrb[48].mxu0 %vm339_vm3, %v1255_v55 }
 0x197   :  { %11737 = vmatpush3.bf16.xpose.msra.mxu1 %v894_v57  ;;  %11779 = vmatpush3.bf16.xpose.msra.mxu0 %v1364_v56 }
 0x198   :  { %v1461_v58 = vpop.permute.xlu1 %1460  ;;  %11780 = vmatprep.mubr.msk.bf16.mxu0 %vm13205_vm2, %v13204_v52  ;;  %11790 = vmatprep.subr.bf16.mxu0 %v13204_v52 }
 0x199   :  { %v1306_v59 = vpop.permute.xlu0 %1305  ;;  %11738 = vmatprep.mubr.msk.bf16.mxu1 %vm13205_vm2, %v13204_v52  ;;  %11748 = vmatprep.subr.bf16.mxu1 %v13204_v52  ;;  %v1466_v2 = vsel %vm339_vm3, %v1461_v58, 0 }
 0x19c   :  { %v1512_v60 = vpop.permute.xlu1 %1511 }
 0x19d   :  { %v1357_v61 = vpop.permute.xlu0 %1356  ;;  %v1517_v33 = vsel %vm339_vm3, %v1512_v60, 0 }
 0x19e   :  { %11739 = vmatmul.mubr.msk.bf16.vlgmr.msra.gmra.mrb[36].mxu1 %vm339_vm3, %v889_v36  ;;  %11781 = vmatmul.mubr.msk.bf16.vlgmr.msra.gmra.mrb[52].mxu0 %vm339_vm3, %v1357_v61 }
 0x19f   :  { %11749 = vmatpush3.bf16.xpose.msra.mxu1 %v994_v3  ;;  %11791 = vmatpush3.bf16.xpose.msra.mxu0 %v1466_v2 }
 0x1a0   :  { %v1563_v4 = vpop.permute.xlu1 %1562  ;;  %11792 = vmatprep.mubr.msk.bf16.mxu0 %vm13205_vm2, %v13204_v52  ;;  %11802 = vmatprep.subr.bf16.mxu0 %v13204_v52 }
 0x1a1   :  { %v1408_v5 = vpop.permute.xlu0 %1407  ;;  %11750 = vmatprep.mubr.msk.bf16.mxu1 %vm13205_vm2, %v13204_v52  ;;  %11760 = vmatprep.subr.bf16.mxu1 %v13204_v52  ;;  %v1568_v8 = vsel %vm339_vm3, %v1563_v4, 0 }
 0x1a4   :  { %v1614_v6 = vpop.permute.xlu1 %1613 }
 0x1a5   :  { %v1459_v7 = vpop.permute.xlu0 %1458  ;;  %v1619_v41 = vsel %vm339_vm3, %v1614_v6, 0 }
 0x1a6   :  { %11751 = vmatmul.mubr.msk.bf16.vlgmr.msra.gmra.mrb[40].mxu1 %vm339_vm3, %v989_v37  ;;  %11793 = vmatmul.mubr.msk.bf16.vlgmr.msra.gmra.mrb[56].mxu0 %vm339_vm3, %v1459_v7 }
 0x1a7   :  { %11761 = vmatpush3.bf16.xpose.msra.mxu1 %v1094_v11  ;;  %11803 = vmatpush3.bf16.xpose.msra.mxu0 %v1568_v8 }
 0x1a8   :  { %v1665_v54 = vpop.permute.xlu1 %1664  ;;  %11804 = vmatprep.mubr.msk.bf16.mxu0 %vm13205_vm2, %v13204_v52  ;;  %11814 = vmatprep.subr.bf16.mxu0 %v13204_v52 }
 0x1a9   :  { %v1510_v14 = vpop.permute.xlu0 %1509  ;;  %11762 = vmatprep.mubr.msk.bf16.mxu1 %vm13205_vm2, %v13204_v52  ;;  %11772 = vmatprep.subr.bf16.mxu1 %v13204_v52  ;;  %v1670_v18 = vsel %vm339_vm3, %v1665_v54, 0 }
 0x1ac   :  { %v1716_v15 = vpop.permute.xlu1 %1715 }
 0x1ad   :  { %v1561_v16 = vpop.permute.xlu0 %1560  ;;  %v1721_v47 = vsel %vm339_vm3, %v1716_v15, 0 }
 0x1ae   :  { %11763 = vmatmul.mubr.msk.bf16.vlgmr.msra.gmra.mrb[44].mxu1 %vm339_vm3, %v1089_v49  ;;  %11805 = vmatmul.mubr.msk.bf16.vlgmr.msra.gmra.mrb[60].mxu0 %vm339_vm3, %v1561_v16 }
 0x1af   :  { %11773 = vmatpush3.bf16.xpose.msra.mxu1 %v1313_v17  ;;  %11815 = vmatpush3.bf16.xpose.msra.mxu0 %v1670_v18 }
 0x1b0   :  { %v1767_v21 = vpop.permute.xlu1 %1766  ;;  %11816 = vmatprep.mubr.msk.bf16.mxu0 %vm13205_vm2, %v13204_v52  ;;  %11826 = vmatprep.subr.bf16.mxu0 %v13204_v52 }
 0x1b1   :  { %v1612_v22 = vpop.permute.xlu0 %1611  ;;  %11774 = vmatprep.mubr.msk.bf16.mxu1 %vm13205_vm2, %v13204_v52  ;;  %11784 = vmatprep.subr.bf16.mxu1 %v13204_v52  ;;  %v1772_v26 = vsel %vm339_vm3, %v1767_v21, 0 }
 0x1b4   :  { %v1818_v23 = vpop.permute.xlu1 %1817 }
 0x1b5   :  { %v1663_v24 = vpop.permute.xlu0 %1662  ;;  %v1823_v48 = vsel %vm339_vm3, %v1818_v23, 0 }
 0x1b6   :  { %11775 = vmatmul.mubr.msk.bf16.vlgmr.msra.gmra.mrb[48].mxu1 %vm339_vm3, %v1306_v59  ;;  %11817 = vmatmul.mubr.msk.bf16.vlgmr.msra.gmra.mrb[64].mxu0 %vm339_vm3, %v1663_v24 }
 0x1b7   :  { %11785 = vmatpush3.bf16.xpose.msra.mxu1 %v1415_v25  ;;  %11827 = vmatpush3.bf16.xpose.msra.mxu0 %v1772_v26 }
 0x1b8   :  { %v1869_v27 = vpop.permute.xlu1 %1868  ;;  %11828 = vmatprep.mubr.msk.bf16.mxu0 %vm13205_vm2, %v13204_v52  ;;  %11838 = vmatprep.subr.bf16.mxu0 %v13204_v52 }
 0x1b9   :  { %v1714_v28 = vpop.permute.xlu0 %1713  ;;  %11786 = vmatprep.mubr.msk.bf16.mxu1 %vm13205_vm2, %v13204_v52  ;;  %11796 = vmatprep.subr.bf16.mxu1 %v13204_v52  ;;  %v1874_v34 = vsel %vm339_vm3, %v1869_v27, 0 }
 0x1bc   :  { %v1920_v31 = vpop.permute.xlu1 %1919 }
 0x1bd   :  { %v1765_v32 = vpop.permute.xlu0 %1764  ;;  %v1925_v49 = vsel %vm339_vm3, %v1920_v31, 0 }
 0x1be   :  { %11787 = vmatmul.mubr.msk.bf16.vlgmr.msra.gmra.mrb[52].mxu1 %vm339_vm3, %v1408_v5  ;;  %11829 = vmatmul.mubr.msk.bf16.vlgmr.msra.gmra.mrb[68].mxu0 %vm339_vm3, %v1765_v32 }
 0x1bf   :  { %11797 = vmatpush3.bf16.xpose.msra.mxu1 %v1517_v33  ;;  %11839 = vmatpush3.bf16.xpose.msra.mxu0 %v1874_v34 }
 0x1c0   :  { %v1971_v35 = vpop.permute.xlu1 %1970  ;;  %11840 = vmatprep.mubr.msk.bf16.mxu0 %vm13205_vm2, %v13204_v52  ;;  %11850 = vmatprep.subr.bf16.mxu0 %v13204_v52 }
 0x1c1   :  { %v1816_v36 = vpop.permute.xlu0 %1815  ;;  %11798 = vmatprep.mubr.msk.bf16.mxu1 %vm13205_vm2, %v13204_v52  ;;  %11808 = vmatprep.subr.bf16.mxu1 %v13204_v52  ;;  %v1976_v42 = vsel %vm339_vm3, %v1971_v35, 0 }
 0x1c4   :  { %v2022_v37 = vpop.permute.xlu1 %2021 }
 0x1c5   :  { %v1867_v38 = vpop.permute.xlu0 %1866  ;;  %v2027_v53 = vsel %vm339_vm3, %v2022_v37, 0 }
 0x1c6   :  { %11799 = vmatmul.mubr.msk.bf16.vlgmr.msra.gmra.mrb[56].mxu1 %vm339_vm3, %v1510_v14  ;;  %11841 = vmatmul.mubr.msk.bf16.vlgmr.msra.gmra.mrb[72].mxu0 %vm339_vm3, %v1867_v38 }
 0x1c7   :  { %11809 = vmatpush3.bf16.xpose.msra.mxu1 %v1619_v41  ;;  %11851 = vmatpush3.bf16.xpose.msra.mxu0 %v1976_v42 }
 0x1c8   :  { %v2020_v43 = vpop.permute.xlu1 %2019  ;;  %11852 = vmatprep.mubr.msk.bf16.mxu0 %vm13205_vm2, %v13204_v52  ;;  %11862 = vmatprep.subr.bf16.mxu0 %v13204_v52 }
 0x1c9   :  { %v1918_v44 = vpop.permute.xlu0 %1917  ;;  %11810 = vmatprep.mubr.msk.bf16.mxu1 %vm13205_vm2, %v13204_v52  ;;  %11820 = vmatprep.subr.bf16.mxu1 %v13204_v52 }
 0x1cc   :  { %v2188_v45 = vpop.permute.xlu1 %2187 }
 0x1cd   :  { %v1969_v46 = vpop.permute.xlu0 %1968 }
 0x1ce   :  { %11811 = vmatmul.mubr.msk.bf16.vlgmr.msra.gmra.mrb[60].mxu1 %vm339_vm3, %v1612_v22  ;;  %11853 = vmatmul.mubr.msk.bf16.vlgmr.msra.gmra.mrb[76].mxu0 %vm339_vm3, %v1969_v46 }
 0x1cf   :  { %11821 = vmatpush3.bf16.xpose.msra.mxu1 %v1721_v47  ;;  %11863 = vmatpush3.bf16.msra.mxu0 %v2188_v45 }
 0x1d0   :  { %11822 = vmatprep.mubr.msk.bf16.mxu1 %vm13205_vm2, %v13204_v52  ;;  %11832 = vmatprep.subr.bf16.mxu1 %v13204_v52 }
 0x1d1   :  { %11864 = vmatprep.mubr.msk.bf16.mxu0 %vm13205_vm2, %v13204_v52  ;;  %11874 = vmatprep.subr.bf16.mxu0 %v13204_v52  ;;  %v2235_v55 = vpop.permute.xlu0 %2234 }
 0x1d6   :  { %11823 = vmatmul.mubr.msk.bf16.vlgmr.msra.gmra.mrb[64].mxu1 %vm339_vm3, %v1714_v28 }
 0x1d7   :  { %11833 = vmatpush3.bf16.xpose.msra.mxu1 %v1823_v48  ;;  %11834 = vmatprep.mubr.msk.bf16.mxu1 %vm13205_vm2, %v13204_v52 }
 0x1d8   :  { %11844 = vmatprep.subr.bf16.mxu1 %v13204_v52 }
 0x1de   :  { %11835 = vmatmul.mubr.msk.bf16.vlgmr.msra.gmra.mrb[68].mxu1 %vm339_vm3, %v1816_v36 }
 0x1df   :  { %11845 = vmatpush3.bf16.xpose.msra.mxu1 %v1925_v49  ;;  %11846 = vmatprep.mubr.msk.bf16.mxu1 %vm13205_vm2, %v13204_v52 }
 0x1e0   :  { %11856 = vmatprep.subr.bf16.mxu1 %v13204_v52 }
 0x1e6   :  { %11847 = vmatmul.mubr.msk.bf16.vlgmr.msra.gmra.mrb[72].mxu1 %vm339_vm3, %v1918_v44 }
 0x1e7   :  { %11857 = vmatpush3.bf16.xpose.msra.mxu1 %v2027_v53  ;;  %11858 = vmatprep.mubr.msk.bf16.mxu1 %vm13205_vm2, %v13204_v52 }
 0x1e8   :  { %11868 = vmatprep.subr.bf16.mxu1 %v13204_v52 }
 0x1ee   :  { %11859 = vmatmul.mubr.msk.bf16.vlgmr.msra.gmra.mrb[76].mxu1 %vm339_vm3, %v2020_v43 }
 0x1ef   :  { %11869 = vmatpush3.bf16.msra.mxu1 %v2235_v55  ;;  %11870 = vmatprep.mubr.msk.bf16.mxu1 %vm13205_vm2, %v13204_v52 }
 0x1f0   :  { %11880 = vmatprep.subr.bf16.mxu1 %v13204_v52 }
 0x229   :  { %v380_v56 = vpop.f32.mrb[0].mxu1 }
 0x22a   :  { %v11674_v57 = vpop.f32.mrb[1].mxu1  ;;  %v1138_v61 = vsel %vm1137_vm4, %v380_v56, 0.0 }
 0x22b   :  { %v383_v58 = vpop.f32.mrb[2].mxu1 }
 0x22c   :  { %v11675_v59 = vpop.f32.mrb[3].mxu1  ;;  %v1153_v6 = vsel %vm1137_vm4, %v383_v58, 0.0 }
 0x231   :  { %v430_v60 = vpop.f32.mrb[4].mxu1 }
 0x232   :  { %v1139_v2 = vsel %vm1137_vm4, %v430_v60, 0.0  ;;  %v11680_v3 = vpop.f32.mrb[5].mxu1 }
 0x233   :  { %v1140_v4 = vadd.f32 %v1139_v2, %v1138_v61  ;;  %v433_v5 = vpop.f32.mrb[6].mxu1 }
 0x234   :  { %v1154_v7 = vsel %vm1137_vm4, %v433_v5, 0.0  ;;  %v11681_v8 = vpop.f32.mrb[7].mxu1 }
 0x235   :  { %v1155_v11 = vadd.f32 %v1154_v7, %v1153_v6 }
 0x239   :  { %v480_v54 = vpop.f32.mrb[8].mxu1 }
 0x23a   :  { %v1141_v14 = vsel %vm1137_vm4, %v480_v54, 0.0  ;;  %v11686_v15 = vpop.f32.mrb[9].mxu1 }
 0x23b   :  { %v1142_v16 = vadd.f32 %v1141_v14, %v1140_v4  ;;  %v483_v17 = vpop.f32.mrb[10].mxu1 }
 0x23c   :  { %v1156_v18 = vsel %vm1137_vm4, %v483_v17, 0.0  ;;  %v11687_v21 = vpop.f32.mrb[11].mxu1 }
 0x23d   :  { %v1157_v22 = vadd.f32 %v1156_v18, %v1155_v11 }
 0x241   :  { %v530_v23 = vpop.f32.mrb[12].mxu1 }
 0x242   :  { %v1143_v24 = vsel %vm1137_vm4, %v530_v23, 0.0  ;;  %v11692_v25 = vpop.f32.mrb[13].mxu1 }
 0x243   :  { %v1144_v26 = vadd.f32 %v1143_v24, %v1142_v16  ;;  %v533_v27 = vpop.f32.mrb[14].mxu1 }
 0x244   :  { %v1158_v28 = vsel %vm1137_vm4, %v533_v27, 0.0  ;;  %v11693_v31 = vpop.f32.mrb[15].mxu1 }
 0x245   :  { %v1159_v32 = vadd.f32 %v1158_v28, %v1157_v22 }
 0x249   :  { %v580_v33 = vpop.f32.mrb[16].mxu1  ;;  %v780_v34 = vpop.f32.mrb[32].mxu0 }
 0x24a   :  { %v1145_v35 = vsel %vm1137_vm4, %v580_v33, 0.0  ;;  %v11698_v36 = vpop.f32.mrb[17].mxu1  ;;  %v11722_v37 = vpop.f32.mrb[33].mxu0 }
 0x24b   :  { %v1146_v38 = vadd.f32 %v1145_v35, %v1144_v26  ;;  %v583_v41 = vpop.f32.mrb[18].mxu1  ;;  %v783_v42 = vpop.f32.mrb[34].mxu0 }
 0x24c   :  { %v1160_v43 = vsel %vm1137_vm4, %v583_v41, 0.0  ;;  %v11699_v44 = vpop.f32.mrb[19].mxu1  ;;  %v11723_v45 = vpop.f32.mrb[35].mxu0 }
 0x24d   :  { %v1161_v46 = vadd.f32 %v1160_v43, %v1159_v32  ;;  %v1168_v44 = vsel %vm1137_vm4, %v780_v34, 0.0 }
 0x251   :  { %v630_v47 = vpop.f32.mrb[20].mxu1  ;;  %v880_v48 = vpop.f32.mrb[36].mxu0 }
 0x252   :  { %v1147_v49 = vsel %vm1137_vm4, %v630_v47, 0.0  ;;  %v11704_v53 = vpop.f32.mrb[21].mxu1  ;;  %v11734_v55 = vpop.f32.mrb[37].mxu0  ;;  %v1171_v45 = vsel %vm1137_vm4, %v880_v48, 0.0 }
 0x253   :  { %v1148_v56 = vadd.f32 %v1147_v49, %v1146_v38  ;;  %v633_v57 = vpop.f32.mrb[22].mxu1  ;;  %v883_v58 = vpop.f32.mrb[38].mxu0 }
 0x254   :  { %v1162_v59 = vsel %vm1137_vm4, %v633_v57, 0.0  ;;  %v11705_v60 = vpop.f32.mrb[23].mxu1  ;;  %v11735_v61 = vpop.f32.mrb[39].mxu0  ;;  %v1183_v57 = vsel %vm1137_vm4, %v783_v42, 0.0  ;;  %v1186_v34 = vsel %vm1137_vm4, %v883_v58, 0.0 }
 0x255   :  { %v1163_v2 = vadd.f32 %v1162_v59, %v1161_v46 }
 0x259   :  { %v680_v3 = vpop.f32.mrb[24].mxu1  ;;  %v980_v4 = vpop.f32.mrb[40].mxu0 }
 0x25a   :  { %v1149_v5 = vsel %vm1137_vm4, %v680_v3, 0.0  ;;  %v11710_v6 = vpop.f32.mrb[25].mxu1  ;;  %v11746_v7 = vpop.f32.mrb[41].mxu0 }
 0x25b   :  { %v1150_v8 = vadd.f32 %v1149_v5, %v1148_v56  ;;  %v683_v11 = vpop.f32.mrb[26].mxu1  ;;  %v983_v54 = vpop.f32.mrb[42].mxu0  ;;  %v1175_v7 = vsel %vm1137_vm4, %v980_v4, 0.0 }
 0x25c   :  { %v1164_v14 = vsel %vm1137_vm4, %v683_v11, 0.0  ;;  %v11711_v15 = vpop.f32.mrb[27].mxu1  ;;  %v11747_v16 = vpop.f32.mrb[43].mxu0  ;;  %v1190_v58 = vsel %vm1137_vm4, %v983_v54, 0.0 }
 0x25d   :  { %v1165_v17 = vadd.f32 %v1164_v14, %v1163_v2 }
 0x261   :  { %v730_v18 = vpop.f32.mrb[28].mxu1  ;;  %v1080_v21 = vpop.f32.mrb[44].mxu0 }
 0x262   :  { %v1151_v22 = vsel %vm1137_vm4, %v730_v18, 0.0  ;;  %v11716_v23 = vpop.f32.mrb[29].mxu1  ;;  %v11758_v24 = vpop.f32.mrb[45].mxu0  ;;  %v1179_v4 = vsel %vm1137_vm4, %v1080_v21, 0.0 }
 0x263   :  { %v1152_v25 = vadd.f32 %v1151_v22, %v1150_v8  ;;  %v733_v26 = vpop.f32.mrb[30].mxu1  ;;  %v1083_v27 = vpop.f32.mrb[46].mxu0 }
 0x264   :  { %v1166_v28 = vsel %vm1137_vm4, %v733_v26, 0.0  ;;  %v11717_v31 = vpop.f32.mrb[31].mxu1  ;;  %v11759_v32 = vpop.f32.mrb[47].mxu0  ;;  %v1194_v54 = vsel %vm1137_vm4, %v1083_v27, 0.0 }
 0x265   :  { %v13805_v33 = vmul.f32 0.041666668, %v1152_v25  ;;  %v1167_v35 = vadd.f32 %v1166_v28, %v1165_v17 }
 0x267   :  { %v13807_v36 = vmul.f32 0.041666668, %v1167_v35  ;;  %v1202_v37 = vsel %vm1137_vm4, %v13805_v33, -inf }
 0x268   :  { %1203 = vmax.xlane.f32.xlu1 %v1202_v37 }
 0x269   :  { %v830_v38 = vpop.f32.mrb[32].mxu1  ;;  %v13811_v41 = vpop.f32.mrb[48].mxu0  ;;  %v1205_v43 = vsel %vm1137_vm4, %v13807_v36, -inf }
 0x26a   :  { %v1169_v46 = vsel %vm1137_vm4, %v830_v38, 0.0  ;;  %v11770_v47 = vpop.f32.mrb[49].mxu0  ;;  %1206 = vmax.xlane.f32.xlu0 %v1205_v43  ;;  %v11728_v49 = vpop.f32.mrb[33].mxu1 }
 0x26b   :  { %v1170_v53 = vadd.f32 %v1169_v46, %v1168_v44  ;;  %v833_v55 = vpop.f32.mrb[34].mxu1  ;;  %v13818_v56 = vpop.f32.mrb[50].mxu0 }
 0x26c   :  { %v1184_v59 = vsel %vm1137_vm4, %v833_v55, 0.0  ;;  %v11729_v60 = vpop.f32.mrb[35].mxu1  ;;  %v11771_v61 = vpop.f32.mrb[51].mxu0 }
 0x26d   :  { %v1185_v2 = vadd.f32 %v1184_v59, %v1183_v57  ;;  %v1172_v3 = vadd.f32 %v1171_v45, %v1170_v53 }
 0x26f   :  { %v1187_v48 = vadd.f32 %v1186_v34, %v1185_v2 }
 0x271   :  { %v930_v5 = vpop.f32.mrb[36].mxu1  ;;  %v1400_v6 = vpop.f32.mrb[52].mxu0 }
 0x272   :  { %v1173_v8 = vsel %vm1137_vm4, %v930_v5, 0.0  ;;  %v11740_v11 = vpop.f32.mrb[37].mxu1  ;;  %v11782_v14 = vpop.f32.mrb[53].mxu0 }
 0x273   :  { %v1174_v15 = vadd.f32 %v1173_v8, %v1172_v3  ;;  %v933_v16 = vpop.f32.mrb[38].mxu1  ;;  %v1403_v42 = vpop.f32.mrb[54].mxu0 }
 0x274   :  { %v1188_v17 = vsel %vm1137_vm4, %v933_v16, 0.0  ;;  %v11741_v18 = vpop.f32.mrb[39].mxu1  ;;  %v11783_v22 = vpop.f32.mrb[55].mxu0 }
 0x275   :  { %v1189_v23 = vadd.f32 %v1188_v17, %v1187_v48  ;;  %v1176_v24 = vadd.f32 %v1175_v7, %v1174_v15  ;;  %v2070_v17 = vsel %vm1137_vm4, %v13811_v41, 0.0 }
 0x277   :  { %v1191_v25 = vadd.f32 %v1190_v58, %v1189_v23 }
 0x279   :  { %v1030_v26 = vpop.f32.mrb[40].mxu1  ;;  %v1502_v28 = vpop.f32.mrb[56].mxu0 }
 0x27a   :  { %v1177_v31 = vsel %vm1137_vm4, %v1030_v26, 0.0  ;;  %v11752_v32 = vpop.f32.mrb[41].mxu1  ;;  %v11794_v35 = vpop.f32.mrb[57].mxu0  ;;  %v2085_v26 = vsel %vm1137_vm4, %v13818_v56, 0.0 }
 0x27b   :  { %v1178_v37 = vadd.f32 %v1177_v31, %v1176_v24  ;;  %v1033_v38 = vpop.f32.mrb[42].mxu1  ;;  %v1505_v43 = vpop.f32.mrb[58].mxu0 }
 0x27c   :  { %v1192_v44 = vsel %vm1137_vm4, %v1033_v38, 0.0  ;;  %v11753_v45 = vpop.f32.mrb[43].mxu1  ;;  %v11795_v46 = vpop.f32.mrb[59].mxu0  ;;  %v2088_v38 = vsel %vm1137_vm4, %v1403_v42, 0.0  ;;  %v2092_v42 = vsel %vm1137_vm4, %v1505_v43, 0.0 }
 0x27d   :  { %v1193_v47 = vadd.f32 %v1192_v44, %v1191_v25  ;;  %v1180_v49 = vadd.f32 %v1179_v4, %v1178_v37  ;;  %v2073_v4 = vsel %vm1137_vm4, %v1400_v6, 0.0  ;;  %v2077_v6 = vsel %vm1137_vm4, %v1502_v28, 0.0 }
 0x27f   :  { %v1195_v53 = vadd.f32 %v1194_v54, %v1193_v47 }
 0x281   :  { %v1130_v55 = vpop.f32.mrb[44].mxu1  ;;  %v1604_v57 = vpop.f32.mrb[60].mxu0 }
 0x282   :  { %v1181_v21 = vsel %vm1137_vm4, %v1130_v55, 0.0  ;;  %v11764_v59 = vpop.f32.mrb[45].mxu1  ;;  %v11806_v60 = vpop.f32.mrb[61].mxu0  ;;  %v2081_v28 = vsel %vm1137_vm4, %v1604_v57, 0.0 }
 0x283   :  { %v1182_v61 = vadd.f32 %v1181_v21, %v1180_v49  ;;  %v1133_v2 = vpop.f32.mrb[46].mxu1  ;;  %v1607_v3 = vpop.f32.mrb[62].mxu0 }
 0x284   :  { %v1196_v34 = vsel %vm1137_vm4, %v1133_v2, 0.0  ;;  %v11765_v48 = vpop.f32.mrb[47].mxu1  ;;  %v11807_v5 = vpop.f32.mrb[63].mxu0  ;;  %v2096_v43 = vsel %vm1137_vm4, %v1607_v3, 0.0 }
 0x285   :  { %v13833_v7 = vmul.f32 0.041666668, %v1182_v61  ;;  %v1197_v8 = vadd.f32 %v1196_v34, %v1195_v53 }
 0x287   :  { %v13835_v11 = vmul.f32 0.041666668, %v1197_v8  ;;  %v1208_v27 = vsel %vm1137_vm4, %v13833_v7, -inf }
 0x288   :  { %1209 = vmax.xlane.f32.xlu1 %v1208_v27 }
 0x289   :  { %v1349_v14 = vpop.f32.mrb[48].mxu1  ;;  %v13839_v15 = vpop.f32.mrb[64].mxu0  ;;  %v1211_v16 = vsel %vm1137_vm4, %v13835_v11, -inf }
 0x28a   :  { %v2071_v18 = vsel %vm1137_vm4, %v1349_v14, 0.0  ;;  %v11818_v22 = vpop.f32.mrb[65].mxu0  ;;  %1212 = vmax.xlane.f32.xlu0 %v1211_v16  ;;  %v11776_v23 = vpop.f32.mrb[49].mxu1 }
 0x28b   :  { %v2072_v24 = vadd.f32 %v2071_v18, %v2070_v17  ;;  %v1352_v58 = vpop.f32.mrb[50].mxu1  ;;  %v13846_v25 = vpop.f32.mrb[66].mxu0 }
 0x28c   :  { %v2086_v31 = vsel %vm1137_vm4, %v1352_v58, 0.0  ;;  %v11777_v32 = vpop.f32.mrb[51].mxu1  ;;  %v11819_v35 = vpop.f32.mrb[67].mxu0 }
 0x28d   :  { %v2087_v37 = vadd.f32 %v2086_v31, %v2085_v26  ;;  %v2074_v41 = vadd.f32 %v2073_v4, %v2072_v24 }
 0x28f   :  { %v2089_v44 = vadd.f32 %v2088_v38, %v2087_v37 }
 0x291   :  { %v1451_v45 = vpop.f32.mrb[52].mxu1  ;;  %v1808_v46 = vpop.f32.mrb[68].mxu0 }
 0x292   :  { %v2075_v47 = vsel %vm1137_vm4, %v1451_v45, 0.0  ;;  %v11788_v49 = vpop.f32.mrb[53].mxu1  ;;  %v11830_v54 = vpop.f32.mrb[69].mxu0 }
 0x293   :  { %v2076_v53 = vadd.f32 %v2075_v47, %v2074_v41  ;;  %v1454_v55 = vpop.f32.mrb[54].mxu1  ;;  %v1811_v56 = vpop.f32.mrb[70].mxu0 }
 0x294   :  { %v2090_v21 = vsel %vm1137_vm4, %v1454_v55, 0.0  ;;  %v11789_v59 = vpop.f32.mrb[55].mxu1  ;;  %v11831_v60 = vpop.f32.mrb[71].mxu0 }
 0x295   :  { %v2091_v61 = vadd.f32 %v2090_v21, %v2089_v44  ;;  %v2078_v2 = vadd.f32 %v2077_v6, %v2076_v53  ;;  %v2100_v59 = vsel %vm1137_vm4, %v13839_v15, 0.0 }
 0x297   :  { %v2093_v34 = vadd.f32 %v2092_v42, %v2091_v61 }
 0x299   :  { %v1553_v48 = vpop.f32.mrb[56].mxu1  ;;  %v1910_v5 = vpop.f32.mrb[72].mxu0 }
 0x29a   :  { %v2079_v8 = vsel %vm1137_vm4, %v1553_v48, 0.0  ;;  %v11800_v27 = vpop.f32.mrb[57].mxu1  ;;  %v11842_v14 = vpop.f32.mrb[73].mxu0  ;;  %v2103_v48 = vsel %vm1137_vm4, %v1808_v46, 0.0 }
 0x29b   :  { %v2080_v16 = vadd.f32 %v2079_v8, %v2078_v2  ;;  %v1556_v17 = vpop.f32.mrb[58].mxu1  ;;  %v1913_v18 = vpop.f32.mrb[74].mxu0 }
 0x29c   :  { %v2094_v22 = vsel %vm1137_vm4, %v1556_v17, 0.0  ;;  %v11801_v23 = vpop.f32.mrb[59].mxu1  ;;  %v11843_v24 = vpop.f32.mrb[75].mxu0  ;;  %v2118_v17 = vsel %vm1137_vm4, %v1811_v56, 0.0 }
 0x29d   :  { %v2095_v58 = vadd.f32 %v2094_v22, %v2093_v34  ;;  %v2082_v26 = vadd.f32 %v2081_v28, %v2080_v16  ;;  %v2115_v34 = vsel %vm1137_vm4, %v13846_v25, 0.0 }
 0x29f   :  { %v2097_v4 = vadd.f32 %v2096_v43, %v2095_v58 }
 0x2a1   :  { %v1655_v31 = vpop.f32.mrb[60].mxu1  ;;  %v2012_v32 = vpop.f32.mrb[76].mxu0 }
 0x2a2   :  { %v2083_v35 = vsel %vm1137_vm4, %v1655_v31, 0.0  ;;  %v11812_v37 = vpop.f32.mrb[61].mxu1  ;;  %v11854_v41 = vpop.f32.mrb[77].mxu0  ;;  %v2122_v31 = vsel %vm1137_vm4, %v1913_v18, 0.0 }
 0x2a3   :  { %v2084_v38 = vadd.f32 %v2083_v35, %v2082_v26  ;;  %v1658_v44 = vpop.f32.mrb[62].mxu1  ;;  %v2015_v45 = vpop.f32.mrb[78].mxu0  ;;  %v2107_v26 = vsel %vm1137_vm4, %v1910_v5, 0.0 }
 0x2a4   :  { %v2098_v57 = vsel %vm1137_vm4, %v1658_v44, 0.0  ;;  %v11813_v47 = vpop.f32.mrb[63].mxu1  ;;  %v11855_v49 = vpop.f32.mrb[79].mxu0 }
 0x2a5   :  { %v13863_v54 = vmul.f32 0.041666668, %v2084_v38  ;;  %v2099_v53 = vadd.f32 %v2098_v57, %v2097_v4  ;;  %v2111_v57 = vsel %vm1137_vm4, %v2012_v32, 0.0 }
 0x2a7   :  { %v13865_v55 = vmul.f32 0.041666668, %v2099_v53  ;;  %v2134_v3 = vsel %vm1137_vm4, %v13863_v54, -inf }
 0x2a8   :  { %2135 = vmax.xlane.f32.xlu0 %v2134_v3  ;;  %v2126_v3 = vsel %vm1137_vm4, %v2015_v45, 0.0  ;;  %v13893_v45 = vpop.permute.xlu1 %2278 }
 0x2a9   :  { %v1757_v6 = vpop.f32.mrb[64].mxu1  ;;  %v2137_v21 = vsel %vm1137_vm4, %v13865_v55, -inf }
 0x2aa   :  { %v2101_v60 = vsel %vm1137_vm4, %v1757_v6, 0.0  ;;  %2138 = vmax.xlane.f32.xlu1 %v2137_v21  ;;  %v11824_v61 = vpop.f32.mrb[65].mxu1 }
 0x2ab   :  { %v2102_v2 = vadd.f32 %v2101_v60, %v2100_v59  ;;  %v1760_v42 = vpop.f32.mrb[66].mxu1 }
 0x2ac   :  { %v2116_v8 = vsel %vm1137_vm4, %v1760_v42, 0.0  ;;  %v11825_v27 = vpop.f32.mrb[67].mxu1 }
 0x2ad   :  { %v2117_v14 = vadd.f32 %v2116_v8, %v2115_v34  ;;  %v2104_v16 = vadd.f32 %v2103_v48, %v2102_v2 }
 0x2af   :  { %v2119_v28 = vadd.f32 %v2118_v17, %v2117_v14  ;;  %v13895_v14 = vpop.permute.xlu1 %2366  ;;  %v13899_v17 = vpop.permute.xlu0 %2322 }
 0x2b1   :  { %v1859_v15 = vpop.f32.mrb[68].mxu1 }
 0x2b2   :  { %v2105_v22 = vsel %vm1137_vm4, %v1859_v15, 0.0  ;;  %v11836_v23 = vpop.f32.mrb[69].mxu1 }
 0x2b3   :  { %v2106_v24 = vadd.f32 %v2105_v22, %v2104_v16  ;;  %v1862_v58 = vpop.f32.mrb[70].mxu1  ;;  %v13897_v16 = vpop.permute.xlu1 %2410 }
 0x2b4   :  { %v2120_v25 = vsel %vm1137_vm4, %v1862_v58, 0.0  ;;  %v11837_v43 = vpop.f32.mrb[71].mxu1  ;;  %v13905_v15 = vpop.permute.xlu0 %2454 }
 0x2b5   :  { %v2121_v46 = vadd.f32 %v2120_v25, %v2119_v28  ;;  %v2108_v4 = vadd.f32 %v2107_v26, %v2106_v24 }
 0x2b7   :  { %v2123_v35 = vadd.f32 %v2122_v31, %v2121_v46  ;;  %v13903_v28 = vpop.permute.xlu1 %2498 }
 0x2b8   :  { %v13909_v23 = vpop.permute.xlu0 %2542 }
 0x2b9   :  { %v1961_v37 = vpop.f32.mrb[72].mxu1 }
 0x2ba   :  { %v2109_v56 = vsel %vm1137_vm4, %v1961_v37, 0.0  ;;  %v11848_v41 = vpop.f32.mrb[73].mxu1 }
 0x2bb   :  { %v2110_v38 = vadd.f32 %v2109_v56, %v2108_v4  ;;  %2765 = vrot.lane.b32.xlu1 %v13509_v0, %s13209_s17  ;;  %v1964_v44 = vpop.f32.mrb[74].mxu1  ;;  %v13907_v22 = vpop.permute.xlu1 %2589 }
 0x2bc   :  { %v2124_v5 = vsel %vm1137_vm4, %v1964_v44, 0.0  ;;  %v11849_v47 = vpop.f32.mrb[75].mxu1  ;;  %v13913_v58 = vpop.permute.xlu0 %2633 }
 0x2bd   :  { %v2125_v49 = vadd.f32 %v2124_v5, %v2123_v35  ;;  %v2112_v53 = vadd.f32 %v2111_v57, %v2110_v38 }
 0x2bf   :  { %v2127_v18 = vadd.f32 %v2126_v3, %v2125_v49  ;;  %v13911_v24 = vpop.permute.xlu1 %2677 }
 0x2c1   :  { %v2063_v6 = vpop.f32.mrb[76].mxu1 }
 0x2c2   :  { %v2113_v21 = vsel %vm1137_vm4, %v2063_v6, 0.0  ;;  %v11860_v59 = vpop.f32.mrb[77].mxu1 }
 0x2c3   :  { %v2114_v60 = vadd.f32 %v2113_v21, %v2112_v53  ;;  %v2066_v61 = vpop.f32.mrb[78].mxu1 }
 0x2c4   :  { %v2128_v2 = vsel %vm1137_vm4, %v2066_v61, 0.0  ;;  %v11861_v42 = vpop.f32.mrb[79].mxu1 }
 0x2c5   :  { %v2132_v34 = vmul.f32 0.041666668, %v2114_v60  ;;  %v2129_v48 = vadd.f32 %v2128_v2, %v2127_v18 }
 0x2c7   :  { %v2133_v32 = vmul.f32 0.041666668, %v2129_v48  ;;  %v2140_v8 = vsel %vm1137_vm4, %v2132_v34, -inf }
 0x2c8   :  { %2141 = vmax.xlane.f32.xlu0 %v2140_v8 }
 0x2c9   :  { %v2143_v27 = vsel %vm1137_vm4, %v2133_v32, -inf }
 0x2cc   :  { %2144 = vmax.xlane.f32.xlu0 %v2143_v27 }
 0x2e2   :  { %2721 = vrot.lane.b32.xlu0 %v13511_v1, %s13209_s17 }
 0x2f5   :  { %v1204_v26 = vpop.xlane.xlu1 %1203 }
 0x2f6   :  { %v1214_v25 = vsub.f32 %v13805_v33, %v1204_v26 }
 0x2f7   :  { %v1207_v43 = vpop.xlane.xlu0 %1206 }
 0x2f8   :  { %v1218_v46 = vmul.f32 1.442695, %v1214_v25  ;;  %v1215_v4 = vsub.f32 %v13807_v36, %v1207_v43 }
 0x2fa   :  { %13068 = vpow2.f32 %v1218_v46  ;;  %v1220_v31 = vmul.f32 1.442695, %v1215_v4 }
 0x2fc   :  { %13070 = vpow2.f32 %v1220_v31 }
 0x304   :  { %v13917_v35 = vpop.eup %13068 }
 0x305   :  { %v1226_v37 = vsel %vm1137_vm4, %v13917_v35, 0.0 }
 0x306   :  { %v13921_v56 = vpop.eup %13070  ;;  %1227 = vadd.xlane.f32.xlu0 %v1226_v37 }
 0x307   :  { %v1229_v41 = vsel %vm1137_vm4, %v13921_v56, 0.0 }
 0x308   :  { %1230 = vadd.xlane.f32.xlu1 %v1229_v41 }
 0x315   :  { %v1210_v38 = vpop.xlane.xlu1 %1209 }
 0x317   :  { %v1213_v33 = vpop.xlane.xlu0 %1212 }
 0x335   :  { %v2136_v44 = vpop.xlane.xlu0 %2135 }
 0x336   :  { %v2146_v36 = vsub.f32 %v13863_v54, %v2136_v44 }
 0x337   :  { %v2139_v57 = vpop.xlane.xlu1 %2138 }
 0x338   :  { %v2150_v5 = vmul.f32 1.442695, %v2146_v36  ;;  %v2147_v47 = vsub.f32 %v13865_v55, %v2139_v57  ;;  %v13997_v57 = vld [vmem:[%s18419_s3 + $0x10] sm:$0xff] }
 0x33a   :  { %13072 = vpow2.f32 %v2150_v5  ;;  %v2152_v49 = vmul.f32 1.442695, %v2147_v47  ;;  %v14002_v5 = vld [vmem:[%s18419_s3 + $0x18] sm:$0xff] }
 0x33c   :  { %13074 = vpow2.f32 %v2152_v49 }
 0x344   :  { %v13073_v53 = vpop.eup %13072 }
 0x345   :  { %v2158_v3 = vsel %vm1137_vm4, %v13073_v53, 0.0 }
 0x346   :  { %v13928_v18 = vpop.eup %13074  ;;  %2159 = vadd.xlane.f32.xlu1 %v2158_v3 }
 0x347   :  { %v2161_v6 = vsel %vm1137_vm4, %v13928_v18, 0.0 }
 0x348   :  { %2162 = vadd.xlane.f32.xlu0 %v2161_v6 }
 0x355   :  { %v2142_v54 = vpop.xlane.xlu0 %2141 }
 0x356   :  { %v2148_v21 = vsub.f32 %v2132_v34, %v2142_v54  ;;  %v1217_v34 = vsub.f32 %v13835_v11, %v1213_v33 }
 0x357   :  { %2853 = vrot.lane.b32.xlu1 %v13523_v12, %s13209_s17 }
 0x358   :  { %v2154_v60 = vmul.f32 1.442695, %v2148_v21  ;;  %v1224_v27 = vmul.f32 1.442695, %v1217_v34  ;;  %v14149_v21 = vld [vmem:[%s18419_s3 + $0x8] sm:$0xff] }
 0x359   :  { %v2145_v55 = vpop.xlane.xlu0 %2144 }
 0x35a   :  { %v2149_v59 = vsub.f32 %v2133_v32, %v2145_v55  ;;  %13076 = vpow2.f32 %v2154_v60  ;;  %v1216_v32 = vsub.f32 %v13833_v7, %v1210_v38  ;;  %v13966_v7 = vpop.permute.xlu1 %2765 }
 0x35c   :  { %v2156_v61 = vmul.f32 1.442695, %v2149_v59  ;;  %v1222_v26 = vmul.f32 1.442695, %v1216_v32 }
 0x35d   :  { %v13970_v11 = vpop.permute.xlu0 %2721 }
 0x35e   :  { %2809 = vrot.lane.b32.xlu0 %v13525_v13, %s13209_s17  ;;  %13078 = vpow2.f32 %v2156_v61 }
 0x35f   :  { %13080 = vpow2.f32 %v1224_v27 }
 0x360   :  { %13082 = vpow2.f32 %v1222_v26 }
 0x364   :  { %v13936_v2 = vpop.eup %13076 }
 0x365   :  { %v2164_v48 = vsel %vm1137_vm4, %v13936_v2, 0.0 }
 0x368   :  { %v13938_v42 = vpop.eup %13078 }
 0x369   :  { %v2167_v8 = vsel %vm1137_vm4, %v13938_v42, 0.0  ;;  %v13950_v25 = vpop.eup %13080 }
 0x36a   :  { %v13952_v43 = vpop.eup %13082  ;;  %v1235_v46 = vsel %vm1137_vm4, %v13950_v25, 0.0 }
 0x36b   :  { %v1232_v4 = vsel %vm1137_vm4, %v13952_v43, 0.0 }
 0x37b   :  { %2165 = vadd.xlane.f32.xlu1 %v2164_v48 }
 0x37d   :  { %2168 = vadd.xlane.f32.xlu0 %v2167_v8 }
 0x38c   :  { %2944 = vrot.lane.b32.xlu1 %v13431_v62, %s13210_s18 }
 0x393   :  { %2897 = vrot.lane.b32.xlu0 %v13433_v63, %s13210_s18  ;;  %v13978_v37 = vpop.xlane.xlu0 %1227 }
 0x395   :  { %v13974_v31 = vpop.xlane.xlu1 %1230 }
 0x3b0   :  { %1236 = vadd.xlane.f32.xlu1 %v1235_v46 }
 0x3b2   :  { %1233 = vadd.xlane.f32.xlu0 %v1232_v4 }
 0x3c1   :  { %3032 = vrot.lane.b32.xlu1 %v13446_v9, %s13210_s18 }
 0x3c5   :  { %3120 = vrot.lane.b32.xlu1 %v13458_v19, %s13210_s18 }
 0x3c8   :  { %2988 = vrot.lane.b32.xlu0 %v13448_v10, %s13210_s18 }
 0x3c9   :  { %3208 = vrot.lane.b32.xlu1 %v13470_v29, %s13210_s18 }
 0x3cc   :  { %3076 = vrot.lane.b32.xlu0 %v13460_v20, %s13210_s18 }
 0x3cd   :  { %3299 = vrot.lane.b32.xlu1 %v13482_v39, %s13210_s18 }
 0x3d0   :  { %3164 = vrot.lane.b32.xlu0 %v13472_v30, %s13210_s18 }
 0x3d1   :  { %3387 = vrot.lane.b32.xlu1 %v13497_v50, %s13210_s18 }
 0x3d3   :  { %v2160_v41 = vpop.xlane.xlu1 %2159 }
 0x3d4   :  { %13084 = vrcp.f32 %v2160_v41  ;;  %3252 = vrot.lane.b32.xlu0 %v13484_v40, %s13210_s18 }
 0x3d5   :  { %3475 = vrot.lane.b32.xlu1 %v13509_v0, %s13210_s18  ;;  %v2163_v33 = vpop.xlane.xlu0 %2162 }
 0x3d6   :  { %13086 = vrcp.f32 %v2163_v33 }
 0x3d8   :  { %3343 = vrot.lane.b32.xlu0 %v13499_v51, %s13210_s18 }
 0x3d9   :  { %3563 = vrot.lane.b32.xlu1 %v13523_v12, %s13210_s18 }
 0x3dc   :  { %3431 = vrot.lane.b32.xlu0 %v13511_v1, %s13210_s18 }
 0x3dd   :  { %3660 = vrot.lane.b32.xlu1 %v13431_v62, %s13211_s19 }
 0x3de   :  { %v13085_v38 = vpop.eup %13084 }
 0x3df   :  { %v2174_v44 = vmul.f32 %v13085_v38, %v13073_v53 }
 0x3e0   :  { %v13087_v36 = vpop.eup %13086  ;;  %3519 = vrot.lane.b32.xlu0 %v13525_v13, %s13210_s18 }
 0x3e1   :  { %v2175_v47 = vmul.f32 %v13087_v36, %v13928_v18  ;;  %3711 = vrot.lane.b32.xlu1 %v13448_v10, %s13211_s19  ;;  %v2181_v49 = vadd.f32 %v13997_v57, %v2174_v44 }
 0x3e3   :  { %v2182_v53 = vadd.f32 %v14002_v5, %v2175_v47 }
 0x3e4   :  { %3609 = vrot.lane.b32.xlu0 %v13433_v63, %s13211_s19 }
 0x3e5   :  { %v2185_v3 = vpack.c.bf16 %v2182_v53, %v2181_v49  ;;  %3762 = vrot.lane.b32.xlu1 %v13446_v9, %s13211_s19 }
 0x3e7   :  { %11865 = vmatmul.mubr.msk.bf16.vlgmr.msra.gmra.mrb[80].mxu0 %vm1137_vm4, %v2185_v3  ;;  %11871 = vmatmul.mubr.msk.bf16.vlgmr.msra.gmra.mrb[80].mxu1 %vm1137_vm4, %v2185_v3 }
 0x3e8   :  { %11875 = vmatpush3.bf16.msra.mxu0 %v13893_v45  ;;  %11881 = vmatpush3.bf16.msra.mxu1 %v13899_v17  ;;  %v2854_v45 = vpop.permute.xlu1 %2853 }
 0x3e9   :  { %3607 = vrot.lane.b32.xlu0 %v13433_v63, %s13212_s24  ;;  %3813 = vrot.lane.b32.xlu1 %v13460_v20, %s13211_s19 }
 0x3ea   :  { %11876 = vmatprep.mubr.msk.bf16.mxu0 %vm13205_vm2, %v13204_v52  ;;  %11882 = vmatprep.mubr.msk.bf16.mxu1 %vm13205_vm2, %v13204_v52 }
 0x3eb   :  { %11886 = vmatprep.subr.bf16.mxu0 %v13204_v52  ;;  %11892 = vmatprep.subr.bf16.mxu1 %v13204_v52 }
 0x3ed   :  { %3658 = vrot.lane.b32.xlu0 %v13431_v62, %s13212_s24  ;;  %3864 = vrot.lane.b32.xlu1 %v13458_v19, %s13211_s19 }
 0x3ef   :  { %11877 = vmatmul.mubr.msk.bf16.vlgmr.msra.gmra.mrb[84].mxu0 %vm1137_vm4, %v2185_v3  ;;  %11883 = vmatmul.mubr.msk.bf16.vlgmr.msra.gmra.mrb[84].mxu1 %vm1137_vm4, %v2185_v3 }
 0x3f0   :  { %11887 = vmatpush3.bf16.msra.mxu0 %v13895_v14  ;;  %11893 = vmatpush3.bf16.msra.mxu1 %v13897_v16  ;;  %v2810_v14 = vpop.permute.xlu0 %2809 }
 0x3f1   :  { %3709 = vrot.lane.b32.xlu0 %v13448_v10, %s13212_s24  ;;  %3915 = vrot.lane.b32.xlu1 %v13472_v30, %s13211_s19 }
 0x3f2   :  { %11888 = vmatprep.mubr.msk.bf16.mxu0 %vm13205_vm2, %v13204_v52  ;;  %11894 = vmatprep.mubr.msk.bf16.mxu1 %vm13205_vm2, %v13204_v52 }
 0x3f3   :  { %11898 = vmatprep.subr.bf16.mxu0 %v13204_v52  ;;  %11904 = vmatprep.subr.bf16.mxu1 %v13204_v52 }
 0x3f5   :  { %3760 = vrot.lane.b32.xlu0 %v13446_v9, %s13212_s24  ;;  %3966 = vrot.lane.b32.xlu1 %v13470_v29, %s13211_s19 }
 0x3f7   :  { %11889 = vmatmul.mubr.msk.bf16.vlgmr.msra.gmra.mrb[88].mxu0 %vm1137_vm4, %v2185_v3  ;;  %11895 = vmatmul.mubr.msk.bf16.vlgmr.msra.gmra.mrb[88].mxu1 %vm1137_vm4, %v2185_v3 }
 0x3f8   :  { %11899 = vmatpush3.bf16.msra.mxu0 %v13905_v15  ;;  %11905 = vmatpush3.bf16.msra.mxu1 %v13903_v28 }
 0x3f9   :  { %3811 = vrot.lane.b32.xlu0 %v13460_v20, %s13212_s24  ;;  %4017 = vrot.lane.b32.xlu1 %v13484_v40, %s13211_s19 }
 0x3fa   :  { %11900 = vmatprep.mubr.msk.bf16.mxu0 %vm13205_vm2, %v13204_v52  ;;  %11906 = vmatprep.mubr.msk.bf16.mxu1 %vm13205_vm2, %v13204_v52 }
 0x3fb   :  { %11910 = vmatprep.subr.bf16.mxu0 %v13204_v52  ;;  %11916 = vmatprep.subr.bf16.mxu1 %v13204_v52 }
 0x3fd   :  { %3862 = vrot.lane.b32.xlu0 %v13458_v19, %s13212_s24  ;;  %4068 = vrot.lane.b32.xlu1 %v13482_v39, %s13211_s19 }
 0x3ff   :  { %11901 = vmatmul.mubr.msk.bf16.vlgmr.msra.gmra.mrb[92].mxu0 %vm1137_vm4, %v2185_v3  ;;  %11907 = vmatmul.mubr.msk.bf16.vlgmr.msra.gmra.mrb[92].mxu1 %vm1137_vm4, %v2185_v3 }
 0x400   :  { %11911 = vmatpush3.bf16.msra.mxu0 %v13909_v23  ;;  %11917 = vmatpush3.bf16.msra.mxu1 %v13907_v22 }
 0x401   :  { %3913 = vrot.lane.b32.xlu0 %v13472_v30, %s13212_s24  ;;  %4119 = vrot.lane.b32.xlu1 %v13499_v51, %s13211_s19 }
 0x402   :  { %11912 = vmatprep.mubr.msk.bf16.mxu0 %vm13205_vm2, %v13204_v52  ;;  %11918 = vmatprep.mubr.msk.bf16.mxu1 %vm13205_vm2, %v13204_v52 }
 0x403   :  { %11922 = vmatprep.subr.bf16.mxu0 %v13204_v52  ;;  %11928 = vmatprep.subr.bf16.mxu1 %v13204_v52 }
 0x405   :  { %3964 = vrot.lane.b32.xlu0 %v13470_v29, %s13212_s24  ;;  %4170 = vrot.lane.b32.xlu1 %v13497_v50, %s13211_s19 }
 0x408   :  { %v2166_v16 = vpop.xlane.xlu1 %2165 }
 0x409   :  { %13088 = vrcp.f32 %v2166_v16  ;;  %4015 = vrot.lane.b32.xlu0 %v13484_v40, %s13212_s24  ;;  %4221 = vrot.lane.b32.xlu1 %v13511_v1, %s13211_s19 }
 0x40a   :  { %v2169_v17 = vpop.xlane.xlu0 %2168 }
 0x40b   :  { %13090 = vrcp.f32 %v2169_v17 }
 0x40c   :  { %13092 = vrcp.f32 %v13974_v31  ;;  %v2945_v60 = vpop.permute.xlu1 %2944 }
 0x40d   :  { %4066 = vrot.lane.b32.xlu0 %v13482_v39, %s13212_s24  ;;  %4272 = vrot.lane.b32.xlu1 %v13509_v0, %s13211_s19  ;;  %13094 = vrcp.f32 %v13978_v37 }
 0x40e   :  { %v2898_v61 = vpop.permute.xlu0 %2897 }
 0x411   :  { %4117 = vrot.lane.b32.xlu0 %v13499_v51, %s13212_s24  ;;  %4323 = vrot.lane.b32.xlu1 %v13525_v13, %s13211_s19 }
 0x413   :  { %v13089_v28 = vpop.eup %13088 }
 0x414   :  { %v2176_v15 = vmul.f32 %v13089_v28, %v13936_v2  ;;  %v1246_v2 = vld [vmem:[%s18419_s3] sm:$0xff] }
 0x415   :  { %v13091_v22 = vpop.eup %13090  ;;  %4168 = vrot.lane.b32.xlu0 %v13497_v50, %s13212_s24  ;;  %4374 = vrot.lane.b32.xlu1 %v13523_v12, %s13211_s19 }
 0x416   :  { %v2177_v23 = vmul.f32 %v13091_v22, %v13938_v42  ;;  %v2183_v18 = vadd.f32 %v13997_v57, %v2176_v15 }
 0x418   :  { %v2184_v6 = vadd.f32 %v14002_v5, %v2177_v23 }
 0x419   :  { %4219 = vrot.lane.b32.xlu0 %v13511_v1, %s13212_s24  ;;  %4372 = vrot.lane.b32.xlu1 %v13523_v12, %s13212_s24 }
 0x41a   :  { %v2186_v54 = vpack.c.bf16 %v2184_v6, %v2183_v18 }
 0x41c   :  { %11913 = vmatmul.mubr.msk.bf16.vlgmr.msra.gmra.mrb[96].mxu0 %vm1137_vm4, %v2186_v54  ;;  %11919 = vmatmul.mubr.msk.bf16.vlgmr.msra.gmra.mrb[96].mxu1 %vm1137_vm4, %v2186_v54 }
 0x41d   :  { %4270 = vrot.lane.b32.xlu0 %v13509_v0, %s13212_s24  ;;  %11923 = vmatpush3.bf16.msra.mxu0 %v13913_v58 }
 0x41e   :  { %11929 = vmatpush3.bf16.msra.mxu1 %v13911_v24  ;;  %11924 = vmatprep.mubr.msk.bf16.mxu0 %vm13205_vm2, %v13204_v52  ;;  %v13093_v24 = vpop.eup %13092 }
 0x41f   :  { %11930 = vmatprep.mubr.msk.bf16.mxu1 %vm13205_vm2, %v13204_v52  ;;  %11934 = vmatprep.subr.bf16.mxu0 %v13204_v52  ;;  %v13095_v58 = vpop.eup %13094  ;;  %v1243_v55 = vmul.f32 %v13093_v24, %v13921_v56 }
 0x420   :  { %11940 = vmatprep.subr.bf16.mxu1 %v13204_v52  ;;  %v1242_v59 = vmul.f32 %v13095_v58, %v13917_v35 }
 0x421   :  { %4321 = vrot.lane.b32.xlu0 %v13525_v13, %s13212_s24  ;;  %v1249_v56 = vadd.f32 %v14149_v21, %v1243_v55 }
 0x422   :  { %v1248_v35 = vadd.f32 %v1246_v2, %v1242_v59 }
 0x424   :  { %11925 = vmatmul.mubr.msk.bf16.vlgmr.msra.gmra.mrb[100].mxu0 %vm1137_vm4, %v2186_v54  ;;  %11931 = vmatmul.mubr.msk.bf16.vlgmr.msra.gmra.mrb[100].mxu1 %vm1137_vm4, %v2186_v54  ;;  %v1252_v42 = vpack.c.bf16 %v1249_v56, %v1248_v35 }
 0x425   :  { %11935 = vmatpush3.bf16.msra.mxu0 %v13970_v11  ;;  %11941 = vmatpush3.bf16.msra.mxu1 %v13966_v7 }
 0x426   :  { %11936 = vmatprep.mubr.msk.bf16.mxu0 %vm13205_vm2, %v13204_v52  ;;  %11942 = vmatprep.mubr.msk.bf16.mxu1 %vm13205_vm2, %v13204_v52 }
 0x427   :  { %11946 = vmatprep.subr.bf16.mxu0 %v13204_v52  ;;  %11952 = vmatprep.subr.bf16.mxu1 %v13204_v52 }
 0x42c   :  { %11937 = vmatmul.mubr.msk.bf16.vlgmr.msra.gmra.mrb[104].mxu0 %vm1137_vm4, %v2186_v54  ;;  %11943 = vmatmul.mubr.msk.bf16.vlgmr.msra.gmra.mrb[104].mxu1 %vm1137_vm4, %v2186_v54 }
 0x42d   :  { %11947 = vmatpush3.bf16.msra.mxu0 %v2810_v14  ;;  %11953 = vmatpush3.bf16.msra.mxu1 %v2854_v45 }
 0x42e   :  { %11948 = vmatprep.mubr.msk.bf16.mxu0 %vm13205_vm2, %v13204_v52  ;;  %11954 = vmatprep.mubr.msk.bf16.mxu1 %vm13205_vm2, %v13204_v52 }
 0x42f   :  { %11958 = vmatprep.subr.bf16.mxu0 %v13204_v52  ;;  %11964 = vmatprep.subr.bf16.mxu1 %v13204_v52 }
 0x434   :  { %11949 = vmatmul.mubr.msk.bf16.vlgmr.msra.gmra.mrb[108].mxu0 %vm1137_vm4, %v2186_v54  ;;  %11955 = vmatmul.mubr.msk.bf16.vlgmr.msra.gmra.mrb[108].mxu1 %vm1137_vm4, %v2186_v54 }
 0x435   :  { %11959 = vmatpush3.bf16.msra.mxu0 %v2898_v61  ;;  %11965 = vmatpush3.bf16.msra.mxu1 %v2945_v60 }
 0x436   :  { %11960 = vmatprep.mubr.msk.bf16.mxu0 %vm13205_vm2, %v13204_v52  ;;  %11966 = vmatprep.mubr.msk.bf16.mxu1 %vm13205_vm2, %v13204_v52 }
 0x437   :  { %11976 = vmatprep.subr.bf16.mxu1 %v13204_v52  ;;  %11970 = vmatprep.subr.bf16.mxu0 %v13204_v52 }
 0x43c   :  { %11961 = vmatmul.mubr.msk.bf16.vlgmr.msra.gmra.mrb[80].mxu0 %vm1137_vm4, %v1252_v42  ;;  %11967 = vmatmul.mubr.msk.bf16.vlgmr.msra.gmra.mrb[80].mxu1 %vm1137_vm4, %v1252_v42 }
 0x43d   :  { %v1237_v48 = vpop.xlane.xlu1 %1236  ;;  %11978 = vmatprep.mubr.msk.bf16.mxu1 %vm13205_vm2, %v13204_v52  ;;  %11972 = vmatprep.mubr.msk.bf16.mxu0 %vm13205_vm2, %v13204_v52 }
 0x43f   :  { %v1234_v8 = vpop.xlane.xlu0 %1233 }
 0x440   :  { %13096 = vrcp.f32 %v1234_v8 }
 0x441   :  { %v3033_v34 = vpop.permute.xlu1 %3032  ;;  %13098 = vrcp.f32 %v1237_v48 }
 0x442   :  { %11977 = vmatpush3.bf16.msra.mxu1 %v3033_v34 }
 0x443   :  { %v2989_v32 = vpop.permute.xlu0 %2988  ;;  %11988 = vmatprep.subr.bf16.mxu1 %v13204_v52 }
 0x444   :  { %11971 = vmatpush3.bf16.msra.mxu0 %v2989_v32 }
 0x445   :  { %v3121_v27 = vpop.permute.xlu1 %3120  ;;  %11979 = vmatmul.mubr.msk.bf16.vlgmr.msra.gmra.mrb[84].mxu1 %vm1137_vm4, %v1252_v42  ;;  %11982 = vmatprep.subr.bf16.mxu0 %v13204_v52 }
 0x446   :  { %11989 = vmatpush3.bf16.msra.mxu1 %v3121_v27  ;;  %11990 = vmatprep.mubr.msk.bf16.mxu1 %vm13205_vm2, %v13204_v52 }
 0x447   :  { %11973 = vmatmul.mubr.msk.bf16.vlgmr.msra.gmra.mrb[84].mxu0 %vm1137_vm4, %v1252_v42  ;;  %v3077_v26 = vpop.permute.xlu0 %3076  ;;  %12000 = vmatprep.subr.bf16.mxu1 %v13204_v52 }
 0x448   :  { %11983 = vmatpush3.bf16.msra.mxu0 %v3077_v26  ;;  %11984 = vmatprep.mubr.msk.bf16.mxu0 %vm13205_vm2, %v13204_v52 }
 0x449   :  { %v3209_v46 = vpop.permute.xlu1 %3208  ;;  %11994 = vmatprep.subr.bf16.mxu0 %v13204_v52 }
 0x44a   :  { %v13097_v31 = vpop.eup %13096 }
 0x44b   :  { %v3165_v4 = vpop.permute.xlu0 %3164  ;;  %v13099_v41 = vpop.eup %13098  ;;  %v1244_v33 = vmul.f32 %v13097_v31, %v13952_v43 }
 0x44c   :  { %v1245_v44 = vmul.f32 %v13099_v41, %v13950_v25 }
 0x44d   :  { %v3300_v7 = vpop.permute.xlu1 %3299  ;;  %11991 = vmatmul.mubr.msk.bf16.vlgmr.msra.gmra.mrb[88].mxu1 %vm1137_vm4, %v1252_v42  ;;  %v1250_v57 = vadd.f32 %v1246_v2, %v1244_v33 }
 0x44e   :  { %12001 = vmatpush3.bf16.msra.mxu1 %v3209_v46  ;;  %12002 = vmatprep.mubr.msk.bf16.mxu1 %vm13205_vm2, %v13204_v52  ;;  %v1251_v43 = vadd.f32 %v14149_v21, %v1245_v44 }
 0x44f   :  { %11985 = vmatmul.mubr.msk.bf16.vlgmr.msra.gmra.mrb[88].mxu0 %vm1137_vm4, %v1252_v42  ;;  %v3253_v11 = vpop.permute.xlu0 %3252  ;;  %12012 = vmatprep.subr.bf16.mxu1 %v13204_v52 }
 0x450   :  { %11995 = vmatpush3.bf16.msra.mxu0 %v3165_v4  ;;  %11996 = vmatprep.mubr.msk.bf16.mxu0 %vm13205_vm2, %v13204_v52  ;;  %v1253_v47 = vpack.c.bf16 %v1251_v43, %v1250_v57 }
 0x451   :  { %v3388_v37 = vpop.permute.xlu1 %3387  ;;  %12006 = vmatprep.subr.bf16.mxu0 %v13204_v52 }
 0x453   :  { %v3344_v38 = vpop.permute.xlu0 %3343 }
 0x455   :  { %v3476_v36 = vpop.permute.xlu1 %3475  ;;  %12003 = vmatmul.mubr.msk.bf16.vlgmr.msra.gmra.mrb[92].mxu1 %vm1137_vm4, %v1252_v42 }
 0x456   :  { %12013 = vmatpush3.bf16.msra.mxu1 %v3300_v7  ;;  %12014 = vmatprep.mubr.msk.bf16.mxu1 %vm13205_vm2, %v13204_v52 }
 0x457   :  { %11997 = vmatmul.mubr.msk.bf16.vlgmr.msra.gmra.mrb[92].mxu0 %vm1137_vm4, %v1252_v42  ;;  %v3432_v5 = vpop.permute.xlu0 %3431  ;;  %12024 = vmatprep.subr.bf16.mxu1 %v13204_v52 }
 0x458   :  { %12007 = vmatpush3.bf16.msra.mxu0 %v3253_v11  ;;  %12008 = vmatprep.mubr.msk.bf16.mxu0 %vm13205_vm2, %v13204_v52 }
 0x459   :  { %v3564_v25 = vpop.permute.xlu1 %3563  ;;  %12018 = vmatprep.subr.bf16.mxu0 %v13204_v52 }
 0x45b   :  { %v3520_v49 = vpop.permute.xlu0 %3519 }
 0x45d   :  { %v3661_v53 = vpop.permute.xlu1 %3660  ;;  %12015 = vmatmul.mubr.msk.bf16.vlgmr.msra.gmra.mrb[96].mxu1 %vm1137_vm4, %v1253_v47 }
 0x45e   :  { %12025 = vmatpush3.bf16.msra.mxu1 %v3388_v37  ;;  %12026 = vmatprep.mubr.msk.bf16.mxu1 %vm13205_vm2, %v13204_v52  ;;  %v3666_v6 = vsel %vm339_vm3, %v3661_v53, 0 }
 0x45f   :  { %12009 = vmatmul.mubr.msk.bf16.vlgmr.msra.gmra.mrb[96].mxu0 %vm1137_vm4, %v1253_v47  ;;  %v3610_v3 = vpop.permute.xlu0 %3609  ;;  %12036 = vmatprep.subr.bf16.mxu1 %v13204_v52 }
 0x460   :  { %12019 = vmatpush3.bf16.msra.mxu0 %v3344_v38  ;;  %12020 = vmatprep.mubr.msk.bf16.mxu0 %vm13205_vm2, %v13204_v52  ;;  %v3615_v24 = vsel %vm339_vm3, %v3610_v3, 0 }
 0x461   :  { %v3712_v45 = vpop.permute.xlu1 %3711  ;;  %12030 = vmatprep.subr.bf16.mxu0 %v13204_v52 }
 0x462   :  { %v3717_v59 = vsel %vm339_vm3, %v3712_v45, 0 }
 0x463   :  { %v3608_v14 = vpop.permute.xlu0 %3607 }
 0x465   :  { %v3763_v16 = vpop.permute.xlu1 %3762  ;;  %12027 = vmatmul.mubr.msk.bf16.vlgmr.msra.gmra.mrb[100].mxu1 %vm1137_vm4, %v1253_v47 }
 0x466   :  { %12037 = vmatpush3.bf16.msra.mxu1 %v3476_v36  ;;  %12038 = vmatprep.mubr.msk.bf16.mxu1 %vm13205_vm2, %v13204_v52  ;;  %v3768_v21 = vsel %vm339_vm3, %v3763_v16, 0 }
 0x467   :  { %12021 = vmatmul.mubr.msk.bf16.vlgmr.msra.gmra.mrb[100].mxu0 %vm1137_vm4, %v1253_v47  ;;  %v3659_v17 = vpop.permute.xlu0 %3658  ;;  %12048 = vmatprep.subr.bf16.mxu1 %v13204_v52 }
 0x468   :  { %12031 = vmatpush3.bf16.msra.mxu0 %v3432_v5  ;;  %12032 = vmatprep.mubr.msk.bf16.mxu0 %vm13205_vm2, %v13204_v52 }
 0x469   :  { %v3814_v28 = vpop.permute.xlu1 %3813  ;;  %12042 = vmatprep.subr.bf16.mxu0 %v13204_v52 }
 0x46a   :  { %v3819_v35 = vsel %vm339_vm3, %v3814_v28, 0 }
 0x46b   :  { %v3710_v15 = vpop.permute.xlu0 %3709 }
 0x46d   :  { %12039 = vmatmul.mubr.msk.bf16.vlgmr.msra.gmra.mrb[104].mxu1 %vm1137_vm4, %v1253_v47  ;;  %v3865_v22 = vpop.permute.xlu1 %3864 }
 0x46e   :  { %12049 = vmatpush3.bf16.msra.mxu1 %v3564_v25  ;;  %12050 = vmatprep.mubr.msk.bf16.mxu1 %vm13205_vm2, %v13204_v52  ;;  %v3870_v2 = vsel %vm339_vm3, %v3865_v22, 0 }
 0x46f   :  { %12033 = vmatmul.mubr.msk.bf16.vlgmr.msra.gmra.mrb[104].mxu0 %vm1137_vm4, %v1253_v47  ;;  %12060 = vmatprep.subr.bf16.mxu1 %v13204_v52  ;;  %v3761_v23 = vpop.permute.xlu0 %3760 }
 0x470   :  { %12043 = vmatpush3.bf16.msra.mxu0 %v3520_v49  ;;  %12044 = vmatprep.mubr.msk.bf16.mxu0 %vm13205_vm2, %v13204_v52 }
 0x471   :  { %12054 = vmatprep.subr.bf16.mxu0 %v13204_v52  ;;  %v3916_v18 = vpop.permute.xlu1 %3915 }
 0x472   :  { %v3921_v32 = vsel %vm339_vm3, %v3916_v18, 0 }
 0x473   :  { %v3812_v54 = vpop.permute.xlu0 %3811 }
 0x475   :  { %12051 = vmatmul.mubr.msk.bf16.vlgmr.msra.gmra.mrb[108].mxu1 %vm1137_vm4, %v1253_v47  ;;  %v3967_v58 = vpop.permute.xlu1 %3966 }
 0x476   :  { %12062 = vmatprep.mubr.msk.bf16.mxu1 %vm13205_vm2, %v13204_v52  ;;  %v3972_v8 = vsel %vm339_vm3, %v3967_v58, 0 }
 0x477   :  { %12061 = vmatpush3.bf16.xpose.msra.mxu1 %v3666_v6  ;;  %12045 = vmatmul.mubr.msk.bf16.vlgmr.msra.gmra.mrb[108].mxu0 %vm1137_vm4, %v1253_v47  ;;  %v3863_v55 = vpop.permute.xlu0 %3862 }
 0x478   :  { %12072 = vmatprep.subr.bf16.mxu1 %v13204_v52  ;;  %12056 = vmatprep.mubr.msk.bf16.mxu0 %vm13205_vm2, %v13204_v52 }
 0x479   :  { %12055 = vmatpush3.bf16.xpose.msra.mxu0 %v3615_v24  ;;  %v4018_v60 = vpop.permute.xlu1 %4017 }
 0x47a   :  { %12066 = vmatprep.subr.bf16.mxu0 %v13204_v52  ;;  %v4023_v4 = vsel %vm339_vm3, %v4018_v60, 0 }
 0x47b   :  { %v3914_v61 = vpop.permute.xlu0 %3913 }
 0x47d   :  { %v4069_v56 = vpop.permute.xlu1 %4068 }
 0x47e   :  { %12063 = vmatmul.mubr.msk.bf16.vlgmr.msra.gmra.mrb[112].mxu1 %vm339_vm3, %v3659_v17  ;;  %v4074_v46 = vsel %vm339_vm3, %v4069_v56, 0 }
 0x47f   :  { %12073 = vmatpush3.bf16.xpose.msra.mxu1 %v3768_v21  ;;  %12074 = vmatprep.mubr.msk.bf16.mxu1 %vm13205_vm2, %v13204_v52  ;;  %v3965_v42 = vpop.permute.xlu0 %3964 }
 0x480   :  { %12057 = vmatmul.mubr.msk.bf16.vlgmr.msra.gmra.mrb[112].mxu0 %vm339_vm3, %v3608_v14  ;;  %12084 = vmatprep.subr.bf16.mxu1 %v13204_v52 }
 0x481   :  { %12067 = vmatpush3.bf16.xpose.msra.mxu0 %v3717_v59  ;;  %12068 = vmatprep.mubr.msk.bf16.mxu0 %vm13205_vm2, %v13204_v52  ;;  %v4120_v48 = vpop.permute.xlu1 %4119 }
 0x482   :  { %12078 = vmatprep.subr.bf16.mxu0 %v13204_v52  ;;  %v4125_v41 = vsel %vm339_vm3, %v4120_v48, 0 }
 0x483   :  { %v4016_v34 = vpop.permute.xlu0 %4015 }
 0x485   :  { %v4171_v27 = vpop.permute.xlu1 %4170 }
 0x486   :  { %12075 = vmatmul.mubr.msk.bf16.vlgmr.msra.gmra.mrb[116].mxu1 %vm339_vm3, %v3761_v23  ;;  %v4176_v31 = vsel %vm339_vm3, %v4171_v27, 0 }
 0x487   :  { %12085 = vmatpush3.bf16.xpose.msra.mxu1 %v3870_v2  ;;  %12086 = vmatprep.mubr.msk.bf16.mxu1 %vm13205_vm2, %v13204_v52  ;;  %v4067_v26 = vpop.permute.xlu0 %4066 }
 0x488   :  { %12069 = vmatmul.mubr.msk.bf16.vlgmr.msra.gmra.mrb[116].mxu0 %vm339_vm3, %v3710_v15  ;;  %12096 = vmatprep.subr.bf16.mxu1 %v13204_v52 }
 0x489   :  { %12079 = vmatpush3.bf16.xpose.msra.mxu0 %v3819_v35  ;;  %12080 = vmatprep.mubr.msk.bf16.mxu0 %vm13205_vm2, %v13204_v52  ;;  %v4222_v7 = vpop.permute.xlu1 %4221 }
 0x48a   :  { %12090 = vmatprep.subr.bf16.mxu0 %v13204_v52  ;;  %v4227_v57 = vsel %vm339_vm3, %v4222_v7, 0 }
 0x48b   :  { %v4118_v11 = vpop.permute.xlu0 %4117 }
 0x48d   :  { %v4273_v37 = vpop.permute.xlu1 %4272 }
 0x48e   :  { %12087 = vmatmul.mubr.msk.bf16.vlgmr.msra.gmra.mrb[120].mxu1 %vm339_vm3, %v3863_v55  ;;  %v4278_v44 = vsel %vm339_vm3, %v4273_v37, 0 }
 0x48f   :  { %12097 = vmatpush3.bf16.xpose.msra.mxu1 %v3972_v8  ;;  %12098 = vmatprep.mubr.msk.bf16.mxu1 %vm13205_vm2, %v13204_v52  ;;  %v4169_v33 = vpop.permute.xlu0 %4168 }
 0x490   :  { %12081 = vmatmul.mubr.msk.bf16.vlgmr.msra.gmra.mrb[120].mxu0 %vm339_vm3, %v3812_v54  ;;  %12108 = vmatprep.subr.bf16.mxu1 %v13204_v52 }
 0x491   :  { %12091 = vmatpush3.bf16.xpose.msra.mxu0 %v3921_v32  ;;  %12092 = vmatprep.mubr.msk.bf16.mxu0 %vm13205_vm2, %v13204_v52  ;;  %v4324_v38 = vpop.permute.xlu1 %4323 }
 0x492   :  { %12102 = vmatprep.subr.bf16.mxu0 %v13204_v52  ;;  %v4329_v47 = vsel %vm339_vm3, %v4324_v38, 0 }
 0x493   :  { %v4220_v36 = vpop.permute.xlu0 %4219 }
 0x495   :  { %v4375_v5 = vpop.permute.xlu1 %4374 }
 0x496   :  { %12099 = vmatmul.mubr.msk.bf16.vlgmr.msra.gmra.mrb[124].mxu1 %vm339_vm3, %v3965_v42  ;;  %v4380_v25 = vsel %vm339_vm3, %v4375_v5, 0 }
 0x497   :  { %12109 = vmatpush3.bf16.xpose.msra.mxu1 %v4074_v46  ;;  %12110 = vmatprep.mubr.msk.bf16.mxu1 %vm13205_vm2, %v13204_v52  ;;  %v4271_v43 = vpop.permute.xlu0 %4270 }
 0x498   :  { %12093 = vmatmul.mubr.msk.bf16.vlgmr.msra.gmra.mrb[124].mxu0 %vm339_vm3, %v3914_v61  ;;  %12120 = vmatprep.subr.bf16.mxu1 %v13204_v52 }
 0x499   :  { %12103 = vmatpush3.bf16.xpose.msra.mxu0 %v4023_v4  ;;  %12104 = vmatprep.mubr.msk.bf16.mxu0 %vm13205_vm2, %v13204_v52  ;;  %v4373_v49 = vpop.permute.xlu1 %4372 }
 0x49a   :  { %12114 = vmatprep.subr.bf16.mxu0 %v13204_v52 }
 0x49b   :  { %v4322_v53 = vpop.permute.xlu0 %4321 }
 0x49e   :  { %12111 = vmatmul.mubr.msk.bf16.vlgmr.msra.gmra.mrb[128].mxu1 %vm339_vm3, %v4067_v26 }
 0x49f   :  { %12121 = vmatpush3.bf16.xpose.msra.mxu1 %v4176_v31  ;;  %12122 = vmatprep.mubr.msk.bf16.mxu1 %vm13205_vm2, %v13204_v52 }
 0x4a0   :  { %12105 = vmatmul.mubr.msk.bf16.vlgmr.msra.gmra.mrb[128].mxu0 %vm339_vm3, %v4016_v34  ;;  %12132 = vmatprep.subr.bf16.mxu1 %v13204_v52 }
 0x4a1   :  { %12115 = vmatpush3.bf16.xpose.msra.mxu0 %v4125_v41  ;;  %12116 = vmatprep.mubr.msk.bf16.mxu0 %vm13205_vm2, %v13204_v52 }
 0x4a2   :  { %12126 = vmatprep.subr.bf16.mxu0 %v13204_v52 }
 0x4a6   :  { %12123 = vmatmul.mubr.msk.bf16.vlgmr.msra.gmra.mrb[132].mxu1 %vm339_vm3, %v4169_v33 }
 0x4a7   :  { %12133 = vmatpush3.bf16.xpose.msra.mxu1 %v4278_v44  ;;  %12134 = vmatprep.mubr.msk.bf16.mxu1 %vm13205_vm2, %v13204_v52 }
 0x4a8   :  { %12117 = vmatmul.mubr.msk.bf16.vlgmr.msra.gmra.mrb[132].mxu0 %vm339_vm3, %v4118_v11  ;;  %12144 = vmatprep.subr.bf16.mxu1 %v13204_v52 }
 0x4a9   :  { %12127 = vmatpush3.bf16.xpose.msra.mxu0 %v4227_v57  ;;  %12128 = vmatprep.mubr.msk.bf16.mxu0 %vm13205_vm2, %v13204_v52 }
 0x4aa   :  { %12138 = vmatprep.subr.bf16.mxu0 %v13204_v52 }
 0x4ae   :  { %12135 = vmatmul.mubr.msk.bf16.vlgmr.msra.gmra.mrb[136].mxu1 %vm339_vm3, %v4271_v43 }
 0x4af   :  { %12145 = vmatpush3.bf16.xpose.msra.mxu1 %v4380_v25  ;;  %12146 = vmatprep.mubr.msk.bf16.mxu1 %vm13205_vm2, %v13204_v52 }
 0x4b0   :  { %12129 = vmatmul.mubr.msk.bf16.vlgmr.msra.gmra.mrb[136].mxu0 %vm339_vm3, %v4220_v36  ;;  %12156 = vmatprep.subr.bf16.mxu1 %v13204_v52 }
 0x4b1   :  { %12139 = vmatpush3.bf16.xpose.msra.mxu0 %v4329_v47  ;;  %12140 = vmatprep.mubr.msk.bf16.mxu0 %vm13205_vm2, %v13204_v52 }
 0x4b2   :  { %12150 = vmatprep.subr.bf16.mxu0 %v13204_v52 }
 0x4b6   :  { %12147 = vmatmul.mubr.msk.bf16.vlgmr.msra.gmra.mrb[140].mxu1 %vm339_vm3, %v4373_v49 }
 0x4b7   :  { %12158 = vmatprep.mubr.msk.bf16.mxu1 %vm13205_vm2, %v13204_v52 }
 0x4b8   :  { %12141 = vmatmul.mubr.msk.bf16.vlgmr.msra.gmra.mrb[140].mxu0 %vm339_vm3, %v4322_v53 }
 0x4b9   :  { %12152 = vmatprep.mubr.msk.bf16.mxu0 %vm13205_vm2, %v13204_v52 }
 0x551   :  { %v3702_v3 = vpop.f32.mrb[112].mxu1 }
 0x552   :  { %v12064_v45 = vpop.f32.mrb[113].mxu1  ;;  %v4424_v17 = vsel %vm1137_vm4, %v3702_v3, 0.0 }
 0x553   :  { %v3651_v14 = vpop.f32.mrb[112].mxu0  ;;  %v3705_v16 = vpop.f32.mrb[114].mxu1 }
 0x554   :  { %v4423_v28 = vsel %vm1137_vm4, %v3651_v14, 0.0  ;;  %v12058_v15 = vpop.f32.mrb[113].mxu0  ;;  %v12065_v22 = vpop.f32.mrb[115].mxu1  ;;  %v4439_v6 = vsel %vm1137_vm4, %v3705_v16, 0.0 }
 0x555   :  { %v4425_v23 = vadd.f32 %v4424_v17, %v4423_v28  ;;  %v3654_v18 = vpop.f32.mrb[114].mxu0 }
 0x556   :  { %v4438_v54 = vsel %vm1137_vm4, %v3654_v18, 0.0  ;;  %v12059_v24 = vpop.f32.mrb[115].mxu0 }
 0x557   :  { %v4440_v58 = vadd.f32 %v4439_v6, %v4438_v54 }
 0x559   :  { %v3804_v55 = vpop.f32.mrb[116].mxu1 }
 0x55a   :  { %v12076_v21 = vpop.f32.mrb[117].mxu1  ;;  %v4428_v48 = vsel %vm1137_vm4, %v3804_v55, 0.0 }
 0x55b   :  { %v3753_v59 = vpop.f32.mrb[116].mxu0  ;;  %v3807_v60 = vpop.f32.mrb[118].mxu1 }
 0x55c   :  { %v4426_v61 = vsel %vm1137_vm4, %v3753_v59, 0.0  ;;  %v12070_v2 = vpop.f32.mrb[117].mxu0  ;;  %v12077_v56 = vpop.f32.mrb[119].mxu1  ;;  %v4443_v26 = vsel %vm1137_vm4, %v3807_v60, 0.0 }
 0x55d   :  { %v4427_v35 = vadd.f32 %v4426_v61, %v4425_v23  ;;  %v3756_v42 = vpop.f32.mrb[118].mxu0 }
 0x55e   :  { %v4441_v8 = vsel %vm1137_vm4, %v3756_v42, 0.0  ;;  %v12071_v34 = vpop.f32.mrb[119].mxu0 }
 0x55f   :  { %v4442_v32 = vadd.f32 %v4441_v8, %v4440_v58  ;;  %v4429_v27 = vadd.f32 %v4428_v48, %v4427_v35 }
 0x561   :  { %v3906_v46 = vpop.f32.mrb[120].mxu1  ;;  %v4444_v4 = vadd.f32 %v4443_v26, %v4442_v32 }
 0x562   :  { %v12088_v7 = vpop.f32.mrb[121].mxu1  ;;  %v4432_v36 = vsel %vm1137_vm4, %v3906_v46, 0.0 }
 0x563   :  { %v3855_v11 = vpop.f32.mrb[120].mxu0  ;;  %v3909_v31 = vpop.f32.mrb[122].mxu1 }
 0x564   :  { %v4430_v37 = vsel %vm1137_vm4, %v3855_v11, 0.0  ;;  %v12082_v41 = vpop.f32.mrb[121].mxu0  ;;  %v12089_v33 = vpop.f32.mrb[123].mxu1  ;;  %v4447_v47 = vsel %vm1137_vm4, %v3909_v31, 0.0 }
 0x565   :  { %v4431_v38 = vadd.f32 %v4430_v37, %v4429_v27  ;;  %v3858_v44 = vpop.f32.mrb[122].mxu0 }
 0x566   :  { %v4445_v57 = vsel %vm1137_vm4, %v3858_v44, 0.0  ;;  %v12083_v5 = vpop.f32.mrb[123].mxu0 }
 0x567   :  { %v4446_v43 = vadd.f32 %v4445_v57, %v4444_v4  ;;  %v4433_v25 = vadd.f32 %v4432_v36, %v4431_v38 }
 0x569   :  { %v4008_v49 = vpop.f32.mrb[124].mxu1  ;;  %v4448_v53 = vadd.f32 %v4447_v47, %v4446_v43 }
 0x56a   :  { %v12100_v3 = vpop.f32.mrb[125].mxu1  ;;  %v4436_v23 = vsel %vm1137_vm4, %v4008_v49, 0.0 }
 0x56b   :  { %v3957_v45 = vpop.f32.mrb[124].mxu0  ;;  %v4011_v14 = vpop.f32.mrb[126].mxu1 }
 0x56c   :  { %v4434_v16 = vsel %vm1137_vm4, %v3957_v45, 0.0  ;;  %v12094_v17 = vpop.f32.mrb[125].mxu0  ;;  %v12101_v28 = vpop.f32.mrb[127].mxu1  ;;  %v4451_v58 = vsel %vm1137_vm4, %v4011_v14, 0.0 }
 0x56d   :  { %v4435_v15 = vadd.f32 %v4434_v16, %v4433_v25  ;;  %v3960_v22 = vpop.f32.mrb[126].mxu0 }
 0x56e   :  { %v4449_v18 = vsel %vm1137_vm4, %v3960_v22, 0.0  ;;  %v12095_v6 = vpop.f32.mrb[127].mxu0 }
 0x56f   :  { %v4437_v54 = vadd.f32 %v4436_v23, %v4435_v15  ;;  %v4450_v24 = vadd.f32 %v4449_v18, %v4448_v53 }
 0x571   :  { %v4452_v55 = vadd.f32 %v4451_v58, %v4450_v24  ;;  %v4110_v21 = vpop.f32.mrb[128].mxu1  ;;  %v14325_v59 = vmul.f32 0.041666668, %v4437_v54 }
 0x572   :  { %v12112_v60 = vpop.f32.mrb[129].mxu1  ;;  %v4454_v42 = vsel %vm1137_vm4, %v4110_v21, 0.0 }
 0x573   :  { %v4059_v61 = vpop.f32.mrb[128].mxu0  ;;  %v4113_v2 = vpop.f32.mrb[130].mxu1  ;;  %v4487_v56 = vsel %vm1137_vm4, %v14325_v59, -inf  ;;  %v14329_v35 = vmul.f32 0.041666668, %v4452_v55 }
 0x574   :  { %v4453_v48 = vsel %vm1137_vm4, %v4059_v61, 0.0  ;;  %v12106_v8 = vpop.f32.mrb[129].mxu0  ;;  %4488 = vmax.xlane.f32.xlu0 %v4487_v56  ;;  %v12113_v34 = vpop.f32.mrb[131].mxu1  ;;  %v4469_v46 = vsel %vm1137_vm4, %v4113_v2, 0.0 }
 0x575   :  { %v4455_v32 = vadd.f32 %v4454_v42, %v4453_v48  ;;  %v4062_v27 = vpop.f32.mrb[130].mxu0  ;;  %v4490_v26 = vsel %vm1137_vm4, %v14329_v35, -inf }
 0x576   :  { %v4468_v4 = vsel %vm1137_vm4, %v4062_v27, 0.0  ;;  %v12107_v7 = vpop.f32.mrb[131].mxu0  ;;  %4491 = vmax.xlane.f32.xlu1 %v4490_v26 }
 0x577   :  { %v4470_v11 = vadd.f32 %v4469_v46, %v4468_v4 }
 0x579   :  { %v4212_v31 = vpop.f32.mrb[132].mxu1 }
 0x57a   :  { %v12124_v37 = vpop.f32.mrb[133].mxu1  ;;  %v4458_v43 = vsel %vm1137_vm4, %v4212_v31, 0.0 }
 0x57b   :  { %v4161_v41 = vpop.f32.mrb[132].mxu0  ;;  %v4215_v33 = vpop.f32.mrb[134].mxu1 }
 0x57c   :  { %v4456_v38 = vsel %vm1137_vm4, %v4161_v41, 0.0  ;;  %v12118_v44 = vpop.f32.mrb[133].mxu0  ;;  %v12125_v36 = vpop.f32.mrb[135].mxu1  ;;  %v4473_v3 = vsel %vm1137_vm4, %v4215_v33, 0.0 }
 0x57d   :  { %v4457_v57 = vadd.f32 %v4456_v38, %v4455_v32  ;;  %v4164_v5 = vpop.f32.mrb[134].mxu0 }
 0x57e   :  { %v4471_v25 = vsel %vm1137_vm4, %v4164_v5, 0.0  ;;  %v12119_v47 = vpop.f32.mrb[135].mxu0 }
 0x57f   :  { %v4472_v49 = vadd.f32 %v4471_v25, %v4470_v11  ;;  %v4459_v53 = vadd.f32 %v4458_v43, %v4457_v57 }
 0x581   :  { %v4314_v45 = vpop.f32.mrb[136].mxu1  ;;  %v4474_v14 = vadd.f32 %v4473_v3, %v4472_v49 }
 0x582   :  { %v12136_v16 = vpop.f32.mrb[137].mxu1  ;;  %v4462_v54 = vsel %vm1137_vm4, %v4314_v45, 0.0 }
 0x583   :  { %v4263_v17 = vpop.f32.mrb[136].mxu0  ;;  %v4317_v28 = vpop.f32.mrb[138].mxu1 }
 0x584   :  { %v4460_v15 = vsel %vm1137_vm4, %v4263_v17, 0.0  ;;  %v12130_v22 = vpop.f32.mrb[137].mxu0  ;;  %v12137_v23 = vpop.f32.mrb[139].mxu1  ;;  %v4477_v60 = vsel %vm1137_vm4, %v4317_v28, 0.0 }
 0x585   :  { %v4461_v18 = vadd.f32 %v4460_v15, %v4459_v53  ;;  %v4266_v6 = vpop.f32.mrb[138].mxu0 }
 0x586   :  { %v4475_v24 = vsel %vm1137_vm4, %v4266_v6, 0.0  ;;  %v12131_v58 = vpop.f32.mrb[139].mxu0 }
 0x587   :  { %v4476_v55 = vadd.f32 %v4475_v24, %v4474_v14  ;;  %4540 = vrot.lane.b32.xlu1 %v13433_v63, %s13213_s28  ;;  %v4463_v21 = vadd.f32 %v4462_v54, %v4461_v18 }
 0x589   :  { %v4416_v61 = vpop.f32.mrb[140].mxu1  ;;  %v4478_v2 = vadd.f32 %v4477_v60, %v4476_v55 }
 0x58a   :  { %v12148_v56 = vpop.f32.mrb[141].mxu1  ;;  %v4466_v46 = vsel %vm1137_vm4, %v4416_v61, 0.0 }
 0x58b   :  { %v4365_v42 = vpop.f32.mrb[140].mxu0  ;;  %v4419_v48 = vpop.f32.mrb[142].mxu1 }
 0x58c   :  { %v4464_v8 = vsel %vm1137_vm4, %v4365_v42, 0.0  ;;  %v12142_v34 = vpop.f32.mrb[141].mxu0  ;;  %v12149_v32 = vpop.f32.mrb[143].mxu1  ;;  %v4481_v31 = vsel %vm1137_vm4, %v4419_v48, 0.0 }
 0x58d   :  { %v4465_v27 = vadd.f32 %v4464_v8, %v4463_v21  ;;  %v4368_v26 = vpop.f32.mrb[142].mxu0 }
 0x58e   :  { %v4479_v4 = vsel %vm1137_vm4, %v4368_v26, 0.0  ;;  %v12143_v7 = vpop.f32.mrb[143].mxu0 }
 0x58f   :  { %v4467_v63 = vadd.f32 %v4466_v46, %v4465_v27  ;;  %v4480_v11 = vadd.f32 %v4479_v4, %v4478_v2 }
 0x591   :  { %v4482_v37 = vadd.f32 %v4481_v31, %v4480_v11  ;;  %v4485_v41 = vmul.f32 0.041666668, %v4467_v63 }
 0x593   :  { %v4493_v33 = vsel %vm1137_vm4, %v4485_v41, -inf  ;;  %v4486_v38 = vmul.f32 0.041666668, %v4482_v37 }
 0x594   :  { %4494 = vmax.xlane.f32.xlu0 %v4493_v33 }
 0x595   :  { %v4496_v44 = vsel %vm1137_vm4, %v4486_v38, -inf }
 0x598   :  { %4497 = vmax.xlane.f32.xlu0 %v4496_v44 }
 0x5ae   :  { %4587 = vrot.lane.b32.xlu0 %v13431_v62, %s13213_s28 }
 0x601   :  { %v4489_v36 = vpop.xlane.xlu0 %4488 }
 0x602   :  { %v4499_v57 = vsub.f32 %v14325_v59, %v4489_v36 }
 0x603   :  { %v4492_v5 = vpop.xlane.xlu1 %4491 }
 0x604   :  { %v4503_v43 = vmul.f32 1.442695, %v4499_v57  ;;  %v4500_v25 = vsub.f32 %v14329_v35, %v4492_v5 }
 0x606   :  { %13100 = vpow2.f32 %v4503_v43  ;;  %v4505_v47 = vmul.f32 1.442695, %v4500_v25 }
 0x607   :  { %v4541_v49 = vpop.permute.xlu1 %4540 }
 0x608   :  { %13102 = vpow2.f32 %v4505_v47  ;;  %12151 = vmatpush3.bf16.msra.mxu0 %v4541_v49 }
 0x609   :  { %12162 = vmatprep.subr.bf16.mxu0 %v13204_v52 }
 0x610   :  { %v13101_v53 = vpop.eup %13100 }
 0x611   :  { %v4511_v3 = vsel %vm1137_vm4, %v13101_v53, 0.0 }
 0x612   :  { %v13103_v45 = vpop.eup %13102  ;;  %4512 = vadd.xlane.f32.xlu1 %v4511_v3 }
 0x613   :  { %v4514_v62 = vsel %vm1137_vm4, %v13103_v45, 0.0 }
 0x614   :  { %4515 = vadd.xlane.f32.xlu0 %v4514_v62 }
 0x621   :  { %v4495_v59 = vpop.xlane.xlu0 %4494 }
 0x622   :  { %v4501_v16 = vsub.f32 %v4485_v41, %v4495_v59 }
 0x623   :  { %4631 = vrot.lane.b32.xlu1 %v13448_v10, %s13213_s28 }
 0x624   :  { %v4507_v10 = vmul.f32 1.442695, %v4501_v16 }
 0x625   :  { %v4498_v35 = vpop.xlane.xlu0 %4497 }
 0x626   :  { %v4502_v17 = vsub.f32 %v4486_v38, %v4498_v35  ;;  %13104 = vpow2.f32 %v4507_v10 }
 0x627   :  { %4675 = vrot.lane.b32.xlu1 %v13446_v9, %s13213_s28 }
 0x628   :  { %v4509_v9 = vmul.f32 1.442695, %v4502_v17 }
 0x629   :  { %v4588_v14 = vpop.permute.xlu0 %4587 }
 0x62a   :  { %4807 = vrot.lane.b32.xlu0 %v13472_v30, %s13213_s28  ;;  %12157 = vmatpush3.bf16.msra.mxu1 %v4588_v14  ;;  %13106 = vpow2.f32 %v4509_v9 }
 0x62b   :  { %4719 = vrot.lane.b32.xlu1 %v13460_v20, %s13213_s28  ;;  %12168 = vmatprep.subr.bf16.mxu1 %v13204_v52 }
 0x62f   :  { %4763 = vrot.lane.b32.xlu1 %v13458_v19, %s13213_s28 }
 0x630   :  { %v14381_v19 = vpop.eup %13104 }
 0x631   :  { %v4517_v20 = vsel %vm1137_vm4, %v14381_v19, 0.0 }
 0x633   :  { %4851 = vrot.lane.b32.xlu1 %v13470_v29, %s13213_s28 }
 0x634   :  { %v14385_v29 = vpop.eup %13106 }
 0x635   :  { %v4520_v30 = vsel %vm1137_vm4, %v14385_v29, 0.0 }
 0x637   :  { %4942 = vrot.lane.b32.xlu1 %v13482_v39, %s13213_s28 }
 0x63b   :  { %5030 = vrot.lane.b32.xlu1 %v13497_v50, %s13213_s28 }
 0x63f   :  { %5118 = vrot.lane.b32.xlu1 %v13509_v0, %s13213_s28 }
 0x643   :  { %5206 = vrot.lane.b32.xlu1 %v13523_v12, %s13213_s28 }
 0x649   :  { %4518 = vadd.xlane.f32.xlu0 %v4517_v20 }
 0x64d   :  { %4521 = vadd.xlane.f32.xlu0 %v4520_v30 }
 0x663   :  { %4895 = vrot.lane.b32.xlu0 %v13484_v40, %s13213_s28  ;;  %v10989_v40 = vld [vmem:[%s18419_s3 + $0x20] sm:$0xff] }
 0x667   :  { %4986 = vrot.lane.b32.xlu0 %v13499_v51, %s13213_s28  ;;  %v10990_v51 = vld [vmem:[%s18419_s3 + $0x28] sm:$0xff] }
 0x66b   :  { %5074 = vrot.lane.b32.xlu0 %v13511_v1, %s13213_s28 }
 0x66f   :  { %5162 = vrot.lane.b32.xlu0 %v13525_v13, %s13213_s28 }
 0x69f   :  { %v4513_v39 = vpop.xlane.xlu1 %4512 }
 0x6a0   :  { %13108 = vrcp.f32 %v4513_v39 }
 0x6a1   :  { %v4516_v50 = vpop.xlane.xlu0 %4515 }
 0x6a2   :  { %13110 = vrcp.f32 %v4516_v50 }
 0x6a3   :  { %v4632_v0 = vpop.permute.xlu1 %4631 }
 0x6a5   :  { %v4808_v24 = vpop.permute.xlu0 %4807 }
 0x6a7   :  { %v4676_v13 = vpop.permute.xlu1 %4675 }
 0x6aa   :  { %v13109_v12 = vpop.eup %13108 }
 0x6ab   :  { %v4527_v28 = vmul.f32 %v13109_v12, %v13101_v53  ;;  %v4720_v6 = vpop.permute.xlu1 %4719 }
 0x6ac   :  { %v13111_v15 = vpop.eup %13110 }
 0x6ad   :  { %v4528_v1 = vmul.f32 %v13111_v15, %v13103_v45  ;;  %v4534_v22 = vadd.f32 %v10989_v40, %v4527_v28 }
 0x6af   :  { %v4535_v23 = vadd.f32 %v10990_v51, %v4528_v1  ;;  %v4764_v54 = vpop.permute.xlu1 %4763 }
 0x6b1   :  { %v4538_v18 = vpack.c.bf16 %v4535_v23, %v4534_v22 }
 0x6b3   :  { %12153 = vmatmul.mubr.msk.bf16.vlgmr.msra.gmra.mrb[80].mxu0 %vm1137_vm4, %v4538_v18  ;;  %12159 = vmatmul.mubr.msk.bf16.vlgmr.msra.gmra.mrb[80].mxu1 %vm1137_vm4, %v4538_v18  ;;  %v4852_v58 = vpop.permute.xlu1 %4851 }
 0x6b4   :  { %12163 = vmatpush3.bf16.msra.mxu0 %v4632_v0  ;;  %12169 = vmatpush3.bf16.msra.mxu1 %v4676_v13 }
 0x6b5   :  { %12164 = vmatprep.mubr.msk.bf16.mxu0 %vm13205_vm2, %v13204_v52  ;;  %12170 = vmatprep.mubr.msk.bf16.mxu1 %vm13205_vm2, %v13204_v52 }
 0x6b6   :  { %12174 = vmatprep.subr.bf16.mxu0 %v13204_v52  ;;  %12180 = vmatprep.subr.bf16.mxu1 %v13204_v52 }
 0x6b7   :  { %v4943_v55 = vpop.permute.xlu1 %4942 }
 0x6bb   :  { %12165 = vmatmul.mubr.msk.bf16.vlgmr.msra.gmra.mrb[84].mxu0 %vm1137_vm4, %v4538_v18  ;;  %12171 = vmatmul.mubr.msk.bf16.vlgmr.msra.gmra.mrb[84].mxu1 %vm1137_vm4, %v4538_v18  ;;  %v5031_v27 = vpop.permute.xlu1 %5030 }
 0x6bc   :  { %12175 = vmatpush3.bf16.msra.mxu0 %v4720_v6  ;;  %12181 = vmatpush3.bf16.msra.mxu1 %v4764_v54 }
 0x6bd   :  { %12176 = vmatprep.mubr.msk.bf16.mxu0 %vm13205_vm2, %v13204_v52  ;;  %12182 = vmatprep.mubr.msk.bf16.mxu1 %vm13205_vm2, %v13204_v52 }
 0x6be   :  { %12186 = vmatprep.subr.bf16.mxu0 %v13204_v52  ;;  %12192 = vmatprep.subr.bf16.mxu1 %v13204_v52 }
 0x6bf   :  { %v5119_v46 = vpop.permute.xlu1 %5118 }
 0x6c3   :  { %12177 = vmatmul.mubr.msk.bf16.vlgmr.msra.gmra.mrb[88].mxu0 %vm1137_vm4, %v4538_v18  ;;  %12183 = vmatmul.mubr.msk.bf16.vlgmr.msra.gmra.mrb[88].mxu1 %vm1137_vm4, %v4538_v18  ;;  %v5207_v7 = vpop.permute.xlu1 %5206 }
 0x6c4   :  { %12187 = vmatpush3.bf16.msra.mxu0 %v4808_v24  ;;  %12193 = vmatpush3.bf16.msra.mxu1 %v4852_v58 }
 0x6c5   :  { %12188 = vmatprep.mubr.msk.bf16.mxu0 %vm13205_vm2, %v13204_v52  ;;  %12194 = vmatprep.mubr.msk.bf16.mxu1 %vm13205_vm2, %v13204_v52 }
 0x6c6   :  { %12204 = vmatprep.subr.bf16.mxu1 %v13204_v52  ;;  %12198 = vmatprep.subr.bf16.mxu0 %v13204_v52 }
 0x6cb   :  { %12189 = vmatmul.mubr.msk.bf16.vlgmr.msra.gmra.mrb[92].mxu0 %vm1137_vm4, %v4538_v18  ;;  %12195 = vmatmul.mubr.msk.bf16.vlgmr.msra.gmra.mrb[92].mxu1 %vm1137_vm4, %v4538_v18 }
 0x6cc   :  { %12205 = vmatpush3.bf16.msra.mxu1 %v4943_v55  ;;  %12200 = vmatprep.mubr.msk.bf16.mxu0 %vm13205_vm2, %v13204_v52 }
 0x6cd   :  { %12206 = vmatprep.mubr.msk.bf16.mxu1 %vm13205_vm2, %v13204_v52  ;;  %12216 = vmatprep.subr.bf16.mxu1 %v13204_v52 }
 0x6d6   :  { %v4519_v21 = vpop.xlane.xlu0 %4518 }
 0x6d7   :  { %13112 = vrcp.f32 %v4519_v21 }
 0x6da   :  { %v4522_v60 = vpop.xlane.xlu0 %4521 }
 0x6db   :  { %13114 = vrcp.f32 %v4522_v60 }
 0x6de   :  { %v4896_v61 = vpop.permute.xlu0 %4895 }
 0x6df   :  { %12199 = vmatpush3.bf16.msra.mxu0 %v4896_v61 }
 0x6e0   :  { %12210 = vmatprep.subr.bf16.mxu0 %v13204_v52 }
 0x6e1   :  { %v13113_v2 = vpop.eup %13112 }
 0x6e2   :  { %v4529_v56 = vmul.f32 %v13113_v2, %v14381_v19  ;;  %v4987_v26 = vpop.permute.xlu0 %4986 }
 0x6e4   :  { %v4536_v8 = vadd.f32 %v10989_v40, %v4529_v56 }
 0x6e5   :  { %v13115_v42 = vpop.eup %13114 }
 0x6e6   :  { %v4530_v48 = vmul.f32 %v13115_v42, %v14385_v29  ;;  %v5075_v4 = vpop.permute.xlu0 %5074 }
 0x6e8   :  { %v4537_v34 = vadd.f32 %v10990_v51, %v4530_v48 }
 0x6ea   :  { %v4539_v32 = vpack.c.bf16 %v4537_v34, %v4536_v8  ;;  %v5163_v63 = vpop.permute.xlu0 %5162 }
 0x6ec   :  { %12201 = vmatmul.mubr.msk.bf16.vlgmr.msra.gmra.mrb[96].mxu0 %vm1137_vm4, %v4539_v32  ;;  %12207 = vmatmul.mubr.msk.bf16.vlgmr.msra.gmra.mrb[96].mxu1 %vm1137_vm4, %v4539_v32 }
 0x6ed   :  { %12211 = vmatpush3.bf16.msra.mxu0 %v4987_v26  ;;  %12217 = vmatpush3.bf16.msra.mxu1 %v5031_v27 }
 0x6ee   :  { %12212 = vmatprep.mubr.msk.bf16.mxu0 %vm13205_vm2, %v13204_v52  ;;  %12218 = vmatprep.mubr.msk.bf16.mxu1 %vm13205_vm2, %v13204_v52 }
 0x6ef   :  { %12222 = vmatprep.subr.bf16.mxu0 %v13204_v52  ;;  %12228 = vmatprep.subr.bf16.mxu1 %v13204_v52 }
 0x6f4   :  { %12213 = vmatmul.mubr.msk.bf16.vlgmr.msra.gmra.mrb[100].mxu0 %vm1137_vm4, %v4539_v32  ;;  %12219 = vmatmul.mubr.msk.bf16.vlgmr.msra.gmra.mrb[100].mxu1 %vm1137_vm4, %v4539_v32 }
 0x6f5   :  { %12223 = vmatpush3.bf16.msra.mxu0 %v5075_v4  ;;  %12229 = vmatpush3.bf16.msra.mxu1 %v5119_v46 }
 0x6f6   :  { %12224 = vmatprep.mubr.msk.bf16.mxu0 %vm13205_vm2, %v13204_v52  ;;  %12230 = vmatprep.mubr.msk.bf16.mxu1 %vm13205_vm2, %v13204_v52 }
 0x6f7   :  { %12234 = vmatprep.subr.bf16.mxu0 %v13204_v52  ;;  %12240 = vmatprep.subr.bf16.mxu1 %v13204_v52 }
 0x6fc   :  { %12225 = vmatmul.mubr.msk.bf16.vlgmr.msra.gmra.mrb[104].mxu0 %vm1137_vm4, %v4539_v32  ;;  %12231 = vmatmul.mubr.msk.bf16.vlgmr.msra.gmra.mrb[104].mxu1 %vm1137_vm4, %v4539_v32 }
 0x6fd   :  { %12235 = vmatpush3.bf16.msra.mxu0 %v5163_v63  ;;  %12241 = vmatpush3.bf16.msra.mxu1 %v5207_v7 }
 0x6fe   :  { %12236 = vmatprep.mubr.msk.bf16.mxu0 %vm13205_vm2, %v13204_v52  ;;  %12242 = vmatprep.mubr.msk.bf16.mxu1 %vm13205_vm2, %v13204_v52 }
 0x704   :  { %12237 = vmatmul.mubr.msk.bf16.vlgmr.msra.gmra.mrb[108].mxu0 %vm1137_vm4, %v4539_v32  ;;  %12243 = vmatmul.mubr.msk.bf16.vlgmr.msra.gmra.mrb[108].mxu1 %vm1137_vm4, %v4539_v32 }
 0x786   :  { %v14461_v11 = vpop.f32.mrb[80].mxu0  ;;  %v14463_v31 = vpop.f32.mrb[80].mxu1 }
 0x787   :  { %v12154_v37 = vpop.f32.mrb[81].mxu0  ;;  %v12160_v41 = vpop.f32.mrb[81].mxu1  ;;  %v5284_v44 = vsel %vm106_vm1, %v14461_v11, 0.0  ;;  %v5287_v43 = vsel %vm106_vm1, %v14463_v31, 0.0 }
 0x788   :  { %v14465_v33 = vpop.f32.mrb[82].mxu0  ;;  %v14467_v38 = vpop.f32.mrb[82].mxu1 }
 0x789   :  { %v5285_v52 = vsel %vm106_vm1, %v14465_v33, 0.0  ;;  %v12155_v36 = vpop.f32.mrb[83].mxu0  ;;  %v12161_v57 = vpop.f32.mrb[83].mxu1  ;;  %v5289_v47 = vsel %vm106_vm1, %v14467_v38, 0.0 }
 0x78a   :  { %v5286_v5 = vadd.f32 %v5285_v52, %v5284_v44 }
 0x78c   :  { %v5288_v25 = vadd.f32 %v5287_v43, %v5286_v5 }
 0x78e   :  { %v5290_v49 = vadd.f32 %v5289_v47, %v5288_v25  ;;  %v14477_v53 = vpop.f32.mrb[84].mxu0  ;;  %v14479_v3 = vpop.f32.mrb[84].mxu1 }
 0x78f   :  { %v5291_v45 = vsel %vm106_vm1, %v14477_v53, 0.0  ;;  %v12166_v62 = vpop.f32.mrb[85].mxu0  ;;  %v12172_v59 = vpop.f32.mrb[85].mxu1  ;;  %v5295_v20 = vsel %vm106_vm1, %v14479_v3, 0.0 }
 0x790   :  { %v5292_v35 = vadd.f32 %v5291_v45, %v5290_v49  ;;  %v14483_v14 = vpop.f32.mrb[86].mxu0  ;;  %v14485_v16 = vpop.f32.mrb[86].mxu1 }
 0x791   :  { %v5293_v10 = vsel %vm106_vm1, %v14483_v14, 0.0  ;;  %v12167_v17 = vpop.f32.mrb[87].mxu0  ;;  %v12173_v9 = vpop.f32.mrb[87].mxu1  ;;  %v5297_v30 = vsel %vm106_vm1, %v14485_v16, 0.0 }
 0x792   :  { %v5294_v19 = vadd.f32 %v5293_v10, %v5292_v35 }
 0x794   :  { %v5296_v29 = vadd.f32 %v5295_v20, %v5294_v19 }
 0x796   :  { %v5298_v39 = vadd.f32 %v5297_v30, %v5296_v29  ;;  %v14493_v50 = vpop.f32.mrb[88].mxu0  ;;  %v14495_v0 = vpop.f32.mrb[88].mxu1 }
 0x797   :  { %v5299_v12 = vsel %vm106_vm1, %v14493_v50, 0.0  ;;  %v12178_v28 = vpop.f32.mrb[89].mxu0  ;;  %v12184_v15 = vpop.f32.mrb[89].mxu1  ;;  %v5303_v6 = vsel %vm106_vm1, %v14495_v0, 0.0 }
 0x798   :  { %v5300_v40 = vadd.f32 %v5299_v12, %v5298_v39  ;;  %v14499_v51 = vpop.f32.mrb[90].mxu0  ;;  %v14501_v1 = vpop.f32.mrb[90].mxu1 }
 0x799   :  { %v5301_v22 = vsel %vm106_vm1, %v14499_v51, 0.0  ;;  %v12179_v23 = vpop.f32.mrb[91].mxu0  ;;  %v12185_v13 = vpop.f32.mrb[91].mxu1  ;;  %v5305_v24 = vsel %vm106_vm1, %v14501_v1, 0.0 }
 0x79a   :  { %v5302_v18 = vadd.f32 %v5301_v22, %v5300_v40 }
 0x79c   :  { %v5304_v54 = vadd.f32 %v5303_v6, %v5302_v18 }
 0x79e   :  { %v5306_v58 = vadd.f32 %v5305_v24, %v5304_v54  ;;  %v14509_v55 = vpop.f32.mrb[92].mxu0  ;;  %v14511_v21 = vpop.f32.mrb[92].mxu1 }
 0x79f   :  { %v5307_v60 = vsel %vm106_vm1, %v14509_v55, 0.0  ;;  %v12190_v61 = vpop.f32.mrb[93].mxu0  ;;  %v12196_v2 = vpop.f32.mrb[93].mxu1  ;;  %v5311_v26 = vsel %vm106_vm1, %v14511_v21, 0.0 }
 0x7a0   :  { %v5308_v56 = vadd.f32 %v5307_v60, %v5306_v58  ;;  %v14515_v42 = vpop.f32.mrb[94].mxu0  ;;  %v14517_v48 = vpop.f32.mrb[94].mxu1 }
 0x7a1   :  { %v5309_v8 = vsel %vm106_vm1, %v14515_v42, 0.0  ;;  %v12191_v34 = vpop.f32.mrb[95].mxu0  ;;  %v12197_v32 = vpop.f32.mrb[95].mxu1  ;;  %v5313_v4 = vsel %vm106_vm1, %v14517_v48, 0.0 }
 0x7a2   :  { %v5310_v27 = vadd.f32 %v5309_v8, %v5308_v56 }
 0x7a4   :  { %v5312_v46 = vadd.f32 %v5311_v26, %v5310_v27 }
 0x7a6   :  { %v5314_v7 = vadd.f32 %v5313_v4, %v5312_v46 }
 0x7bf   :  { %v14525_v63 = vpop.f32.mrb[96].mxu0  ;;  %v14527_v37 = vpop.f32.mrb[96].mxu1 }
 0x7c0   :  { %v5315_v41 = vsel %vm106_vm1, %v14525_v63, 0.0  ;;  %v12202_v44 = vpop.f32.mrb[97].mxu0  ;;  %v12208_v52 = vpop.f32.mrb[97].mxu1  ;;  %v5319_v45 = vsel %vm106_vm1, %v14527_v37, 0.0 }
 0x7c1   :  { %v5316_v36 = vadd.f32 %v5315_v41, %v5314_v7  ;;  %v14531_v57 = vpop.f32.mrb[98].mxu0  ;;  %v14533_v5 = vpop.f32.mrb[98].mxu1 }
 0x7c2   :  { %v5317_v43 = vsel %vm106_vm1, %v14531_v57, 0.0  ;;  %v12203_v25 = vpop.f32.mrb[99].mxu0  ;;  %v12209_v47 = vpop.f32.mrb[99].mxu1  ;;  %v5321_v59 = vsel %vm106_vm1, %v14533_v5, 0.0 }
 0x7c3   :  { %v5318_v49 = vadd.f32 %v5317_v43, %v5316_v36 }
 0x7c5   :  { %v5320_v62 = vadd.f32 %v5319_v45, %v5318_v49 }
 0x7c7   :  { %v5322_v35 = vadd.f32 %v5321_v59, %v5320_v62  ;;  %v14541_v10 = vpop.f32.mrb[100].mxu0  ;;  %v14543_v17 = vpop.f32.mrb[100].mxu1 }
 0x7c8   :  { %v5323_v9 = vsel %vm106_vm1, %v14541_v10, 0.0  ;;  %v12214_v19 = vpop.f32.mrb[101].mxu0  ;;  %v12220_v20 = vpop.f32.mrb[101].mxu1  ;;  %v5327_v22 = vsel %vm106_vm1, %v14543_v17, 0.0 }
 0x7c9   :  { %v5324_v29 = vadd.f32 %v5323_v9, %v5322_v35  ;;  %v14547_v30 = vpop.f32.mrb[102].mxu0  ;;  %v14549_v39 = vpop.f32.mrb[102].mxu1 }
 0x7ca   :  { %v5325_v12 = vsel %vm106_vm1, %v14547_v30, 0.0  ;;  %v12215_v28 = vpop.f32.mrb[103].mxu0  ;;  %v12221_v15 = vpop.f32.mrb[103].mxu1  ;;  %v5329_v13 = vsel %vm106_vm1, %v14549_v39, 0.0 }
 0x7cb   :  { %v5326_v40 = vadd.f32 %v5325_v12, %v5324_v29 }
 0x7cd   :  { %v5328_v23 = vadd.f32 %v5327_v22, %v5326_v40 }
 0x7cf   :  { %v5330_v18 = vadd.f32 %v5329_v13, %v5328_v23  ;;  %v14557_v6 = vpop.f32.mrb[104].mxu0  ;;  %v14559_v54 = vpop.f32.mrb[104].mxu1 }
 0x7d0   :  { %v5331_v24 = vsel %vm106_vm1, %v14557_v6, 0.0  ;;  %v12226_v58 = vpop.f32.mrb[105].mxu0  ;;  %v12232_v60 = vpop.f32.mrb[105].mxu1  ;;  %v5335_v26 = vsel %vm106_vm1, %v14559_v54, 0.0 }
 0x7d1   :  { %v5332_v61 = vadd.f32 %v5331_v24, %v5330_v18  ;;  %v5114_v2 = vpop.f32.mrb[106].mxu0  ;;  %v5158_v56 = vpop.f32.mrb[106].mxu1 }
 0x7d2   :  { %v5333_v8 = vsel %vm106_vm1, %v5114_v2, 0.0  ;;  %v12227_v34 = vpop.f32.mrb[107].mxu0  ;;  %v12233_v32 = vpop.f32.mrb[107].mxu1  ;;  %v5337_v4 = vsel %vm106_vm1, %v5158_v56, 0.0 }
 0x7d3   :  { %v5334_v27 = vadd.f32 %v5333_v8, %v5332_v61 }
 0x7d5   :  { %v5336_v46 = vadd.f32 %v5335_v26, %v5334_v27 }
 0x7d7   :  { %v5338_v7 = vadd.f32 %v5337_v4, %v5336_v46  ;;  %v5199_v41 = vpop.f32.mrb[108].mxu0  ;;  %v5243_v44 = vpop.f32.mrb[108].mxu1 }
 0x7d8   :  { %v5339_v52 = vsel %vm106_vm1, %v5199_v41, 0.0  ;;  %v12238_v36 = vpop.f32.mrb[109].mxu0  ;;  %v12244_v43 = vpop.f32.mrb[109].mxu1  ;;  %v5343_v9 = vsel %vm106_vm1, %v5243_v44, 0.0 }
 0x7d9   :  { %v5340_v25 = vadd.f32 %v5339_v52, %v5338_v7  ;;  %v5202_v47 = vpop.f32.mrb[110].mxu0  ;;  %v5246_v49 = vpop.f32.mrb[110].mxu1 }
 0x7da   :  { %v5341_v45 = vsel %vm106_vm1, %v5202_v47, 0.0  ;;  %v12239_v62 = vpop.f32.mrb[111].mxu0  ;;  %v12245_v59 = vpop.f32.mrb[111].mxu1  ;;  %v5345_v20 = vsel %vm106_vm1, %v5246_v49, 0.0 }
 0x7db   :  { %v5342_v35 = vadd.f32 %v5341_v45, %v5340_v25 }
 0x7dd   :  { %v5344_v19 = vadd.f32 %v5343_v9, %v5342_v35 }
 0x7df   :  { %v5346_v29 = vadd.f32 %v5345_v20, %v5344_v19 }
 0x7e1   :  { %v5347_v12 = vrot.slane %v5346_v29, 4 }
 0x7e3   :  { %v5348_v28 = vadd.f32 %v5347_v12, %v5346_v29 }
 0x7e5   :  { %v5349_v15 = vrot.slane %v5348_v28, 2 }
 0x7e7   :  { %v5350_v40 = vadd.f32 %v5349_v15, %v5348_v28 }
 0x7e9   :  { %v5351_v22 = vrot.slane %v5350_v40, 1 }
 0x7eb   :  { %v5352_v23 = vadd.f32 %v5351_v22, %v5350_v40 }
 0x7ed   :  { %v5354_v13 = vmul.f32 0.00390625, %v5352_v23 }
 0x7ef   :  { %v14572_v18 = vsub.f32 %v14461_v11, %v5354_v13  ;;  %v14575_v24 = vsub.f32 %v14465_v33, %v5354_v13  ;;  %v14578_v58 = vsub.f32 %v14463_v31, %v5354_v13  ;;  %v14581_v60 = vsub.f32 %v14467_v38, %v5354_v13 }
 0x7f0   :  { %v14584_v61 = vsub.f32 %v14477_v53, %v5354_v13  ;;  %v14587_v8 = vsub.f32 %v14483_v14, %v5354_v13  ;;  %v14590_v34 = vsub.f32 %v14479_v3, %v5354_v13  ;;  %v14593_v11 = vsub.f32 %v14485_v16, %v5354_v13 }
 0x7f1   :  { %v14596_v33 = vsub.f32 %v14493_v50, %v5354_v13  ;;  %v14599_v31 = vsub.f32 %v14499_v51, %v5354_v13  ;;  %v14602_v38 = vsub.f32 %v14495_v0, %v5354_v13  ;;  %v14605_v53 = vsub.f32 %v14501_v1, %v5354_v13 }
 0x7f2   :  { %v14608_v14 = vsub.f32 %v14509_v55, %v5354_v13  ;;  %v14611_v3 = vsub.f32 %v14515_v42, %v5354_v13  ;;  %v14614_v16 = vsub.f32 %v14511_v21, %v5354_v13  ;;  %v14617_v50 = vsub.f32 %v14517_v48, %v5354_v13 }
 0x7f3   :  { %v14620_v51 = vsub.f32 %v14525_v63, %v5354_v13  ;;  %v14623_v0 = vsub.f32 %v14531_v57, %v5354_v13  ;;  %v14626_v1 = vsub.f32 %v14527_v37, %v5354_v13  ;;  %v14629_v55 = vsub.f32 %v14533_v5, %v5354_v13 }
 0x7f4   :  { %v14632_v42 = vsub.f32 %v14541_v10, %v5354_v13  ;;  %v14635_v21 = vsub.f32 %v14547_v30, %v5354_v13  ;;  %v14638_v48 = vsub.f32 %v14543_v17, %v5354_v13  ;;  %v14641_v63 = vsub.f32 %v14549_v39, %v5354_v13 }
 0x7f5   :  { %v14644_v57 = vsub.f32 %v14557_v6, %v5354_v13  ;;  %v14646_v37 = vsub.f32 %v5114_v2, %v5354_v13  ;;  %v14649_v5 = vsub.f32 %v14559_v54, %v5354_v13  ;;  %v14651_v32 = vsub.f32 %v5158_v56, %v5354_v13 }
 0x7f6   :  { %v14653_v10 = vsub.f32 %v5199_v41, %v5354_v13  ;;  %v14655_v30 = vsub.f32 %v5202_v47, %v5354_v13  ;;  %v14657_v27 = vsub.f32 %v5243_v44, %v5354_v13  ;;  %v14659_v17 = vsub.f32 %v5246_v49, %v5354_v13  ;;  %v5648_v47 = vld [vmem:[%s18420_s6] sm:$0xff]  ;;  %v5649_v49 = vld [vmem:[%s18420_s6 + $0x8] sm:$0xf] }
 0x7f7   :  { %v5387_v39 = vmul.f32 %v14572_v18, %v14572_v18  ;;  %v5388_v6 = vmul.f32 %v14575_v24, %v14575_v24  ;;  %v5389_v54 = vmul.f32 %v14578_v58, %v14578_v58  ;;  %v5390_v2 = vmul.f32 %v14581_v60, %v14581_v60 }
 0x7f8   :  { %v5391_v4 = vmul.f32 %v14584_v61, %v14584_v61  ;;  %v5392_v44 = vmul.f32 %v14587_v8, %v14587_v8  ;;  %v5393_v43 = vmul.f32 %v14590_v34, %v14590_v34  ;;  %v5394_v62 = vmul.f32 %v14593_v11, %v14593_v11 }
 0x7f9   :  { %v5419_v56 = vsel %vm106_vm1, %v5387_v39, 0.0  ;;  %v5420_v26 = vsel %vm106_vm1, %v5388_v6, 0.0  ;;  %v5422_v7 = vsel %vm106_vm1, %v5389_v54, 0.0  ;;  %v5424_v52 = vsel %vm106_vm1, %v5390_v2, 0.0 }
 0x7fa   :  { %v5421_v46 = vadd.f32 %v5420_v26, %v5419_v56  ;;  %v5426_v25 = vsel %vm106_vm1, %v5391_v4, 0.0  ;;  %v5428_v59 = vsel %vm106_vm1, %v5392_v44, 0.0  ;;  %v5650_v9 = vpack.c.bf16 %v5649_v49, %v5648_v47 }
 0x7fb   :  { %v5395_v19 = vmul.f32 %v14596_v33, %v14596_v33  ;;  %v5430_v20 = vsel %vm106_vm1, %v5393_v43, 0.0  ;;  %v5396_v28 = vmul.f32 %v14599_v31, %v14599_v31  ;;  %v5432_v15 = vsel %vm106_vm1, %v5394_v62, 0.0 }
 0x7fc   :  { %v5423_v41 = vadd.f32 %v5422_v7, %v5421_v46  ;;  %13039 = vmatprep.subr.msk.bf16.mxu0 %vm155_vm0, %v5650_v9  ;;  %v5707_v12 = vsel %vm155_vm0, %v5650_v9, 0  ;;  %v5397_v22 = vmul.f32 %v14602_v38, %v14602_v38  ;;  %v5398_v39 = vmul.f32 %v14605_v53, %v14605_v53 }
 0x7fd   :  { %12247 = vmatpush3.bf16.msra.mxu0 %v5707_v12  ;;  %v5434_v23 = vsel %vm106_vm1, %v5395_v19, 0.0  ;;  %v5436_v6 = vsel %vm106_vm1, %v5396_v28, 0.0  ;;  %v5399_v2 = vmul.f32 %v14608_v14, %v14608_v14  ;;  %v5400_v46 = vmul.f32 %v14611_v3, %v14611_v3 }
 0x7fe   :  { %v5425_v36 = vadd.f32 %v5424_v52, %v5423_v41  ;;  %v5438_v56 = vsel %vm106_vm1, %v5397_v22, 0.0  ;;  %v5440_v4 = vsel %vm106_vm1, %v5398_v39, 0.0  ;;  %v5401_v41 = vmul.f32 %v14614_v16, %v14614_v16 }
 0x7ff   :  { %v5442_v44 = vsel %vm106_vm1, %v5399_v2, 0.0  ;;  %v5444_v43 = vsel %vm106_vm1, %v5400_v46, 0.0  ;;  %v5403_v47 = vmul.f32 %v14620_v51, %v14620_v51  ;;  %v5404_v62 = vmul.f32 %v14623_v0, %v14623_v0 }
 0x800   :  { %v5427_v45 = vadd.f32 %v5426_v25, %v5425_v36  ;;  %v5402_v36 = vmul.f32 %v14617_v50, %v14617_v50  ;;  %v5446_v49 = vsel %vm106_vm1, %v5401_v41, 0.0  ;;  %v5405_v9 = vmul.f32 %v14626_v1, %v14626_v1 }
 0x801   :  { %v5450_v19 = vsel %vm106_vm1, %v5403_v47, 0.0  ;;  %v5452_v12 = vsel %vm106_vm1, %v5404_v62, 0.0 }
 0x802   :  { %v5429_v35 = vadd.f32 %v5428_v59, %v5427_v45  ;;  %v5448_v59 = vsel %vm106_vm1, %v5402_v36, 0.0 }
 0x804   :  { %v5431_v29 = vadd.f32 %v5430_v20, %v5429_v35 }
 0x806   :  { %v5433_v40 = vadd.f32 %v5432_v15, %v5431_v29  ;;  %v5406_v29 = vmul.f32 %v14629_v55, %v14629_v55  ;;  %v5407_v15 = vmul.f32 %v14632_v42, %v14632_v42 }
 0x808   :  { %v5435_v13 = vadd.f32 %v5434_v23, %v5433_v40  ;;  %v5454_v40 = vsel %vm106_vm1, %v5405_v9, 0.0  ;;  %v5408_v23 = vmul.f32 %v14635_v21, %v14635_v21 }
 0x80a   :  { %v5437_v54 = vadd.f32 %v5436_v6, %v5435_v13  ;;  %v5456_v13 = vsel %vm106_vm1, %v5406_v29, 0.0  ;;  %v5409_v6 = vmul.f32 %v14638_v48, %v14638_v48 }
 0x80c   :  { %v5439_v26 = vadd.f32 %v5438_v56, %v5437_v54  ;;  %v5458_v54 = vsel %vm106_vm1, %v5407_v15, 0.0  ;;  %v5410_v56 = vmul.f32 %v14641_v63, %v14641_v63 }
 0x80e   :  { %v5441_v7 = vadd.f32 %v5440_v4, %v5439_v26  ;;  %v5460_v26 = vsel %vm106_vm1, %v5408_v23, 0.0  ;;  %v5411_v4 = vmul.f32 %v14644_v57, %v14644_v57 }
 0x810   :  { %v5443_v52 = vadd.f32 %v5442_v44, %v5441_v7  ;;  %v5462_v7 = vsel %vm106_vm1, %v5409_v6, 0.0  ;;  %v5412_v44 = vmul.f32 %v14646_v37, %v14646_v37 }
 0x812   :  { %v5445_v25 = vadd.f32 %v5444_v43, %v5443_v52  ;;  %v5464_v52 = vsel %vm106_vm1, %v5410_v56, 0.0  ;;  %v5413_v43 = vmul.f32 %v14649_v5, %v14649_v5 }
 0x814   :  { %v5447_v45 = vadd.f32 %v5446_v49, %v5445_v25  ;;  %v5466_v25 = vsel %vm106_vm1, %v5411_v4, 0.0  ;;  %v5414_v49 = vmul.f32 %v14651_v32, %v14651_v32 }
 0x816   :  { %v5449_v35 = vadd.f32 %v5448_v59, %v5447_v45  ;;  %v5468_v45 = vsel %vm106_vm1, %v5412_v44, 0.0  ;;  %v5415_v59 = vmul.f32 %v14653_v10, %v14653_v10 }
 0x818   :  { %v5451_v20 = vadd.f32 %v5450_v19, %v5449_v35  ;;  %v5470_v35 = vsel %vm106_vm1, %v5413_v43, 0.0  ;;  %v5416_v19 = vmul.f32 %v14655_v30, %v14655_v30 }
 0x81a   :  { %v5453_v28 = vadd.f32 %v5452_v12, %v5451_v20  ;;  %v5472_v20 = vsel %vm106_vm1, %v5414_v49, 0.0  ;;  %v5417_v12 = vmul.f32 %v14657_v27, %v14657_v27 }
 0x81c   :  { %v5455_v22 = vadd.f32 %v5454_v40, %v5453_v28  ;;  %v5474_v28 = vsel %vm106_vm1, %v5415_v59, 0.0  ;;  %v5418_v40 = vmul.f32 %v14659_v17, %v14659_v17 }
 0x81e   :  { %v5457_v39 = vadd.f32 %v5456_v13, %v5455_v22  ;;  %v5476_v22 = vsel %vm106_vm1, %v5416_v19, 0.0  ;;  %v5478_v13 = vsel %vm106_vm1, %v5417_v12, 0.0  ;;  %v5480_v6 = vsel %vm106_vm1, %v5418_v40, 0.0  ;;  %v14787_v19 = vld [vmem:[%s18422_s5] ss:$0 sm:$0xff] }
 0x820   :  { %v5459_v2 = vadd.f32 %v5458_v54, %v5457_v39 }
 0x822   :  { %v5461_v46 = vadd.f32 %v5460_v26, %v5459_v2 }
 0x824   :  { %v5463_v41 = vadd.f32 %v5462_v7, %v5461_v46 }
 0x826   :  { %v5465_v36 = vadd.f32 %v5464_v52, %v5463_v41  ;;  %v5493_v52 = vlaneseq }
 0x828   :  { %v5467_v47 = vadd.f32 %v5466_v25, %v5465_v36  ;;  %v14765_v36 = vshrl.u32 %v5493_v52, 7  ;;  %v5282_v25 = vld [vmem:[%s18421_s4] sm:$0x1]  ;;  %s13220_s4 = smov 8  }
 0x82a   :  { %v5469_v62 = vadd.f32 %v5468_v45, %v5467_v47  ;;  %18491 = vst [vmem:[#allocation3_spill] sm:$0xff] %v14765_v36  ;;  %v14771_v49 = vsub.s32 0, %v14765_v36 }
 0x82c   :  { %v5471_v9 = vadd.f32 %v5470_v35, %v5469_v62  ;;  %18492 = vst [vmem:[#allocation4_spill] sm:$0xff] %v14771_v49 }
 0x82e   :  { %v5473_v29 = vadd.f32 %v5472_v20, %v5471_v9 }
 0x830   :  { %v5475_v15 = vadd.f32 %v5474_v28, %v5473_v29 }
 0x832   :  { %v5477_v23 = vadd.f32 %v5476_v22, %v5475_v15  ;;  %v13124_v15 = vld [vmem:[%s18417_s0] sm:$0xff]  ;;  %v13126_v22 = vld [vmem:[%s18417_s0 + $0x10] sm:$0xff] }
 0x834   :  { %v5479_v39 = vadd.f32 %v5478_v13, %v5477_v23  ;;  %v13127_v13 = vld [vmem:[%s18417_s0 + $0x18] sm:$0xff] }
 0x836   :  { %v5481_v54 = vadd.f32 %v5480_v6, %v5479_v39 }
 0x838   :  { %v5482_v2 = vrot.slane %v5481_v54, 4 }
 0x83a   :  { %v5483_v56 = vadd.f32 %v5482_v2, %v5481_v54 }
 0x83c   :  { %v5484_v26 = vrot.slane %v5483_v56, 2 }
 0x83e   :  { %v5485_v46 = vadd.f32 %v5484_v26, %v5483_v56  ;;  %v13128_v26 = vld [vmem:[%s18417_s0 + $0x20] sm:$0xff] }
 0x840   :  { %v5486_v4 = vrot.slane %v5485_v46, 1 }
 0x842   :  { %v5487_v7 = vadd.f32 %v5486_v4, %v5485_v46  ;;  %v13129_v4 = vld [vmem:[%s18417_s0 + $0x28] sm:$0xff] }
 0x844   :  { %v5488_v41 = vmul.f32 0.00390625, %v5487_v7 }
 0x846   :  { %v5489_v44 = vadd.f32 1e-05, %v5488_v41 }
 0x848   :  { %13116 = vrsqrt.f32 %v5489_v44 }
 0x852   :  { %v13117_v43 = vpop.eup %13116 }
 0x853   :  { %v5491_v47 = vmul.f32 %v13117_v43, %v5282_v25 }
 0x855   :  { %v14774_v45 = vrot.slane %v5491_v47, %v14771_v49 }
 0x857   :  { %v5498_v62 = vmul.f32 %v14774_v45, %v14572_v18  ;;  %v5499_v59 = vmul.f32 %v14774_v45, %v14575_v24  ;;  %v5500_v35 = vmul.f32 %v14774_v45, %v14578_v58  ;;  %v5501_v9 = vmul.f32 %v14774_v45, %v14581_v60 }
 0x858   :  { %v5502_v20 = vmul.f32 %v14774_v45, %v14584_v61  ;;  %v5503_v18 = vmul.f32 %v14774_v45, %v14587_v8  ;;  %v13125_v8 = vld [vmem:[%s18417_s0 + $0x8] sm:$0xff]  ;;  %v5504_v6 = vmul.f32 %v14774_v45, %v14590_v34  ;;  %v5505_v54 = vmul.f32 %v14774_v45, %v14593_v11 }
 0x859   :  { %v5536_v29 = vadd.f32 %v14787_v19, %v5498_v62  ;;  %v5537_v24 = vadd.f32 %v14787_v19, %v5499_v59  ;;  %v5538_v58 = vadd.f32 %v14787_v19, %v5500_v35  ;;  %v5539_v12 = vadd.f32 %v14787_v19, %v5501_v9 }
 0x85a   :  { %v5540_v60 = vadd.f32 %v14787_v19, %v5502_v20  ;;  %v5541_v28 = vadd.f32 %v14787_v19, %v5503_v18  ;;  %v5506_v2 = vmul.f32 %v14774_v45, %v14596_v33  ;;  %v5507_v56 = vmul.f32 %v14774_v45, %v14599_v31  ;;  %v13130_v18 = vld [vmem:[%s18417_s0 + $0x30] sm:$0xff] }
 0x85b   :  { %v5568_v61 = vadd.f32 %v13124_v15, %v5536_v29  ;;  %v5569_v40 = vadd.f32 %v13125_v8, %v5537_v24  ;;  %v5570_v23 = vadd.f32 %v13126_v22, %v5538_v58  ;;  %v5571_v39 = vadd.f32 %v13127_v13, %v5539_v12  ;;  %v13131_v24 = vld [vmem:[%s18417_s0 + $0x38] sm:$0xff] }
 0x85c   :  { %v5572_v46 = vadd.f32 %v13128_v26, %v5540_v60  ;;  %v5573_v7 = vadd.f32 %v13129_v4, %v5541_v28  ;;  %v5542_v52 = vadd.f32 %v14787_v19, %v5504_v6  ;;  %v5543_v33 = vadd.f32 %v14787_v19, %v5505_v54  ;;  %v13135_v26 = vld [vmem:[%s18417_s0 + $0x58] sm:$0xff] }
 0x85d   :  { %v5600_v34 = vmax.f32 %v5568_v61, 0.0  ;;  %v5601_v41 = vmax.f32 %v5569_v40, 0.0  ;;  %v5602_v44 = vmax.f32 %v5570_v23, 0.0  ;;  %v5603_v11 = vmax.f32 %v5571_v39, 0.0 }
 0x85e   :  { %v5544_v31 = vadd.f32 %v14787_v19, %v5506_v2  ;;  %v5545_v43 = vadd.f32 %v14787_v19, %v5507_v56  ;;  %v5604_v25 = vmax.f32 %v5572_v46, 0.0  ;;  %v5605_v47 = vmax.f32 %v5573_v7, 0.0  ;;  %v13134_v2 = vld [vmem:[%s18417_s0 + $0x50] sm:$0xff] }
 0x85f   :  { %v5508_v62 = vmul.f32 %v14774_v45, %v14602_v38  ;;  %v5633_v59 = vpack.c.bf16 %v5603_v11, %v5602_v44  ;;  %v5632_v35 = vpack.c.bf16 %v5601_v41, %v5600_v34  ;;  %v5509_v9 = vmul.f32 %v14774_v45, %v14605_v53  ;;  %v13132_v53 = vld [vmem:[%s18417_s0 + $0x40] sm:$0xff] }
 0x860   :  { %v5510_v20 = vmul.f32 %v14774_v45, %v14608_v14  ;;  %v5574_v29 = vadd.f32 %v13130_v18, %v5542_v52  ;;  %v5575_v58 = vadd.f32 %v13131_v24, %v5543_v33  ;;  %v5511_v38 = vmul.f32 %v14774_v45, %v14611_v3  ;;  %v13133_v14 = vld [vmem:[%s18417_s0 + $0x48] sm:$0xff] }
 0x861   :  { %v5576_v12 = vadd.f32 %v13132_v53, %v5544_v31  ;;  %v5577_v60 = vadd.f32 %v13133_v14, %v5545_v43  ;;  %12248 = vmatprep.mubr.msk.bf16.mxu0 %vm106_vm1, %v5632_v35  ;;  %v5634_v28 = vpack.c.bf16 %v5605_v47, %v5604_v25  ;;  %v5546_v15 = vadd.f32 %v14787_v19, %v5508_v62  ;;  %v13138_v35 = vld [vmem:[%s18417_s0 + $0x70] sm:$0xff] }
 0x862   :  { %12249 = vmatmul.mubr.msk.bf16.vlgmr.msra.gmra.mrb[144].mxu0 %vm106_vm1, %v5633_v59  ;;  %v5547_v3 = vadd.f32 %v14787_v19, %v5509_v9  ;;  %v5606_v61 = vmax.f32 %v5574_v29, 0.0  ;;  %v5607_v8 = vmax.f32 %v5575_v58, 0.0  ;;  %v5548_v40 = vadd.f32 %v14787_v19, %v5510_v20  ;;  %v13139_v20 = vld [vmem:[%s18417_s0 + $0x78] sm:$0xff] }
 0x863   :  { %12252 = vmatprep.mubr.msk.bf16.mxu0 %vm106_vm1, %v5634_v28  ;;  %v5549_v22 = vadd.f32 %v14787_v19, %v5511_v38  ;;  %v5608_v23 = vmax.f32 %v5576_v12, 0.0  ;;  %v5609_v13 = vmax.f32 %v5577_v60, 0.0  ;;  %v5512_v39 = vmul.f32 %v14774_v45, %v14614_v16 }
 0x864   :  { %v5513_v6 = vmul.f32 %v14774_v45, %v14617_v50  ;;  %v5514_v54 = vmul.f32 %v14774_v45, %v14620_v51  ;;  %v5578_v56 = vadd.f32 %v13134_v2, %v5546_v15  ;;  %v5579_v46 = vadd.f32 %v13135_v26, %v5547_v3  ;;  %v13136_v50 = vld [vmem:[%s18417_s0 + $0x60] sm:$0xff]  ;;  %v13137_v51 = vld [vmem:[%s18417_s0 + $0x68] sm:$0xff] }
 0x865   :  { %v5635_v4 = vpack.c.bf16 %v5607_v8, %v5606_v61  ;;  %v5515_v16 = vmul.f32 %v14774_v45, %v14623_v0  ;;  %v5580_v7 = vadd.f32 %v13136_v50, %v5548_v40  ;;  %v5581_v34 = vadd.f32 %v13137_v51, %v5549_v22  ;;  %v13142_v22 = vld [vmem:[%s18417_s0 + $0x90] sm:$0xff] }
 0x866   :  { %v5636_v41 = vpack.c.bf16 %v5609_v13, %v5608_v23  ;;  %v5550_v44 = vadd.f32 %v14787_v19, %v5512_v39  ;;  %v5551_v11 = vadd.f32 %v14787_v19, %v5513_v6  ;;  %v5610_v0 = vmax.f32 %v5578_v56, 0.0  ;;  %v13143_v13 = vld [vmem:[%s18417_s0 + $0x98] sm:$0xff] }
 0x867   :  { %v5611_v52 = vmax.f32 %v5579_v46, 0.0  ;;  %v5552_v33 = vadd.f32 %v14787_v19, %v5514_v54  ;;  %v5553_v31 = vadd.f32 %v14787_v19, %v5515_v16  ;;  %v5612_v43 = vmax.f32 %v5580_v7, 0.0 }
 0x868   :  { %v5613_v25 = vmax.f32 %v5581_v34, 0.0  ;;  %v5516_v47 = vmul.f32 %v14774_v45, %v14626_v1  ;;  %v5517_v62 = vmul.f32 %v14774_v45, %v14629_v55  ;;  %v5518_v59 = vmul.f32 %v14774_v45, %v14632_v42  ;;  %v13140_v55 = vld [vmem:[%s18417_s0 + $0x80] sm:$0xff]  ;;  %v13141_v42 = vld [vmem:[%s18417_s0 + $0x88] sm:$0xff] }
 0x869   :  { %v5582_v9 = vadd.f32 %v13138_v35, %v5550_v44  ;;  %v5583_v18 = vadd.f32 %v13139_v20, %v5551_v11  ;;  %v5637_v29 = vpack.c.bf16 %v5611_v52, %v5610_v0  ;;  %v5519_v1 = vmul.f32 %v14774_v45, %v14635_v21  ;;  %v13146_v11 = vld [vmem:[%s18417_s0 + $0xb0] sm:$0xff]  ;;  %v13147_v52 = vld [vmem:[%s18417_s0 + $0xb8] sm:$0xff] }
 0x86a   :  { %12253 = vmatmul.mubr.msk.bf16.gmra.mrb[148].mxu0 %vm106_vm1, %v5635_v4  ;;  %v5584_v24 = vadd.f32 %v13140_v55, %v5552_v33  ;;  %v5585_v58 = vadd.f32 %v13141_v42, %v5553_v31  ;;  %v5638_v38 = vpack.c.bf16 %v5613_v25, %v5612_v43  ;;  %v5554_v53 = vadd.f32 %v14787_v19, %v5516_v47 }
 0x86b   :  { %12256 = vmatprep.mubr.msk.bf16.mxu0 %vm106_vm1, %v5636_v41  ;;  %v5555_v12 = vadd.f32 %v14787_v19, %v5517_v62  ;;  %v5614_v21 = vmax.f32 %v5582_v9, 0.0  ;;  %v5615_v14 = vmax.f32 %v5583_v18, 0.0  ;;  %v5556_v60 = vadd.f32 %v14787_v19, %v5518_v59 }
 0x86c   :  { %v5557_v28 = vadd.f32 %v14787_v19, %v5519_v1  ;;  %v5616_v15 = vmax.f32 %v5584_v24, 0.0  ;;  %v5617_v3 = vmax.f32 %v5585_v58, 0.0  ;;  %v5520_v61 = vmul.f32 %v14774_v45, %v14638_v48  ;;  %v13150_v24 = vld [vmem:[%s18417_s0 + $0xd0] sm:$0xff]  ;;  %v13151_v58 = vld [vmem:[%s18417_s0 + $0xd8] sm:$0xff] }
 0x86d   :  { %v5521_v8 = vmul.f32 %v14774_v45, %v14641_v63  ;;  %v5522_v40 = vmul.f32 %v14774_v45, %v14644_v57  ;;  %v5586_v23 = vadd.f32 %v13142_v22, %v5554_v53  ;;  %v5587_v39 = vadd.f32 %v13143_v13, %v5555_v12  ;;  %v13144_v63 = vld [vmem:[%s18417_s0 + $0xa0] sm:$0xff]  ;;  %v13145_v57 = vld [vmem:[%s18417_s0 + $0xa8] sm:$0xff]  ;;  %v13155_v22 = vld [vmem:[%s18417_s0 + $0xf0] sm:$0xff] }
 0x86e   :  { %v5639_v6 = vpack.c.bf16 %v5615_v14, %v5614_v21  ;;  %v5523_v48 = vmul.f32 %v14774_v45, %v14646_v37  ;;  %v5588_v54 = vadd.f32 %v13144_v63, %v5556_v60  ;;  %v5589_v2 = vadd.f32 %v13145_v57, %v5557_v28  ;;  %v13152_v12 = vld [vmem:[%s18417_s0 + $0xe0] sm:$0xff]  ;;  %v5918_v57 = vld [vmem:[%s18423_s8 + $0x8] sm:$0xf] }
 0x86f   :  { %v5640_v56 = vpack.c.bf16 %v5617_v3, %v5616_v15  ;;  %v5558_v26 = vadd.f32 %v14787_v19, %v5520_v61  ;;  %v5559_v46 = vadd.f32 %v14787_v19, %v5521_v8  ;;  %v5618_v37 = vmax.f32 %v5586_v23, 0.0  ;;  %v13154_v8 = vld [vmem:[%s18417_s0 + $0xf8] sm:$0xff] }
 0x870   :  { %v5619_v4 = vmax.f32 %v5587_v39, 0.0  ;;  %v5560_v16 = vadd.f32 %v14787_v19, %v5522_v40  ;;  %v5561_v50 = vadd.f32 %v14787_v19, %v5523_v48  ;;  %v5620_v7 = vmax.f32 %v5588_v54, 0.0  ;;  %v5917_v54 = vld [vmem:[%s18423_s8] sm:$0xff] }
 0x871   :  { %v5621_v51 = vmax.f32 %v5589_v2, 0.0  ;;  %v5524_v34 = vmul.f32 %v14774_v45, %v14649_v5  ;;  %v5525_v41 = vmul.f32 %v14774_v45, %v14651_v32  ;;  %v5526_v44 = vmul.f32 %v14774_v45, %v14653_v10  ;;  %v13148_v32 = vld [vmem:[%s18417_s0 + $0xc0] sm:$0xff]  ;;  %v13149_v10 = vld [vmem:[%s18417_s0 + $0xc8] sm:$0xff] }
 0x872   :  { %12257 = vmatmul.mubr.msk.bf16.gmra.mrb[152].mxu0 %vm106_vm1, %v5637_v29  ;;  %v5590_v0 = vadd.f32 %v13146_v11, %v5558_v26  ;;  %v5591_v33 = vadd.f32 %v13147_v52, %v5559_v46  ;;  %v5641_v31 = vpack.c.bf16 %v5619_v4, %v5618_v37  ;;  %v5527_v5 = vmul.f32 %v14774_v45, %v14655_v30  ;;  %v8111_v4 = vld [vmem:[%s18424_s10] sm:$0xff] }
 0x873   :  { %12260 = vmatprep.mubr.msk.bf16.mxu0 %vm106_vm1, %v5638_v38  ;;  %v5592_v43 = vadd.f32 %v13148_v32, %v5560_v16  ;;  %v5593_v25 = vadd.f32 %v13149_v10, %v5561_v50  ;;  %v5642_v47 = vpack.c.bf16 %v5621_v51, %v5620_v7  ;;  %v5562_v62 = vadd.f32 %v14787_v19, %v5524_v34  ;;  %v8112_v16 = vld [vmem:[%s18424_s10 + $0x8] sm:$0xf] }
 0x874   :  { %v5563_v59 = vadd.f32 %v14787_v19, %v5525_v41  ;;  %v5622_v30 = vmax.f32 %v5590_v0, 0.0  ;;  %v5623_v35 = vmax.f32 %v5591_v33, 0.0  ;;  %v5564_v9 = vadd.f32 %v14787_v19, %v5526_v44  ;;  %v15028_v44 = vld [vmem:[%s18425_s7] ss:$0 sm:$0xff] }
 0x875   :  { %v5565_v20 = vadd.f32 %v14787_v19, %v5527_v5  ;;  %v5624_v18 = vmax.f32 %v5592_v43, 0.0  ;;  %v5625_v29 = vmax.f32 %v5593_v25, 0.0  ;;  %v5529_v1 = vmul.f32 %v14774_v45, %v14659_v17 }
 0x876   :  { %v5528_v55 = vmul.f32 %v14774_v45, %v14657_v27  ;;  %v5594_v42 = vadd.f32 %v13150_v24, %v5562_v62  ;;  %v5595_v38 = vadd.f32 %v13151_v58, %v5563_v59  ;;  %v5643_v53 = vpack.c.bf16 %v5623_v35, %v5622_v30  ;;  %v13153_v27 = vld [vmem:[%s18417_s0 + $0xe8] sm:$0xff] }
 0x877   :  { %v5596_v21 = vadd.f32 %v13152_v12, %v5564_v9  ;;  %v5597_v17 = vadd.f32 %v13153_v27, %v5565_v20  ;;  %v5644_v45 = vpack.c.bf16 %v5625_v29, %v5624_v18  ;;  %v5567_v14 = vadd.f32 %v14787_v19, %v5529_v1 }
 0x878   :  { %v5566_v60 = vadd.f32 %v14787_v19, %v5528_v55  ;;  %v5626_v28 = vmax.f32 %v5594_v42, 0.0  ;;  %v5627_v15 = vmax.f32 %v5595_v38, 0.0  ;;  %v13214_v63 = vmov 0  }
 0x879   :  { %v5628_v3 = vmax.f32 %v5596_v21, 0.0  ;;  %v5629_v61 = vmax.f32 %v5597_v17, 0.0  ;;  %v5599_v40 = vadd.f32 %v13154_v8, %v5567_v14  ;;  %5887 = vst.msk [vmem:[#allocation2] sm:$0xff] %vm5886_vm5, %v13214_v63  ;;  %5888 = vst.msk [vmem:[#allocation2 + $0x8] sm:$0xff] %vm5886_vm5, %v13214_v63  ;;  %v5919_v2 = vpack.c.bf16 %v5918_v57, %v5917_v54  ;;  %v11043_v14 = vld [vmem:[%s18426_s9 + $0x10] sm:$0xff] }
 0x87a   :  { %12261 = vmatmul.mubr.msk.bf16.gmra.mrb[156].mxu0 %vm106_vm1, %v5639_v6  ;;  %v5598_v23 = vadd.f32 %v13155_v22, %v5566_v60  ;;  %v5645_v13 = vpack.c.bf16 %v5627_v15, %v5626_v28  ;;  %5889 = vst.msk [vmem:[#allocation2 + $0x10] sm:$0xff] %vm5886_vm5, %v13214_v63  ;;  %5890 = vst.msk [vmem:[#allocation2 + $0x70] sm:$0xff] %vm5886_vm5, %v13214_v63  ;;  %v8113_v50 = vpack.c.bf16 %v8112_v16, %v8111_v4  ;;  %v11044_v60 = vld [vmem:[%s18426_s9 + $0x18] sm:$0xf] }
 0x87b   :  { %12264 = vmatprep.mubr.msk.bf16.mxu0 %vm106_vm1, %v5640_v56  ;;  %v5646_v39 = vpack.c.bf16 %v5629_v61, %v5628_v3  ;;  %v5631_v19 = vmax.f32 %v5599_v40, 0.0  ;;  %5891 = vst.msk [vmem:[#allocation2 + $0x78] sm:$0xff] %vm5886_vm5, %v13214_v63  ;;  %5892 = vst.msk [vmem:[#allocation2 + $0x80] sm:$0xff] %vm5886_vm5, %v13214_v63  ;;  %13040 = vmatprep.subr.msk.bf16.mxu0 %vm155_vm0, %v5919_v2  ;;  %v5976_v56 = vsel %vm155_vm0, %v5919_v2, 0 }
 0x87c   :  { %v5630_v6 = vmax.f32 %v5598_v23, 0.0  ;;  %5894 = vst.msk [vmem:[#allocation2 + $0x58] sm:$0xff] %vm5886_vm5, %v13214_v63  ;;  %5895 = vst.msk [vmem:[#allocation2 + $0x60] sm:$0xff] %vm5886_vm5, %v13214_v63  ;;  %12281 = vmatpush3.bf16.msra.mxu0 %v5976_v56  ;;  %13045 = vmatprep.subr.msk.bf16.mxu1 %vm155_vm0, %v8113_v50  ;;  %v8492_v7 = vsel %vm155_vm0, %v8113_v50, 0  ;;  %v6560_v3 = vpack.c.bf16 %v11044_v60, %v11043_v14 }
 0x87d   :  { %5896 = vst.msk [vmem:[#allocation2 + $0x68] sm:$0xff] %vm5886_vm5, %v13214_v63  ;;  %5897 = vst.msk [vmem:[#allocation2 + $0xc8] sm:$0xff] %vm5886_vm5, %v13214_v63  ;;  %12451 = vmatpush3.bf16.msra.mxu1 %v8492_v7 }
 0x87e   :  { %v5647_v48 = vpack.c.bf16 %v5631_v19, %v5630_v6  ;;  %5898 = vst.msk [vmem:[#allocation2 + $0xd0] sm:$0xff] %vm5886_vm5, %v13214_v63  ;;  %5899 = vst.msk [vmem:[#allocation2 + $0xd8] sm:$0xff] %vm5886_vm5, %v13214_v63  ;;  %v6658_v22 = vsel %vm155_vm0, %v6560_v3, 0  ;;  %13041 = vmatprep.subr.msk.bf16.mxu0 %vm155_vm0, %v6560_v3 }
 0x880   :  { %v8095_v26 = vld [vmem:[#allocation2] sm:$0xff]  ;;  %v8096_v46 = vld [vmem:[#allocation2 + $0x8] sm:$0xff] }
 0x881   :  { %8411 = vrot.lane.b32.xlu0 %v8095_v26, %s13215_s25  ;;  %8413 = vrot.lane.b32.xlu1 %v8096_v46, %s13215_s25  ;;  %v15011_v37 = vld [vmem:[#allocation2 + $0x10] sm:$0xff] }
 0x882   :  { %12265 = vmatmul.mubr.msk.bf16.gmra.mrb[160].mxu0 %vm106_vm1, %v5641_v31  ;;  %v8103_v40 = vld [vmem:[#allocation2 + $0x70] sm:$0xff]  ;;  %v15084_v54 = vld [vmem:[#allocation2 + $0x80] sm:$0xff]  ;;  %v8104_v4 = vld [vmem:[#allocation2 + $0x78] sm:$0xff] }
 0x883   :  { %12268 = vmatprep.mubr.msk.bf16.mxu0 %vm106_vm1, %v5642_v47 }
 0x885   :  { %8415 = vrot.lane.b32.xlu0 %v15011_v37, %s13215_s25 }
 0x88a   :  { %12269 = vmatmul.mubr.msk.bf16.gmra.mrb[164].mxu0 %vm106_vm1, %v5643_v53 }
 0x88b   :  { %12272 = vmatprep.mubr.msk.bf16.mxu0 %vm106_vm1, %v5644_v45 }
 0x892   :  { %12273 = vmatmul.mubr.msk.bf16.gmra.mrb[168].mxu0 %vm106_vm1, %v5645_v13 }
 0x893   :  { %12276 = vmatprep.mubr.msk.bf16.mxu0 %vm106_vm1, %v5646_v39 }
 0x89a   :  { %12277 = vmatmul.mubr.msk.bf16.gmra.mrb[172].mxu0 %vm106_vm1, %v5647_v48 }
 0x8f3   :  { %v8412_v51 = vpop.permute.xlu0 %8411  ;;  %v8414_v34 = vpop.permute.xlu1 %8413 }
 0x8f4   :  { %12452 = vmatprep.mubr.msk.bf16.mxu1 %vm106_vm1, %v8412_v51 }
 0x8f5   :  { %12453 = vmatmul.mubr.msk.bf16.vlgmr.msra.gmra.mrb[144].mxu1 %vm106_vm1, %v8414_v34 }
 0x8f7   :  { %v8416_v11 = vpop.permute.xlu0 %8415 }
 0x8f8   :  { %12456 = vmatprep.mubr.msk.bf16.mxu1 %vm106_vm1, %v8416_v11 }
 0x935   :  { %v12250_v41 = vpop.f32.mrb[144].mxu0 }
 0x936   :  { %v5743_v0 = vpop.f32.mrb[145].mxu0  ;;  %v5752_v33 = vadd.f32 %v12250_v41, %v15028_v44 }
 0x937   :  { %v12251_v52 = vpop.f32.mrb[146].mxu0  ;;  %v5744_v32 = vadd.f32 %v15028_v44, %v5743_v0 }
 0x938   :  { %v5755_v31 = vadd.f32 %v12251_v52, %v15028_v44  ;;  %v5746_v5 = vpop.f32.mrb[147].mxu0 }
 0x939   :  { %v5747_v43 = vadd.f32 %v15028_v44, %v5746_v5 }
 0x93a   :  { %v5871_v10 = vpack.c.bf16 %v5755_v31, %v5752_v33 }
 0x93b   :  { %v5870_v25 = vpack.c.bf16 %v5747_v43, %v5744_v32 }
 0x93c   :  { %5902 = vst.msk [vmem:[#allocation2 + $0x20] sm:$0xff] %vm5886_vm5, %v5871_v10 }
 0x93d   :  { %5901 = vst.msk [vmem:[#allocation2 + $0x18] sm:$0xff] %vm5886_vm5, %v5870_v25  ;;  %v12254_v47 = vpop.f32.mrb[148].mxu0  ;;  %12282 = vmatprep.mubr.msk.bf16.mxu0 %vm106_vm1, %v5870_v25 }
 0x93e   :  { %v5759_v62 = vpop.f32.mrb[149].mxu0  ;;  %12283 = vmatmul.mubr.msk.bf16.vlgmr.msra.gmra.mrb[176].mxu0 %vm106_vm1, %v5871_v10  ;;  %v5768_v30 = vadd.f32 %v12254_v47, %v15028_v44 }
 0x93f   :  { %v12255_v59 = vpop.f32.mrb[150].mxu0  ;;  %v5760_v20 = vadd.f32 %v15028_v44, %v5759_v62  ;;  %12315 = vmatpush3.bf16.msra.mxu0 %v6658_v22 }
 0x940   :  { %v5771_v35 = vadd.f32 %v12255_v59, %v15028_v44  ;;  %v5762_v9 = vpop.f32.mrb[151].mxu0 }
 0x941   :  { %v5763_v18 = vadd.f32 %v15028_v44, %v5762_v9 }
 0x942   :  { %v5873_v29 = vpack.c.bf16 %v5771_v35, %v5768_v30 }
 0x943   :  { %v5872_v1 = vpack.c.bf16 %v5763_v18, %v5760_v20  ;;  %v15043_v55 = vld [vmem:[#allocation2 + $0x20] sm:$0xff] }
 0x944   :  { %5904 = vst.msk [vmem:[#allocation2 + $0x30] sm:$0xff] %vm5886_vm5, %v5873_v29  ;;  %8419 = vrot.lane.b32.xlu0 %v15043_v55, %s13215_s25  ;;  %v15048_v24 = vld [vmem:[#allocation2 + $0x18] sm:$0xff] }
 0x945   :  { %5903 = vst.msk [vmem:[#allocation2 + $0x28] sm:$0xff] %vm5886_vm5, %v5872_v1  ;;  %v12258_v42 = vpop.f32.mrb[152].mxu0  ;;  %12286 = vmatprep.mubr.msk.bf16.mxu0 %vm106_vm1, %v5872_v1  ;;  %8417 = vrot.lane.b32.xlu1 %v15048_v24, %s13215_s25 }
 0x946   :  { %v5775_v58 = vpop.f32.mrb[153].mxu0  ;;  %12287 = vmatmul.mubr.msk.bf16.gmra.mrb[180].mxu0 %vm106_vm1, %v5873_v29  ;;  %v5784_v53 = vadd.f32 %v12258_v42, %v15028_v44 }
 0x947   :  { %v12259_v38 = vpop.f32.mrb[154].mxu0  ;;  %v5776_v27 = vadd.f32 %v15028_v44, %v5775_v58 }
 0x948   :  { %v5787_v12 = vadd.f32 %v12259_v38, %v15028_v44  ;;  %v5778_v21 = vpop.f32.mrb[155].mxu0 }
 0x949   :  { %v5779_v17 = vadd.f32 %v15028_v44, %v5778_v21  ;;  %v11131_v21 = vld [vmem:[%s18424_s10 + $0x20] sm:$0xff] }
 0x94a   :  { %v5875_v45 = vpack.c.bf16 %v5787_v12, %v5784_v53 }
 0x94b   :  { %v5874_v28 = vpack.c.bf16 %v5779_v17, %v5776_v27  ;;  %v15065_v15 = vld [vmem:[#allocation2 + $0x30] sm:$0xff]  ;;  %v11132_v27 = vld [vmem:[%s18424_s10 + $0x28] sm:$0xf] }
 0x94c   :  { %5906 = vst.msk [vmem:[#allocation2 + $0x40] sm:$0xff] %vm5886_vm5, %v5875_v45  ;;  %8423 = vrot.lane.b32.xlu0 %v15065_v15, %s13215_s25  ;;  %v15070_v61 = vld [vmem:[#allocation2 + $0x28] sm:$0xff] }
 0x94d   :  { %5905 = vst.msk [vmem:[#allocation2 + $0x38] sm:$0xff] %vm5886_vm5, %v5874_v28  ;;  %v12262_v8 = vpop.f32.mrb[156].mxu0  ;;  %12290 = vmatprep.mubr.msk.bf16.mxu0 %vm106_vm1, %v5874_v28  ;;  %8421 = vrot.lane.b32.xlu1 %v15070_v61, %s13215_s25 }
 0x94e   :  { %v5791_v23 = vpop.f32.mrb[157].mxu0  ;;  %12291 = vmatmul.mubr.msk.bf16.gmra.mrb[184].mxu0 %vm106_vm1, %v5875_v45  ;;  %v5800_v39 = vadd.f32 %v12262_v8, %v15028_v44  ;;  %v8674_v45 = vpack.c.bf16 %v11132_v27, %v11131_v21  ;;  %v11168_v21 = vld [vmem:[%s18424_s10 + $0x48] sm:$0xf] }
 0x94f   :  { %v12263_v13 = vpop.f32.mrb[158].mxu0  ;;  %v5792_v48 = vadd.f32 %v15028_v44, %v5791_v23 }
 0x950   :  { %v5803_v19 = vadd.f32 %v12263_v13, %v15028_v44  ;;  %v5794_v6 = vpop.f32.mrb[159].mxu0  ;;  %8427 = vrot.lane.b32.xlu0 %v8103_v40, %s13215_s25  ;;  %13046 = vmatprep.subr.msk.bf16.mxu1 %vm155_vm0, %v8674_v45  ;;  %v8772_v28 = vsel %vm155_vm0, %v8674_v45, 0 }
 0x951   :  { %v5795_v63 = vadd.f32 %v15028_v44, %v5794_v6  ;;  %12485 = vmatpush3.bf16.msra.mxu1 %v8772_v28 }
 0x952   :  { %v5877_v57 = vpack.c.bf16 %v5803_v19, %v5800_v39 }
 0x953   :  { %v5876_v2 = vpack.c.bf16 %v5795_v63, %v5792_v48  ;;  %v6538_v63 = vld [vmem:[%s18426_s9] sm:$0xff] }
 0x954   :  { %5908 = vst.msk [vmem:[#allocation2 + $0x50] sm:$0xff] %vm5886_vm5, %v5877_v57  ;;  %v15087_v56 = vld [vmem:[#allocation2 + $0x38] sm:$0xff]  ;;  %8431 = vrot.lane.b32.xlu0 %v15084_v54, %s13215_s25 }
 0x955   :  { %5907 = vst.msk [vmem:[#allocation2 + $0x48] sm:$0xff] %vm5886_vm5, %v5876_v2  ;;  %v12266_v26 = vpop.f32.mrb[160].mxu0  ;;  %12294 = vmatprep.mubr.msk.bf16.mxu0 %vm106_vm1, %v5876_v2  ;;  %8425 = vrot.lane.b32.xlu1 %v15087_v56, %s13215_s25 }
 0x956   :  { %v5807_v46 = vpop.f32.mrb[161].mxu0  ;;  %12295 = vmatmul.mubr.msk.bf16.gmra.mrb[188].mxu0 %vm106_vm1, %v5877_v57  ;;  %v5816_v50 = vadd.f32 %v12266_v26, %v15028_v44  ;;  %v6539_v57 = vld [vmem:[%s18426_s9 + $0x8] sm:$0xf] }
 0x957   :  { %v12267_v16 = vpop.f32.mrb[162].mxu0  ;;  %v5808_v34 = vadd.f32 %v15028_v44, %v5807_v46  ;;  %v15193_v26 = vpack.c.bf16 %v6539_v57, %v6538_v63 }
 0x958   :  { %v5819_v7 = vadd.f32 %v12267_v16, %v15028_v44  ;;  %v5810_v51 = vpop.f32.mrb[163].mxu0  ;;  %v11149_v16 = vld [vmem:[%s18424_s10 + $0x30] sm:$0xff] }
 0x959   :  { %v5811_v41 = vadd.f32 %v15028_v44, %v5810_v51  ;;  %8429 = vrot.lane.b32.xlu1 %v8104_v4, %s13215_s25  ;;  %13042 = vmatprep.subr.msk.bf16.mxu0 %vm155_vm0, %v15193_v26 }
 0x95a   :  { %v5879_v11 = vpack.c.bf16 %v5819_v7, %v5816_v50  ;;  %v11150_v50 = vld [vmem:[%s18424_s10 + $0x38] sm:$0xf] }
 0x95b   :  { %v5878_v0 = vpack.c.bf16 %v5811_v41, %v5808_v34  ;;  %v15231_v4 = vld [vmem:[#allocation2 + $0x50] sm:$0xff]  ;;  %v15243_v7 = vpack.c.bf16 %v11150_v50, %v11149_v16 }
 0x95c   :  { %5910 = vst.msk [vmem:[#allocation2 + $0x90] sm:$0xff] %vm5886_vm5, %v5879_v11  ;;  %v15177_v48 = vld [vmem:[#allocation2 + $0x48] sm:$0xff] }
 0x95d   :  { %5909 = vst.msk [vmem:[#allocation2 + $0x88] sm:$0xff] %vm5886_vm5, %v5878_v0  ;;  %v12270_v52 = vpop.f32.mrb[164].mxu0  ;;  %12298 = vmatprep.mubr.msk.bf16.mxu0 %vm106_vm1, %v5878_v0  ;;  %13047 = vmatprep.subr.msk.bf16.mxu1 %vm155_vm0, %v15243_v7 }
 0x95e   :  { %v5823_v33 = vpop.f32.mrb[165].mxu0  ;;  %12299 = vmatmul.mubr.msk.bf16.gmra.mrb[192].mxu0 %vm106_vm1, %v5879_v11  ;;  %v5832_v5 = vadd.f32 %v12270_v52, %v15028_v44 }
 0x95f   :  { %v12271_v31 = vpop.f32.mrb[166].mxu0  ;;  %v5824_v10 = vadd.f32 %v15028_v44, %v5823_v33 }
 0x960   :  { %v5835_v32 = vadd.f32 %v12271_v31, %v15028_v44  ;;  %v5826_v43 = vpop.f32.mrb[167].mxu0 }
 0x961   :  { %v5827_v25 = vadd.f32 %v15028_v44, %v5826_v43 }
 0x962   :  { %v5881_v47 = vpack.c.bf16 %v5835_v32, %v5832_v5 }
 0x963   :  { %v5880_v62 = vpack.c.bf16 %v5827_v25, %v5824_v10  ;;  %v15109_v59 = vld [vmem:[#allocation2 + $0x90] sm:$0xff] }
 0x964   :  { %5912 = vst.msk [vmem:[#allocation2 + $0xa0] sm:$0xff] %vm5886_vm5, %v5881_v47  ;;  %8435 = vrot.lane.b32.xlu0 %v15109_v59, %s13215_s25  ;;  %v15114_v30 = vld [vmem:[#allocation2 + $0x88] sm:$0xff] }
 0x965   :  { %5911 = vst.msk [vmem:[#allocation2 + $0x98] sm:$0xff] %vm5886_vm5, %v5880_v62  ;;  %v12274_v35 = vpop.f32.mrb[168].mxu0  ;;  %12302 = vmatprep.mubr.msk.bf16.mxu0 %vm106_vm1, %v5880_v62  ;;  %8433 = vrot.lane.b32.xlu1 %v15114_v30, %s13215_s25 }
 0x966   :  { %v5839_v9 = vpop.f32.mrb[169].mxu0  ;;  %12303 = vmatmul.mubr.msk.bf16.gmra.mrb[196].mxu0 %vm106_vm1, %v5881_v47  ;;  %v5848_v18 = vadd.f32 %v12274_v35, %v15028_v44 }
 0x967   :  { %v12275_v20 = vpop.f32.mrb[170].mxu0  ;;  %v5840_v42 = vadd.f32 %v15028_v44, %v5839_v9 }
 0x968   :  { %v5851_v29 = vadd.f32 %v12275_v20, %v15028_v44  ;;  %v5842_v1 = vpop.f32.mrb[171].mxu0 }
 0x969   :  { %v5843_v58 = vadd.f32 %v15028_v44, %v5842_v1  ;;  %v15335_v1 = vld [vmem:[#allocation2 + $0x58] sm:$0xff] }
 0x96a   :  { %v5883_v38 = vpack.c.bf16 %v5851_v29, %v5848_v18  ;;  %v9084_v18 = vsel %vm155_vm0, %v15243_v7, 0 }
 0x96b   :  { %v5882_v53 = vpack.c.bf16 %v5843_v58, %v5840_v42  ;;  %v15125_v12 = vld [vmem:[#allocation2 + $0xa0] sm:$0xff] }
 0x96c   :  { %5914 = vst.msk [vmem:[#allocation2 + $0xb0] sm:$0xff] %vm5886_vm5, %v5883_v38  ;;  %8439 = vrot.lane.b32.xlu0 %v15125_v12, %s13215_s25  ;;  %v15136_v17 = vld [vmem:[#allocation2 + $0x98] sm:$0xff] }
 0x96d   :  { %5913 = vst.msk [vmem:[#allocation2 + $0xa8] sm:$0xff] %vm5886_vm5, %v5882_v53  ;;  %v12278_v14 = vpop.f32.mrb[172].mxu0  ;;  %12306 = vmatprep.mubr.msk.bf16.mxu0 %vm106_vm1, %v5882_v53  ;;  %8437 = vrot.lane.b32.xlu1 %v15136_v17, %s13215_s25 }
 0x96e   :  { %v5855_v60 = vpop.f32.mrb[173].mxu0  ;;  %12307 = vmatmul.mubr.msk.bf16.gmra.mrb[200].mxu0 %vm106_vm1, %v5883_v38  ;;  %v5864_v8 = vadd.f32 %v12278_v14, %v15028_v44 }
 0x96f   :  { %v12279_v3 = vpop.f32.mrb[174].mxu0  ;;  %v5856_v23 = vadd.f32 %v15028_v44, %v5855_v60 }
 0x970   :  { %v5867_v40 = vadd.f32 %v12279_v3, %v15028_v44  ;;  %8691 = vrot.lane.b32.xlu0 %v15011_v37, %s13215_s25  ;;  %v5858_v22 = vpop.f32.mrb[175].mxu0  ;;  %v11077_v3 = vld [vmem:[%s18426_s9 + $0x20] sm:$0xff] }
 0x971   :  { %v5859_v13 = vadd.f32 %v15028_v44, %v5858_v22  ;;  %v15165_v44 = vld [vmem:[#allocation2 + $0x40] sm:$0xff] }
 0x972   :  { %v5885_v39 = vpack.c.bf16 %v5867_v40, %v5864_v8  ;;  %v11078_v8 = vld [vmem:[%s18426_s9 + $0x28] sm:$0xf] }
 0x973   :  { %v5884_v19 = vpack.c.bf16 %v5859_v13, %v5856_v23  ;;  %v15191_v2 = vld [vmem:[#allocation2 + $0xb0] sm:$0xff]  ;;  %v6918_v23 = vsel %vm155_vm0, %v15193_v26, 0  ;;  %v15389_v13 = vpack.c.bf16 %v11078_v8, %v11077_v3  ;;  %v15415_v26 = vld [vmem:[%s18427_s11] ss:$0 sm:$0xff] }
 0x974   :  { %5916 = vst.msk [vmem:[#allocation2 + $0xc0] sm:$0xff] %vm5886_vm5, %v5885_v39  ;;  %8695 = vrot.lane.b32.xlu0 %v15043_v55, %s13215_s25  ;;  %v15154_v6 = vld [vmem:[#allocation2 + $0xa8] sm:$0xff] }
 0x975   :  { %5915 = vst.msk [vmem:[#allocation2 + $0xb8] sm:$0xff] %vm5886_vm5, %v5884_v19  ;;  %12310 = vmatprep.mubr.msk.bf16.mxu0 %vm106_vm1, %v5884_v19  ;;  %8441 = vrot.lane.b32.xlu1 %v15154_v6, %s13215_s25 }
 0x976   :  { %12311 = vmatmul.mubr.msk.bf16.gmra.mrb[204].mxu0 %vm106_vm1, %v5885_v39 }
 0x978   :  { %8699 = vrot.lane.b32.xlu0 %v15065_v15, %s13215_s25 }
 0x979   :  { %8693 = vrot.lane.b32.xlu1 %v15048_v24, %s13215_s25 }
 0x97b   :  { %v15281_v33 = vld [vmem:[#allocation2 + $0xc0] sm:$0xff] }
 0x97c   :  { %8703 = vrot.lane.b32.xlu0 %v15165_v44, %s13215_s25  ;;  %v15207_v46 = vld [vmem:[#allocation2 + $0xb8] sm:$0xff] }
 0x97d   :  { %8697 = vrot.lane.b32.xlu1 %v15070_v61, %s13215_s25 }
 0x980   :  { %8707 = vrot.lane.b32.xlu0 %v15084_v54, %s13215_s25 }
 0x981   :  { %8701 = vrot.lane.b32.xlu1 %v15087_v56, %s13215_s25 }
 0x984   :  { %8711 = vrot.lane.b32.xlu0 %v15109_v59, %s13215_s25 }
 0x985   :  { %8705 = vrot.lane.b32.xlu1 %v15177_v48, %s13215_s25 }
 0x988   :  { %8715 = vrot.lane.b32.xlu0 %v15125_v12, %s13215_s25 }
 0x989   :  { %8709 = vrot.lane.b32.xlu1 %v15114_v30, %s13215_s25 }
 0x98c   :  { %8719 = vrot.lane.b32.xlu0 %v15191_v2, %s13215_s25 }
 0x98d   :  { %8713 = vrot.lane.b32.xlu1 %v15136_v17, %s13215_s25 }
 0x990   :  { %6577 = vrot.lane.b32.xlu0 %v15048_v24, %s13208_s16 }
 0x991   :  { %8717 = vrot.lane.b32.xlu1 %v15154_v6, %s13215_s25 }
 0x994   :  { %6579 = vrot.lane.b32.xlu0 %v15043_v55, %s13208_s16 }
 0x995   :  { %8721 = vrot.lane.b32.xlu1 %v15207_v46, %s13215_s25 }
 0x998   :  { %6581 = vrot.lane.b32.xlu0 %v15070_v61, %s13208_s16 }
 0x999   :  { %9003 = vrot.lane.b32.xlu1 %v15048_v24, %s13215_s25 }
 0x99c   :  { %6583 = vrot.lane.b32.xlu0 %v15065_v15, %s13208_s16 }
 0x99d   :  { %9005 = vrot.lane.b32.xlu1 %v15043_v55, %s13215_s25 }
 0x9a0   :  { %6585 = vrot.lane.b32.xlu0 %v15087_v56, %s13208_s16 }
 0x9a1   :  { %9007 = vrot.lane.b32.xlu1 %v15070_v61, %s13215_s25 }
 0x9a4   :  { %6587 = vrot.lane.b32.xlu0 %v15165_v44, %s13208_s16 }
 0x9a5   :  { %9009 = vrot.lane.b32.xlu1 %v15065_v15, %s13215_s25 }
 0x9a8   :  { %6589 = vrot.lane.b32.xlu0 %v15177_v48, %s13208_s16 }
 0x9a9   :  { %9011 = vrot.lane.b32.xlu1 %v15087_v56, %s13215_s25 }
 0x9ac   :  { %6591 = vrot.lane.b32.xlu0 %v15231_v4, %s13208_s16 }
 0x9ad   :  { %9013 = vrot.lane.b32.xlu1 %v15165_v44, %s13215_s25 }
 0x9b0   :  { %6593 = vrot.lane.b32.xlu0 %v15114_v30, %s13208_s16 }
 0x9b1   :  { %9015 = vrot.lane.b32.xlu1 %v15177_v48, %s13215_s25 }
 0x9b4   :  { %6595 = vrot.lane.b32.xlu0 %v15109_v59, %s13208_s16 }
 0x9b5   :  { %9017 = vrot.lane.b32.xlu1 %v15231_v4, %s13215_s25 }
 0x9b6   :  { %v8420_v34 = vpop.permute.xlu0 %8419 }
 0x9b7   :  { %v8418_v51 = vpop.permute.xlu1 %8417 }
 0x9b8   :  { %12457 = vmatmul.mubr.msk.bf16.gmra.mrb[148].mxu1 %vm106_vm1, %v8418_v51  ;;  %6597 = vrot.lane.b32.xlu0 %v15136_v17, %s13208_s16  ;;  %v15420_v51 = vld [vmem:[#allocation2 + $0xc8] sm:$0xff] }
 0x9b9   :  { %9019 = vrot.lane.b32.xlu1 %v15114_v30, %s13215_s25  ;;  %12460 = vmatprep.mubr.msk.bf16.mxu1 %vm106_vm1, %v8420_v34 }
 0x9bc   :  { %6599 = vrot.lane.b32.xlu0 %v15125_v12, %s13208_s16 }
 0x9bd   :  { %9021 = vrot.lane.b32.xlu1 %v15109_v59, %s13215_s25 }
 0x9be   :  { %v8424_v11 = vpop.permute.xlu0 %8423 }
 0x9bf   :  { %v8422_v41 = vpop.permute.xlu1 %8421 }
 0x9c0   :  { %12461 = vmatmul.mubr.msk.bf16.gmra.mrb[152].mxu1 %vm106_vm1, %v8422_v41  ;;  %6601 = vrot.lane.b32.xlu0 %v15154_v6, %s13208_s16 }
 0x9c1   :  { %9023 = vrot.lane.b32.xlu1 %v15136_v17, %s13215_s25  ;;  %12464 = vmatprep.mubr.msk.bf16.mxu1 %vm106_vm1, %v8424_v11 }
 0x9c2   :  { %v8428_v0 = vpop.permute.xlu0 %8427 }
 0x9c4   :  { %6603 = vrot.lane.b32.xlu0 %v15191_v2, %s13208_s16 }
 0x9c5   :  { %9025 = vrot.lane.b32.xlu1 %v15125_v12, %s13215_s25 }
 0x9c6   :  { %v8432_v5 = vpop.permute.xlu0 %8431 }
 0x9c7   :  { %v8426_v52 = vpop.permute.xlu1 %8425 }
 0x9c8   :  { %12465 = vmatmul.mubr.msk.bf16.gmra.mrb[156].mxu1 %vm106_vm1, %v8426_v52  ;;  %6605 = vrot.lane.b32.xlu0 %v15207_v46, %s13208_s16 }
 0x9c9   :  { %9027 = vrot.lane.b32.xlu1 %v15154_v6, %s13215_s25  ;;  %12468 = vmatprep.mubr.msk.bf16.mxu1 %vm106_vm1, %v8428_v0 }
 0x9cb   :  { %v8430_v31 = vpop.permute.xlu1 %8429 }
 0x9cc   :  { %6607 = vrot.lane.b32.xlu0 %v15281_v33, %s13208_s16 }
 0x9cd   :  { %9029 = vrot.lane.b32.xlu1 %v15191_v2, %s13215_s25 }
 0x9d0   :  { %12469 = vmatmul.mubr.msk.bf16.gmra.mrb[160].mxu1 %vm106_vm1, %v8430_v31  ;;  %6837 = vrot.lane.b32.xlu0 %v15011_v37, %s13208_s16 }
 0x9d1   :  { %9031 = vrot.lane.b32.xlu1 %v15207_v46, %s13215_s25  ;;  %12472 = vmatprep.mubr.msk.bf16.mxu1 %vm106_vm1, %v8432_v5 }
 0x9d4   :  { %6839 = vrot.lane.b32.xlu0 %v15048_v24, %s13208_s16 }
 0x9d5   :  { %9033 = vrot.lane.b32.xlu1 %v15281_v33, %s13215_s25 }
 0x9d6   :  { %v8436_v43 = vpop.permute.xlu0 %8435 }
 0x9d7   :  { %v8434_v32 = vpop.permute.xlu1 %8433 }
 0x9d8   :  { %12473 = vmatmul.mubr.msk.bf16.gmra.mrb[164].mxu1 %vm106_vm1, %v8434_v32  ;;  %6841 = vrot.lane.b32.xlu0 %v15043_v55, %s13208_s16 }
 0x9d9   :  { %9315 = vrot.lane.b32.xlu1 %v15043_v55, %s13215_s25  ;;  %12476 = vmatprep.mubr.msk.bf16.mxu1 %vm106_vm1, %v8436_v43 }
 0x9dc   :  { %6843 = vrot.lane.b32.xlu0 %v15070_v61, %s13208_s16 }
 0x9dd   :  { %9317 = vrot.lane.b32.xlu1 %v15070_v61, %s13215_s25 }
 0x9de   :  { %v8440_v37 = vpop.permute.xlu0 %8439 }
 0x9df   :  { %v8438_v24 = vpop.permute.xlu1 %8437 }
 0x9e0   :  { %12477 = vmatmul.mubr.msk.bf16.gmra.mrb[168].mxu1 %vm106_vm1, %v8438_v24  ;;  %6845 = vrot.lane.b32.xlu0 %v15065_v15, %s13208_s16 }
 0x9e1   :  { %9319 = vrot.lane.b32.xlu1 %v15065_v15, %s13215_s25  ;;  %12480 = vmatprep.mubr.msk.bf16.mxu1 %vm106_vm1, %v8440_v37 }
 0x9e2   :  { %v8692_v10 = vpop.permute.xlu0 %8691 }
 0x9e4   :  { %6847 = vrot.lane.b32.xlu0 %v15087_v56, %s13208_s16 }
 0x9e5   :  { %9321 = vrot.lane.b32.xlu1 %v15087_v56, %s13215_s25 }
 0x9e6   :  { %v8696_v25 = vpop.permute.xlu0 %8695 }
 0x9e7   :  { %v8442_v47 = vpop.permute.xlu1 %8441 }
 0x9e8   :  { %12481 = vmatmul.mubr.msk.bf16.gmra.mrb[172].mxu1 %vm106_vm1, %v8442_v47  ;;  %6849 = vrot.lane.b32.xlu0 %v15165_v44, %s13208_s16 }
 0x9e9   :  { %9323 = vrot.lane.b32.xlu1 %v15165_v44, %s13215_s25  ;;  %12486 = vmatprep.mubr.msk.bf16.mxu1 %vm106_vm1, %v8692_v10 }
 0x9ea   :  { %v8700_v62 = vpop.permute.xlu0 %8699 }
 0x9eb   :  { %v8694_v35 = vpop.permute.xlu1 %8693 }
 0x9ec   :  { %6851 = vrot.lane.b32.xlu0 %v15177_v48, %s13208_s16 }
 0x9ed   :  { %9325 = vrot.lane.b32.xlu1 %v15177_v48, %s13215_s25 }
 0x9ee   :  { %v8704_v9 = vpop.permute.xlu0 %8703 }
 0x9ef   :  { %v8698_v20 = vpop.permute.xlu1 %8697 }
 0x9f0   :  { %12487 = vmatmul.mubr.msk.bf16.vlgmr.msra.gmra.mrb[144].mxu1 %vm106_vm1, %v8694_v35  ;;  %6853 = vrot.lane.b32.xlu0 %v15084_v54, %s13208_s16 }
 0x9f1   :  { %9327 = vrot.lane.b32.xlu1 %v15231_v4, %s13215_s25  ;;  %12490 = vmatprep.mubr.msk.bf16.mxu1 %vm106_vm1, %v8696_v25 }
 0x9f2   :  { %v8708_v29 = vpop.permute.xlu0 %8707  ;;  %12519 = vmatpush3.bf16.msra.mxu1 %v9084_v18 }
 0x9f3   :  { %v8702_v42 = vpop.permute.xlu1 %8701 }
 0x9f4   :  { %6855 = vrot.lane.b32.xlu0 %v15114_v30, %s13208_s16  ;;  %v11167_v30 = vld [vmem:[%s18424_s10 + $0x40] sm:$0xff] }
 0x9f5   :  { %9329 = vrot.lane.b32.xlu1 %v15335_v1, %s13215_s25  ;;  %v15361_v45 = vpack.c.bf16 %v11168_v21, %v11167_v30 }
 0x9f6   :  { %v8712_v58 = vpop.permute.xlu0 %8711 }
 0x9f7   :  { %v8706_v38 = vpop.permute.xlu1 %8705  ;;  %13048 = vmatprep.subr.msk.bf16.mxu1 %vm155_vm0, %v15361_v45 }
 0x9f8   :  { %12491 = vmatmul.mubr.msk.bf16.gmra.mrb[148].mxu1 %vm106_vm1, %v8698_v20  ;;  %6857 = vrot.lane.b32.xlu0 %v15109_v59, %s13208_s16 }
 0x9f9   :  { %9331 = vrot.lane.b32.xlu1 %v15109_v59, %s13215_s25  ;;  %12494 = vmatprep.mubr.msk.bf16.mxu1 %vm106_vm1, %v8700_v62 }
 0x9fa   :  { %v15347_v54 = vpop.permute.xlu0 %8715 }
 0x9fb   :  { %v8710_v53 = vpop.permute.xlu1 %8709 }
 0x9fc   :  { %6859 = vrot.lane.b32.xlu0 %v15136_v17, %s13208_s16 }
 0x9fd   :  { %9333 = vrot.lane.b32.xlu1 %v15136_v17, %s13215_s25 }
 0x9fe   :  { %v15359_v27 = vpop.permute.xlu0 %8719 }
 0x9ff   :  { %v8714_v14 = vpop.permute.xlu1 %8713 }
 0xa00   :  { %12495 = vmatmul.mubr.msk.bf16.gmra.mrb[152].mxu1 %vm106_vm1, %v8702_v42  ;;  %6861 = vrot.lane.b32.xlu0 %v15125_v12, %s13208_s16 }
 0xa01   :  { %9335 = vrot.lane.b32.xlu1 %v15125_v12, %s13215_s25  ;;  %12498 = vmatprep.mubr.msk.bf16.mxu1 %vm106_vm1, %v8704_v9 }
 0xa02   :  { %v6578_v60 = vpop.permute.xlu0 %6577 }
 0xa03   :  { %v15371_v28 = vpop.permute.xlu1 %8717  ;;  %12316 = vmatprep.mubr.msk.bf16.mxu0 %vm106_vm1, %v6578_v60 }
 0xa04   :  { %6863 = vrot.lane.b32.xlu0 %v15154_v6, %s13208_s16 }
 0xa05   :  { %9337 = vrot.lane.b32.xlu1 %v15154_v6, %s13215_s25 }
 0xa06   :  { %v6580_v40 = vpop.permute.xlu0 %6579 }
 0xa07   :  { %v15384_v22 = vpop.permute.xlu1 %8721  ;;  %12317 = vmatmul.mubr.msk.bf16.vlgmr.msra.gmra.mrb[208].mxu0 %vm106_vm1, %v6580_v40 }
 0xa08   :  { %12499 = vmatmul.mubr.msk.bf16.gmra.mrb[156].mxu1 %vm106_vm1, %v8706_v38  ;;  %6865 = vrot.lane.b32.xlu0 %v15191_v2, %s13208_s16 }
 0xa09   :  { %9339 = vrot.lane.b32.xlu1 %v15191_v2, %s13215_s25  ;;  %12502 = vmatprep.mubr.msk.bf16.mxu1 %vm106_vm1, %v8708_v29 }
 0xa0a   :  { %v6582_v39 = vpop.permute.xlu0 %6581  ;;  %12349 = vmatpush3.bf16.msra.mxu0 %v6918_v23 }
 0xa0b   :  { %v15397_v19 = vpop.permute.xlu1 %9003  ;;  %12320 = vmatprep.mubr.msk.bf16.mxu0 %vm106_vm1, %v6582_v39  ;;  %13043 = vmatprep.subr.msk.bf16.mxu0 %vm155_vm0, %v15389_v13 }
 0xa0c   :  { %6867 = vrot.lane.b32.xlu0 %v15207_v46, %s13208_s16 }
 0xa0d   :  { %9341 = vrot.lane.b32.xlu1 %v15207_v46, %s13215_s25 }
 0xa0e   :  { %v6584_v63 = vpop.permute.xlu0 %6583 }
 0xa0f   :  { %v15406_v57 = vpop.permute.xlu1 %9005  ;;  %12321 = vmatmul.mubr.msk.bf16.gmra.mrb[212].mxu0 %vm106_vm1, %v6584_v63 }
 0xa10   :  { %12503 = vmatmul.mubr.msk.bf16.gmra.mrb[160].mxu1 %vm106_vm1, %v8710_v53  ;;  %7118 = vrot.lane.b32.xlu0 %v15043_v55, %s13208_s16 }
 0xa11   :  { %v12284_v16 = vpop.f32.mrb[176].mxu0  ;;  %9343 = vrot.lane.b32.xlu1 %v15281_v33, %s13215_s25  ;;  %12506 = vmatprep.mubr.msk.bf16.mxu1 %vm106_vm1, %v8712_v58 }
 0xa12   :  { %v6012_v50 = vpop.f32.mrb[177].mxu0  ;;  %v6586_v7 = vpop.permute.xlu0 %6585  ;;  %v15431_v0 = vadd.f32 %v12284_v16, %v15415_v26 }
 0xa13   :  { %v15423_v34 = vadd.f32 %v15415_v26, %v6012_v50  ;;  %v12285_v41 = vpop.f32.mrb[178].mxu0  ;;  %v15425_v55 = vpop.permute.xlu1 %9007  ;;  %12324 = vmatprep.mubr.msk.bf16.mxu0 %vm106_vm1, %v6586_v7 }
 0xa14   :  { %v6015_v11 = vpop.f32.mrb[179].mxu0  ;;  %7120 = vrot.lane.b32.xlu0 %v15070_v61, %s13208_s16  ;;  %v15441_v32 = vadd.f32 %v12285_v41, %v15415_v26  ;;  %v6145_v10 = vsel %vm6141_vm6, %v15431_v0, 0.0 }
 0xa15   :  { %v15434_v52 = vadd.f32 %v15415_v26, %v6015_v11  ;;  %9345 = vrot.lane.b32.xlu1 %v15420_v51, %s13215_s25  ;;  %v6142_v5 = vsel %vm6141_vm6, %v15423_v34, 0.0 }
 0xa16   :  { %v6588_v31 = vpop.permute.xlu0 %6587  ;;  %v6147_v9 = vsel %vm6141_vm6, %v15441_v32, 0.0 }
 0xa17   :  { %v6143_v43 = vsel %vm6141_vm6, %v15434_v52, 0.0  ;;  %v15445_v37 = vpop.permute.xlu1 %9009  ;;  %12325 = vmatmul.mubr.msk.bf16.gmra.mrb[216].mxu0 %vm106_vm1, %v6588_v31 }
 0xa18   :  { %v6144_v24 = vadd.f32 %v6143_v43, %v6142_v5  ;;  %12507 = vmatmul.mubr.msk.bf16.gmra.mrb[164].mxu1 %vm106_vm1, %v8714_v14  ;;  %7122 = vrot.lane.b32.xlu0 %v15065_v15, %s13208_s16 }
 0xa19   :  { %v12288_v25 = vpop.f32.mrb[180].mxu0  ;;  %9628 = vrot.lane.b32.xlu1 %v15070_v61, %s13215_s25  ;;  %12510 = vmatprep.mubr.msk.bf16.mxu1 %vm106_vm1, %v15347_v54 }
 0xa1a   :  { %v6146_v47 = vadd.f32 %v6145_v10, %v6144_v24  ;;  %v6028_v62 = vpop.f32.mrb[181].mxu0  ;;  %v6590_v35 = vpop.permute.xlu0 %6589  ;;  %v15468_v61 = vadd.f32 %v12288_v25, %v15415_v26 }
 0xa1b   :  { %v15460_v20 = vadd.f32 %v15415_v26, %v6028_v62  ;;  %v12289_v18 = vpop.f32.mrb[182].mxu0  ;;  %v15462_v29 = vpop.permute.xlu1 %9011  ;;  %12328 = vmatprep.mubr.msk.bf16.mxu0 %vm106_vm1, %v6590_v35 }
 0xa1c   :  { %v6148_v42 = vadd.f32 %v6147_v9, %v6146_v47  ;;  %v6031_v58 = vpop.f32.mrb[183].mxu0  ;;  %7124 = vrot.lane.b32.xlu0 %v15087_v56, %s13208_s16  ;;  %v15478_v21 = vadd.f32 %v12289_v18, %v15415_v26 }
 0xa1d   :  { %v6149_v38 = vsel %vm6141_vm6, %v15460_v20, 0.0  ;;  %v15473_v54 = vadd.f32 %v15415_v26, %v6031_v58  ;;  %9630 = vrot.lane.b32.xlu1 %v15065_v15, %s13215_s25  ;;  %v6153_v15 = vsel %vm6141_vm6, %v15468_v61, 0.0 }
 0xa1e   :  { %v6150_v53 = vadd.f32 %v6149_v38, %v6148_v42  ;;  %v6592_v30 = vpop.permute.xlu0 %6591  ;;  %v6155_v63 = vsel %vm6141_vm6, %v15478_v21, 0.0 }
 0xa1f   :  { %v6151_v14 = vsel %vm6141_vm6, %v15473_v54, 0.0  ;;  %v15482_v60 = vpop.permute.xlu1 %9013  ;;  %12329 = vmatmul.mubr.msk.bf16.gmra.mrb[220].mxu0 %vm106_vm1, %v6592_v30 }
 0xa20   :  { %v6152_v3 = vadd.f32 %v6151_v14, %v6150_v53  ;;  %12511 = vmatmul.mubr.msk.bf16.gmra.mrb[168].mxu1 %vm106_vm1, %v15371_v28  ;;  %7126 = vrot.lane.b32.xlu0 %v15165_v44, %s13208_s16 }
 0xa21   :  { %v12292_v8 = vpop.f32.mrb[184].mxu0  ;;  %9632 = vrot.lane.b32.xlu1 %v15087_v56, %s13215_s25  ;;  %12514 = vmatprep.mubr.msk.bf16.mxu1 %vm106_vm1, %v15359_v27 }
 0xa22   :  { %v6154_v40 = vadd.f32 %v6153_v15, %v6152_v3  ;;  %v6044_v23 = vpop.f32.mrb[185].mxu0  ;;  %v6594_v39 = vpop.permute.xlu0 %6593  ;;  %v15506_v56 = vadd.f32 %v12292_v8, %v15415_v26 }
 0xa23   :  { %v15498_v28 = vadd.f32 %v15415_v26, %v6044_v23  ;;  %v12293_v16 = vpop.f32.mrb[186].mxu0  ;;  %v15500_v50 = vpop.permute.xlu1 %9015  ;;  %12332 = vmatprep.mubr.msk.bf16.mxu0 %vm106_vm1, %v6594_v39  ;;  %v9396_v23 = vsel %vm155_vm0, %v15361_v45, 0 }
 0xa24   :  { %v6156_v7 = vadd.f32 %v6155_v63, %v6154_v40  ;;  %v6047_v41 = vpop.f32.mrb[187].mxu0  ;;  %7128 = vrot.lane.b32.xlu0 %v15177_v48, %s13208_s16  ;;  %v15516_v43 = vadd.f32 %v12293_v16, %v15415_v26 }
 0xa25   :  { %v6157_v27 = vsel %vm6141_vm6, %v15498_v28, 0.0  ;;  %v15511_v11 = vadd.f32 %v15415_v26, %v6047_v41  ;;  %9634 = vrot.lane.b32.xlu1 %v15165_v44, %s13215_s25  ;;  %v6161_v44 = vsel %vm6141_vm6, %v15506_v56, 0.0  ;;  %v15573_v41 = vld [vmem:[#allocation2 + $0x60] sm:$0xff] }
 0xa26   :  { %v6158_v31 = vadd.f32 %v6157_v27, %v6156_v7  ;;  %v6596_v5 = vpop.permute.xlu0 %6595  ;;  %v6163_v18 = vsel %vm6141_vm6, %v15516_v43, 0.0 }
 0xa27   :  { %v6159_v24 = vsel %vm6141_vm6, %v15511_v11, 0.0  ;;  %v15520_v10 = vpop.permute.xlu1 %9017  ;;  %12333 = vmatmul.mubr.msk.bf16.gmra.mrb[224].mxu0 %vm106_vm1, %v6596_v5 }
 0xa28   :  { %v6160_v25 = vadd.f32 %v6159_v24, %v6158_v31  ;;  %12515 = vmatmul.mubr.msk.bf16.gmra.mrb[172].mxu1 %vm106_vm1, %v15384_v22  ;;  %7130 = vrot.lane.b32.xlu0 %v15231_v4, %s13208_s16 }
 0xa29   :  { %v12296_v47 = vpop.f32.mrb[188].mxu0  ;;  %9636 = vrot.lane.b32.xlu1 %v15177_v48, %s13215_s25  ;;  %12520 = vmatprep.mubr.msk.bf16.mxu1 %vm106_vm1, %v15397_v19 }
 0xa2a   :  { %v6162_v62 = vadd.f32 %v6161_v44, %v6160_v25  ;;  %v6060_v35 = vpop.f32.mrb[189].mxu0  ;;  %v6598_v9 = vpop.permute.xlu0 %6597  ;;  %v15544_v48 = vadd.f32 %v12296_v47, %v15415_v26 }
 0xa2b   :  { %v15536_v22 = vadd.f32 %v15415_v26, %v6060_v35  ;;  %v12297_v42 = vpop.f32.mrb[190].mxu0  ;;  %v15538_v58 = vpop.permute.xlu1 %9019  ;;  %12336 = vmatprep.mubr.msk.bf16.mxu0 %vm106_vm1, %v6598_v9 }
 0xa2c   :  { %v6164_v38 = vadd.f32 %v6163_v18, %v6162_v62  ;;  %v6063_v53 = vpop.f32.mrb[191].mxu0  ;;  %7132 = vrot.lane.b32.xlu0 %v15335_v1, %s13208_s16  ;;  %v15554_v15 = vadd.f32 %v12297_v42, %v15415_v26 }
 0xa2d   :  { %v6165_v19 = vsel %vm6141_vm6, %v15536_v22, 0.0  ;;  %v15549_v30 = vadd.f32 %v15415_v26, %v6063_v53  ;;  %9638 = vrot.lane.b32.xlu1 %v15231_v4, %s13215_s25  ;;  %v6169_v4 = vsel %vm6141_vm6, %v15544_v48, 0.0 }
 0xa2e   :  { %v6166_v14 = vadd.f32 %v6165_v19, %v6164_v38  ;;  %v6600_v3 = vpop.permute.xlu0 %6599 }
 0xa2f   :  { %v6167_v8 = vsel %vm6141_vm6, %v15549_v30, 0.0  ;;  %v15558_v40 = vpop.permute.xlu1 %9021  ;;  %12337 = vmatmul.mubr.msk.bf16.gmra.mrb[228].mxu0 %vm106_vm1, %v6600_v3 }
 0xa30   :  { %v6168_v39 = vadd.f32 %v6167_v8, %v6166_v14  ;;  %12521 = vmatmul.mubr.msk.bf16.vlgmr.msra.gmra.mrb[144].mxu1 %vm106_vm1, %v15406_v57  ;;  %7134 = vrot.lane.b32.xlu0 %v15109_v59, %s13208_s16  ;;  %v6171_v57 = vsel %vm6141_vm6, %v15554_v15, 0.0 }
 0xa31   :  { %v12300_v63 = vpop.f32.mrb[192].mxu0  ;;  %9640 = vrot.lane.b32.xlu1 %v15335_v1, %s13215_s25  ;;  %12524 = vmatprep.mubr.msk.bf16.mxu1 %vm106_vm1, %v15425_v55 }
 0xa32   :  { %v6170_v16 = vadd.f32 %v6169_v4, %v6168_v39  ;;  %v6076_v7 = vpop.f32.mrb[193].mxu0  ;;  %v6602_v45 = vpop.permute.xlu0 %6601  ;;  %12553 = vmatpush3.bf16.msra.mxu1 %v9396_v23  ;;  %v15586_v55 = vadd.f32 %v12300_v63, %v15415_v26 }
 0xa33   :  { %v15578_v59 = vadd.f32 %v15415_v26, %v6076_v7  ;;  %v12301_v27 = vpop.f32.mrb[194].mxu0  ;;  %v15580_v31 = vpop.permute.xlu1 %9023  ;;  %12340 = vmatprep.mubr.msk.bf16.mxu0 %vm106_vm1, %v6602_v45  ;;  %v11186_v7 = vld [vmem:[%s18424_s10 + $0x58] sm:$0xf] }
 0xa34   :  { %v6172_v1 = vadd.f32 %v6171_v57, %v6170_v16  ;;  %v6079_v5 = vpop.f32.mrb[195].mxu0  ;;  %7136 = vrot.lane.b32.xlu0 %v15136_v17, %s13208_s16  ;;  %v15596_v62 = vadd.f32 %v12301_v27, %v15415_v26  ;;  %v6177_v42 = vsel %vm6141_vm6, %v15586_v55, 0.0  ;;  %v11185_v16 = vld [vmem:[%s18424_s10 + $0x50] sm:$0xff] }
 0xa35   :  { %v6173_v24 = vsel %vm6141_vm6, %v15578_v59, 0.0  ;;  %v15591_v25 = vadd.f32 %v15415_v26, %v6079_v5  ;;  %9642 = vrot.lane.b32.xlu1 %v15573_v41, %s13215_s25  ;;  %v15639_v27 = vpack.c.bf16 %v11186_v7, %v11185_v16 }
 0xa36   :  { %v6174_v44 = vadd.f32 %v6173_v24, %v6172_v1  ;;  %v6604_v47 = vpop.permute.xlu0 %6603  ;;  %v6179_v3 = vsel %vm6141_vm6, %v15596_v62, 0.0 }
 0xa37   :  { %v6175_v35 = vsel %vm6141_vm6, %v15591_v25, 0.0  ;;  %v15600_v9 = vpop.permute.xlu1 %9025  ;;  %12341 = vmatmul.mubr.msk.bf16.gmra.mrb[232].mxu0 %vm106_vm1, %v6604_v47  ;;  %13049 = vmatprep.subr.msk.bf16.mxu1 %vm155_vm0, %v15639_v27 }
 0xa38   :  { %v6176_v18 = vadd.f32 %v6175_v35, %v6174_v44  ;;  %12525 = vmatmul.mubr.msk.bf16.gmra.mrb[148].mxu1 %vm106_vm1, %v15445_v37  ;;  %7138 = vrot.lane.b32.xlu0 %v15125_v12, %s13208_s16 }
 0xa39   :  { %v12304_v38 = vpop.f32.mrb[196].mxu0  ;;  %9644 = vrot.lane.b32.xlu1 %v15136_v17, %s13215_s25  ;;  %12528 = vmatprep.mubr.msk.bf16.mxu1 %vm106_vm1, %v15462_v29 }
 0xa3a   :  { %v6178_v53 = vadd.f32 %v6177_v42, %v6176_v18  ;;  %v6092_v19 = vpop.f32.mrb[197].mxu0  ;;  %v6606_v14 = vpop.permute.xlu0 %6605  ;;  %v15624_v17 = vadd.f32 %v12304_v38, %v15415_v26 }
 0xa3b   :  { %v15616_v37 = vadd.f32 %v15415_v26, %v6092_v19  ;;  %v12305_v8 = vpop.f32.mrb[198].mxu0  ;;  %v15618_v23 = vpop.permute.xlu1 %9027  ;;  %12344 = vmatprep.mubr.msk.bf16.mxu0 %vm106_vm1, %v6606_v14 }
 0xa3c   :  { %v6180_v39 = vadd.f32 %v6179_v3, %v6178_v53  ;;  %v6095_v4 = vpop.f32.mrb[199].mxu0  ;;  %7140 = vrot.lane.b32.xlu0 %v15154_v6, %s13208_s16  ;;  %v15642_v1 = vadd.f32 %v12305_v8, %v15415_v26  ;;  %v6185_v44 = vsel %vm6141_vm6, %v15624_v17, 0.0 }
 0xa3d   :  { %v6181_v29 = vsel %vm6141_vm6, %v15616_v37, 0.0  ;;  %v15629_v63 = vadd.f32 %v15415_v26, %v6095_v4  ;;  %9646 = vrot.lane.b32.xlu1 %v15125_v12, %s13215_s25 }
 0xa3e   :  { %v6182_v45 = vadd.f32 %v6181_v29, %v6180_v39  ;;  %v6608_v57 = vpop.permute.xlu0 %6607 }
 0xa3f   :  { %v6183_v5 = vsel %vm6141_vm6, %v15629_v63, 0.0  ;;  %v15646_v24 = vpop.permute.xlu1 %9029  ;;  %12345 = vmatmul.mubr.msk.bf16.gmra.mrb[236].mxu0 %vm106_vm1, %v6608_v57 }
 0xa40   :  { %v6184_v12 = vadd.f32 %v6183_v5, %v6182_v45  ;;  %12529 = vmatmul.mubr.msk.bf16.gmra.mrb[152].mxu1 %vm106_vm1, %v15482_v60  ;;  %7142 = vrot.lane.b32.xlu0 %v15191_v2, %s13208_s16  ;;  %v6187_v60 = vsel %vm6141_vm6, %v15642_v1, 0.0  ;;  %v7199_v45 = vsel %vm155_vm0, %v15389_v13, 0 }
 0xa41   :  { %v12308_v47 = vpop.f32.mrb[200].mxu0  ;;  %9648 = vrot.lane.b32.xlu1 %v15154_v6, %s13215_s25  ;;  %12532 = vmatprep.mubr.msk.bf16.mxu1 %vm106_vm1, %v15500_v50 }
 0xa42   :  { %v6186_v35 = vadd.f32 %v6185_v44, %v6184_v12  ;;  %v6108_v18 = vpop.f32.mrb[201].mxu0  ;;  %v6838_v42 = vpop.permute.xlu0 %6837  ;;  %v15672_v50 = vadd.f32 %v12308_v47, %v15415_v26 }
 0xa43   :  { %v15664_v38 = vadd.f32 %v15415_v26, %v6108_v18  ;;  %v12309_v53 = vpop.f32.mrb[202].mxu0  ;;  %v15666_v19 = vpop.permute.xlu1 %9031  ;;  %12350 = vmatprep.mubr.msk.bf16.mxu0 %vm106_vm1, %v6838_v42 }
 0xa44   :  { %v6188_v6 = vadd.f32 %v6187_v60, %v6186_v35  ;;  %v6111_v14 = vpop.f32.mrb[203].mxu0  ;;  %7144 = vrot.lane.b32.xlu0 %v15207_v46, %s13208_s16  ;;  %v15682_v29 = vadd.f32 %v12309_v53, %v15415_v26 }
 0xa45   :  { %v6189_v3 = vsel %vm6141_vm6, %v15664_v38, 0.0  ;;  %v15677_v8 = vadd.f32 %v15415_v26, %v6111_v14  ;;  %9650 = vrot.lane.b32.xlu1 %v15191_v2, %s13215_s25  ;;  %v6193_v2 = vsel %vm6141_vm6, %v15672_v50, 0.0 }
 0xa46   :  { %v6190_v39 = vadd.f32 %v6189_v3, %v6188_v6  ;;  %v6840_v4 = vpop.permute.xlu0 %6839  ;;  %v8115_v6 = vld [vmem:[#allocation2 + $0x8] sm:$0xff] }
 0xa47   :  { %v6191_v16 = vsel %vm6141_vm6, %v15677_v8, 0.0  ;;  %v15686_v7 = vpop.permute.xlu1 %9033  ;;  %12351 = vmatmul.mubr.msk.bf16.vlgmr.msra.gmra.mrb[208].mxu0 %vm106_vm1, %v6840_v4 }
 0xa48   :  { %v6192_v57 = vadd.f32 %v6191_v16, %v6190_v39  ;;  %12533 = vmatmul.mubr.msk.bf16.gmra.mrb[156].mxu1 %vm106_vm1, %v15520_v10  ;;  %7146 = vrot.lane.b32.xlu0 %v15281_v33, %s13208_s16  ;;  %v6195_v10 = vsel %vm6141_vm6, %v15682_v29, 0.0 }
 0xa49   :  { %v12312_v5 = vpop.f32.mrb[204].mxu0  ;;  %9652 = vrot.lane.b32.xlu1 %v15207_v46, %s13215_s25  ;;  %12536 = vmatprep.mubr.msk.bf16.mxu1 %vm106_vm1, %v15538_v58  ;;  %v15711_v58 = vld [vmem:[#allocation2 + $0xc0] sm:$0xff] }
 0xa4a   :  { %v6194_v12 = vadd.f32 %v6193_v2, %v6192_v57  ;;  %v6124_v44 = vpop.f32.mrb[205].mxu0  ;;  %v6842_v13 = vpop.permute.xlu0 %6841  ;;  %12383 = vmatpush3.bf16.msra.mxu0 %v7199_v45  ;;  %v15714_v42 = vadd.f32 %v12312_v5, %v15415_v26 }
 0xa4b   :  { %v15704_v47 = vadd.f32 %v15415_v26, %v6124_v44  ;;  %v12313_v33 = vpop.f32.mrb[206].mxu0  ;;  %v15706_v35 = vpop.permute.xlu1 %9315  ;;  %12354 = vmatprep.mubr.msk.bf16.mxu0 %vm106_vm1, %v6842_v13 }
 0xa4c   :  { %v6196_v18 = vadd.f32 %v6195_v10, %v6194_v12  ;;  %v6127_v46 = vpop.f32.mrb[207].mxu0  ;;  %7148 = vrot.lane.b32.xlu0 %v15420_v51, %s13208_s16  ;;  %v15724_v39 = vadd.f32 %v12313_v33, %v15415_v26  ;;  %v6201_v57 = vsel %vm6141_vm6, %v15714_v42, 0.0  ;;  %v15740_v12 = vld [vmem:[#allocation2 + $0xd0] sm:$0xff] }
 0xa4d   :  { %v6197_v60 = vsel %vm6141_vm6, %v15704_v47, 0.0  ;;  %v15719_v53 = vadd.f32 %v15415_v26, %v6127_v46  ;;  %9654 = vrot.lane.b32.xlu1 %v15711_v58, %s13215_s25  ;;  %v8116_v26 = vld [vmem:[#allocation2 + $0x10] sm:$0xff] }
 0xa4e   :  { %v6198_v14 = vadd.f32 %v6197_v60, %v6196_v18  ;;  %v6844_v3 = vpop.permute.xlu0 %6843  ;;  %v6203_v44 = vsel %vm6141_vm6, %v15724_v39, 0.0  ;;  %v8117_v60 = vld [vmem:[#allocation2 + $0x18] sm:$0xff] }
 0xa4f   :  { %v6199_v4 = vsel %vm6141_vm6, %v15719_v53, 0.0  ;;  %v15728_v16 = vpop.permute.xlu1 %9317  ;;  %12355 = vmatmul.mubr.msk.bf16.gmra.mrb[212].mxu0 %vm106_vm1, %v6844_v3 }
 0xa50   :  { %v6200_v45 = vadd.f32 %v6199_v4, %v6198_v14  ;;  %12537 = vmatmul.mubr.msk.bf16.gmra.mrb[160].mxu1 %vm106_vm1, %v15558_v40  ;;  %8151 = vrot.lane.b32.xlu0 %v8115_v6, %s13215_s25  ;;  %v9905_v14 = vld [vmem:[#allocation2 + $0x30] sm:$0xff] }
 0xa51   :  { %9656 = vrot.lane.b32.xlu1 %v15420_v51, %s13215_s25  ;;  %12540 = vmatprep.mubr.msk.bf16.mxu1 %vm106_vm1, %v15580_v31  ;;  %v11097_v51 = vld [vmem:[%s18424_s10 + $0x10] sm:$0xff]  ;;  %v11098_v31 = vld [vmem:[%s18424_s10 + $0x18] sm:$0xf] }
 0xa52   :  { %v6202_v2 = vadd.f32 %v6201_v57, %v6200_v45  ;;  %v6846_v5 = vpop.permute.xlu0 %6845  ;;  %v15756_v10 = vpack.c.bf16 %v11098_v31, %v11097_v51  ;;  %v8118_v57 = vld [vmem:[#allocation2 + $0x20] sm:$0xff] }
 0xa53   :  { %v15744_v40 = vpop.permute.xlu1 %9319  ;;  %12358 = vmatprep.mubr.msk.bf16.mxu0 %vm106_vm1, %v6846_v5  ;;  %v9907_v51 = vld [vmem:[#allocation2 + $0x40] sm:$0xff] }
 0xa54   :  { %v6204_v13 = vadd.f32 %v6203_v44, %v6202_v2  ;;  %8153 = vrot.lane.b32.xlu0 %v8116_v26, %s13215_s25  ;;  %13044 = vmatprep.subr.msk.bf16.mxu0 %vm155_vm0, %v15756_v10  ;;  %v9906_v2 = vld [vmem:[#allocation2 + $0x38] sm:$0xff] }
 0xa55   :  { %9658 = vrot.lane.b32.xlu1 %v15740_v12, %s13215_s25 }
 0xa56   :  { %v6205_v33 = vrot.slane %v6204_v13, 4  ;;  %v6848_v18 = vpop.permute.xlu0 %6847 }
 0xa57   :  { %v15758_v46 = vpop.permute.xlu1 %9321  ;;  %12359 = vmatmul.mubr.msk.bf16.gmra.mrb[216].mxu0 %vm106_vm1, %v6848_v18 }
 0xa58   :  { %v6206_v6 = vadd.f32 %v6205_v33, %v6204_v13  ;;  %12541 = vmatmul.mubr.msk.bf16.gmra.mrb[164].mxu1 %vm106_vm1, %v15600_v9  ;;  %8155 = vrot.lane.b32.xlu0 %v8117_v60, %s13215_s25  ;;  %v9908_v60 = vld [vmem:[#allocation2 + $0x48] sm:$0xff] }
 0xa59   :  { %9941 = vrot.lane.b32.xlu1 %v9905_v14, %s13215_s25  ;;  %12544 = vmatprep.mubr.msk.bf16.mxu1 %vm106_vm1, %v15618_v23  ;;  %v8119_v23 = vld [vmem:[#allocation2 + $0x28] sm:$0xff] }
 0xa5a   :  { %v6207_v3 = vrot.slane %v6206_v6, 2  ;;  %v6850_v4 = vpop.permute.xlu0 %6849 }
 0xa5b   :  { %v15769_v45 = vpop.permute.xlu1 %9323  ;;  %12362 = vmatprep.mubr.msk.bf16.mxu0 %vm106_vm1, %v6850_v4 }
 0xa5c   :  { %v6208_v26 = vadd.f32 %v6207_v3, %v6206_v6  ;;  %8157 = vrot.lane.b32.xlu0 %v8118_v57, %s13215_s25 }
 0xa5d   :  { %9943 = vrot.lane.b32.xlu1 %v9906_v2, %s13215_s25 }
 0xa5e   :  { %v6209_v9 = vrot.slane %v6208_v26, 1  ;;  %v6852_v5 = vpop.permute.xlu0 %6851 }
 0xa5f   :  { %v15774_v44 = vpop.permute.xlu1 %9325  ;;  %12363 = vmatmul.mubr.msk.bf16.gmra.mrb[220].mxu0 %vm106_vm1, %v6852_v5 }
 0xa60   :  { %v6210_v13 = vadd.f32 %v6209_v9, %v6208_v26  ;;  %12545 = vmatmul.mubr.msk.bf16.gmra.mrb[168].mxu1 %vm106_vm1, %v15646_v24  ;;  %8159 = vrot.lane.b32.xlu0 %v8119_v23, %s13215_s25 }
 0xa61   :  { %9945 = vrot.lane.b32.xlu1 %v9907_v51, %s13215_s25  ;;  %12548 = vmatprep.mubr.msk.bf16.mxu1 %vm106_vm1, %v15666_v19 }
 0xa62   :  { %v15783_v31 = vmul.f32 0.00390625, %v6210_v13  ;;  %v6854_v33 = vpop.permute.xlu0 %6853 }
 0xa63   :  { %v15785_v18 = vpop.permute.xlu1 %9327  ;;  %12366 = vmatprep.mubr.msk.bf16.mxu0 %vm106_vm1, %v6854_v33  ;;  %v9912_v33 = vld [vmem:[#allocation2 + $0x68] sm:$0xff] }
 0xa64   :  { %8161 = vrot.lane.b32.xlu0 %v9905_v14, %s13215_s25  ;;  %v15792_v24 = vsub.f32 %v15511_v11, %v15783_v31  ;;  %v15796_v6 = vsub.f32 %v15516_v43, %v15783_v31  ;;  %v15800_v3 = vsub.f32 %v15536_v22, %v15783_v31  ;;  %v15804_v4 = vsub.f32 %v15549_v30, %v15783_v31 }
 0xa65   :  { %9947 = vrot.lane.b32.xlu1 %v9908_v60, %s13215_s25  ;;  %v15808_v14 = vsub.f32 %v15544_v48, %v15783_v31  ;;  %v15812_v11 = vsub.f32 %v15554_v15, %v15783_v31  ;;  %v15819_v43 = vsub.f32 %v15578_v59, %v15783_v31  ;;  %v15823_v22 = vsub.f32 %v15591_v25, %v15783_v31 }
 0xa66   :  { %v6856_v19 = vpop.permute.xlu0 %6855  ;;  %v15827_v48 = vsub.f32 %v15586_v55, %v15783_v31  ;;  %v15831_v30 = vsub.f32 %v15596_v62, %v15783_v31  ;;  %v15837_v15 = vsub.f32 %v15616_v37, %v15783_v31  ;;  %v15841_v59 = vsub.f32 %v15629_v63, %v15783_v31  ;;  %v9909_v62 = vld [vmem:[#allocation2 + $0x50] sm:$0xff] }
 0xa67   :  { %v15814_v57 = vpop.permute.xlu1 %9329  ;;  %12367 = vmatmul.mubr.msk.bf16.gmra.mrb[224].mxu0 %vm106_vm1, %v6856_v19  ;;  %v15845_v25 = vsub.f32 %v15624_v17, %v15783_v31  ;;  %v15849_v55 = vsub.f32 %v15642_v1, %v15783_v31  ;;  %v15858_v37 = vsub.f32 %v15677_v8, %v15783_v31  ;;  %v15862_v63 = vsub.f32 %v15672_v50, %v15783_v31 }
 0xa68   :  { %12549 = vmatmul.mubr.msk.bf16.gmra.mrb[172].mxu1 %vm106_vm1, %v15686_v7  ;;  %8163 = vrot.lane.b32.xlu0 %v9906_v2, %s13215_s25  ;;  %v15854_v7 = vsub.f32 %v15664_v38, %v15783_v31  ;;  %v15866_v17 = vsub.f32 %v15682_v29, %v15783_v31  ;;  %v15871_v26 = vsub.f32 %v15704_v47, %v15783_v31  ;;  %v9910_v2 = vld [vmem:[#allocation2 + $0x58] sm:$0xff] }
 0xa69   :  { %9949 = vrot.lane.b32.xlu1 %v9909_v62, %s13215_s25  ;;  %v15875_v38 = vsub.f32 %v15719_v53, %v15783_v31  ;;  %v15879_v8 = vsub.f32 %v15714_v42, %v15783_v31  ;;  %v15883_v50 = vsub.f32 %v15724_v39, %v15783_v31  ;;  %12554 = vmatprep.mubr.msk.bf16.mxu1 %vm106_vm1, %v15706_v35  ;;  %v8123_v39 = vld [vmem:[#allocation2 + $0x78] sm:$0xff] }
 0xa6a   :  { %v6858_v1 = vpop.permute.xlu0 %6857  ;;  %v15891_v47 = vsub.f32 %v15423_v34, %v15783_v31  ;;  %v15895_v53 = vsub.f32 %v15434_v52, %v15783_v31  ;;  %v15901_v42 = vsub.f32 %v15431_v0, %v15783_v31  ;;  %v15909_v34 = vsub.f32 %v15441_v32, %v15783_v31 }
 0xa6b   :  { %v15887_v29 = vpop.permute.xlu1 %9331  ;;  %12370 = vmatprep.mubr.msk.bf16.mxu0 %vm106_vm1, %v6858_v1  ;;  %v9709_v0 = vsel %vm155_vm0, %v15639_v27, 0  ;;  %v15922_v23 = vsub.f32 %v15460_v20, %v15783_v31  ;;  %v15934_v27 = vsub.f32 %v15473_v54, %v15783_v31 }
 0xa6c   :  { %8165 = vrot.lane.b32.xlu0 %v9907_v51, %s13215_s25  ;;  %v6244_v52 = vmul.f32 %v15891_v47, %v15891_v47  ;;  %v6245_v5 = vmul.f32 %v15895_v53, %v15895_v53  ;;  %v6246_v32 = vmul.f32 %v15901_v42, %v15901_v42  ;;  %v8124_v51 = vld [vmem:[#allocation2 + $0x80] sm:$0xff]  ;;  %v6247_v20 = vmul.f32 %v15909_v34, %v15909_v34 }
 0xa6d   :  { %9951 = vrot.lane.b32.xlu1 %v9910_v2, %s13215_s25  ;;  %v6248_v54 = vmul.f32 %v15922_v23, %v15922_v23 }
 0xa6e   :  { %v6860_v35 = vpop.permute.xlu0 %6859  ;;  %v6276_v60 = vsel %vm6141_vm6, %v6244_v52, 0.0  ;;  %v6277_v19 = vsel %vm6141_vm6, %v6245_v5, 0.0  ;;  %v6279_v62 = vsel %vm6141_vm6, %v6246_v32, 0.0  ;;  %v6281_v52 = vsel %vm6141_vm6, %v6247_v20, 0.0  ;;  %v8125_v5 = vld [vmem:[#allocation2 + $0x88] sm:$0xff]  ;;  %v9913_v32 = vld [vmem:[#allocation2 + $0xa0] sm:$0xff] }
 0xa6f   :  { %v15904_v9 = vpop.permute.xlu1 %9333  ;;  %12371 = vmatmul.mubr.msk.bf16.gmra.mrb[228].mxu0 %vm106_vm1, %v6860_v35 }
 0xa70   :  { %12555 = vmatmul.mubr.msk.bf16.vlgmr.msra.gmra.mrb[144].mxu1 %vm106_vm1, %v15728_v16  ;;  %8167 = vrot.lane.b32.xlu0 %v8123_v39, %s13215_s25  ;;  %v15955_v39 = vsub.f32 %v15478_v21, %v15783_v31  ;;  %v15967_v21 = vsub.f32 %v15498_v28, %v15783_v31 }
 0xa71   :  { %9953 = vrot.lane.b32.xlu1 %v15573_v41, %s13215_s25  ;;  %12558 = vmatprep.mubr.msk.bf16.mxu1 %vm106_vm1, %v15744_v40  ;;  %v6278_v41 = vadd.f32 %v6277_v19, %v6276_v60  ;;  %v15944_v40 = vsub.f32 %v15468_v61, %v15783_v31  ;;  %v6249_v61 = vmul.f32 %v15934_v27, %v15934_v27 }
 0xa72   :  { %v6862_v13 = vpop.permute.xlu0 %6861  ;;  %12587 = vmatpush3.bf16.msra.mxu1 %v9709_v0  ;;  %v6251_v28 = vmul.f32 %v15955_v39, %v15955_v39 }
 0xa73   :  { %v15930_v16 = vpop.permute.xlu1 %9335  ;;  %12374 = vmatprep.mubr.msk.bf16.mxu0 %vm106_vm1, %v6862_v13  ;;  %v6280_v2 = vadd.f32 %v6279_v62, %v6278_v41  ;;  %v6250_v13 = vmul.f32 %v15944_v40, %v15944_v40  ;;  %v6285_v19 = vsel %vm6141_vm6, %v6249_v61, 0.0  ;;  %v8126_v41 = vld [vmem:[#allocation2 + $0x90] sm:$0xff]  ;;  %v9914_v62 = vld [vmem:[#allocation2 + $0xa8] sm:$0xff] }
 0xa74   :  { %8169 = vrot.lane.b32.xlu0 %v8124_v51, %s13215_s25  ;;  %v6283_v51 = vsel %vm6141_vm6, %v6248_v54, 0.0 }
 0xa75   :  { %9955 = vrot.lane.b32.xlu1 %v9912_v33, %s13215_s25  ;;  %v6282_v0 = vadd.f32 %v6281_v52, %v6280_v2  ;;  %v11203_v33 = vld [vmem:[%s18424_s10 + $0x60] sm:$0xff]  ;;  %v15990_v2 = vsub.f32 %v15506_v56, %v15783_v31  ;;  %v6252_v52 = vmul.f32 %v15967_v21, %v15967_v21  ;;  %v6253_v56 = vmul.f32 %v15792_v24, %v15792_v24 }
 0xa76   :  { %v6864_v1 = vpop.permute.xlu0 %6863  ;;  %v6289_v31 = vsel %vm6141_vm6, %v6251_v28, 0.0 }
 0xa77   :  { %v15950_v35 = vpop.permute.xlu1 %9337  ;;  %12375 = vmatmul.mubr.msk.bf16.gmra.mrb[232].mxu0 %vm106_vm1, %v6864_v1  ;;  %v6284_v20 = vadd.f32 %v6283_v51, %v6282_v0 }
 0xa78   :  { %12559 = vmatmul.mubr.msk.bf16.gmra.mrb[148].mxu1 %vm106_vm1, %v15758_v46  ;;  %8171 = vrot.lane.b32.xlu0 %v8125_v5, %s13215_s25  ;;  %v6287_v5 = vsel %vm6141_vm6, %v6250_v13, 0.0  ;;  %v8127_v13 = vld [vmem:[#allocation2 + $0x98] sm:$0xff] }
 0xa79   :  { %12562 = vmatprep.mubr.msk.bf16.mxu1 %vm106_vm1, %v15769_v45  ;;  %9957 = vrot.lane.b32.xlu1 %v9913_v32, %s13215_s25  ;;  %v11204_v45 = vld [vmem:[%s18424_s10 + $0x68] sm:$0xf]  ;;  %v6286_v54 = vadd.f32 %v6285_v19, %v6284_v20  ;;  %v6291_v20 = vsel %vm6141_vm6, %v6252_v52, 0.0  ;;  %v8232_v52 = vsel %vm155_vm0, %v15756_v10, 0 }
 0xa7a   :  { %v6866_v46 = vpop.permute.xlu0 %6865  ;;  %v15986_v1 = vpack.c.bf16 %v11204_v45, %v11203_v33  ;;  %v9915_v33 = vld [vmem:[#allocation2 + $0xb0] sm:$0xff]  ;;  %v6254_v45 = vmul.f32 %v15990_v2, %v15990_v2 }
 0xa7b   :  { %v15979_v60 = vpop.permute.xlu1 %9339  ;;  %12378 = vmatprep.mubr.msk.bf16.mxu0 %vm106_vm1, %v6866_v46  ;;  %v6288_v61 = vadd.f32 %v6287_v5, %v6286_v54  ;;  %v6293_v54 = vsel %vm6141_vm6, %v6253_v56, 0.0 }
 0xa7c   :  { %8173 = vrot.lane.b32.xlu0 %v8126_v41, %s13215_s25  ;;  %13050 = vmatprep.subr.msk.bf16.mxu1 %vm155_vm0, %v15986_v1 }
 0xa7d   :  { %9959 = vrot.lane.b32.xlu1 %v9914_v62, %s13215_s25  ;;  %v6290_v46 = vadd.f32 %v6289_v31, %v6288_v61  ;;  %v6295_v61 = vsel %vm6141_vm6, %v6254_v45, 0.0  ;;  %v6258_v45 = vmul.f32 %v15808_v14, %v15808_v14 }
 0xa7e   :  { %v6868_v0 = vpop.permute.xlu0 %6867 }
 0xa7f   :  { %v15996_v51 = vpop.permute.xlu1 %9341  ;;  %12379 = vmatmul.mubr.msk.bf16.gmra.mrb[236].mxu0 %vm106_vm1, %v6868_v0  ;;  %v6292_v28 = vadd.f32 %v6291_v20, %v6290_v46  ;;  %v6256_v0 = vmul.f32 %v15800_v3, %v15800_v3 }
 0xa80   :  { %12563 = vmatmul.mubr.msk.bf16.gmra.mrb[152].mxu1 %vm106_vm1, %v15774_v44  ;;  %8175 = vrot.lane.b32.xlu0 %v8127_v13, %s13215_s25  ;;  %v6255_v44 = vmul.f32 %v15796_v6, %v15796_v6 }
 0xa81   :  { %12566 = vmatprep.mubr.msk.bf16.mxu1 %vm106_vm1, %v15785_v18  ;;  %9961 = vrot.lane.b32.xlu1 %v9915_v33, %s13215_s25  ;;  %v6294_v5 = vadd.f32 %v6293_v54, %v6292_v28  ;;  %v9916_v18 = vld [vmem:[#allocation2 + $0xb8] sm:$0xff]  ;;  %v6299_v20 = vsel %vm6141_vm6, %v6256_v0, 0.0 }
 0xa82   :  { %v7119_v19 = vpop.permute.xlu0 %7118  ;;  %v6297_v56 = vsel %vm6141_vm6, %v6255_v44, 0.0 }
 0xa83   :  { %v16013_v41 = vpop.permute.xlu1 %9343  ;;  %12384 = vmatprep.mubr.msk.bf16.mxu0 %vm106_vm1, %v7119_v19  ;;  %v6296_v13 = vadd.f32 %v6295_v61, %v6294_v5  ;;  %v6260_v5 = vmul.f32 %v15819_v43, %v15819_v43 }
 0xa84   :  { %8177 = vrot.lane.b32.xlu0 %v9913_v32, %s13215_s25  ;;  %v6257_v32 = vmul.f32 %v15804_v4, %v15804_v4 }
 0xa85   :  { %9963 = vrot.lane.b32.xlu1 %v9916_v18, %s13215_s25  ;;  %v6298_v10 = vadd.f32 %v6297_v56, %v6296_v13  ;;  %v6307_v56 = vsel %vm6141_vm6, %v6260_v5, 0.0  ;;  %v6265_v5 = vmul.f32 %v15841_v59, %v15841_v59 }
 0xa86   :  { %v7121_v31 = vpop.permute.xlu0 %7120 }
 0xa87   :  { %v16026_v46 = vpop.permute.xlu1 %9345  ;;  %12385 = vmatmul.mubr.msk.bf16.vlgmr.msra.gmra.mrb[208].mxu0 %vm106_vm1, %v7121_v31  ;;  %v6300_v28 = vadd.f32 %v6299_v20, %v6298_v10 }
 0xa88   :  { %12567 = vmatmul.mubr.msk.bf16.gmra.mrb[156].mxu1 %vm106_vm1, %v15814_v57  ;;  %12417 = vmatpush3.bf16.msra.mxu0 %v8232_v52  ;;  %v9918_v57 = vld [vmem:[#allocation2 + $0xc8] sm:$0xff]  ;;  %v16056_v52 = vld [vmem:[%s18427_s11] ss:$0 sm:$0xff]  ;;  %s13217_s11 = smov 120  }
 0xa89   :  { %8179 = vrot.lane.b32.xlu0 %v9914_v62, %s13215_s25  ;;  %12570 = vmatprep.mubr.msk.bf16.mxu1 %vm106_vm1, %v15887_v29  ;;  %v6259_v62 = vmul.f32 %v15812_v11, %v15812_v11  ;;  %v6301_v29 = vsel %vm6141_vm6, %v6257_v32, 0.0  ;;  %v6262_v32 = vmul.f32 %v15827_v48, %v15827_v48 }
 0xa8a   :  { %9965 = vrot.lane.b32.xlu1 %v15711_v58, %s13215_s25  ;;  %v7123_v19 = vpop.permute.xlu0 %7122  ;;  %v6302_v54 = vadd.f32 %v6301_v29, %v6300_v28  ;;  %v6303_v58 = vsel %vm6141_vm6, %v6258_v45, 0.0 }
 0xa8b   :  { %v16042_v44 = vpop.permute.xlu1 %9628  ;;  %12388 = vmatprep.mubr.msk.bf16.mxu0 %vm106_vm1, %v7123_v19  ;;  %v6305_v31 = vsel %vm6141_vm6, %v6259_v62, 0.0  ;;  %v6311_v62 = vsel %vm6141_vm6, %v6262_v32, 0.0 }
 0xa8c   :  { %v6304_v0 = vadd.f32 %v6303_v58, %v6302_v54 }
 0xa8d   :  { %8181 = vrot.lane.b32.xlu0 %v9915_v33, %s13215_s25  ;;  %v6261_v33 = vmul.f32 %v15823_v22, %v15823_v22 }
 0xa8e   :  { %v7125_v18 = vpop.permute.xlu0 %7124  ;;  %9967 = vrot.lane.b32.xlu1 %v9918_v57, %s13215_s25  ;;  %v6306_v13 = vadd.f32 %v6305_v31, %v6304_v0  ;;  %v6264_v57 = vmul.f32 %v15837_v15, %v15837_v15  ;;  %v6266_v0 = vmul.f32 %v15845_v25, %v15845_v25 }
 0xa8f   :  { %v16058_v61 = vpop.permute.xlu1 %9630  ;;  %12389 = vmatmul.mubr.msk.bf16.gmra.mrb[212].mxu0 %vm106_vm1, %v7125_v18  ;;  %v6309_v19 = vsel %vm6141_vm6, %v6261_v33, 0.0 }
 0xa90   :  { %12571 = vmatmul.mubr.msk.bf16.gmra.mrb[160].mxu1 %vm106_vm1, %v15904_v9  ;;  %v6308_v45 = vadd.f32 %v6307_v56, %v6306_v13  ;;  %v9920_v9 = vld [vmem:[#allocation2 + $0xd8] sm:$0xff]  ;;  %v6315_v33 = vsel %vm6141_vm6, %v6264_v57, 0.0  ;;  %v6267_v56 = vmul.f32 %v15849_v55, %v15849_v55 }
 0xa91   :  { %12574 = vmatprep.mubr.msk.bf16.mxu1 %vm106_vm1, %v15930_v16  ;;  %7400 = vrot.lane.b32.xlu0 %v16056_v52, %s13216_s1  ;;  %v6263_v16 = vmul.f32 %v15831_v30, %v15831_v30 }
 0xa92   :  { %v7127_v10 = vpop.permute.xlu0 %7126  ;;  %9969 = vrot.lane.b32.xlu1 %v15740_v12, %s13215_s25  ;;  %v6310_v28 = vadd.f32 %v6309_v19, %v6308_v45  ;;  %v6319_v45 = vsel %vm6141_vm6, %v6266_v0, 0.0  ;;  %v6321_v57 = vsel %vm6141_vm6, %v6267_v56, 0.0  ;;  %v6271_v0 = vmul.f32 %v15866_v17, %v15866_v17 }
 0xa93   :  { %v16075_v20 = vpop.permute.xlu1 %9632  ;;  %12392 = vmatprep.mubr.msk.bf16.mxu0 %vm106_vm1, %v7127_v10  ;;  %v6313_v58 = vsel %vm6141_vm6, %v6263_v16, 0.0 }
 0xa94   :  { %v6312_v12 = vadd.f32 %v6311_v62, %v6310_v28  ;;  %v6269_v28 = vmul.f32 %v15858_v37, %v15858_v37 }
 0xa96   :  { %v7129_v29 = vpop.permute.xlu0 %7128  ;;  %9971 = vrot.lane.b32.xlu1 %v9920_v9, %s13215_s25  ;;  %v6314_v18 = vadd.f32 %v6313_v58, %v6312_v12 }
 0xa97   :  { %v16085_v54 = vpop.permute.xlu1 %9634  ;;  %12393 = vmatmul.mubr.msk.bf16.gmra.mrb[216].mxu0 %vm106_vm1, %v7129_v29  ;;  %v6270_v29 = vmul.f32 %v15862_v63, %v15862_v63 }
 0xa98   :  { %12575 = vmatmul.mubr.msk.bf16.gmra.mrb[164].mxu1 %vm106_vm1, %v15950_v35  ;;  %v6316_v13 = vadd.f32 %v6315_v33, %v6314_v18  ;;  %v6317_v35 = vsel %vm6141_vm6, %v6265_v5, 0.0 }
 0xa99   :  { %12578 = vmatprep.mubr.msk.bf16.mxu1 %vm106_vm1, %v15979_v60  ;;  %v6268_v60 = vmul.f32 %v15854_v7, %v15854_v7 }
 0xa9a   :  { %v7131_v31 = vpop.permute.xlu0 %7130  ;;  %v6318_v10 = vadd.f32 %v6317_v35, %v6316_v13  ;;  %10223 = vrot.lane.b32.xlu1 %v16056_v52, %s13217_s11  ;;  %v16153_v52 = vld [vmem:[%s18417_s0] sm:$0xff] }
 0xa9b   :  { %v16098_v32 = vpop.permute.xlu1 %9636  ;;  %12396 = vmatprep.mubr.msk.bf16.mxu0 %vm106_vm1, %v7131_v31  ;;  %v6323_v12 = vsel %vm6141_vm6, %v6268_v60, 0.0  ;;  %v6327_v31 = vsel %vm6141_vm6, %v6270_v29, 0.0  ;;  %v6329_v60 = vsel %vm6141_vm6, %v6271_v0, 0.0  ;;  %18493 = vst [vmem:[#allocation5_spill] sm:$0xff] %v16153_v52 }
 0xa9c   :  { %v6320_v16 = vadd.f32 %v6319_v45, %v6318_v10  ;;  %v6273_v10 = vmul.f32 %v15875_v38, %v15875_v38 }
 0xa9e   :  { %v7133_v9 = vpop.permute.xlu0 %7132  ;;  %v6322_v62 = vadd.f32 %v6321_v57, %v6320_v16  ;;  %7774 = vrot.lane.b32.xlu1 %v16153_v52, %s13216_s1 }
 0xa9f   :  { %v16107_v19 = vpop.permute.xlu1 %9638  ;;  %12397 = vmatmul.mubr.msk.bf16.gmra.mrb[220].mxu0 %vm106_vm1, %v7133_v9  ;;  %v6274_v9 = vmul.f32 %v15879_v8, %v15879_v8 }
 0xaa0   :  { %12579 = vmatmul.mubr.msk.bf16.gmra.mrb[168].mxu1 %vm106_vm1, %v15996_v51  ;;  %v6324_v58 = vadd.f32 %v6323_v12, %v6322_v62  ;;  %v6325_v51 = vsel %vm6141_vm6, %v6269_v28, 0.0 }
 0xaa1   :  { %12582 = vmatprep.mubr.msk.bf16.mxu1 %vm106_vm1, %v16013_v41  ;;  %v6272_v41 = vmul.f32 %v15871_v26, %v15871_v26  ;;  %v6335_v12 = vsel %vm6141_vm6, %v6274_v9, 0.0 }
 0xaa2   :  { %v7135_v5 = vpop.permute.xlu0 %7134  ;;  %v6326_v33 = vadd.f32 %v6325_v51, %v6324_v58  ;;  %v10022_v58 = vsel %vm155_vm0, %v15986_v1, 0  ;;  %v16171_v1 = vld [vmem:[%s18417_s0 + $0x10] sm:$0xff] }
 0xaa3   :  { %v16120_v18 = vpop.permute.xlu1 %9640  ;;  %12400 = vmatprep.mubr.msk.bf16.mxu0 %vm106_vm1, %v7135_v5  ;;  %v6331_v16 = vsel %vm6141_vm6, %v6272_v41, 0.0  ;;  %18494 = vst [vmem:[#allocation6_spill] sm:$0xff] %v16171_v1  ;;  %7778 = vrot.lane.b32.xlu1 %v16171_v1, %s13216_s1 }
 0xaa4   :  { %v6328_v56 = vadd.f32 %v6327_v31, %v6326_v33 }
 0xaa6   :  { %v7137_v13 = vpop.permute.xlu0 %7136  ;;  %v6330_v45 = vadd.f32 %v6329_v60, %v6328_v56 }
 0xaa7   :  { %v16129_v35 = vpop.permute.xlu1 %9642  ;;  %12401 = vmatmul.mubr.msk.bf16.gmra.mrb[224].mxu0 %vm106_vm1, %v7137_v13 }
 0xaa8   :  { %12583 = vmatmul.mubr.msk.bf16.gmra.mrb[172].mxu1 %vm106_vm1, %v16026_v46  ;;  %v6332_v57 = vadd.f32 %v6331_v16, %v6330_v45  ;;  %v6275_v46 = vmul.f32 %v15883_v50, %v15883_v50 }
 0xaa9   :  { %12588 = vmatprep.mubr.msk.bf16.mxu1 %vm106_vm1, %v16042_v44  ;;  %v6333_v44 = vsel %vm6141_vm6, %v6273_v10, 0.0 }
 0xaaa   :  { %v7139_v28 = vpop.permute.xlu0 %7138  ;;  %v6334_v29 = vadd.f32 %v6333_v44, %v6332_v57  ;;  %v6337_v33 = vsel %vm6141_vm6, %v6275_v46, 0.0 }
 0xaab   :  { %v16144_v62 = vpop.permute.xlu1 %9644  ;;  %12404 = vmatprep.mubr.msk.bf16.mxu0 %vm106_vm1, %v7139_v28  ;;  %v16193_v28 = vld [vmem:[%s18417_s0 + $0x38] sm:$0xff] }
 0xaac   :  { %v6336_v0 = vadd.f32 %v6335_v12, %v6334_v29 }
 0xaae   :  { %v7141_v5 = vpop.permute.xlu0 %7140  ;;  %v6338_v41 = vadd.f32 %v6337_v33, %v6336_v0  ;;  %v16217_v0 = vld [vmem:[%s18417_s0 + $0x58] sm:$0xff] }
 0xaaf   :  { %v16160_v51 = vpop.permute.xlu1 %9646  ;;  %12405 = vmatmul.mubr.msk.bf16.gmra.mrb[228].mxu0 %vm106_vm1, %v7141_v5 }
 0xab0   :  { %12589 = vmatmul.mubr.msk.bf16.vlgmr.msra.gmra.mrb[144].mxu1 %vm106_vm1, %v16058_v61  ;;  %v6339_v13 = vrot.slane %v6338_v41, 4 }
 0xab1   :  { %12592 = vmatprep.mubr.msk.bf16.mxu1 %vm106_vm1, %v16075_v20  ;;  %12621 = vmatpush3.bf16.msra.mxu1 %v10022_v58  ;;  %v16179_v20 = vld [vmem:[%s18417_s0 + $0x28] sm:$0xff] }
 0xab2   :  { %v7143_v31 = vpop.permute.xlu0 %7142  ;;  %v6340_v10 = vadd.f32 %v6339_v13, %v6338_v41  ;;  %7784 = vrot.lane.b32.xlu1 %v16179_v20, %s13216_s1  ;;  %v16241_v13 = vld [vmem:[%s18417_s0 + $0x78] sm:$0xff] }
 0xab3   :  { %v9649_v56 = vpop.permute.xlu1 %9648  ;;  %12408 = vmatprep.mubr.msk.bf16.mxu0 %vm106_vm1, %v7143_v31 }
 0xab4   :  { %v6341_v60 = vrot.slane %v6340_v10, 2 }
 0xab6   :  { %v7145_v61 = vpop.permute.xlu0 %7144  ;;  %v6342_v9 = vadd.f32 %v6341_v60, %v6340_v10  ;;  %7788 = vrot.lane.b32.xlu1 %v16193_v28, %s13216_s1  ;;  %v6139_v10 = vld [vmem:[%s18428_s12] sm:$0x1] }
 0xab7   :  { %v16183_v45 = vpop.permute.xlu1 %9650  ;;  %12409 = vmatmul.mubr.msk.bf16.gmra.mrb[232].mxu0 %vm106_vm1, %v7145_v61 }
 0xab8   :  { %12593 = vmatmul.mubr.msk.bf16.gmra.mrb[148].mxu1 %vm106_vm1, %v16085_v54  ;;  %v6343_v57 = vrot.slane %v6342_v9, 1 }
 0xab9   :  { %12596 = vmatprep.mubr.msk.bf16.mxu1 %vm106_vm1, %v16098_v32  ;;  %v16203_v32 = vld [vmem:[%s18417_s0 + $0x48] sm:$0xff] }
 0xaba   :  { %v7147_v16 = vpop.permute.xlu0 %7146  ;;  %v6344_v44 = vadd.f32 %v6343_v57, %v6342_v9  ;;  %7792 = vrot.lane.b32.xlu1 %v16203_v32, %s13216_s1  ;;  %v16254_v9 = vld [vmem:[%s18417_s0 + $0x88] sm:$0xff]  ;;  %v16267_v57 = vld [vmem:[%s18429_s13] ss:$0 sm:$0xff] }
 0xabb   :  { %v16197_v46 = vpop.permute.xlu1 %9652  ;;  %12412 = vmatprep.mubr.msk.bf16.mxu0 %vm106_vm1, %v7147_v16 }
 0xabc   :  { %v6345_v29 = vmul.f32 0.00390625, %v6344_v44 }
 0xabe   :  { %v7149_v54 = vpop.permute.xlu0 %7148  ;;  %v6346_v5 = vadd.f32 1e-05, %v6345_v29  ;;  %7796 = vrot.lane.b32.xlu1 %v16217_v0, %s13216_s1  ;;  %v16275_v29 = vld [vmem:[%s18417_s0 + $0x98] sm:$0xff] }
 0xabf   :  { %v16207_v12 = vpop.permute.xlu1 %9654  ;;  %12413 = vmatmul.mubr.msk.bf16.gmra.mrb[236].mxu0 %vm106_vm1, %v7149_v54 }
 0xac0   :  { %12597 = vmatmul.mubr.msk.bf16.gmra.mrb[152].mxu1 %vm106_vm1, %v16107_v19  ;;  %13118 = vrsqrt.f32 %v6346_v5  ;;  %v16227_v19 = vld [vmem:[%s18417_s0 + $0x68] sm:$0xff] }
 0xac1   :  { %12600 = vmatprep.mubr.msk.bf16.mxu1 %vm106_vm1, %v16120_v18 }
 0xac2   :  { %v8152_v58 = vpop.permute.xlu0 %8151  ;;  %7800 = vrot.lane.b32.xlu1 %v16227_v19, %s13216_s1 }
 0xac3   :  { %v16221_v33 = vpop.permute.xlu1 %9656  ;;  %12418 = vmatprep.mubr.msk.bf16.mxu0 %vm106_vm1, %v8152_v58 }
 0xac6   :  { %v8154_v41 = vpop.permute.xlu0 %8153  ;;  %7804 = vrot.lane.b32.xlu1 %v16241_v13, %s13216_s1 }
 0xac7   :  { %v16231_v18 = vpop.permute.xlu1 %9658  ;;  %12419 = vmatmul.mubr.msk.bf16.vlgmr.msra.gmra.mrb[240].mxu0 %vm106_vm1, %v8154_v41 }
 0xac8   :  { %12601 = vmatmul.mubr.msk.bf16.gmra.mrb[156].mxu1 %vm106_vm1, %v16129_v35 }
 0xac9   :  { %12604 = vmatprep.mubr.msk.bf16.mxu1 %vm106_vm1, %v16144_v62 }
 0xaca   :  { %v8156_v31 = vpop.permute.xlu0 %8155  ;;  %v13119_v61 = vpop.eup %13118  ;;  %7808 = vrot.lane.b32.xlu1 %v16254_v9, %s13216_s1 }
 0xacb   :  { %12422 = vmatprep.mubr.msk.bf16.mxu0 %vm106_vm1, %v8156_v31  ;;  %v16249_v35 = vpop.permute.xlu1 %9941  ;;  %v6348_v60 = vmul.f32 %v13119_v61, %v6139_v10 }
 0xacd   :  { %v16260_v16 = vrot.slane %v6348_v60, %v14771_v49 }
 0xace   :  { %v8158_v62 = vpop.permute.xlu0 %8157  ;;  %7812 = vrot.lane.b32.xlu1 %v16275_v29, %s13216_s1 }
 0xacf   :  { %12423 = vmatmul.mubr.msk.bf16.gmra.mrb[244].mxu0 %vm106_vm1, %v8158_v62  ;;  %v6384_v44 = vmul.f32 %v16260_v16, %v15875_v38  ;;  %v6356_v5 = vmul.f32 %v16260_v16, %v15895_v53  ;;  %v16285_v58 = vpop.permute.xlu1 %9943  ;;  %v6358_v38 = vmul.f32 %v16260_v16, %v15909_v34  ;;  %v6359_v41 = vmul.f32 %v16260_v16, %v15922_v23 }
 0xad0   :  { %12605 = vmatmul.mubr.msk.bf16.gmra.mrb[160].mxu1 %vm106_vm1, %v16160_v51  ;;  %v6355_v51 = vmul.f32 %v16260_v16, %v15891_v47  ;;  %v6360_v31 = vmul.f32 %v16260_v16, %v15934_v27  ;;  %v6361_v47 = vmul.f32 %v16260_v16, %v15944_v40  ;;  %v16307_v27 = vld [vmem:[%s18417_s0 + $0xe8] sm:$0xff] }
 0xad1   :  { %12608 = vmatprep.mubr.msk.bf16.mxu1 %vm106_vm1, %v9649_v56  ;;  %v6357_v56 = vmul.f32 %v16260_v16, %v15901_v42  ;;  %v6422_v53 = vadd.f32 %v16267_v57, %v6384_v44  ;;  %v6394_v10 = vadd.f32 %v16267_v57, %v6356_v5  ;;  %v6396_v60 = vadd.f32 %v16267_v57, %v6358_v38  ;;  %v16321_v5 = vld [vmem:[%s18417_s0 + $0x8] sm:$0xff] }
 0xad2   :  { %v8160_v54 = vpop.permute.xlu0 %8159  ;;  %v6393_v42 = vadd.f32 %v16267_v57, %v6355_v51  ;;  %v6397_v34 = vadd.f32 %v16267_v57, %v6359_v41  ;;  %v6398_v23 = vadd.f32 %v16267_v57, %v6360_v31  ;;  %v6399_v62 = vadd.f32 %v16267_v57, %v6361_v47  ;;  %v16329_v41 = vld [vmem:[%s18417_s0 + $0x18] sm:$0xff]  ;;  %v16335_v47 = vld [vmem:[%s18417_s0 + $0x20] sm:$0xff] }
 0xad3   :  { %12426 = vmatprep.mubr.msk.bf16.mxu0 %vm106_vm1, %v8160_v54  ;;  %v6395_v61 = vadd.f32 %v16267_v57, %v6357_v56  ;;  %v6454_v40 = vadd.f32 %v16307_v27, %v6422_v53  ;;  %v16313_v54 = vld [vmem:[%s18417_s0 + $0xa8] sm:$0xff]  ;;  %v6426_v56 = vadd.f32 %v16321_v5, %v6394_v10  ;;  %v6428_v31 = vadd.f32 %v16329_v41, %v6396_v60  ;;  %v16342_v10 = vld [vmem:[%s18417_s0 + $0x30] sm:$0xff] }
 0xad4   :  { %7816 = vrot.lane.b32.xlu1 %v16313_v54, %s13216_s1  ;;  %v6425_v51 = vadd.f32 %v16153_v52, %v6393_v42  ;;  %v6429_v53 = vadd.f32 %v16335_v47, %v6397_v34  ;;  %v6430_v42 = vadd.f32 %v16179_v20, %v6398_v23 }
 0xad5   :  { %v6427_v38 = vadd.f32 %v16171_v1, %v6395_v61  ;;  %v6431_v61 = vadd.f32 %v16342_v10, %v6399_v62  ;;  %v6458_v49 = vmax.f32 %v6426_v56, 0.0  ;;  %v16347_v1 = vpop.permute.xlu1 %9945  ;;  %v6460_v20 = vmax.f32 %v6428_v31, 0.0  ;;  %v16354_v62 = vld [vmem:[%s18417_s0 + $0xb8] sm:$0xff] }
 0xad6   :  { %v8162_v44 = vpop.permute.xlu0 %8161  ;;  %v6457_v60 = vmax.f32 %v6425_v51, 0.0  ;;  %v6461_v34 = vmax.f32 %v6429_v53, 0.0  ;;  %v6462_v23 = vmax.f32 %v6430_v42, 0.0  ;;  %v6365_v51 = vmul.f32 %v16260_v16, %v15990_v2  ;;  %v16426_v42 = vld [vmem:[%s18417_s0 + $0x40] sm:$0xff] }
 0xad7   :  { %12427 = vmatmul.mubr.msk.bf16.gmra.mrb[248].mxu0 %vm106_vm1, %v8162_v44  ;;  %v6486_v44 = vmax.f32 %v6454_v40, 0.0  ;;  %v6459_v36 = vmax.f32 %v6427_v38, 0.0  ;;  %v6463_v52 = vmax.f32 %v6431_v61, 0.0  ;;  %6490 = vst.msk [vmem:[%s18430_s14 + $0x8] sm:$0xff] %vm6141_vm6, %v6458_v49  ;;  %v6364_v40 = vmul.f32 %v16260_v16, %v15792_v24  ;;  %6492 = vst.msk [vmem:[%s18430_s14 + $0x18] sm:$0xff] %vm6141_vm6, %v6460_v20 }
 0xad8   :  { %12609 = vmatmul.mubr.msk.bf16.gmra.mrb[164].mxu1 %vm106_vm1, %v16183_v45  ;;  %7820 = vrot.lane.b32.xlu1 %v16354_v62, %s13216_s1  ;;  %6489 = vst.msk [vmem:[%s18430_s14] sm:$0xff] %vm6141_vm6, %v6457_v60  ;;  %v6362_v45 = vmul.f32 %v16260_v16, %v15955_v39  ;;  %6493 = vst.msk [vmem:[%s18430_s14 + $0x20] sm:$0xff] %vm6141_vm6, %v6461_v34  ;;  %v6367_v49 = vmul.f32 %v16260_v16, %v15800_v3  ;;  %v16433_v60 = vld [vmem:[%s18417_s0 + $0x50] sm:$0xff] }
 0xad9   :  { %12612 = vmatprep.mubr.msk.bf16.mxu1 %vm106_vm1, %v16197_v46  ;;  %6518 = vst.msk [vmem:[%s18430_s14 + $0xe8] sm:$0xff] %vm6141_vm6, %v6486_v44  ;;  %6491 = vst.msk [vmem:[%s18430_s14 + $0x10] sm:$0xff] %vm6141_vm6, %v6459_v36  ;;  %v6363_v46 = vmul.f32 %v16260_v16, %v15967_v21  ;;  %v6366_v36 = vmul.f32 %v16260_v16, %v15796_v6  ;;  %v6368_v24 = vmul.f32 %v16260_v16, %v15804_v4  ;;  %v16436_v34 = vpop.permute.xlu1 %9947 }
 0xada   :  { %v8164_v56 = vpop.permute.xlu0 %8163  ;;  %6494 = vst.msk [vmem:[%s18430_s14 + $0x28] sm:$0xff] %vm6141_vm6, %v6462_v23  ;;  %6495 = vst.msk [vmem:[%s18430_s14 + $0x30] sm:$0xff] %vm6141_vm6, %v6463_v52  ;;  %v6369_v39 = vmul.f32 %v16260_v16, %v15808_v14  ;;  %v6400_v21 = vadd.f32 %v16267_v57, %v6362_v45  ;;  %v6402_v52 = vadd.f32 %v16267_v57, %v6364_v40  ;;  %v16418_v14 = vld [vmem:[%s18417_s0 + $0xc8] sm:$0xff]  ;;  %v16442_v45 = vld [vmem:[%s18417_s0 + $0x60] sm:$0xff] }
 0xadb   :  { %12430 = vmatprep.mubr.msk.bf16.mxu0 %vm106_vm1, %v8164_v56  ;;  %v6401_v2 = vadd.f32 %v16267_v57, %v6363_v46  ;;  %v6403_v38 = vadd.f32 %v16267_v57, %v6365_v51  ;;  %v6404_v6 = vadd.f32 %v16267_v57, %v6366_v36  ;;  %v6405_v3 = vadd.f32 %v16267_v57, %v6367_v49  ;;  %v16449_v40 = vld [vmem:[%s18417_s0 + $0x70] sm:$0xff] }
 0xadc   :  { %v6406_v31 = vadd.f32 %v16267_v57, %v6368_v24  ;;  %v6407_v4 = vadd.f32 %v16267_v57, %v6369_v39  ;;  %7824 = vrot.lane.b32.xlu1 %v16418_v14, %s13216_s1  ;;  %v6432_v53 = vadd.f32 %v16193_v28, %v6400_v21  ;;  %v6434_v44 = vadd.f32 %v16203_v32, %v6402_v52 }
 0xadd   :  { %v6433_v61 = vadd.f32 %v16426_v42, %v6401_v2  ;;  %v6435_v20 = vadd.f32 %v16433_v60, %v6403_v38  ;;  %v6436_v28 = vadd.f32 %v16217_v0, %v6404_v6  ;;  %v6437_v46 = vadd.f32 %v16442_v45, %v6405_v3  ;;  %v16460_v2 = vld [vmem:[%s18417_s0 + $0xd8] sm:$0xff] }
 0xade   :  { %v8166_v23 = vpop.permute.xlu0 %8165  ;;  %v6438_v32 = vadd.f32 %v16227_v19, %v6406_v31  ;;  %v6439_v51 = vadd.f32 %v16449_v40, %v6407_v4  ;;  %v6464_v0 = vmax.f32 %v6432_v53, 0.0  ;;  %v6466_v36 = vmax.f32 %v6434_v44, 0.0 }
 0xadf   :  { %12431 = vmatmul.mubr.msk.bf16.gmra.mrb[252].mxu0 %vm106_vm1, %v8166_v23  ;;  %v6465_v56 = vmax.f32 %v6433_v61, 0.0  ;;  %v6467_v49 = vmax.f32 %v6435_v20, 0.0  ;;  %v6468_v19 = vmax.f32 %v6436_v28, 0.0  ;;  %v6469_v24 = vmax.f32 %v6437_v46, 0.0  ;;  %v16529_v20 = vld [vmem:[%s18417_s0 + $0x80] sm:$0xff]  ;;  %v16536_v46 = vld [vmem:[%s18417_s0 + $0x90] sm:$0xff] }
 0xae0   :  { %12613 = vmatmul.mubr.msk.bf16.gmra.mrb[168].mxu1 %vm106_vm1, %v16207_v12  ;;  %v6470_v39 = vmax.f32 %v6438_v32, 0.0  ;;  %v6471_v21 = vmax.f32 %v6439_v51, 0.0  ;;  %7828 = vrot.lane.b32.xlu1 %v16460_v2, %s13216_s1  ;;  %6496 = vst.msk [vmem:[%s18430_s14 + $0x38] sm:$0xff] %vm6141_vm6, %v6464_v0  ;;  %6498 = vst.msk [vmem:[%s18430_s14 + $0x48] sm:$0xff] %vm6141_vm6, %v6466_v36  ;;  %v6370_v12 = vmul.f32 %v16260_v16, %v15812_v11 }
 0xae1   :  { %12616 = vmatprep.mubr.msk.bf16.mxu1 %vm106_vm1, %v16221_v33  ;;  %6497 = vst.msk [vmem:[%s18430_s14 + $0x40] sm:$0xff] %vm6141_vm6, %v6465_v56  ;;  %6499 = vst.msk [vmem:[%s18430_s14 + $0x50] sm:$0xff] %vm6141_vm6, %v6467_v49  ;;  %v6371_v33 = vmul.f32 %v16260_v16, %v15819_v43  ;;  %v6372_v52 = vmul.f32 %v16260_v16, %v15823_v22  ;;  %v6373_v38 = vmul.f32 %v16260_v16, %v15827_v48 }
 0xae2   :  { %v8168_v6 = vpop.permute.xlu0 %8167  ;;  %6500 = vst.msk [vmem:[%s18430_s14 + $0x58] sm:$0xff] %vm6141_vm6, %v6468_v19  ;;  %6501 = vst.msk [vmem:[%s18430_s14 + $0x60] sm:$0xff] %vm6141_vm6, %v6469_v24  ;;  %v6374_v11 = vmul.f32 %v16260_v16, %v15831_v30  ;;  %v6375_v43 = vmul.f32 %v16260_v16, %v15837_v15  ;;  %v6376_v22 = vmul.f32 %v16260_v16, %v15841_v59  ;;  %v16517_v30 = vpop.permute.xlu1 %9949 }
 0xae3   :  { %6502 = vst.msk [vmem:[%s18430_s14 + $0x68] sm:$0xff] %vm6141_vm6, %v6470_v39  ;;  %6503 = vst.msk [vmem:[%s18430_s14 + $0x70] sm:$0xff] %vm6141_vm6, %v6471_v21  ;;  %v6377_v48 = vmul.f32 %v16260_v16, %v15845_v25  ;;  %12434 = vmatprep.mubr.msk.bf16.mxu0 %vm106_vm1, %v8168_v6  ;;  %v6408_v3 = vadd.f32 %v16267_v57, %v6370_v12  ;;  %v6409_v31 = vadd.f32 %v16267_v57, %v6371_v33  ;;  %v13183_v33 = vld [vmem:[%s18417_s0 + $0xf8] sm:$0xff] }
 0xae4   :  { %v6410_v4 = vadd.f32 %v16267_v57, %v6372_v52  ;;  %v6411_v53 = vadd.f32 %v16267_v57, %v6373_v38  ;;  %v6412_v15 = vadd.f32 %v16267_v57, %v6374_v11  ;;  %v6413_v61 = vadd.f32 %v16267_v57, %v6375_v43  ;;  %7832 = vrot.lane.b32.xlu1 %v16307_v27, %s13216_s1 }
 0xae5   :  { %v6414_v59 = vadd.f32 %v16267_v57, %v6376_v22  ;;  %v6415_v25 = vadd.f32 %v16267_v57, %v6377_v48  ;;  %v6440_v44 = vadd.f32 %v16241_v13, %v6408_v3  ;;  %v6441_v23 = vadd.f32 %v16529_v20, %v6409_v31  ;;  %v16543_v13 = vld [vmem:[%s18417_s0 + $0xa0] sm:$0xff] }
 0xae6   :  { %v6442_v28 = vadd.f32 %v16254_v9, %v6410_v4  ;;  %v6443_v32 = vadd.f32 %v16536_v46, %v6411_v53  ;;  %v8170_v51 = vpop.permute.xlu0 %8169  ;;  %v6444_v27 = vadd.f32 %v16275_v29, %v6412_v15  ;;  %v6445_v0 = vadd.f32 %v16543_v13, %v6413_v61  ;;  %v16550_v9 = vld [vmem:[%s18417_s0 + $0xb0] sm:$0xff]  ;;  %v16586_v6 = vpop.permute.xlu1 %9951 }
 0xae7   :  { %v6446_v56 = vadd.f32 %v16313_v54, %v6414_v59  ;;  %v6447_v36 = vadd.f32 %v16550_v9, %v6415_v25  ;;  %12435 = vmatmul.mubr.msk.bf16.gmra.mrb[0].mxu0 %vm106_vm1, %v8170_v51  ;;  %v6472_v29 = vmax.f32 %v6440_v44, 0.0  ;;  %v6473_v49 = vmax.f32 %v6441_v23, 0.0  ;;  %v16632_v15 = vld [vmem:[%s18417_s0 + $0xd0] sm:$0xff] }
 0xae8   :  { %12617 = vmatmul.mubr.msk.bf16.gmra.mrb[172].mxu1 %vm106_vm1, %v16231_v18  ;;  %v6474_v19 = vmax.f32 %v6442_v28, 0.0  ;;  %v6475_v24 = vmax.f32 %v6443_v32, 0.0  ;;  %v6476_v54 = vmax.f32 %v6444_v27, 0.0  ;;  %v6477_v39 = vmax.f32 %v6445_v0, 0.0  ;;  %7836 = vrot.lane.b32.xlu1 %v13183_v33, %s13216_s1 }
 0xae9   :  { %12622 = vmatprep.mubr.msk.bf16.mxu1 %vm106_vm1, %v16249_v35  ;;  %v6478_v21 = vmax.f32 %v6446_v56, 0.0  ;;  %v6479_v12 = vmax.f32 %v6447_v36, 0.0  ;;  %6504 = vst.msk [vmem:[%s18430_s14 + $0x78] sm:$0xff] %vm6141_vm6, %v6472_v29  ;;  %6505 = vst.msk [vmem:[%s18430_s14 + $0x80] sm:$0xff] %vm6141_vm6, %v6473_v49  ;;  %v6378_v18 = vmul.f32 %v16260_v16, %v15849_v55  ;;  %v6379_v35 = vmul.f32 %v16260_v16, %v15854_v7 }
 0xaea   :  { %6506 = vst.msk [vmem:[%s18430_s14 + $0x88] sm:$0xff] %vm6141_vm6, %v6474_v19  ;;  %6507 = vst.msk [vmem:[%s18430_s14 + $0x90] sm:$0xff] %vm6141_vm6, %v6475_v24  ;;  %v6380_v52 = vmul.f32 %v16260_v16, %v15858_v37  ;;  %v6381_v38 = vmul.f32 %v16260_v16, %v15862_v63  ;;  %v8172_v11 = vpop.permute.xlu0 %8171  ;;  %v6382_v55 = vmul.f32 %v16260_v16, %v15866_v17  ;;  %v9954_v27 = vpop.permute.xlu1 %9953 }
 0xaeb   :  { %6508 = vst.msk [vmem:[%s18430_s14 + $0x98] sm:$0xff] %vm6141_vm6, %v6476_v54  ;;  %6509 = vst.msk [vmem:[%s18430_s14 + $0xa0] sm:$0xff] %vm6141_vm6, %v6477_v39  ;;  %v6383_v7 = vmul.f32 %v16260_v16, %v15871_v26  ;;  %v6386_v37 = vmul.f32 %v16260_v16, %v15883_v50  ;;  %v6385_v63 = vmul.f32 %v16260_v16, %v15879_v8  ;;  %12438 = vmatprep.mubr.msk.bf16.mxu0 %vm106_vm1, %v8172_v11  ;;  %v16625_v16 = vld [vmem:[%s18417_s0 + $0xc0] sm:$0xff] }
 0xaec   :  { %6510 = vst.msk [vmem:[%s18430_s14 + $0xa8] sm:$0xff] %vm6141_vm6, %v6478_v21  ;;  %6511 = vst.msk [vmem:[%s18430_s14 + $0xb0] sm:$0xff] %vm6141_vm6, %v6479_v12  ;;  %v6416_v43 = vadd.f32 %v16267_v57, %v6378_v18  ;;  %v6417_v22 = vadd.f32 %v16267_v57, %v6379_v35  ;;  %v6418_v48 = vadd.f32 %v16267_v57, %v6380_v52  ;;  %v18496_v35 = vld [vmem:[#allocation6_spill] sm:$0xff] }
 0xaed   :  { %v6419_v3 = vadd.f32 %v16267_v57, %v6381_v38  ;;  %v6420_v17 = vadd.f32 %v16267_v57, %v6382_v55  ;;  %v6421_v26 = vadd.f32 %v16267_v57, %v6383_v7  ;;  %v6424_v31 = vadd.f32 %v16267_v57, %v6386_v37 }
 0xaee   :  { %v6423_v50 = vadd.f32 %v16267_v57, %v6385_v63  ;;  %v6448_v8 = vadd.f32 %v16354_v62, %v6416_v43  ;;  %v6449_v4 = vadd.f32 %v16625_v16, %v6417_v22  ;;  %v6450_v53 = vadd.f32 %v16418_v14, %v6418_v48  ;;  %v8174_v59 = vpop.permute.xlu0 %8173  ;;  %v16639_v62 = vld [vmem:[%s18417_s0 + $0xe0] sm:$0xff]  ;;  %v16645_v14 = vld [vmem:[%s18417_s0 + $0xf0] sm:$0xff] }
 0xaef   :  { %v6451_v61 = vadd.f32 %v16632_v15, %v6419_v3  ;;  %v6452_v57 = vadd.f32 %v16460_v2, %v6420_v17  ;;  %v6453_v25 = vadd.f32 %v16639_v62, %v6421_v26  ;;  %v6456_v44 = vadd.f32 %v13183_v33, %v6424_v31  ;;  %12439 = vmatmul.mubr.msk.bf16.gmra.mrb[4].mxu0 %vm106_vm1, %v8174_v59 }
 0xaf0   :  { %v6455_v23 = vadd.f32 %v16645_v14, %v6423_v50  ;;  %12623 = vmatmul.mubr.msk.bf16.vlgmr.msra.gmra.mrb[144].mxu1 %vm106_vm1, %v16285_v58  ;;  %v6480_v2 = vmax.f32 %v6448_v8, 0.0  ;;  %v6481_v28 = vmax.f32 %v6449_v4, 0.0  ;;  %v6482_v32 = vmax.f32 %v6450_v53, 0.0  ;;  %v9956_v58 = vpop.permute.xlu1 %9955 }
 0xaf1   :  { %v6483_v51 = vmax.f32 %v6451_v61, 0.0  ;;  %12626 = vmatprep.mubr.msk.bf16.mxu1 %vm106_vm1, %v16347_v1  ;;  %v6484_v0 = vmax.f32 %v6452_v57, 0.0  ;;  %v6485_v56 = vmax.f32 %v6453_v25, 0.0  ;;  %v6488_v36 = vmax.f32 %v6456_v44, 0.0 }
 0xaf2   :  { %v6487_v29 = vmax.f32 %v6455_v23, 0.0  ;;  %6512 = vst.msk [vmem:[%s18430_s14 + $0xb8] sm:$0xff] %vm6141_vm6, %v6480_v2  ;;  %6513 = vst.msk [vmem:[%s18430_s14 + $0xc0] sm:$0xff] %vm6141_vm6, %v6481_v28  ;;  %v8176_v1 = vpop.permute.xlu0 %8175 }
 0xaf3   :  { %6514 = vst.msk [vmem:[%s18430_s14 + $0xc8] sm:$0xff] %vm6141_vm6, %v6482_v32  ;;  %6515 = vst.msk [vmem:[%s18430_s14 + $0xd0] sm:$0xff] %vm6141_vm6, %v6483_v51  ;;  %12442 = vmatprep.mubr.msk.bf16.mxu0 %vm106_vm1, %v8176_v1 }
 0xaf4   :  { %6516 = vst.msk [vmem:[%s18430_s14 + $0xd8] sm:$0xff] %vm6141_vm6, %v6484_v0  ;;  %6517 = vst.msk [vmem:[%s18430_s14 + $0xe0] sm:$0xff] %vm6141_vm6, %v6485_v56  ;;  %v9958_v24 = vpop.permute.xlu1 %9957 }
 0xaf5   :  { %6520 = vst.msk [vmem:[%s18430_s14 + $0xf8] sm:$0xff] %vm6141_vm6, %v6488_v36  ;;  %6519 = vst.msk [vmem:[%s18430_s14 + $0xf0] sm:$0xff] %vm6141_vm6, %v6487_v29 }
 0xaf6   :  { %v8178_v49 = vpop.permute.xlu0 %8177 }
 0xaf7   :  { %12443 = vmatmul.mubr.msk.bf16.gmra.mrb[8].mxu0 %vm106_vm1, %v8178_v49 }
 0xaf8   :  { %12627 = vmatmul.mubr.msk.bf16.gmra.mrb[148].mxu1 %vm106_vm1, %v16436_v34  ;;  %v9960_v39 = vpop.permute.xlu1 %9959  ;;  %v11096_v34 = vld [vmem:[%s18429_s13] ss:$0 sm:$0xff] }
 0xaf9   :  { %12630 = vmatprep.mubr.msk.bf16.mxu1 %vm106_vm1, %v16517_v30  ;;  %7707 = vrot.lane.b32.xlu0 %v11096_v34, %s13216_s1 }
 0xafb   :  { %v8180_v19 = vpop.permute.xlu0 %8179 }
 0xafc   :  { %12446 = vmatprep.mubr.msk.bf16.mxu0 %vm106_vm1, %v8180_v19  ;;  %v9962_v21 = vpop.permute.xlu1 %9961 }
 0xafd   :  { %7776 = vrot.lane.b32.xlu0 %v16321_v5, %s13216_s1 }
 0xaff   :  { %v8182_v54 = vpop.permute.xlu0 %8181 }
 0xb00   :  { %12447 = vmatmul.mubr.msk.bf16.gmra.mrb[12].mxu0 %vm106_vm1, %v8182_v54  ;;  %12631 = vmatmul.mubr.msk.bf16.gmra.mrb[152].mxu1 %vm106_vm1, %v16586_v6  ;;  %v9964_v30 = vpop.permute.xlu1 %9963 }
 0xb01   :  { %12634 = vmatprep.mubr.msk.bf16.mxu1 %vm106_vm1, %v9954_v27  ;;  %7780 = vrot.lane.b32.xlu0 %v16329_v41, %s13216_s1  ;;  %v18495_v41 = vld [vmem:[#allocation5_spill] sm:$0xff] }
 0xb03   :  { %v16745_v52 = vpop.permute.xlu0 %7400 }
 0xb04   :  { %v9966_v12 = vpop.permute.xlu1 %9965 }
 0xb05   :  { %7782 = vrot.lane.b32.xlu0 %v16335_v47, %s13216_s1 }
 0xb08   :  { %12635 = vmatmul.mubr.msk.bf16.gmra.mrb[156].mxu1 %vm106_vm1, %v9956_v58  ;;  %v9968_v33 = vpop.permute.xlu1 %9967 }
 0xb09   :  { %12638 = vmatprep.mubr.msk.bf16.mxu1 %vm106_vm1, %v9958_v24  ;;  %7786 = vrot.lane.b32.xlu0 %v16342_v10, %s13216_s1 }
 0xb0c   :  { %v9970_v18 = vpop.permute.xlu1 %9969 }
 0xb0d   :  { %7790 = vrot.lane.b32.xlu0 %v16426_v42, %s13216_s1 }
 0xb10   :  { %12639 = vmatmul.mubr.msk.bf16.gmra.mrb[160].mxu1 %vm106_vm1, %v9960_v39  ;;  %v9972_v5 = vpop.permute.xlu1 %9971 }
 0xb11   :  { %12642 = vmatprep.mubr.msk.bf16.mxu1 %vm106_vm1, %v9962_v21  ;;  %7794 = vrot.lane.b32.xlu0 %v16433_v60, %s13216_s1 }
 0xb15   :  { %7798 = vrot.lane.b32.xlu0 %v16442_v45, %s13216_s1 }
 0xb18   :  { %12643 = vmatmul.mubr.msk.bf16.gmra.mrb[164].mxu1 %vm106_vm1, %v9964_v30 }
 0xb19   :  { %12646 = vmatprep.mubr.msk.bf16.mxu1 %vm106_vm1, %v9966_v12  ;;  %7802 = vrot.lane.b32.xlu0 %v16449_v40, %s13216_s1 }
 0xb1d   :  { %7806 = vrot.lane.b32.xlu0 %v16529_v20, %s13216_s1 }
 0xb20   :  { %12647 = vmatmul.mubr.msk.bf16.gmra.mrb[168].mxu1 %vm106_vm1, %v9968_v33 }
 0xb21   :  { %12650 = vmatprep.mubr.msk.bf16.mxu1 %vm106_vm1, %v9970_v18  ;;  %7810 = vrot.lane.b32.xlu0 %v16536_v46, %s13216_s1 }
 0xb25   :  { %7814 = vrot.lane.b32.xlu0 %v16543_v13, %s13216_s1 }
 0xb28   :  { %12651 = vmatmul.mubr.msk.bf16.gmra.mrb[172].mxu1 %vm106_vm1, %v9972_v5 }
 0xb29   :  { %7818 = vrot.lane.b32.xlu0 %v16550_v9, %s13216_s1 }
 0xb2d   :  { %7822 = vrot.lane.b32.xlu0 %v16625_v16, %s13216_s1 }
 0xb31   :  { %7826 = vrot.lane.b32.xlu0 %v16632_v15, %s13216_s1 }
 0xb35   :  { %7830 = vrot.lane.b32.xlu0 %v16639_v62, %s13216_s1 }
 0xb39   :  { %7834 = vrot.lane.b32.xlu0 %v16645_v14, %s13216_s1 }
 0xb3d   :  { %10565 = vrot.lane.b32.xlu0 %v18495_v41, %s13217_s11 }
 0xb41   :  { %10569 = vrot.lane.b32.xlu0 %v18496_v35, %s13217_s11 }
 0xb45   :  { %10573 = vrot.lane.b32.xlu0 %v16335_v47, %s13217_s11 }
 0xb49   :  { %10577 = vrot.lane.b32.xlu0 %v16342_v10, %s13217_s11 }
 0xb4d   :  { %10581 = vrot.lane.b32.xlu0 %v16426_v42, %s13217_s11 }
 0xb51   :  { %10585 = vrot.lane.b32.xlu0 %v16433_v60, %s13217_s11 }
 0xb55   :  { %10589 = vrot.lane.b32.xlu0 %v16442_v45, %s13217_s11 }
 0xb59   :  { %10593 = vrot.lane.b32.xlu0 %v16449_v40, %s13217_s11 }
 0xb5a   :  { %v12386_v38 = vpop.f32.mrb[208].mxu0 }
 0xb5b   :  { %v7235_v6 = vpop.f32.mrb[209].mxu0  ;;  %v16756_v63 = vadd.f32 %v12386_v38, %v16745_v52 }
 0xb5c   :  { %v16750_v11 = vadd.f32 %v16745_v52, %v7235_v6  ;;  %v12387_v55 = vpop.f32.mrb[210].mxu0 }
 0xb5d   :  { %v7238_v7 = vpop.f32.mrb[211].mxu0  ;;  %v16763_v47 = vadd.f32 %v12387_v55, %v16745_v52  ;;  %v7440_v3 = vsel %vm6141_vm6, %v16756_v63, 0.0  ;;  %10597 = vrot.lane.b32.xlu0 %v16529_v20, %s13217_s11 }
 0xb5e   :  { %v16753_v37 = vadd.f32 %v16745_v52, %v7238_v7  ;;  %v7437_v43 = vsel %vm6141_vm6, %v16750_v11, 0.0 }
 0xb5f   :  { %v7442_v10 = vsel %vm6141_vm6, %v16763_v47, 0.0 }
 0xb60   :  { %v7438_v22 = vsel %vm6141_vm6, %v16753_v37, 0.0 }
 0xb61   :  { %v7439_v48 = vadd.f32 %v7438_v22, %v7437_v43  ;;  %10601 = vrot.lane.b32.xlu0 %v16536_v46, %s13217_s11 }
 0xb62   :  { %v12390_v17 = vpop.f32.mrb[212].mxu0 }
 0xb63   :  { %v7441_v26 = vadd.f32 %v7440_v3, %v7439_v48  ;;  %v7251_v31 = vpop.f32.mrb[213].mxu0  ;;  %v16777_v61 = vadd.f32 %v12390_v17, %v16745_v52 }
 0xb64   :  { %v16774_v50 = vadd.f32 %v16745_v52, %v7251_v31  ;;  %v12391_v8 = vpop.f32.mrb[214].mxu0 }
 0xb65   :  { %v7443_v4 = vadd.f32 %v7442_v10, %v7441_v26  ;;  %v7254_v53 = vpop.f32.mrb[215].mxu0  ;;  %v16787_v25 = vadd.f32 %v12391_v8, %v16745_v52  ;;  %v7448_v2 = vsel %vm6141_vm6, %v16777_v61, 0.0  ;;  %10605 = vrot.lane.b32.xlu0 %v16543_v13, %s13217_s11 }
 0xb66   :  { %v7444_v59 = vsel %vm6141_vm6, %v16774_v50, 0.0  ;;  %v16782_v57 = vadd.f32 %v16745_v52, %v7254_v53 }
 0xb67   :  { %v7445_v42 = vadd.f32 %v7444_v59, %v7443_v4  ;;  %v7450_v60 = vsel %vm6141_vm6, %v16787_v25, 0.0 }
 0xb68   :  { %v7446_v44 = vsel %vm6141_vm6, %v16782_v57, 0.0 }
 0xb69   :  { %v7447_v23 = vadd.f32 %v7446_v44, %v7445_v42  ;;  %10609 = vrot.lane.b32.xlu0 %v16550_v9, %s13217_s11 }
 0xb6a   :  { %v12394_v28 = vpop.f32.mrb[216].mxu0 }
 0xb6b   :  { %v7449_v32 = vadd.f32 %v7448_v2, %v7447_v23  ;;  %v7267_v51 = vpop.f32.mrb[217].mxu0  ;;  %v16801_v29 = vadd.f32 %v12394_v28, %v16745_v52 }
 0xb6c   :  { %v16798_v27 = vadd.f32 %v16745_v52, %v7267_v51  ;;  %v12395_v0 = vpop.f32.mrb[218].mxu0 }
 0xb6d   :  { %v7451_v56 = vadd.f32 %v7450_v60, %v7449_v32  ;;  %v7270_v36 = vpop.f32.mrb[219].mxu0  ;;  %v16811_v49 = vadd.f32 %v12395_v0, %v16745_v52  ;;  %v7456_v54 = vsel %vm6141_vm6, %v16801_v29, 0.0  ;;  %10613 = vrot.lane.b32.xlu0 %v16625_v16, %s13217_s11 }
 0xb6e   :  { %v7452_v1 = vsel %vm6141_vm6, %v16798_v27, 0.0  ;;  %v16806_v58 = vadd.f32 %v16745_v52, %v7270_v36 }
 0xb6f   :  { %v7453_v45 = vadd.f32 %v7452_v1, %v7451_v56  ;;  %v7458_v40 = vsel %vm6141_vm6, %v16811_v49, 0.0 }
 0xb70   :  { %v7454_v19 = vsel %vm6141_vm6, %v16806_v58, 0.0 }
 0xb71   :  { %v7455_v24 = vadd.f32 %v7454_v19, %v7453_v45  ;;  %10617 = vrot.lane.b32.xlu0 %v16632_v15, %s13217_s11 }
 0xb72   :  { %v12398_v39 = vpop.f32.mrb[220].mxu0 }
 0xb73   :  { %v7457_v21 = vadd.f32 %v7456_v54, %v7455_v24  ;;  %v7283_v34 = vpop.f32.mrb[221].mxu0  ;;  %v16825_v5 = vadd.f32 %v12398_v39, %v16745_v52 }
 0xb74   :  { %v16822_v30 = vadd.f32 %v16745_v52, %v7283_v34  ;;  %v12399_v12 = vpop.f32.mrb[222].mxu0 }
 0xb75   :  { %v7459_v33 = vadd.f32 %v7458_v40, %v7457_v21  ;;  %v7286_v18 = vpop.f32.mrb[223].mxu0  ;;  %v16835_v38 = vadd.f32 %v12399_v12, %v16745_v52  ;;  %v7464_v7 = vsel %vm6141_vm6, %v16825_v5, 0.0  ;;  %10621 = vrot.lane.b32.xlu0 %v16639_v62, %s13217_s11 }
 0xb76   :  { %v7460_v41 = vsel %vm6141_vm6, %v16822_v30, 0.0  ;;  %v16830_v35 = vadd.f32 %v16745_v52, %v7286_v18 }
 0xb77   :  { %v7461_v20 = vadd.f32 %v7460_v41, %v7459_v33  ;;  %v7466_v46 = vsel %vm6141_vm6, %v16835_v38, 0.0 }
 0xb78   :  { %v7462_v6 = vsel %vm6141_vm6, %v16830_v35, 0.0 }
 0xb79   :  { %v7463_v55 = vadd.f32 %v7462_v6, %v7461_v20  ;;  %10625 = vrot.lane.b32.xlu0 %v16645_v14, %s13217_s11 }
 0xb7a   :  { %v12402_v43 = vpop.f32.mrb[224].mxu0 }
 0xb7b   :  { %v7465_v22 = vadd.f32 %v7464_v7, %v7463_v55  ;;  %v7299_v48 = vpop.f32.mrb[225].mxu0  ;;  %v16849_v10 = vadd.f32 %v12402_v43, %v16745_v52 }
 0xb7c   :  { %v16846_v3 = vadd.f32 %v16745_v52, %v7299_v48  ;;  %v12403_v17 = vpop.f32.mrb[226].mxu0 }
 0xb7d   :  { %v7467_v26 = vadd.f32 %v7466_v46, %v7465_v22  ;;  %v7302_v31 = vpop.f32.mrb[227].mxu0  ;;  %v16859_v53 = vadd.f32 %v12403_v17, %v16745_v52  ;;  %v7472_v44 = vsel %vm6141_vm6, %v16849_v10, 0.0 }
 0xb7e   :  { %v7468_v8 = vsel %vm6141_vm6, %v16846_v3, 0.0  ;;  %v16854_v4 = vadd.f32 %v16745_v52, %v7302_v31 }
 0xb7f   :  { %v7469_v13 = vadd.f32 %v7468_v8, %v7467_v26  ;;  %v7474_v9 = vsel %vm6141_vm6, %v16859_v53, 0.0 }
 0xb80   :  { %v7470_v59 = vsel %vm6141_vm6, %v16854_v4, 0.0 }
 0xb81   :  { %v7471_v42 = vadd.f32 %v7470_v59, %v7469_v13 }
 0xb82   :  { %v12406_v23 = vpop.f32.mrb[228].mxu0 }
 0xb83   :  { %v7473_v2 = vadd.f32 %v7472_v44, %v7471_v42  ;;  %v7315_v28 = vpop.f32.mrb[229].mxu0  ;;  %v16873_v56 = vadd.f32 %v12406_v23, %v16745_v52 }
 0xb84   :  { %v16870_v32 = vadd.f32 %v16745_v52, %v7315_v28  ;;  %v12407_v51 = vpop.f32.mrb[230].mxu0 }
 0xb85   :  { %v7475_v60 = vadd.f32 %v7474_v9, %v7473_v2  ;;  %v7318_v0 = vpop.f32.mrb[231].mxu0  ;;  %v16883_v45 = vadd.f32 %v12407_v51, %v16745_v52  ;;  %v7480_v54 = vsel %vm6141_vm6, %v16873_v56, 0.0 }
 0xb86   :  { %v7476_v36 = vsel %vm6141_vm6, %v16870_v32, 0.0  ;;  %v16878_v1 = vadd.f32 %v16745_v52, %v7318_v0 }
 0xb87   :  { %v7477_v16 = vadd.f32 %v7476_v36, %v7475_v60  ;;  %v7482_v15 = vsel %vm6141_vm6, %v16883_v45, 0.0 }
 0xb88   :  { %v7478_v19 = vsel %vm6141_vm6, %v16878_v1, 0.0 }
 0xb89   :  { %v7479_v24 = vadd.f32 %v7478_v19, %v7477_v16 }
 0xb8a   :  { %v12410_v39 = vpop.f32.mrb[232].mxu0 }
 0xb8b   :  { %v7481_v21 = vadd.f32 %v7480_v54, %v7479_v24  ;;  %v7331_v34 = vpop.f32.mrb[233].mxu0  ;;  %v16897_v41 = vadd.f32 %v12410_v39, %v16745_v52 }
 0xb8c   :  { %v16894_v40 = vadd.f32 %v16745_v52, %v7331_v34  ;;  %v12411_v12 = vpop.f32.mrb[234].mxu0 }
 0xb8d   :  { %v7483_v33 = vadd.f32 %v7482_v15, %v7481_v21  ;;  %v7334_v18 = vpop.f32.mrb[235].mxu0  ;;  %v7430_v55 = vadd.f32 %v12411_v12, %v16745_v52  ;;  %v7488_v22 = vsel %vm6141_vm6, %v16897_v41, 0.0 }
 0xb8e   :  { %v7484_v20 = vsel %vm6141_vm6, %v16894_v40, 0.0  ;;  %v7428_v6 = vadd.f32 %v16745_v52, %v7334_v18 }
 0xb8f   :  { %v7485_v62 = vadd.f32 %v7484_v20, %v7483_v33  ;;  %v7490_v26 = vsel %vm6141_vm6, %v7430_v55, 0.0 }
 0xb90   :  { %v7486_v7 = vsel %vm6141_vm6, %v7428_v6, 0.0 }
 0xb91   :  { %v7487_v43 = vadd.f32 %v7486_v7, %v7485_v62 }
 0xb92   :  { %v12414_v48 = vpop.f32.mrb[236].mxu0 }
 0xb93   :  { %v7489_v46 = vadd.f32 %v7488_v22, %v7487_v43  ;;  %v7347_v17 = vpop.f32.mrb[237].mxu0  ;;  %v7433_v14 = vadd.f32 %v12414_v48, %v16745_v52 }
 0xb94   :  { %v7431_v31 = vadd.f32 %v16745_v52, %v7347_v17  ;;  %v12415_v8 = vpop.f32.mrb[238].mxu0 }
 0xb95   :  { %v7491_v13 = vadd.f32 %v7490_v26, %v7489_v46  ;;  %v7350_v59 = vpop.f32.mrb[239].mxu0  ;;  %v7434_v2 = vadd.f32 %v12415_v8, %v16745_v52  ;;  %v7496_v51 = vsel %vm6141_vm6, %v7433_v14, 0.0 }
 0xb96   :  { %v7492_v42 = vsel %vm6141_vm6, %v7431_v31, 0.0  ;;  %v7432_v44 = vadd.f32 %v16745_v52, %v7350_v59 }
 0xb97   :  { %v7493_v23 = vadd.f32 %v7492_v42, %v7491_v13  ;;  %v7498_v16 = vsel %vm6141_vm6, %v7434_v2, 0.0 }
 0xb98   :  { %v7494_v28 = vsel %vm6141_vm6, %v7432_v44, 0.0 }
 0xb99   :  { %v7495_v9 = vadd.f32 %v7494_v28, %v7493_v23 }
 0xb9a   :  { %v16916_v60 = vpop.f32.mrb[240].mxu0 }
 0xb9b   :  { %v7497_v0 = vadd.f32 %v7496_v51, %v7495_v9  ;;  %v16918_v36 = vpop.f32.mrb[241].mxu0 }
 0xb9c   :  { %v16921_v19 = vpop.f32.mrb[242].mxu0 }
 0xb9d   :  { %v7499_v24 = vadd.f32 %v7498_v16, %v7497_v0  ;;  %v16923_v54 = vpop.f32.mrb[243].mxu0 }
 0xb9f   :  { %v7500_v39 = vrot.slane %v7499_v24, 4 }
 0xba1   :  { %v7501_v21 = vadd.f32 %v7500_v39, %v7499_v24 }
 0xba2   :  { %v16925_v52 = vpop.f32.mrb[244].mxu0 }
 0xba3   :  { %v7502_v34 = vrot.slane %v7501_v21, 2  ;;  %v16927_v15 = vpop.f32.mrb[245].mxu0 }
 0xba4   :  { %v16929_v12 = vpop.f32.mrb[246].mxu0 }
 0xba5   :  { %v7503_v33 = vadd.f32 %v7502_v34, %v7501_v21  ;;  %v16931_v18 = vpop.f32.mrb[247].mxu0 }
 0xba7   :  { %v7504_v20 = vrot.slane %v7503_v33, 1 }
 0xba9   :  { %v7505_v62 = vadd.f32 %v7504_v20, %v7503_v33 }
 0xbaa   :  { %v16933_v7 = vpop.f32.mrb[248].mxu0 }
 0xbab   :  { %v16935_v43 = vmul.f32 0.00390625, %v7505_v62  ;;  %v16937_v22 = vpop.f32.mrb[249].mxu0 }
 0xbac   :  { %v16939_v48 = vpop.f32.mrb[250].mxu0 }
 0xbad   :  { %v16941_v46 = vpop.f32.mrb[251].mxu0  ;;  %v16945_v17 = vsub.f32 %v16806_v58, %v16935_v43  ;;  %v16949_v26 = vsub.f32 %v16811_v49, %v16935_v43  ;;  %v16953_v8 = vsub.f32 %v16822_v30, %v16935_v43  ;;  %v16957_v13 = vsub.f32 %v16830_v35, %v16935_v43 }
 0xbae   :  { %v16961_v59 = vsub.f32 %v16825_v5, %v16935_v43  ;;  %v16965_v58 = vsub.f32 %v16835_v38, %v16935_v43  ;;  %v16969_v49 = vsub.f32 %v16846_v3, %v16935_v43  ;;  %v16973_v30 = vsub.f32 %v16854_v4, %v16935_v43 }
 0xbaf   :  { %18497 = vst [vmem:[#allocation5_spill] sm:$0xff] %v16945_v17  ;;  %18498 = vst [vmem:[#allocation6_spill] sm:$0xff] %v16949_v26  ;;  %v16977_v35 = vsub.f32 %v16849_v10, %v16935_v43  ;;  %v16981_v5 = vsub.f32 %v16859_v53, %v16935_v43  ;;  %v16985_v38 = vsub.f32 %v16870_v32, %v16935_v43 }
 0xbb0   :  { %18499 = vst [vmem:[#allocation7_spill] sm:$0xff] %v16953_v8  ;;  %18500 = vst [vmem:[#allocation8_spill] sm:$0xff] %v16957_v13  ;;  %v16989_v3 = vsub.f32 %v16878_v1, %v16935_v43  ;;  %v16993_v4 = vsub.f32 %v16873_v56, %v16935_v43  ;;  %v16997_v10 = vsub.f32 %v16883_v45, %v16935_v43 }
 0xbb1   :  { %18501 = vst [vmem:[#allocation9_spill] sm:$0xff] %v16961_v59  ;;  %18502 = vst [vmem:[#allocation10_spill] sm:$0xff] %v16965_v58  ;;  %v17001_v53 = vsub.f32 %v16894_v40, %v16935_v43  ;;  %v17004_v42 = vsub.f32 %v7428_v6, %v16935_v43  ;;  %v17008_v32 = vsub.f32 %v16897_v41, %v16935_v43 }
 0xbb2   :  { %18503 = vst [vmem:[#allocation11_spill] sm:$0xff] %v16977_v35  ;;  %18504 = vst [vmem:[#allocation12_spill] sm:$0xff] %v16997_v10  ;;  %v17011_v1 = vsub.f32 %v7430_v55, %v16935_v43  ;;  %v17013_v56 = vpop.f32.mrb[252].mxu0  ;;  %v17016_v23 = vsub.f32 %v7431_v31, %v16935_v43  ;;  %v17019_v45 = vsub.f32 %v7432_v44, %v16935_v43 }
 0xbb3   :  { %18505 = vst [vmem:[#allocation13_spill] sm:$0xff] %v17001_v53  ;;  %18506 = vst [vmem:[#allocation14_spill] sm:$0xff] %v17008_v32  ;;  %v17022_v40 = vsub.f32 %v7433_v14, %v16935_v43  ;;  %v17025_v6 = vsub.f32 %v7434_v2, %v16935_v43  ;;  %v17027_v28 = vpop.f32.mrb[253].mxu0  ;;  %v17031_v41 = vsub.f32 %v16750_v11, %v16935_v43 }
 0xbb4   :  { %18507 = vst [vmem:[#allocation15_spill] sm:$0xff] %v17011_v1  ;;  %18508 = vst [vmem:[#allocation16_spill] sm:$0xff] %v17016_v23  ;;  %v17035_v55 = vsub.f32 %v16753_v37, %v16935_v43  ;;  %v17037_v31 = vpop.f32.mrb[254].mxu0  ;;  %v17043_v14 = vsub.f32 %v16756_v63, %v16935_v43  ;;  %v17047_v2 = vsub.f32 %v16763_v47, %v16935_v43 }
 0xbb5   :  { %18509 = vst [vmem:[#allocation17_spill] sm:$0xff] %v17019_v45  ;;  %18510 = vst [vmem:[#allocation18_spill] sm:$0xff] %v17022_v40  ;;  %v17039_v44 = vpop.f32.mrb[255].mxu0  ;;  %v7539_v11 = vmul.f32 %v17031_v41, %v17031_v41  ;;  %v17055_v37 = vsub.f32 %v16774_v50, %v16935_v43  ;;  %v17065_v47 = vsub.f32 %v16782_v57, %v16935_v43 }
 0xbb6   :  { %18511 = vst [vmem:[#allocation19_spill] sm:$0xff] %v17025_v6  ;;  %18512 = vst [vmem:[#allocation20_spill] sm:$0xff] %v17031_v41  ;;  %v7540_v9 = vmul.f32 %v17035_v55, %v17035_v55  ;;  %v7541_v51 = vmul.f32 %v17043_v14, %v17043_v14  ;;  %v7542_v16 = vmul.f32 %v17047_v2, %v17047_v2 }
 0xbb7   :  { %18513 = vst [vmem:[#allocation21_spill] sm:$0xff] %v17035_v55  ;;  %18514 = vst [vmem:[#allocation22_spill] sm:$0xff] %v17043_v14  ;;  %v7571_v24 = vsel %vm6141_vm6, %v7539_v11, 0.0  ;;  %v17077_v33 = vsub.f32 %v16777_v61, %v16935_v43  ;;  %v7543_v57 = vmul.f32 %v17055_v37, %v17055_v37  ;;  %v17084_v11 = vsub.f32 %v16787_v25, %v16935_v43 }
 0xbb8   :  { %18515 = vst [vmem:[#allocation23_spill] sm:$0xff] %v17047_v2  ;;  %18516 = vst [vmem:[#allocation24_spill] sm:$0xff] %v17055_v37  ;;  %v7572_v39 = vsel %vm6141_vm6, %v7540_v9, 0.0  ;;  %v7574_v20 = vsel %vm6141_vm6, %v7541_v51, 0.0  ;;  %v7544_v9 = vmul.f32 %v17065_v47, %v17065_v47  ;;  %v17089_v2 = vpop.permute.xlu1 %10223  ;;  %v17093_v61 = vsub.f32 %v16798_v27, %v16935_v43 }
 0xbb9   :  { %18517 = vst [vmem:[#allocation25_spill] sm:$0xff] %v17065_v47  ;;  %v7573_v21 = vadd.f32 %v7572_v39, %v7571_v24  ;;  %18518 = vst [vmem:[#allocation26_spill] sm:$0xff] %v17077_v33  ;;  %v7576_v24 = vsel %vm6141_vm6, %v7542_v16, 0.0  ;;  %v7545_v51 = vmul.f32 %v17077_v33, %v17077_v33  ;;  %v17104_v16 = vsub.f32 %v16801_v29, %v16935_v43 }
 0xbba   :  { %v17059_v0 = vpop.f32.mrb[0].mxu0  ;;  %18519 = vst [vmem:[#allocation27_spill] sm:$0xff] %v17084_v11  ;;  %18520 = vst [vmem:[#allocation28_spill] sm:$0xff] %v17093_v61  ;;  %v7546_v27 = vmul.f32 %v17084_v11, %v17084_v11  ;;  %v7547_v29 = vmul.f32 %v17093_v61, %v17093_v61 }
 0xbbb   :  { %v17061_v63 = vpop.f32.mrb[1].mxu0  ;;  %v7575_v62 = vadd.f32 %v7574_v20, %v7573_v21  ;;  %v7578_v21 = vsel %vm6141_vm6, %v7543_v57, 0.0  ;;  %18521 = vst [vmem:[#allocation29_spill] sm:$0xff] %v17104_v16  ;;  %v7582_v43 = vsel %vm6141_vm6, %v7545_v51, 0.0 }
 0xbbc   :  { %v17071_v50 = vpop.f32.mrb[2].mxu0 }
 0xbbd   :  { %v17073_v34 = vpop.f32.mrb[3].mxu0  ;;  %v7577_v39 = vadd.f32 %v7576_v24, %v7575_v62  ;;  %v7580_v62 = vsel %vm6141_vm6, %v7544_v9, 0.0 }
 0xbbf   :  { %v7579_v37 = vadd.f32 %v7578_v21, %v7577_v39 }
 0xbc1   :  { %v7581_v57 = vadd.f32 %v7580_v62, %v7579_v37 }
 0xbc2   :  { %v17098_v20 = vpop.f32.mrb[4].mxu0 }
 0xbc3   :  { %v12624_v25 = vpop.f32.mrb[144].mxu1  ;;  %v17100_v14 = vpop.f32.mrb[5].mxu0  ;;  %v7583_v11 = vadd.f32 %v7582_v43, %v7581_v57 }
 0xbc4   :  { %v10058_v47 = vpop.f32.mrb[145].mxu1  ;;  %v17109_v24 = vpop.f32.mrb[6].mxu0  ;;  %v12654_v55 = vadd.f32 %v12624_v25, %v16916_v60  ;;  %v7548_v60 = vmul.f32 %v16945_v17, %v16945_v17 }
 0xbc5   :  { %v12625_v33 = vpop.f32.mrb[146].mxu1  ;;  %v12655_v39 = vadd.f32 %v10058_v47, %v16918_v36  ;;  %v17113_v21 = vpop.f32.mrb[7].mxu0  ;;  %v7584_v36 = vsel %vm6141_vm6, %v7546_v27, 0.0  ;;  %v7549_v47 = vmul.f32 %v17104_v16, %v17104_v16 }
 0xbc6   :  { %v12656_v41 = vadd.f32 %v12625_v33, %v16921_v19  ;;  %v10061_v6 = vpop.f32.mrb[147].mxu1  ;;  %v17130_v19 = vadd.f32 %v12654_v55, %v17089_v2  ;;  %v7585_v33 = vadd.f32 %v7584_v36, %v7583_v11 }
 0xbc7   :  { %v12657_v9 = vadd.f32 %v10061_v6, %v16923_v54  ;;  %v17121_v40 = vadd.f32 %v12655_v39, %v17089_v2  ;;  %v7586_v54 = vsel %vm6141_vm6, %v7547_v29, 0.0  ;;  %v7588_v29 = vsel %vm6141_vm6, %v7548_v60, 0.0 }
 0xbc8   :  { %v17136_v6 = vadd.f32 %v12656_v41, %v17089_v2  ;;  %v7587_v55 = vadd.f32 %v7586_v54, %v7585_v33  ;;  %v7550_v41 = vmul.f32 %v16949_v26, %v16949_v26  ;;  %v7551_v33 = vmul.f32 %v16953_v8, %v16953_v8 }
 0xbc9   :  { %v17127_v37 = vadd.f32 %v12657_v9, %v17089_v2  ;;  %v10260_v51 = vsel %vm6141_vm6, %v17121_v40, 0.0  ;;  %v10263_v9 = vsel %vm6141_vm6, %v17130_v19, 0.0  ;;  %v7590_v60 = vsel %vm6141_vm6, %v7549_v47, 0.0 }
 0xbca   :  { %v17142_v27 = vpop.f32.mrb[8].mxu0  ;;  %v7589_v54 = vadd.f32 %v7588_v29, %v7587_v55  ;;  %v10265_v26 = vsel %vm6141_vm6, %v17136_v6, 0.0  ;;  %v7592_v29 = vsel %vm6141_vm6, %v7550_v41, 0.0 }
 0xbcb   :  { %v10261_v25 = vsel %vm6141_vm6, %v17127_v37, 0.0  ;;  %v12628_v62 = vpop.f32.mrb[148].mxu1  ;;  %v17144_v39 = vpop.f32.mrb[9].mxu0 }
 0xbcc   :  { %v10262_v57 = vadd.f32 %v10261_v25, %v10260_v51  ;;  %v12658_v11 = vadd.f32 %v12628_v62, %v16925_v52  ;;  %v10074_v43 = vpop.f32.mrb[149].mxu1  ;;  %v17152_v36 = vpop.f32.mrb[10].mxu0  ;;  %v7591_v55 = vadd.f32 %v7590_v60, %v7589_v54 }
 0xbcd   :  { %v12659_v16 = vadd.f32 %v10074_v43, %v16927_v15  ;;  %v12629_v17 = vpop.f32.mrb[150].mxu1  ;;  %v17157_v52 = vpop.f32.mrb[11].mxu0  ;;  %v7552_v43 = vmul.f32 %v16957_v13, %v16957_v13 }
 0xbce   :  { %v10264_v51 = vadd.f32 %v10263_v9, %v10262_v57  ;;  %v12660_v25 = vadd.f32 %v12629_v17, %v16929_v12  ;;  %v10077_v62 = vpop.f32.mrb[151].mxu1  ;;  %v17171_v12 = vadd.f32 %v12658_v11, %v17089_v2 }
 0xbcf   :  { %v17164_v61 = vadd.f32 %v12659_v16, %v17089_v2  ;;  %v12661_v15 = vadd.f32 %v10077_v62, %v16931_v18  ;;  %v7593_v16 = vadd.f32 %v7592_v29, %v7591_v55  ;;  %v7553_v18 = vmul.f32 %v16961_v59, %v16961_v59 }
 0xbd0   :  { %v10266_v57 = vadd.f32 %v10265_v26, %v10264_v51  ;;  %v7594_v62 = vsel %vm6141_vm6, %v7551_v33, 0.0  ;;  %v17182_v26 = vadd.f32 %v12660_v25, %v17089_v2  ;;  %v7554_v29 = vmul.f32 %v16965_v58, %v16965_v58 }
 0xbd1   :  { %v10267_v17 = vsel %vm6141_vm6, %v17164_v61, 0.0  ;;  %v17176_v47 = vadd.f32 %v12661_v15, %v17089_v2  ;;  %v7595_v51 = vadd.f32 %v7594_v62, %v7593_v16  ;;  %v7596_v33 = vsel %vm6141_vm6, %v7552_v43, 0.0 }
 0xbd2   :  { %v10268_v9 = vadd.f32 %v10267_v17, %v10266_v57  ;;  %v10271_v25 = vsel %vm6141_vm6, %v17171_v12, 0.0  ;;  %v7555_v16 = vmul.f32 %v16969_v49, %v16969_v49  ;;  %v7598_v43 = vsel %vm6141_vm6, %v7553_v18, 0.0 }
 0xbd3   :  { %v10269_v11 = vsel %vm6141_vm6, %v17176_v47, 0.0  ;;  %v17186_v41 = vpop.f32.mrb[12].mxu0  ;;  %v12632_v54 = vpop.f32.mrb[152].mxu1  ;;  %v10273_v58 = vsel %vm6141_vm6, %v17182_v26, 0.0 }
 0xbd4   :  { %v10270_v60 = vadd.f32 %v10269_v11, %v10268_v9  ;;  %v17188_v15 = vpop.f32.mrb[13].mxu0  ;;  %v12662_v55 = vadd.f32 %v12632_v54, %v16933_v7  ;;  %v10090_v57 = vpop.f32.mrb[153].mxu1  ;;  %v7597_v9 = vadd.f32 %v7596_v33, %v7595_v51  ;;  %v7600_v33 = vsel %vm6141_vm6, %v7554_v29, 0.0 }
 0xbd5   :  { %v17196_v17 = vpop.f32.mrb[14].mxu0  ;;  %v12663_v59 = vadd.f32 %v10090_v57, %v16937_v22  ;;  %v12633_v13 = vpop.f32.mrb[154].mxu1  ;;  %v7556_v57 = vmul.f32 %v16973_v30, %v16973_v30 }
 0xbd6   :  { %v10272_v62 = vadd.f32 %v10271_v25, %v10270_v60  ;;  %v17201_v7 = vpop.f32.mrb[15].mxu0  ;;  %v12664_v11 = vadd.f32 %v12633_v13, %v16939_v48  ;;  %v10093_v54 = vpop.f32.mrb[155].mxu1  ;;  %v7599_v51 = vadd.f32 %v7598_v43, %v7597_v9  ;;  %v17215_v48 = vadd.f32 %v12662_v55, %v17089_v2 }
 0xbd7   :  { %v17208_v8 = vadd.f32 %v12663_v59, %v17089_v2  ;;  %v12665_v22 = vadd.f32 %v10093_v54, %v16941_v46  ;;  %v7557_v46 = vmul.f32 %v16977_v35, %v16977_v35  ;;  %v7602_v54 = vsel %vm6141_vm6, %v7555_v16, 0.0 }
 0xbd8   :  { %v10274_v60 = vadd.f32 %v10273_v58, %v10272_v62  ;;  %v7601_v59 = vadd.f32 %v7600_v33, %v7599_v51  ;;  %v17226_v58 = vadd.f32 %v12664_v11, %v17089_v2  ;;  %v7558_v51 = vmul.f32 %v16981_v5, %v16981_v5 }
 0xbd9   :  { %v10275_v13 = vsel %vm6141_vm6, %v17208_v8, 0.0  ;;  %v17220_v18 = vadd.f32 %v12665_v22, %v17089_v2  ;;  %v10279_v16 = vsel %vm6141_vm6, %v17215_v48, 0.0 }
 0xbda   :  { %v10276_v25 = vadd.f32 %v10275_v13, %v10274_v60  ;;  %v7603_v9 = vadd.f32 %v7602_v54, %v7601_v59  ;;  %v7604_v60 = vsel %vm6141_vm6, %v7556_v57, 0.0  ;;  %v7559_v13 = vmul.f32 %v16985_v38, %v16985_v38 }
 0xbdb   :  { %v10277_v55 = vsel %vm6141_vm6, %v17220_v18, 0.0  ;;  %v12636_v29 = vpop.f32.mrb[156].mxu1  ;;  %v7606_v54 = vsel %vm6141_vm6, %v7557_v46, 0.0 }
 0xbdc   :  { %v10278_v62 = vadd.f32 %v10277_v55, %v10276_v25  ;;  %v12666_v43 = vadd.f32 %v12636_v29, %v17013_v56  ;;  %v10106_v22 = vpop.f32.mrb[157].mxu1  ;;  %v7605_v35 = vadd.f32 %v7604_v60, %v7603_v9  ;;  %v10281_v55 = vsel %vm6141_vm6, %v17226_v58, 0.0 }
 0xbdd   :  { %v12667_v11 = vadd.f32 %v10106_v22, %v17027_v28  ;;  %v12637_v33 = vpop.f32.mrb[158].mxu1  ;;  %v17247_v28 = vpop.permute.xlu0 %7707  ;;  %v7560_v22 = vmul.f32 %v16989_v3, %v16989_v3 }
 0xbde   :  { %v10280_v59 = vadd.f32 %v10279_v16, %v10278_v62  ;;  %v12668_v25 = vadd.f32 %v12637_v33, %v17037_v31  ;;  %v10109_v56 = vpop.f32.mrb[159].mxu1  ;;  %v7607_v9 = vadd.f32 %v7606_v54, %v7605_v35  ;;  %v7608_v31 = vsel %vm6141_vm6, %v7558_v51, 0.0 }
 0xbdf   :  { %v17244_v57 = vadd.f32 %v12667_v11, %v17089_v2  ;;  %v12669_v29 = vadd.f32 %v10109_v56, %v17039_v44  ;;  %v17253_v60 = vadd.f32 %v12666_v43, %v17089_v2  ;;  %v7561_v33 = vmul.f32 %v16993_v4, %v16993_v4 }
 0xbe0   :  { %v10282_v62 = vadd.f32 %v10281_v55, %v10280_v59  ;;  %v7609_v11 = vadd.f32 %v7608_v31, %v7607_v9  ;;  %v7610_v56 = vsel %vm6141_vm6, %v7559_v13, 0.0  ;;  %v17264_v35 = vadd.f32 %v12668_v25, %v17089_v2 }
 0xbe1   :  { %v10283_v46 = vsel %vm6141_vm6, %v17244_v57, 0.0  ;;  %v17258_v16 = vadd.f32 %v12669_v29, %v17089_v2  ;;  %v7562_v9 = vmul.f32 %v16997_v10, %v16997_v10  ;;  %v10287_v13 = vsel %vm6141_vm6, %v17253_v60, 0.0 }
 0xbe2   :  { %v10284_v44 = vadd.f32 %v10283_v46, %v10282_v62  ;;  %v7611_v59 = vadd.f32 %v7610_v56, %v7609_v11  ;;  %v7612_v62 = vsel %vm6141_vm6, %v7560_v22, 0.0  ;;  %v17275_v46 = vpop.permute.xlu0 %7776  ;;  %v11222_v11 = vld [vmem:[%s18429_s13] ss:$0 sm:$0xff] }
 0xbe3   :  { %v10285_v43 = vsel %vm6141_vm6, %v17258_v16, 0.0  ;;  %v12640_v51 = vpop.f32.mrb[160].mxu1  ;;  %10530 = vrot.lane.b32.xlu1 %v11222_v11, %s13217_s11 }
 0xbe4   :  { %v10286_v54 = vadd.f32 %v10285_v43, %v10284_v44  ;;  %v12670_v55 = vadd.f32 %v12640_v51, %v17059_v0  ;;  %v10122_v29 = vpop.f32.mrb[161].mxu1  ;;  %v7563_v0 = vmul.f32 %v17001_v53, %v17001_v53  ;;  %v7613_v44 = vadd.f32 %v7612_v62, %v7611_v59 }
 0xbe5   :  { %v12671_v25 = vadd.f32 %v10122_v29, %v17061_v63  ;;  %v12641_v31 = vpop.f32.mrb[162].mxu1  ;;  %v7614_v51 = vsel %vm6141_vm6, %v7561_v33, 0.0  ;;  %v10289_v63 = vsel %vm6141_vm6, %v17264_v35, 0.0  ;;  %v7564_v53 = vmul.f32 %v17004_v42, %v17004_v42 }
 0xbe6   :  { %v10288_v56 = vadd.f32 %v10287_v13, %v10286_v54  ;;  %v12672_v43 = vadd.f32 %v12641_v31, %v17071_v50  ;;  %v10125_v22 = vpop.f32.mrb[163].mxu1  ;;  %v7615_v59 = vadd.f32 %v7614_v51, %v7613_v44  ;;  %v7616_v50 = vsel %vm6141_vm6, %v7562_v9, 0.0 }
 0xbe7   :  { %v17288_v29 = vadd.f32 %v12671_v25, %v17089_v2  ;;  %v12673_v10 = vadd.f32 %v10125_v22, %v17073_v34  ;;  %v17295_v62 = vadd.f32 %v12670_v55, %v17089_v2  ;;  %v13188_v34 = vld [vmem:[%s18417_s0 + $0x8] sm:$0xff]  ;;  %v7565_v9 = vmul.f32 %v17008_v32, %v17008_v32 }
 0xbe8   :  { %v10290_v54 = vadd.f32 %v10289_v63, %v10288_v56  ;;  %v7617_v25 = vadd.f32 %v7616_v50, %v7615_v59  ;;  %10567 = vrot.lane.b32.xlu1 %v13188_v34, %s13217_s11  ;;  %v7618_v55 = vsel %vm6141_vm6, %v7563_v0, 0.0  ;;  %v17310_v11 = vadd.f32 %v12672_v43, %v17089_v2  ;;  %v17314_v56 = vpop.permute.xlu0 %7780 }
 0xbe9   :  { %v10291_v33 = vsel %vm6141_vm6, %v17288_v29, 0.0  ;;  %v17300_v13 = vadd.f32 %v12673_v10, %v17089_v2  ;;  %v7620_v50 = vsel %vm6141_vm6, %v7564_v53, 0.0  ;;  %v10295_v0 = vsel %vm6141_vm6, %v17295_v62, 0.0 }
 0xbea   :  { %v10292_v31 = vadd.f32 %v10291_v33, %v10290_v54  ;;  %v7619_v22 = vadd.f32 %v7618_v55, %v7617_v25  ;;  %v7566_v54 = vmul.f32 %v17011_v1, %v17011_v1  ;;  %v7567_v34 = vmul.f32 %v17016_v23, %v17016_v23  ;;  %v13189_v55 = vld [vmem:[%s18417_s0 + $0x18] sm:$0xff] }
 0xbeb   :  { %v10293_v10 = vsel %vm6141_vm6, %v17300_v13, 0.0  ;;  %v12644_v44 = vpop.f32.mrb[164].mxu1  ;;  %v7622_v53 = vsel %vm6141_vm6, %v7565_v9, 0.0 }
 0xbec   :  { %v10294_v51 = vadd.f32 %v10293_v10, %v10292_v31  ;;  %v12674_v63 = vadd.f32 %v12644_v44, %v17098_v20  ;;  %v10138_v59 = vpop.f32.mrb[165].mxu1  ;;  %v7621_v32 = vadd.f32 %v7620_v50, %v7619_v22  ;;  %10571 = vrot.lane.b32.xlu1 %v13189_v55, %s13217_s11 }
 0xbed   :  { %v12675_v43 = vadd.f32 %v10138_v59, %v17100_v14  ;;  %v12645_v33 = vpop.f32.mrb[166].mxu1  ;;  %v10297_v14 = vsel %vm6141_vm6, %v17310_v11, 0.0  ;;  %v7624_v59 = vsel %vm6141_vm6, %v7566_v54, 0.0  ;;  %v18522_v54 = vld [vmem:[#allocation18_spill] sm:$0xff] }
 0xbee   :  { %v10296_v25 = vadd.f32 %v10295_v0, %v10294_v51  ;;  %v12676_v31 = vadd.f32 %v12645_v33, %v17109_v24  ;;  %v10141_v20 = vpop.f32.mrb[167].mxu1  ;;  %v7568_v24 = vmul.f32 %v17019_v45, %v17019_v45  ;;  %v7623_v22 = vadd.f32 %v7622_v53, %v7621_v32  ;;  %v13190_v32 = vld [vmem:[%s18417_s0 + $0x28] sm:$0xff] }
 0xbef   :  { %v17334_v10 = vadd.f32 %v12675_v43, %v17089_v2  ;;  %v12677_v44 = vadd.f32 %v10141_v20, %v17113_v21  ;;  %v17341_v50 = vadd.f32 %v12674_v63, %v17089_v2  ;;  %v17348_v43 = vpop.permute.xlu0 %7782  ;;  %v7569_v63 = vmul.f32 %v18522_v54, %v18522_v54 }
 0xbf0   :  { %v10298_v51 = vadd.f32 %v10297_v14, %v10296_v25  ;;  %v7625_v33 = vadd.f32 %v7624_v59, %v7623_v22  ;;  %10575 = vrot.lane.b32.xlu1 %v13190_v32, %s13217_s11  ;;  %v7626_v25 = vsel %vm6141_vm6, %v7567_v34, 0.0  ;;  %v17358_v20 = vadd.f32 %v12676_v31, %v17089_v2  ;;  %v18523_v59 = vld [vmem:[#allocation19_spill] sm:$0xff] }
 0xbf1   :  { %v10299_v9 = vsel %vm6141_vm6, %v17334_v10, 0.0  ;;  %v17346_v0 = vadd.f32 %v12677_v44, %v17089_v2  ;;  %v7628_v32 = vsel %vm6141_vm6, %v7568_v24, 0.0  ;;  %v10303_v34 = vsel %vm6141_vm6, %v17341_v50, 0.0 }
 0xbf2   :  { %v10300_v21 = vadd.f32 %v10299_v9, %v10298_v51  ;;  %v7627_v14 = vadd.f32 %v7626_v25, %v7625_v33  ;;  %v7570_v9 = vmul.f32 %v18523_v59, %v18523_v59  ;;  %v10305_v24 = vsel %vm6141_vm6, %v17358_v20, 0.0 }
 0xbf3   :  { %v10301_v55 = vsel %vm6141_vm6, %v17346_v0, 0.0  ;;  %v12648_v53 = vpop.f32.mrb[168].mxu1 }
 0xbf4   :  { %v10302_v44 = vadd.f32 %v10301_v55, %v10300_v21  ;;  %v12678_v22 = vadd.f32 %v12648_v53, %v17142_v27  ;;  %v10154_v51 = vpop.f32.mrb[169].mxu1  ;;  %v7629_v45 = vadd.f32 %v7628_v32, %v7627_v14  ;;  %v13191_v27 = vld [vmem:[%s18417_s0 + $0x38] sm:$0xff]  ;;  %v7630_v21 = vsel %vm6141_vm6, %v7569_v63, 0.0  ;;  %v17381_v55 = vpop.permute.xlu0 %7786 }
 0xbf5   :  { %v12679_v31 = vadd.f32 %v10154_v51, %v17144_v39  ;;  %v12649_v54 = vpop.f32.mrb[170].mxu1  ;;  %10579 = vrot.lane.b32.xlu1 %v13191_v27, %s13217_s11  ;;  %v7632_v53 = vsel %vm6141_vm6, %v7570_v9, 0.0 }
 0xbf6   :  { %v10304_v23 = vadd.f32 %v10303_v34, %v10302_v44  ;;  %v12680_v1 = vadd.f32 %v12649_v54, %v17152_v36  ;;  %v10157_v33 = vpop.f32.mrb[171].mxu1  ;;  %v7631_v36 = vadd.f32 %v7630_v21, %v7629_v45  ;;  %v17385_v14 = vadd.f32 %v12678_v22, %v17089_v2 }
 0xbf7   :  { %v17378_v25 = vadd.f32 %v12679_v31, %v17089_v2  ;;  %v12681_v39 = vadd.f32 %v10157_v33, %v17157_v52  ;;  %v13192_v52 = vld [vmem:[%s18417_s0 + $0x48] sm:$0xff] }
 0xbf8   :  { %v10306_v54 = vadd.f32 %v10305_v24, %v10304_v23  ;;  %v7633_v51 = vadd.f32 %v7632_v53, %v7631_v36  ;;  %v17397_v23 = vadd.f32 %v12680_v1, %v17089_v2  ;;  %v10311_v33 = vsel %vm6141_vm6, %v17385_v14, 0.0  ;;  %v17405_v24 = vpop.permute.xlu0 %7790  ;;  %v13193_v53 = vld [vmem:[%s18417_s0 + $0x58] sm:$0xff] }
 0xbf9   :  { %v10307_v63 = vsel %vm6141_vm6, %v17378_v25, 0.0  ;;  %v17390_v44 = vadd.f32 %v12681_v39, %v17089_v2  ;;  %10583 = vrot.lane.b32.xlu1 %v13192_v52, %s13217_s11 }
 0xbfa   :  { %v10308_v32 = vadd.f32 %v10307_v63, %v10306_v54  ;;  %v7634_v39 = vrot.slane %v7633_v51, 4 }
 0xbfb   :  { %v10309_v45 = vsel %vm6141_vm6, %v17390_v44, 0.0  ;;  %v12652_v22 = vpop.f32.mrb[172].mxu1 }
 0xbfc   :  { %v10310_v9 = vadd.f32 %v10309_v45, %v10308_v32  ;;  %v12682_v34 = vadd.f32 %v12652_v22, %v17186_v41  ;;  %v10170_v31 = vpop.f32.mrb[173].mxu1  ;;  %v10313_v41 = vsel %vm6141_vm6, %v17397_v23, 0.0  ;;  %v7635_v22 = vadd.f32 %v7634_v39, %v7633_v51  ;;  %v13195_v39 = vld [vmem:[%s18417_s0 + $0x78] sm:$0xff] }
 0xbfd   :  { %v12683_v27 = vadd.f32 %v10170_v31, %v17188_v15  ;;  %v12653_v21 = vpop.f32.mrb[174].mxu1  ;;  %10587 = vrot.lane.b32.xlu1 %v13193_v53, %s13217_s11  ;;  %v13194_v31 = vld [vmem:[%s18417_s0 + $0x68] sm:$0xff] }
 0xbfe   :  { %v10312_v36 = vadd.f32 %v10311_v33, %v10310_v9  ;;  %v12684_v1 = vadd.f32 %v12653_v21, %v17196_v17  ;;  %v10173_v54 = vpop.f32.mrb[175].mxu1  ;;  %v17419_v52 = vadd.f32 %v12682_v34, %v17089_v2  ;;  %v17433_v33 = vpop.permute.xlu0 %7794 }
 0xbff   :  { %v17415_v63 = vadd.f32 %v12683_v27, %v17089_v2  ;;  %v12685_v15 = vadd.f32 %v10173_v54, %v17201_v7 }
 0xc00   :  { %v10314_v32 = vadd.f32 %v10313_v41, %v10312_v36  ;;  %v10257_v7 = vadd.f32 %v12684_v1, %v17089_v2  ;;  %v10319_v21 = vsel %vm6141_vm6, %v17419_v52, 0.0  ;;  %v7636_v36 = vrot.slane %v7635_v22, 2 }
 0xc01   :  { %v10315_v17 = vsel %vm6141_vm6, %v17415_v63, 0.0  ;;  %v17424_v45 = vadd.f32 %v12685_v15, %v17089_v2  ;;  %10591 = vrot.lane.b32.xlu1 %v13194_v31, %s13217_s11  ;;  %v13196_v15 = vld [vmem:[%s18417_s0 + $0x88] sm:$0xff]  ;;  %v13197_v31 = vld [vmem:[%s18417_s0 + $0x98] sm:$0xff] }
 0xc02   :  { %v10316_v9 = vadd.f32 %v10315_v17, %v10314_v32  ;;  %v10321_v54 = vsel %vm6141_vm6, %v10257_v7, 0.0  ;;  %v17442_v1 = vpop.permute.xlu0 %7798  ;;  %v7637_v53 = vadd.f32 %v7636_v36, %v7635_v22  ;;  %v13198_v36 = vld [vmem:[%s18417_s0 + $0xa8] sm:$0xff] }
 0xc03   :  { %v10317_v34 = vsel %vm6141_vm6, %v17424_v45, 0.0 }
 0xc04   :  { %v10318_v27 = vadd.f32 %v10317_v34, %v10316_v9  ;;  %v7638_v17 = vrot.slane %v7637_v53, 1 }
 0xc05   :  { %10595 = vrot.lane.b32.xlu1 %v13195_v39, %s13217_s11 }
 0xc06   :  { %v10320_v51 = vadd.f32 %v10319_v21, %v10318_v27  ;;  %v17452_v34 = vpop.permute.xlu0 %7802  ;;  %v7639_v22 = vadd.f32 %v7638_v17, %v7637_v53  ;;  %v13200_v17 = vld [vmem:[%s18417_s0 + $0xc8] sm:$0xff] }
 0xc08   :  { %v10322_v2 = vadd.f32 %v10321_v54, %v10320_v51  ;;  %v7640_v54 = vmul.f32 0.00390625, %v7639_v22 }
 0xc09   :  { %10599 = vrot.lane.b32.xlu1 %v13196_v15, %s13217_s11 }
 0xc0a   :  { %v10323_v41 = vrot.slane %v10322_v2, 4  ;;  %v17458_v39 = vpop.permute.xlu0 %7806  ;;  %v7641_v53 = vadd.f32 1e-05, %v7640_v54 }
 0xc0c   :  { %v10324_v32 = vadd.f32 %v10323_v41, %v10322_v2  ;;  %v13199_v41 = vld [vmem:[%s18417_s0 + $0xb8] sm:$0xff]  ;;  %13120 = vrsqrt.f32 %v7641_v53 }
 0xc0d   :  { %10603 = vrot.lane.b32.xlu1 %v13197_v31, %s13217_s11 }
 0xc0e   :  { %v10325_v9 = vrot.slane %v10324_v32, 2 }
 0xc10   :  { %v10326_v27 = vadd.f32 %v10325_v9, %v10324_v32 }
 0xc11   :  { %10607 = vrot.lane.b32.xlu1 %v13198_v36, %s13217_s11  ;;  %v13218_v36 = vmov 1966171168  }
 0xc12   :  { %v10327_v21 = vrot.slane %v10326_v27, 1 }
 0xc14   :  { %v10328_v51 = vadd.f32 %v10327_v21, %v10326_v27  ;;  %v17494_v27 = vpop.permute.xlu0 %7810 }
 0xc15   :  { %10611 = vrot.lane.b32.xlu1 %v13199_v41, %s13217_s11 }
 0xc16   :  { %v17460_v2 = vmul.f32 0.00390625, %v10328_v51  ;;  %v7645_v51 = vunpack.c.l.s4 %v13218_v36 }
 0xc18   :  { %v17468_v15 = vsub.f32 %v17220_v18, %v17460_v2  ;;  %v17472_v32 = vsub.f32 %v17226_v58, %v17460_v2  ;;  %v17480_v9 = vsub.f32 %v17244_v57, %v17460_v2  ;;  %v17484_v31 = vsub.f32 %v17258_v16, %v17460_v2 }
 0xc19   :  { %10615 = vrot.lane.b32.xlu1 %v13200_v17, %s13217_s11  ;;  %v17488_v18 = vsub.f32 %v17253_v60, %v17460_v2  ;;  %v17492_v58 = vsub.f32 %v17264_v35, %v17460_v2  ;;  %v17498_v22 = vsub.f32 %v17288_v29, %v17460_v2  ;;  %v17502_v57 = vsub.f32 %v17300_v13, %v17460_v2  ;;  %v13203_v17 = vld [vmem:[%s18417_s0 + $0xf8] sm:$0xff] }
 0xc1a   :  { %18524 = vst [vmem:[#allocation30_spill] sm:$0xff] %v17468_v15  ;;  %18525 = vst [vmem:[#allocation31_spill] sm:$0xff] %v17472_v32  ;;  %v17506_v16 = vsub.f32 %v17295_v62, %v17460_v2  ;;  %v17510_v60 = vsub.f32 %v17310_v11, %v17460_v2  ;;  %v17514_v35 = vsub.f32 %v17334_v10, %v17460_v2  ;;  %v7646_v41 = vunpack.c.0.s8 %v7645_v51 }
 0xc1b   :  { %18526 = vst [vmem:[#allocation32_spill] sm:$0xff] %v17480_v9  ;;  %18527 = vst [vmem:[#allocation33_spill] sm:$0xff] %v17484_v31  ;;  %v17518_v29 = vsub.f32 %v17346_v0, %v17460_v2  ;;  %v17522_v13 = vsub.f32 %v17341_v50, %v17460_v2  ;;  %v17526_v62 = vsub.f32 %v17358_v20, %v17460_v2  ;;  %v13201_v20 = vld [vmem:[%s18417_s0 + $0xd8] sm:$0xff] }
 0xc1c   :  { %18528 = vst [vmem:[#allocation34_spill] sm:$0xff] %v17488_v18  ;;  %18529 = vst [vmem:[#allocation35_spill] sm:$0xff] %v17492_v58  ;;  %v17530_v11 = vsub.f32 %v17378_v25, %v17460_v2  ;;  %v17534_v10 = vsub.f32 %v17390_v44, %v17460_v2  ;;  %v17538_v0 = vsub.f32 %v17385_v14, %v17460_v2 }
 0xc1d   :  { %18530 = vst [vmem:[#allocation36_spill] sm:$0xff] %v17498_v22  ;;  %18531 = vst [vmem:[#allocation37_spill] sm:$0xff] %v17502_v57  ;;  %v17542_v50 = vsub.f32 %v17397_v23, %v17460_v2  ;;  %10619 = vrot.lane.b32.xlu1 %v13201_v20, %s13217_s11  ;;  %v17550_v25 = vsub.f32 %v17415_v63, %v17460_v2  ;;  %v17554_v44 = vsub.f32 %v17424_v45, %v17460_v2  ;;  %v17571_v45 = vpop.permute.xlu0 %7814 }
 0xc1e   :  { %18532 = vst [vmem:[#allocation38_spill] sm:$0xff] %v17506_v16  ;;  %18533 = vst [vmem:[#allocation39_spill] sm:$0xff] %v17510_v60  ;;  %v17558_v14 = vsub.f32 %v17419_v52, %v17460_v2  ;;  %v17561_v23 = vsub.f32 %v10257_v7, %v17460_v2  ;;  %v17565_v21 = vsub.f32 %v17121_v40, %v17460_v2  ;;  %v13202_v7 = vld [vmem:[%s18417_s0 + $0xe8] sm:$0xff]  ;;  %s13219_s0 = smov 4  }
 0xc1f   :  { %18534 = vst [vmem:[#allocation40_spill] sm:$0xff] %v17514_v35  ;;  %18535 = vst [vmem:[#allocation41_spill] sm:$0xff] %v17518_v29  ;;  %v17569_v63 = vsub.f32 %v17127_v37, %v17460_v2  ;;  %v17575_v52 = vsub.f32 %v17130_v19, %v17460_v2  ;;  %v17583_v40 = vsub.f32 %v17136_v6, %v17460_v2 }
 0xc20   :  { %18536 = vst [vmem:[#allocation42_spill] sm:$0xff] %v17522_v13  ;;  %18537 = vst [vmem:[#allocation43_spill] sm:$0xff] %v17526_v62  ;;  %v10362_v37 = vmul.f32 %v17565_v21, %v17565_v21  ;;  %v17591_v19 = vsub.f32 %v17164_v61, %v17460_v2  ;;  %v17603_v20 = vsub.f32 %v17176_v47, %v17460_v2 }
 0xc21   :  { %18538 = vst [vmem:[#allocation44_spill] sm:$0xff] %v17530_v11  ;;  %18539 = vst [vmem:[#allocation45_spill] sm:$0xff] %v17534_v10  ;;  %10623 = vrot.lane.b32.xlu1 %v13202_v7, %s13217_s11  ;;  %v10363_v54 = vmul.f32 %v17569_v63, %v17569_v63  ;;  %v10364_v53 = vmul.f32 %v17575_v52, %v17575_v52  ;;  %v17599_v6 = vpop.permute.xlu0 %7818  ;;  %v10365_v36 = vmul.f32 %v17583_v40, %v17583_v40 }
 0xc22   :  { %18540 = vst [vmem:[#allocation46_spill] sm:$0xff] %v17538_v0  ;;  %18541 = vst [vmem:[#allocation47_spill] sm:$0xff] %v17542_v50  ;;  %v10394_v61 = vsel %vm6141_vm6, %v10362_v37, 0.0  ;;  %v10366_v47 = vmul.f32 %v17591_v19, %v17591_v19  ;;  %v17621_v37 = vsub.f32 %v17182_v26, %v17460_v2 }
 0xc23   :  { %18542 = vst [vmem:[#allocation48_spill] sm:$0xff] %v17550_v25  ;;  %18543 = vst [vmem:[#allocation49_spill] sm:$0xff] %v17554_v44  ;;  %v10395_v51 = vsel %vm6141_vm6, %v10363_v54, 0.0  ;;  %v10397_v59 = vsel %vm6141_vm6, %v10364_v53, 0.0  ;;  %v10367_v54 = vmul.f32 %v17603_v20, %v17603_v20 }
 0xc24   :  { %18544 = vst [vmem:[#allocation50_spill] sm:$0xff] %v17558_v14  ;;  %18545 = vst [vmem:[#allocation51_spill] sm:$0xff] %v17561_v23  ;;  %v10396_v7 = vadd.f32 %v10395_v51, %v10394_v61  ;;  %v17631_v51 = vsub.f32 %v17208_v8, %v17460_v2  ;;  %v10401_v26 = vsel %vm6141_vm6, %v10366_v47, 0.0 }
 0xc25   :  { %18546 = vst [vmem:[#allocation52_spill] sm:$0xff] %v17565_v21  ;;  %18547 = vst [vmem:[#allocation53_spill] sm:$0xff] %v17569_v63  ;;  %10627 = vrot.lane.b32.xlu1 %v13203_v17, %s13217_s11  ;;  %v13121_v63 = vpop.eup %13120  ;;  %v17614_v17 = vsub.f32 %v17171_v12, %v17460_v2  ;;  %v17627_v12 = vpop.permute.xlu0 %7822 }
 0xc26   :  { %18548 = vst [vmem:[#allocation54_spill] sm:$0xff] %v17575_v52  ;;  %18549 = vst [vmem:[#allocation55_spill] sm:$0xff] %v17591_v19  ;;  %v18551_v52 = vld [vmem:[#allocation3_spill] sm:$0xff]  ;;  %v10370_v8 = vmul.f32 %v17631_v51, %v17631_v51 }
 0xc27   :  { %18550 = vst [vmem:[#allocation56_spill] sm:$0xff] %v17599_v6  ;;  %v17610_v21 = vsub.s32 %v7646_v41, %v18551_v52  ;;  %18552 = vst [vmem:[#allocation3_spill] sm:$0xff] %v17614_v17  ;;  %v10398_v6 = vadd.f32 %v10397_v59, %v10396_v7  ;;  %v10399_v52 = vsel %vm6141_vm6, %v10365_v36, 0.0  ;;  %v10368_v59 = vmul.f32 %v17614_v17, %v17614_v17 }
 0xc28   :  { %18553 = vst [vmem:[#allocation57_spill] sm:$0xff] %v17621_v37  ;;  %18554 = vst [vmem:[#allocation58_spill] sm:$0xff] %v17631_v51  ;;  %v10369_v7 = vmul.f32 %v17621_v37, %v17621_v37  ;;  %v10403_v36 = vsel %vm6141_vm6, %v10367_v54, 0.0  ;;  %v10371_v54 = vmul.f32 %v17468_v15, %v17468_v15  ;;  %v18591_v51 = vld [vmem:[#allocation24_spill] sm:$0xff] }
 0xc29   :  { %v10400_v41 = vadd.f32 %v10399_v52, %v10398_v6  ;;  %v7650_v61 = vrot.slane %v13121_v63, %v17610_v21  ;;  %v17642_v52 = vsub.f32 %v17215_v48, %v17460_v2  ;;  %v10405_v17 = vsel %vm6141_vm6, %v10368_v59, 0.0  ;;  %v17648_v47 = vpop.permute.xlu0 %7826 }
 0xc2a   :  { %v10409_v2 = vsel %vm6141_vm6, %v10370_v8, 0.0  ;;  %v10411_v59 = vsel %vm6141_vm6, %v10371_v54, 0.0 }
 0xc2b   :  { %v10402_v53 = vadd.f32 %v10401_v26, %v10400_v41  ;;  %v7657_v63 = vrot.slane %v7650_v61, %v17610_v21  ;;  %18555 = vst [vmem:[#allocation59_spill] sm:$0xff] %v17642_v52  ;;  %v10407_v41 = vsel %vm6141_vm6, %v10369_v7, 0.0  ;;  %v10372_v48 = vmul.f32 %v17642_v52, %v17642_v52 }
 0xc2d   :  { %v10404_v6 = vadd.f32 %v10403_v36, %v10402_v53  ;;  %7658 = vrot.lane.b32.xlu0 %v7657_v63, %s13219_s0  ;;  %v17659_v36 = vpop.permute.xlu0 %7830  ;;  %v10413_v7 = vsel %vm6141_vm6, %v10372_v48, 0.0  ;;  %v10375_v63 = vmul.f32 %v17484_v31, %v17484_v31 }
 0xc2f   :  { %v10406_v19 = vadd.f32 %v10405_v17, %v10404_v6  ;;  %v10373_v17 = vmul.f32 %v17472_v32, %v17472_v32  ;;  %v10374_v6 = vmul.f32 %v17480_v9, %v17480_v9  ;;  %v10419_v48 = vsel %vm6141_vm6, %v10375_v63, 0.0 }
 0xc31   :  { %v10408_v61 = vadd.f32 %v10407_v41, %v10406_v19  ;;  %v10415_v8 = vsel %vm6141_vm6, %v10373_v17, 0.0  ;;  %v10417_v54 = vsel %vm6141_vm6, %v10374_v6, 0.0 }
 0xc33   :  { %v10410_v26 = vadd.f32 %v10409_v2, %v10408_v61  ;;  %v10376_v61 = vmul.f32 %v17488_v18, %v17488_v18  ;;  %v10380_v18 = vmul.f32 %v17506_v16, %v17506_v16  ;;  %v10383_v16 = vmul.f32 %v17518_v29, %v17518_v29 }
 0xc35   :  { %v10412_v53 = vadd.f32 %v10411_v59, %v10410_v26  ;;  %v17670_v26 = vpop.permute.xlu0 %7834  ;;  %v10377_v59 = vmul.f32 %v17492_v58, %v17492_v58  ;;  %v10421_v17 = vsel %vm6141_vm6, %v10376_v61, 0.0 }
 0xc37   :  { %v10414_v19 = vadd.f32 %v10413_v7, %v10412_v53  ;;  %v10378_v7 = vmul.f32 %v17498_v22, %v17498_v22  ;;  %v10423_v6 = vsel %vm6141_vm6, %v10377_v59, 0.0  ;;  %v10429_v59 = vsel %vm6141_vm6, %v10380_v18, 0.0 }
 0xc38   :  { %v10385_v18 = vmul.f32 %v17526_v62, %v17526_v62 }
 0xc39   :  { %v10416_v41 = vadd.f32 %v10415_v8, %v10414_v19  ;;  %v10379_v8 = vmul.f32 %v17502_v57, %v17502_v57  ;;  %v10425_v63 = vsel %vm6141_vm6, %v10378_v7, 0.0 }
 0xc3b   :  { %v10418_v2 = vadd.f32 %v10417_v54, %v10416_v41  ;;  %v17681_v54 = vpop.permute.xlu0 %10565  ;;  %v10427_v61 = vsel %vm6141_vm6, %v10379_v8, 0.0 }
 0xc3d   :  { %v10420_v53 = vadd.f32 %v10419_v48, %v10418_v2  ;;  %v10381_v48 = vmul.f32 %v17510_v60, %v17510_v60 }
 0xc3f   :  { %v10422_v19 = vadd.f32 %v10421_v17, %v10420_v53  ;;  %v10382_v17 = vmul.f32 %v17514_v35, %v17514_v35  ;;  %v10431_v7 = vsel %vm6141_vm6, %v10381_v48, 0.0  ;;  %v10386_v48 = vmul.f32 %v17530_v11, %v17530_v11 }
 0xc41   :  { %v10424_v41 = vadd.f32 %v10423_v6, %v10422_v19  ;;  %v17692_v6 = vpop.permute.xlu0 %10569  ;;  %v10433_v8 = vsel %vm6141_vm6, %v10382_v17, 0.0 }
 0xc42   :  { %18556 = vst [vmem:[#allocation60_spill] sm:$0xff] %v17692_v6 }
 0xc43   :  { %v10426_v2 = vadd.f32 %v10425_v63, %v10424_v41  ;;  %v10384_v63 = vmul.f32 %v17522_v13, %v17522_v13 }
 0xc45   :  { %v10428_v53 = vadd.f32 %v10427_v61, %v10426_v2  ;;  %v10435_v61 = vsel %vm6141_vm6, %v10383_v16, 0.0  ;;  %v17701_v60 = vpop.permute.xlu0 %10573  ;;  %v10387_v16 = vmul.f32 %v17534_v10, %v17534_v10 }
 0xc46   :  { %18557 = vst [vmem:[#allocation61_spill] sm:$0xff] %v17701_v60 }
 0xc47   :  { %v10430_v19 = vadd.f32 %v10429_v59, %v10428_v53  ;;  %v10437_v53 = vsel %vm6141_vm6, %v10384_v63, 0.0 }
 0xc49   :  { %v10432_v41 = vadd.f32 %v10431_v7, %v10430_v19  ;;  %v10439_v19 = vsel %vm6141_vm6, %v10385_v18, 0.0  ;;  %v17709_v7 = vpop.permute.xlu1 %7774  ;;  %v10443_v18 = vsel %vm6141_vm6, %v10387_v16, 0.0 }
 0xc4b   :  { %v10434_v2 = vadd.f32 %v10433_v8, %v10432_v41  ;;  %v17711_v41 = vpop.permute.xlu0 %10577  ;;  %v10441_v8 = vsel %vm6141_vm6, %v10386_v48, 0.0 }
 0xc4c   :  { %18558 = vst [vmem:[#allocation62_spill] sm:$0xff] %v17711_v41 }
 0xc4d   :  { %v10436_v35 = vadd.f32 %v10435_v61, %v10434_v2  ;;  %v17716_v61 = vpop.permute.xlu1 %7778 }
 0xc4f   :  { %v10438_v59 = vadd.f32 %v10437_v53, %v10436_v35  ;;  %v17718_v63 = vpop.permute.xlu0 %10581  ;;  %v10388_v35 = vmul.f32 %v17538_v0, %v17538_v0 }
 0xc50   :  { %18559 = vst [vmem:[#allocation63_spill] sm:$0xff] %v17718_v63 }
 0xc51   :  { %v10440_v17 = vadd.f32 %v10439_v19, %v10438_v59  ;;  %v10389_v59 = vmul.f32 %v17542_v50, %v17542_v50  ;;  %v10445_v19 = vsel %vm6141_vm6, %v10388_v35, 0.0  ;;  %v17726_v11 = vpop.permute.xlu1 %7784 }
 0xc53   :  { %v10442_v2 = vadd.f32 %v10441_v8, %v10440_v17  ;;  %v17728_v48 = vpop.permute.xlu0 %10585  ;;  %v10390_v17 = vmul.f32 %v17550_v25, %v17550_v25  ;;  %v10447_v8 = vsel %vm6141_vm6, %v10389_v59, 0.0 }
 0xc54   :  { %18560 = vst [vmem:[#allocation64_spill] sm:$0xff] %v17728_v48 }
 0xc55   :  { %v10444_v53 = vadd.f32 %v10443_v18, %v10442_v2  ;;  %v17733_v0 = vpop.permute.xlu1 %7788  ;;  %v10391_v2 = vmul.f32 %v17554_v44, %v17554_v44  ;;  %v10449_v35 = vsel %vm6141_vm6, %v10390_v17, 0.0 }
 0xc57   :  { %v10446_v10 = vadd.f32 %v10445_v19, %v10444_v53  ;;  %v17735_v16 = vpop.permute.xlu0 %10589  ;;  %v10392_v53 = vmul.f32 %v17558_v14, %v17558_v14  ;;  %v10451_v19 = vsel %vm6141_vm6, %v10391_v2, 0.0 }
 0xc58   :  { %18561 = vst [vmem:[#allocation65_spill] sm:$0xff] %v17735_v16 }
 0xc59   :  { %v10448_v13 = vadd.f32 %v10447_v8, %v10446_v10  ;;  %v17743_v50 = vpop.permute.xlu1 %7792  ;;  %v10393_v10 = vmul.f32 %v17561_v23, %v17561_v23  ;;  %v10453_v8 = vsel %vm6141_vm6, %v10392_v53, 0.0 }
 0xc5b   :  { %v10450_v18 = vadd.f32 %v10449_v35, %v10448_v13  ;;  %v17745_v59 = vpop.permute.xlu0 %10593  ;;  %v10455_v13 = vsel %vm6141_vm6, %v10393_v10, 0.0 }
 0xc5c   :  { %18562 = vst [vmem:[#allocation66_spill] sm:$0xff] %v17745_v59 }
 0xc5d   :  { %v10452_v25 = vadd.f32 %v10451_v19, %v10450_v18  ;;  %v17750_v44 = vpop.permute.xlu1 %7796 }
 0xc5f   :  { %v10454_v62 = vadd.f32 %v10453_v8, %v10452_v25  ;;  %v17752_v17 = vpop.permute.xlu0 %10597 }
 0xc60   :  { %18563 = vst [vmem:[#allocation67_spill] sm:$0xff] %v17752_v17 }
 0xc61   :  { %v10456_v35 = vadd.f32 %v10455_v13, %v10454_v62  ;;  %v17755_v14 = vpop.permute.xlu1 %7800 }
 0xc63   :  { %v10457_v2 = vrot.slane %v10456_v35, 4  ;;  %v17757_v29 = vpop.permute.xlu0 %10601 }
 0xc64   :  { %18564 = vst [vmem:[#allocation68_spill] sm:$0xff] %v17757_v29 }
 0xc65   :  { %v10458_v18 = vadd.f32 %v10457_v2, %v10456_v35  ;;  %v17759_v19 = vpop.permute.xlu1 %7804 }
 0xc67   :  { %v17761_v59 = vpop.permute.xlu0 %10605  ;;  %v10459_v23 = vrot.slane %v10458_v18, 2 }
 0xc68   :  { %18565 = vst [vmem:[#allocation69_spill] sm:$0xff] %v17761_v59 }
 0xc69   :  { %v17763_v53 = vpop.permute.xlu1 %7808  ;;  %v10460_v25 = vadd.f32 %v10459_v23, %v10458_v18 }
 0xc6b   :  { %v17765_v8 = vpop.permute.xlu0 %10609  ;;  %v10461_v17 = vrot.slane %v10460_v25, 1 }
 0xc6c   :  { %18566 = vst [vmem:[#allocation70_spill] sm:$0xff] %v17765_v8 }
 0xc6d   :  { %v17767_v22 = vpop.permute.xlu1 %7812  ;;  %v10462_v10 = vadd.f32 %v10461_v17, %v10460_v25 }
 0xc6f   :  { %v17769_v62 = vpop.permute.xlu0 %10613  ;;  %v10463_v29 = vmul.f32 0.00390625, %v10462_v10 }
 0xc70   :  { %18567 = vst [vmem:[#allocation71_spill] sm:$0xff] %v17769_v62  ;;  %v7435_v62 = vld [vmem:[%s18428_s12] sm:$0x1] }
 0xc71   :  { %v17771_v13 = vpop.permute.xlu1 %7816  ;;  %v10464_v2 = vadd.f32 1e-05, %v10463_v29 }
 0xc73   :  { %v17773_v35 = vpop.permute.xlu0 %10617  ;;  %13122 = vrsqrt.f32 %v10464_v2 }
 0xc74   :  { %18568 = vst [vmem:[#allocation72_spill] sm:$0xff] %v17773_v35  ;;  %v18571_v35 = vld [vmem:[#allocation4_spill] sm:$0xff] }
 0xc75   :  { %v17775_v57 = vpop.permute.xlu1 %7820 }
 0xc77   :  { %v17777_v59 = vpop.permute.xlu0 %10621 }
 0xc78   :  { %18569 = vst [vmem:[#allocation73_spill] sm:$0xff] %v17777_v59 }
 0xc79   :  { %v17779_v23 = vpop.permute.xlu1 %7824 }
 0xc7b   :  { %v17781_v18 = vpop.permute.xlu0 %10625 }
 0xc7c   :  { %18570 = vst [vmem:[#allocation74_spill] sm:$0xff] %v17781_v18 }
 0xc7d   :  { %v17786_v17 = vpop.permute.xlu1 %7828  ;;  %v13123_v25 = vpop.eup %13122 }
 0xc7e   :  { %v10473_v16 = vrot.slane %v13123_v25, %v17610_v21 }
 0xc80   :  { %v10480_v59 = vrot.slane %v10473_v16, %v17610_v21 }
 0xc81   :  { %v17791_v2 = vpop.permute.xlu1 %7832 }
 0xc85   :  { %v17795_v18 = vpop.permute.xlu1 %7836 }
 0xc89   :  { %v17797_v48 = vpop.permute.xlu1 %10530 }
 0xc8d   :  { %v17799_v58 = vpop.permute.xlu1 %10567 }
 0xc9f   :  { %v7659_v10 = vpop.permute.xlu0 %7658 }
 0xca0   :  { %v7661_v8 = vmul.f32 %v7659_v10, %v7435_v62  ;;  %v17801_v62 = vpop.permute.xlu1 %10571 }
 0xca1   :  { %18572 = vst [vmem:[#allocation4_spill] sm:$0xff] %v17801_v62 }
 0xca2   :  { %v7666_v29 = vrot.slane %v7661_v8, %v18571_v35 }
 0xca4   :  { %7667 = vrot.lane.b32.xlu1 %v7666_v29, %s13216_s1  ;;  %v17803_v8 = vpop.permute.xlu1 %10575 }
 0xca5   :  { %18573 = vst [vmem:[#allocation75_spill] sm:$0xff] %v17803_v8 }
 0xca8   :  { %10481 = vrot.lane.b32.xlu1 %v10480_v59, %s13220_s4  ;;  %v17805_v25 = vpop.permute.xlu1 %10579 }
 0xca9   :  { %18574 = vst [vmem:[#allocation76_spill] sm:$0xff] %v17805_v25  ;;  %v18589_v25 = vld [vmem:[#allocation22_spill] sm:$0xff] }
 0xcac   :  { %v17807_v10 = vpop.permute.xlu1 %10583 }
 0xcad   :  { %18575 = vst [vmem:[#allocation77_spill] sm:$0xff] %v17807_v10 }
 0xcb0   :  { %v17809_v29 = vpop.permute.xlu1 %10587 }
 0xcb1   :  { %18576 = vst [vmem:[#allocation78_spill] sm:$0xff] %v17809_v29 }
 0xcb4   :  { %v17811_v21 = vpop.permute.xlu1 %10591 }
 0xcb5   :  { %18577 = vst [vmem:[#allocation79_spill] sm:$0xff] %v17811_v21  ;;  %v18587_v21 = vld [vmem:[#allocation20_spill] sm:$0xff] }
 0xcb8   :  { %v17813_v16 = vpop.permute.xlu1 %10595 }
 0xcb9   :  { %18578 = vst [vmem:[#allocation80_spill] sm:$0xff] %v17813_v16 }
 0xcbc   :  { %v17815_v59 = vpop.permute.xlu1 %10599 }
 0xcbd   :  { %18579 = vst [vmem:[#allocation81_spill] sm:$0xff] %v17815_v59  ;;  %v18588_v59 = vld [vmem:[#allocation21_spill] sm:$0xff] }
 0xcc0   :  { %v17817_v63 = vpop.permute.xlu1 %10603 }
 0xcc1   :  { %18580 = vst [vmem:[#allocation82_spill] sm:$0xff] %v17817_v63 }
 0xcc4   :  { %v17819_v9 = vpop.permute.xlu1 %10607 }
 0xcc5   :  { %18581 = vst [vmem:[#allocation83_spill] sm:$0xff] %v17819_v9 }
 0xcc8   :  { %v17821_v31 = vpop.permute.xlu1 %10611 }
 0xcc9   :  { %18582 = vst [vmem:[#allocation84_spill] sm:$0xff] %v17821_v31  ;;  %v18590_v31 = vld [vmem:[#allocation23_spill] sm:$0xff] }
 0xccc   :  { %v17823_v52 = vpop.permute.xlu1 %10615 }
 0xccd   :  { %18583 = vst [vmem:[#allocation85_spill] sm:$0xff] %v17823_v52 }
 0xcd0   :  { %v17825_v32 = vpop.permute.xlu1 %10619 }
 0xcd1   :  { %18584 = vst [vmem:[#allocation86_spill] sm:$0xff] %v17825_v32 }
 0xcd4   :  { %v17827_v41 = vpop.permute.xlu1 %10623 }
 0xcd5   :  { %18585 = vst [vmem:[#allocation87_spill] sm:$0xff] %v17827_v41  ;;  %v18592_v41 = vld [vmem:[#allocation25_spill] sm:$0xff] }
 0xcd8   :  { %v17829_v10 = vpop.permute.xlu1 %10627 }
 0xcd9   :  { %18586 = vst [vmem:[#allocation88_spill] sm:$0xff] %v17829_v10 }
 0xd16   :  { %v17831_v29 = vpop.permute.xlu1 %7667 }
 0xd17   :  { %v7670_v16 = vmul.f32 %v17831_v29, %v18587_v21  ;;  %v7671_v63 = vmul.f32 %v17831_v29, %v18588_v59  ;;  %v7672_v9 = vmul.f32 %v17831_v29, %v18589_v25  ;;  %v7673_v52 = vmul.f32 %v17831_v29, %v18590_v31 }
 0xd18   :  { %v7674_v32 = vmul.f32 %v17831_v29, %v18591_v51  ;;  %v7675_v10 = vmul.f32 %v17831_v29, %v18592_v41  ;;  %v18593_v51 = vld [vmem:[#allocation26_spill] sm:$0xff]  ;;  %v18594_v41 = vld [vmem:[#allocation27_spill] sm:$0xff] }
 0xd19   :  { %v7710_v15 = vadd.f32 %v17247_v28, %v7670_v16  ;;  %v7711_v60 = vadd.f32 %v17247_v28, %v7671_v63  ;;  %v7712_v21 = vadd.f32 %v17247_v28, %v7672_v9  ;;  %v7713_v59 = vadd.f32 %v17247_v28, %v7673_v52 }
 0xd1a   :  { %v7714_v31 = vadd.f32 %v17247_v28, %v7674_v32  ;;  %v7715_v6 = vadd.f32 %v17247_v28, %v7675_v10  ;;  %v7676_v62 = vmul.f32 %v17831_v29, %v18593_v51  ;;  %v7677_v16 = vmul.f32 %v17831_v29, %v18594_v41  ;;  %v18598_v51 = vld [vmem:[#allocation6_spill] sm:$0xff] }
 0xd1b   :  { %v7870_v8 = vadd.f32 %v17709_v7, %v7710_v15  ;;  %v7871_v25 = vadd.f32 %v17275_v46, %v7711_v60  ;;  %v7872_v9 = vadd.f32 %v17716_v61, %v7712_v21  ;;  %v7873_v52 = vadd.f32 %v17314_v56, %v7713_v59  ;;  %v18596_v61 = vld [vmem:[#allocation5_spill] sm:$0xff] }
 0xd1c   :  { %v7874_v46 = vadd.f32 %v17348_v43, %v7714_v31  ;;  %v7875_v15 = vadd.f32 %v17726_v11, %v7715_v6  ;;  %v7716_v32 = vadd.f32 %v17247_v28, %v7676_v62  ;;  %v7717_v60 = vadd.f32 %v17247_v28, %v7677_v16  ;;  %v18597_v6 = vld [vmem:[#allocation29_spill] sm:$0xff] }
 0xd1d   :  { %v7902_v37 = vmax.f32 %v7870_v8, 0.0  ;;  %v7903_v63 = vmax.f32 %v7871_v25, 0.0  ;;  %v7904_v7 = vmax.f32 %v7872_v9, 0.0  ;;  %v7905_v10 = vmax.f32 %v7873_v52, 0.0  ;;  %v18595_v8 = vld [vmem:[#allocation28_spill] sm:$0xff] }
 0xd1e   :  { %v7678_v25 = vmul.f32 %v17831_v29, %v18595_v8  ;;  %v7679_v56 = vmul.f32 %v17831_v29, %v18596_v61  ;;  %v7907_v43 = vmax.f32 %v7875_v15, 0.0  ;;  %v7876_v11 = vadd.f32 %v17381_v55, %v7716_v32  ;;  %v18599_v55 = vld [vmem:[#allocation7_spill] sm:$0xff]  ;;  %v18600_v52 = vld [vmem:[#allocation8_spill] sm:$0xff] }
 0xd1f   :  { %7966 = vrot.lane.b32.xlu0 %v7902_v37, %s13219_s0  ;;  %7968 = vrot.lane.b32.xlu1 %v7903_v63, %s13219_s0  ;;  %v7906_v37 = vmax.f32 %v7874_v46, 0.0  ;;  %v7680_v62 = vmul.f32 %v17831_v29, %v18597_v6  ;;  %v7877_v21 = vadd.f32 %v17733_v0, %v7717_v60  ;;  %v7681_v41 = vmul.f32 %v17831_v29, %v18598_v51 }
 0xd20   :  { %v7718_v59 = vadd.f32 %v17247_v28, %v7678_v25  ;;  %v7719_v31 = vadd.f32 %v17247_v28, %v7679_v56  ;;  %v7908_v16 = vmax.f32 %v7876_v11, 0.0  ;;  %v7682_v9 = vmul.f32 %v17831_v29, %v18599_v55  ;;  %v18601_v25 = vld [vmem:[#allocation9_spill] sm:$0xff] }
 0xd21   :  { %v7720_v63 = vadd.f32 %v17247_v28, %v7680_v62  ;;  %v7683_v0 = vmul.f32 %v17831_v29, %v18600_v52  ;;  %v7909_v46 = vmax.f32 %v7877_v21, 0.0  ;;  %v7721_v60 = vadd.f32 %v17247_v28, %v7681_v41 }
 0xd22   :  { %v7878_v15 = vadd.f32 %v17405_v24, %v7718_v59  ;;  %v7879_v32 = vadd.f32 %v17743_v50, %v7719_v31  ;;  %v7684_v61 = vmul.f32 %v17831_v29, %v18601_v25  ;;  %v18602_v50 = vld [vmem:[#allocation10_spill] sm:$0xff]  ;;  %v7687_v31 = vmul.f32 %v17831_v29, %v16973_v30 }
 0xd23   :  { %7970 = vrot.lane.b32.xlu0 %v7904_v7, %s13219_s0  ;;  %7972 = vrot.lane.b32.xlu1 %v7905_v10, %s13219_s0  ;;  %v7880_v7 = vadd.f32 %v17433_v33, %v7720_v63  ;;  %v7722_v10 = vadd.f32 %v17247_v28, %v7682_v9  ;;  %v7723_v8 = vadd.f32 %v17247_v28, %v7683_v0 }
 0xd24   :  { %v7910_v56 = vmax.f32 %v7878_v15, 0.0  ;;  %v7881_v24 = vadd.f32 %v17750_v44, %v7721_v60  ;;  %v7724_v62 = vadd.f32 %v17247_v28, %v7684_v61  ;;  %v7686_v44 = vmul.f32 %v17831_v29, %v16969_v49 }
 0xd25   :  { %v7912_v11 = vmax.f32 %v7880_v7, 0.0  ;;  %v7882_v33 = vadd.f32 %v17442_v1, %v7722_v10  ;;  %v7883_v6 = vadd.f32 %v17755_v14, %v7723_v8  ;;  %v18603_v14 = vld [vmem:[#allocation11_spill] sm:$0xff]  ;;  %v7727_v49 = vadd.f32 %v17247_v28, %v7687_v31 }
 0xd26   :  { %v7913_v21 = vmax.f32 %v7881_v24, 0.0  ;;  %v7884_v1 = vadd.f32 %v17452_v34, %v7724_v62  ;;  %v7726_v55 = vadd.f32 %v17247_v28, %v7686_v44  ;;  %v7689_v30 = vmul.f32 %v17831_v29, %v16981_v5  ;;  %v18605_v24 = vld [vmem:[#allocation13_spill] sm:$0xff]  ;;  %v18608_v44 = vld [vmem:[#allocation15_spill] sm:$0xff] }
 0xd27   :  { %7974 = vrot.lane.b32.xlu0 %v7906_v37, %s13219_s0  ;;  %7976 = vrot.lane.b32.xlu1 %v7907_v43, %s13219_s0  ;;  %v7911_v37 = vmax.f32 %v7879_v32, 0.0  ;;  %v7685_v43 = vmul.f32 %v17831_v29, %v18602_v50  ;;  %v7914_v51 = vmax.f32 %v7882_v33, 0.0  ;;  %v7915_v41 = vmax.f32 %v7883_v6, 0.0 }
 0xd28   :  { %v7916_v9 = vmax.f32 %v7884_v1, 0.0  ;;  %v7690_v34 = vmul.f32 %v17831_v29, %v16985_v38  ;;  %v7887_v15 = vadd.f32 %v17763_v53, %v7727_v49  ;;  %v7729_v5 = vadd.f32 %v17247_v28, %v7689_v30  ;;  %v18604_v53 = vld [vmem:[#allocation12_spill] sm:$0xff] }
 0xd29   :  { %v7725_v59 = vadd.f32 %v17247_v28, %v7685_v43  ;;  %v7693_v8 = vmul.f32 %v17831_v29, %v18604_v53  ;;  %v7695_v50 = vmul.f32 %v17831_v29, %v17004_v42  ;;  %v7697_v42 = vmul.f32 %v17831_v29, %v18608_v44 }
 0xd2a   :  { %v7730_v60 = vadd.f32 %v17247_v28, %v7690_v34  ;;  %v7919_v10 = vmax.f32 %v7887_v15, 0.0 }
 0xd2b   :  { %7978 = vrot.lane.b32.xlu0 %v7908_v16, %s13219_s0  ;;  %7980 = vrot.lane.b32.xlu1 %v7909_v46, %s13219_s0  ;;  %v7688_v16 = vmul.f32 %v17831_v29, %v18603_v14  ;;  %v7885_v63 = vadd.f32 %v17759_v19, %v7725_v59  ;;  %v7691_v19 = vmul.f32 %v17831_v29, %v16989_v3  ;;  %v18610_v14 = vld [vmem:[#allocation17_spill] sm:$0xff] }
 0xd2c   :  { %v7886_v46 = vadd.f32 %v17458_v39, %v7726_v55  ;;  %v7692_v3 = vmul.f32 %v17831_v29, %v16993_v4  ;;  %v7889_v39 = vadd.f32 %v17767_v22, %v7729_v5  ;;  %v7733_v4 = vadd.f32 %v17247_v28, %v7693_v8  ;;  %v10258_v5 = vld [vmem:[%s18428_s12] sm:$0x1] }
 0xd2d   :  { %v7728_v52 = vadd.f32 %v17247_v28, %v7688_v16  ;;  %v7917_v0 = vmax.f32 %v7885_v63, 0.0  ;;  %v7731_v38 = vadd.f32 %v17247_v28, %v7691_v19  ;;  %v7694_v22 = vmul.f32 %v17831_v29, %v18605_v24 }
 0xd2e   :  { %v7918_v7 = vmax.f32 %v7886_v46, 0.0  ;;  %v7893_v62 = vadd.f32 %v17775_v57, %v7733_v4  ;;  %v7735_v59 = vadd.f32 %v17247_v28, %v7695_v50  ;;  %v7699_v57 = vmul.f32 %v17831_v29, %v18610_v14 }
 0xd2f   :  { %7982 = vrot.lane.b32.xlu0 %v7910_v56, %s13219_s0  ;;  %7984 = vrot.lane.b32.xlu1 %v7911_v37, %s13219_s0  ;;  %v7888_v32 = vadd.f32 %v17494_v27, %v7728_v52  ;;  %v7890_v27 = vadd.f32 %v17571_v45, %v7730_v60  ;;  %v7891_v61 = vadd.f32 %v17771_v13, %v7731_v38  ;;  %v7921_v37 = vmax.f32 %v7889_v39, 0.0  ;;  %v18606_v45 = vld [vmem:[#allocation56_spill] sm:$0xff]  ;;  %v18607_v13 = vld [vmem:[#allocation14_spill] sm:$0xff]  ;;  %v18611_v52 = vld [vmem:[#allocation19_spill] sm:$0xff] }
 0xd30   :  { %v7732_v56 = vadd.f32 %v17247_v28, %v7692_v3  ;;  %v7696_v6 = vmul.f32 %v17831_v29, %v18607_v13  ;;  %v7925_v16 = vmax.f32 %v7893_v62, 0.0  ;;  %v7895_v55 = vadd.f32 %v17779_v23, %v7735_v59 }
 0xd31   :  { %v7920_v25 = vmax.f32 %v7888_v32, 0.0  ;;  %v7922_v43 = vmax.f32 %v7890_v27, 0.0  ;;  %v7737_v49 = vadd.f32 %v17247_v28, %v7697_v42  ;;  %v7701_v34 = vmul.f32 %v17831_v29, %v18611_v52  ;;  %v10482_v32 = vpop.permute.xlu1 %10481 }
 0xd32   :  { %v7892_v33 = vadd.f32 %v18606_v45, %v7732_v56 }
 0xd33   :  { %7986 = vrot.lane.b32.xlu0 %v7912_v11, %s13219_s0  ;;  %7988 = vrot.lane.b32.xlu1 %v7913_v21, %s13219_s0  ;;  %v7923_v11 = vmax.f32 %v7891_v61, 0.0  ;;  %v7734_v21 = vadd.f32 %v17247_v28, %v7694_v22  ;;  %v7741_v15 = vadd.f32 %v17247_v28, %v7701_v34 }
 0xd34   :  { %v7924_v31 = vmax.f32 %v7892_v33, 0.0 }
 0xd35   :  { %v7894_v63 = vadd.f32 %v17627_v12, %v7734_v21  ;;  %v7897_v12 = vadd.f32 %v17786_v17, %v7737_v49  ;;  %v7901_v39 = vadd.f32 %v17795_v18, %v7741_v15  ;;  %v18613_v49 = vld [vmem:[#allocation53_spill] sm:$0xff] }
 0xd37   :  { %7990 = vrot.lane.b32.xlu0 %v7914_v51, %s13219_s0  ;;  %7992 = vrot.lane.b32.xlu1 %v7915_v41, %s13219_s0  ;;  %v7736_v51 = vadd.f32 %v17247_v28, %v7696_v6  ;;  %v18609_v41 = vld [vmem:[#allocation16_spill] sm:$0xff]  ;;  %v7926_v19 = vmax.f32 %v7894_v63, 0.0  ;;  %v7929_v38 = vmax.f32 %v7897_v12, 0.0  ;;  %v7933_v8 = vmax.f32 %v7901_v39, 0.0  ;;  %v18616_v12 = vld [vmem:[#allocation55_spill] sm:$0xff] }
 0xd38   :  { %v7698_v1 = vmul.f32 %v17831_v29, %v18609_v41 }
 0xd39   :  { %v7896_v46 = vadd.f32 %v17648_v47, %v7736_v51  ;;  %v18612_v47 = vld [vmem:[#allocation18_spill] sm:$0xff] }
 0xd3a   :  { %v7738_v30 = vadd.f32 %v17247_v28, %v7698_v1  ;;  %v7700_v17 = vmul.f32 %v17831_v29, %v18612_v47 }
 0xd3b   :  { %7994 = vrot.lane.b32.xlu0 %v7916_v9, %s13219_s0  ;;  %7996 = vrot.lane.b32.xlu1 %v7917_v0, %s13219_s0  ;;  %v7739_v9 = vadd.f32 %v17247_v28, %v7699_v57  ;;  %v7927_v0 = vmax.f32 %v7895_v55, 0.0  ;;  %v7928_v60 = vmax.f32 %v7896_v46, 0.0 }
 0xd3c   :  { %v7898_v23 = vadd.f32 %v17659_v36, %v7738_v30  ;;  %v7740_v53 = vadd.f32 %v17247_v28, %v7700_v17  ;;  %v18617_v17 = vld [vmem:[#allocation57_spill] sm:$0xff] }
 0xd3d   :  { %v7899_v3 = vadd.f32 %v17791_v2, %v7739_v9  ;;  %v18614_v9 = vld [vmem:[#allocation52_spill] sm:$0xff] }
 0xd3e   :  { %v7930_v36 = vmax.f32 %v7898_v23, 0.0  ;;  %v7900_v29 = vadd.f32 %v17670_v26, %v7740_v53 }
 0xd3f   :  { %7998 = vrot.lane.b32.xlu0 %v7918_v7, %s13219_s0  ;;  %8000 = vrot.lane.b32.xlu1 %v7919_v10, %s13219_s0  ;;  %v10484_v7 = vmul.f32 %v10482_v32, %v10258_v5  ;;  %v7931_v10 = vmax.f32 %v7899_v3, 0.0 }
 0xd41   :  { %v10489_v2 = vrot.slane %v10484_v7, %v18571_v35 }
 0xd43   :  { %8002 = vrot.lane.b32.xlu0 %v7920_v25, %s13219_s0  ;;  %8004 = vrot.lane.b32.xlu1 %v7921_v37, %s13219_s0  ;;  %v7932_v25 = vmax.f32 %v7900_v29, 0.0  ;;  %v18620_v29 = vld [vmem:[#allocation60_spill] sm:$0xff] }
 0xd47   :  { %8006 = vrot.lane.b32.xlu0 %v7922_v43, %s13219_s0  ;;  %8008 = vrot.lane.b32.xlu1 %v7923_v11, %s13219_s0 }
 0xd4b   :  { %8010 = vrot.lane.b32.xlu0 %v7924_v31, %s13219_s0  ;;  %8012 = vrot.lane.b32.xlu1 %v7925_v16, %s13219_s0 }
 0xd4f   :  { %8014 = vrot.lane.b32.xlu0 %v7926_v19, %s13219_s0  ;;  %8016 = vrot.lane.b32.xlu1 %v7927_v0, %s13219_s0  ;;  %v18615_v19 = vld [vmem:[#allocation54_spill] sm:$0xff] }
 0xd53   :  { %8018 = vrot.lane.b32.xlu0 %v7928_v60, %s13219_s0  ;;  %8020 = vrot.lane.b32.xlu1 %v7929_v38, %s13219_s0 }
 0xd57   :  { %8022 = vrot.lane.b32.xlu0 %v7930_v36, %s13219_s0  ;;  %8024 = vrot.lane.b32.xlu1 %v7931_v10, %s13219_s0  ;;  %v18618_v36 = vld [vmem:[#allocation3_spill] sm:$0xff] }
 0xd5b   :  { %8028 = vrot.lane.b32.xlu1 %v7933_v8, %s13219_s0  ;;  %10490 = vrot.lane.b32.xlu0 %v10489_v2, %s13217_s11  ;;  %v18619_v2 = vld [vmem:[#allocation4_spill] sm:$0xff] }
 0xd5f   :  { %8026 = vrot.lane.b32.xlu0 %v7932_v25, %s13219_s0 }
 0xd91   :  { %v7967_v18 = vpop.permute.xlu0 %7966  ;;  %v7969_v27 = vpop.permute.xlu1 %7968 }
 0xd92   :  { %8063 = vst.msk [vmem:[%s18430_s14] sm:$0xff] %vm8062_vm7, %v7967_v18  ;;  %8064 = vst.msk [vmem:[%s18430_s14 + $0x8] sm:$0xff] %vm8062_vm7, %v7969_v27  ;;  %v18622_v18 = vld [vmem:[#allocation61_spill] sm:$0xff] }
 0xd95   :  { %v7971_v28 = vpop.permute.xlu0 %7970  ;;  %v7973_v26 = vpop.permute.xlu1 %7972 }
 0xd96   :  { %8065 = vst.msk [vmem:[%s18430_s14 + $0x10] sm:$0xff] %vm8062_vm7, %v7971_v28  ;;  %8066 = vst.msk [vmem:[%s18430_s14 + $0x18] sm:$0xff] %vm8062_vm7, %v7973_v26 }
 0xd99   :  { %v7975_v35 = vpop.permute.xlu0 %7974  ;;  %v7977_v61 = vpop.permute.xlu1 %7976 }
 0xd9a   :  { %8067 = vst.msk [vmem:[%s18430_s14 + $0x20] sm:$0xff] %vm8062_vm7, %v7975_v35  ;;  %8068 = vst.msk [vmem:[%s18430_s14 + $0x28] sm:$0xff] %vm8062_vm7, %v7977_v61 }
 0xd9d   :  { %v7979_v56 = vpop.permute.xlu0 %7978  ;;  %v7981_v37 = vpop.permute.xlu1 %7980 }
 0xd9e   :  { %8069 = vst.msk [vmem:[%s18430_s14 + $0x30] sm:$0xff] %vm8062_vm7, %v7979_v56  ;;  %8070 = vst.msk [vmem:[%s18430_s14 + $0x38] sm:$0xff] %vm8062_vm7, %v7981_v37  ;;  %v18623_v56 = vld [vmem:[#allocation30_spill] sm:$0xff] }
 0xda1   :  { %v7983_v4 = vpop.permute.xlu0 %7982  ;;  %v7985_v24 = vpop.permute.xlu1 %7984 }
 0xda2   :  { %8071 = vst.msk [vmem:[%s18430_s14 + $0x40] sm:$0xff] %vm8062_vm7, %v7983_v4  ;;  %8072 = vst.msk [vmem:[%s18430_s14 + $0x48] sm:$0xff] %vm8062_vm7, %v7985_v24  ;;  %v18624_v4 = vld [vmem:[#allocation58_spill] sm:$0xff] }
 0xda5   :  { %v7987_v22 = vpop.permute.xlu0 %7986  ;;  %v7989_v50 = vpop.permute.xlu1 %7988 }
 0xda6   :  { %8073 = vst.msk [vmem:[%s18430_s14 + $0x50] sm:$0xff] %vm8062_vm7, %v7987_v22  ;;  %8074 = vst.msk [vmem:[%s18430_s14 + $0x58] sm:$0xff] %vm8062_vm7, %v7989_v50  ;;  %v18625_v50 = vld [vmem:[#allocation76_spill] sm:$0xff] }
 0xda9   :  { %v7991_v43 = vpop.permute.xlu0 %7990  ;;  %v7993_v11 = vpop.permute.xlu1 %7992 }
 0xdaa   :  { %8075 = vst.msk [vmem:[%s18430_s14 + $0x60] sm:$0xff] %vm8062_vm7, %v7991_v43  ;;  %8076 = vst.msk [vmem:[%s18430_s14 + $0x68] sm:$0xff] %vm8062_vm7, %v7993_v11  ;;  %v18626_v11 = vld [vmem:[#allocation62_spill] sm:$0xff] }
 0xdad   :  { %v7995_v45 = vpop.permute.xlu0 %7994  ;;  %v7997_v33 = vpop.permute.xlu1 %7996 }
 0xdae   :  { %8077 = vst.msk [vmem:[%s18430_s14 + $0x70] sm:$0xff] %vm8062_vm7, %v7995_v45  ;;  %8078 = vst.msk [vmem:[%s18430_s14 + $0x78] sm:$0xff] %vm8062_vm7, %v7997_v33  ;;  %v18627_v33 = vld [vmem:[#allocation31_spill] sm:$0xff] }
 0xdb1   :  { %v7999_v13 = vpop.permute.xlu0 %7998  ;;  %v8001_v6 = vpop.permute.xlu1 %8000 }
 0xdb2   :  { %8079 = vst.msk [vmem:[%s18430_s14 + $0x80] sm:$0xff] %vm8062_vm7, %v7999_v13  ;;  %8080 = vst.msk [vmem:[%s18430_s14 + $0x88] sm:$0xff] %vm8062_vm7, %v8001_v6 }
 0xdb5   :  { %v8003_v62 = vpop.permute.xlu0 %8002  ;;  %v8005_v21 = vpop.permute.xlu1 %8004 }
 0xdb6   :  { %8081 = vst.msk [vmem:[%s18430_s14 + $0x90] sm:$0xff] %vm8062_vm7, %v8003_v62  ;;  %8082 = vst.msk [vmem:[%s18430_s14 + $0x98] sm:$0xff] %vm8062_vm7, %v8005_v21 }
 0xdb9   :  { %v8007_v59 = vpop.permute.xlu0 %8006  ;;  %v8009_v44 = vpop.permute.xlu1 %8008 }
 0xdba   :  { %8083 = vst.msk [vmem:[%s18430_s14 + $0xa0] sm:$0xff] %vm8062_vm7, %v8007_v59  ;;  %8084 = vst.msk [vmem:[%s18430_s14 + $0xa8] sm:$0xff] %vm8062_vm7, %v8009_v44  ;;  %v18628_v59 = vld [vmem:[#allocation59_spill] sm:$0xff] }
 0xdbd   :  { %v8011_v42 = vpop.permute.xlu0 %8010  ;;  %v8013_v31 = vpop.permute.xlu1 %8012 }
 0xdbe   :  { %8085 = vst.msk [vmem:[%s18430_s14 + $0xb0] sm:$0xff] %vm8062_vm7, %v8011_v42  ;;  %8086 = vst.msk [vmem:[%s18430_s14 + $0xb8] sm:$0xff] %vm8062_vm7, %v8013_v31 }
 0xdc1   :  { %v8015_v51 = vpop.permute.xlu0 %8014  ;;  %v8017_v41 = vpop.permute.xlu1 %8016 }
 0xdc2   :  { %8087 = vst.msk [vmem:[%s18430_s14 + $0xc0] sm:$0xff] %vm8062_vm7, %v8015_v51  ;;  %8088 = vst.msk [vmem:[%s18430_s14 + $0xc8] sm:$0xff] %vm8062_vm7, %v8017_v41  ;;  %v18629_v51 = vld [vmem:[#allocation33_spill] sm:$0xff] }
 0xdc5   :  { %v8019_v1 = vpop.permute.xlu0 %8018  ;;  %v8021_v14 = vpop.permute.xlu1 %8020 }
 0xdc6   :  { %8089 = vst.msk [vmem:[%s18430_s14 + $0xd0] sm:$0xff] %vm8062_vm7, %v8019_v1  ;;  %8090 = vst.msk [vmem:[%s18430_s14 + $0xd8] sm:$0xff] %vm8062_vm7, %v8021_v14  ;;  %v18630_v1 = vld [vmem:[#allocation32_spill] sm:$0xff] }
 0xdc9   :  { %v8023_v57 = vpop.permute.xlu0 %8022  ;;  %v8025_v16 = vpop.permute.xlu1 %8024 }
 0xdca   :  { %8091 = vst.msk [vmem:[%s18430_s14 + $0xe0] sm:$0xff] %vm8062_vm7, %v8023_v57  ;;  %8092 = vst.msk [vmem:[%s18430_s14 + $0xe8] sm:$0xff] %vm8062_vm7, %v8025_v16  ;;  %v18631_v16 = vld [vmem:[#allocation77_spill] sm:$0xff] }
 0xdcd   :  { %v18118_v63 = vpop.permute.xlu0 %10490  ;;  %v8029_v55 = vpop.permute.xlu1 %8028 }
 0xdce   :  { %8094 = vst.msk [vmem:[%s18430_s14 + $0xf8] sm:$0xff] %vm8062_vm7, %v8029_v55  ;;  %v10494_v30 = vmul.f32 %v18118_v63, %v18613_v49  ;;  %v10493_v52 = vmul.f32 %v18118_v63, %v18614_v9  ;;  %v10496_v34 = vmul.f32 %v18118_v63, %v17583_v40  ;;  %v10495_v0 = vmul.f32 %v18118_v63, %v18615_v19  ;;  %v18632_v49 = vld [vmem:[#allocation63_spill] sm:$0xff] }
 0xdcf   :  { %v10498_v46 = vmul.f32 %v18118_v63, %v17603_v20  ;;  %v10497_v23 = vmul.f32 %v18118_v63, %v18616_v12  ;;  %v10500_v7 = vmul.f32 %v18118_v63, %v18617_v17  ;;  %v10499_v10 = vmul.f32 %v18118_v63, %v18618_v36 }
 0xdd0   :  { %v10534_v15 = vadd.f32 %v17797_v48, %v10494_v30  ;;  %v10533_v5 = vadd.f32 %v17797_v48, %v10493_v52  ;;  %v10536_v32 = vadd.f32 %v17797_v48, %v10496_v34  ;;  %v10535_v60 = vadd.f32 %v17797_v48, %v10495_v0  ;;  %v18633_v52 = vld [vmem:[#allocation78_spill] sm:$0xff] }
 0xdd1   :  { %v8027_v38 = vpop.permute.xlu0 %8026  ;;  %v10538_v3 = vadd.f32 %v17797_v48, %v10498_v46  ;;  %v10537_v47 = vadd.f32 %v17797_v48, %v10497_v23  ;;  %v10540_v28 = vadd.f32 %v17797_v48, %v10500_v7  ;;  %v10539_v26 = vadd.f32 %v17797_v48, %v10499_v10  ;;  %v18634_v46 = vld [vmem:[#allocation35_spill] sm:$0xff] }
 0xdd2   :  { %8093 = vst.msk [vmem:[%s18430_s14 + $0xf0] sm:$0xff] %vm8062_vm7, %v8027_v38  ;;  %v10662_v40 = vadd.f32 %v17799_v58, %v10534_v15  ;;  %v10661_v20 = vadd.f32 %v17681_v54, %v10533_v5  ;;  %v10664_v8 = vadd.f32 %v18619_v2, %v10536_v32  ;;  %v10663_v25 = vadd.f32 %v18620_v29, %v10535_v60  ;;  %v18621_v58 = vld [vmem:[#allocation75_spill] sm:$0xff]  ;;  %v18635_v5 = vld [vmem:[#allocation64_spill] sm:$0xff]  ;;  %v18636_v60 = vld [vmem:[#allocation34_spill] sm:$0xff] }
 0xdd3   :  { %v10666_v54 = vadd.f32 %v18621_v58, %v10538_v3  ;;  %v10665_v27 = vadd.f32 %v18622_v18, %v10537_v47  ;;  %v10502_v37 = vmul.f32 %v18118_v63, %v18623_v56  ;;  %v10501_v24 = vmul.f32 %v18118_v63, %v18624_v4  ;;  %v18638_v47 = vld [vmem:[#allocation65_spill] sm:$0xff]  ;;  %v18640_v2 = vld [vmem:[#allocation36_spill] sm:$0xff]  ;;  %v18642_v18 = vld [vmem:[#allocation39_spill] sm:$0xff] }
 0xdd4   :  { %v10694_v39 = vmax.f32 %v10662_v40, 0.0  ;;  %v10693_v53 = vmax.f32 %v10661_v20, 0.0  ;;  %v10696_v35 = vmax.f32 %v10664_v8, 0.0  ;;  %v10695_v61 = vmax.f32 %v10663_v25, 0.0  ;;  %v18637_v20 = vld [vmem:[#allocation79_spill] sm:$0xff]  ;;  %v18641_v58 = vld [vmem:[#allocation80_spill] sm:$0xff] }
 0xdd5   :  { %v10698_v22 = vmax.f32 %v10666_v54, 0.0  ;;  %v10668_v43 = vadd.f32 %v18625_v50, %v10540_v28  ;;  %v10667_v45 = vadd.f32 %v18626_v11, %v10539_v26  ;;  %v10504_v13 = vmul.f32 %v18118_v63, %v18627_v33  ;;  %v18643_v28 = vld [vmem:[#allocation66_spill] sm:$0xff]  ;;  %v18647_v33 = vld [vmem:[#allocation81_spill] sm:$0xff] }
 0xdd6   :  { %10759 = vrot.lane.b32.xlu1 %v10694_v39, %s13220_s4  ;;  %10757 = vrot.lane.b32.xlu0 %v10693_v53, %s13220_s4  ;;  %v10697_v6 = vmax.f32 %v10665_v27, 0.0  ;;  %v10542_v62 = vadd.f32 %v17797_v48, %v10502_v37  ;;  %v10541_v21 = vadd.f32 %v17797_v48, %v10501_v24  ;;  %v10503_v44 = vmul.f32 %v18118_v63, %v18628_v59  ;;  %v18639_v39 = vld [vmem:[#allocation37_spill] sm:$0xff]  ;;  %v18644_v56 = vld [vmem:[#allocation38_spill] sm:$0xff] }
 0xdd7   :  { %v10700_v42 = vmax.f32 %v10668_v43, 0.0  ;;  %v10544_v31 = vadd.f32 %v17797_v48, %v10504_v13  ;;  %v10506_v41 = vmul.f32 %v18118_v63, %v18629_v51  ;;  %v10505_v14 = vmul.f32 %v18118_v63, %v18630_v1  ;;  %v18646_v43 = vld [vmem:[#allocation40_spill] sm:$0xff]  ;;  %v18649_v59 = vld [vmem:[#allocation82_spill] sm:$0xff]  ;;  %v18650_v51 = vld [vmem:[#allocation43_spill] sm:$0xff] }
 0xdd8   :  { %v10699_v57 = vmax.f32 %v10667_v45, 0.0  ;;  %v10670_v55 = vadd.f32 %v18631_v16, %v10542_v62  ;;  %v10669_v30 = vadd.f32 %v18632_v49, %v10541_v21  ;;  %v10543_v9 = vadd.f32 %v17797_v48, %v10503_v44 }
 0xdd9   :  { %v10672_v34 = vadd.f32 %v18633_v52, %v10544_v31  ;;  %v10546_v19 = vadd.f32 %v17797_v48, %v10506_v41  ;;  %v10545_v0 = vadd.f32 %v17797_v48, %v10505_v14  ;;  %v10508_v12 = vmul.f32 %v18118_v63, %v18634_v46 }
 0xdda   :  { %10763 = vrot.lane.b32.xlu1 %v10696_v35, %s13220_s4  ;;  %10761 = vrot.lane.b32.xlu0 %v10695_v61, %s13220_s4  ;;  %v10702_v23 = vmax.f32 %v10670_v55, 0.0  ;;  %v10701_v15 = vmax.f32 %v10669_v30, 0.0  ;;  %v10671_v32 = vadd.f32 %v18635_v5, %v10543_v9  ;;  %v10507_v38 = vmul.f32 %v18118_v63, %v18636_v60  ;;  %v18652_v55 = vld [vmem:[#allocation42_spill] sm:$0xff]  ;;  %v18653_v9 = vld [vmem:[#allocation83_spill] sm:$0xff]  ;;  %v18656_v5 = vld [vmem:[#allocation44_spill] sm:$0xff] }
 0xddb   :  { %v10704_v40 = vmax.f32 %v10672_v34, 0.0  ;;  %v10674_v3 = vadd.f32 %v18637_v20, %v10546_v19  ;;  %v10673_v17 = vadd.f32 %v18638_v47, %v10545_v0  ;;  %v10548_v7 = vadd.f32 %v17797_v48, %v10508_v12  ;;  %v18654_v34 = vld [vmem:[#allocation69_spill] sm:$0xff] }
 0xddc   :  { %v10703_v36 = vmax.f32 %v10671_v32, 0.0  ;;  %v10547_v10 = vadd.f32 %v17797_v48, %v10507_v38  ;;  %v10510_v53 = vmul.f32 %v18118_v63, %v18639_v39  ;;  %v10509_v8 = vmul.f32 %v18118_v63, %v18640_v2  ;;  %v18660_v39 = vld [vmem:[#allocation46_spill] sm:$0xff] }
 0xddd   :  { %v10706_v29 = vmax.f32 %v10674_v3, 0.0  ;;  %v10705_v25 = vmax.f32 %v10673_v17, 0.0  ;;  %v10676_v54 = vadd.f32 %v18641_v58, %v10548_v7  ;;  %v10512_v27 = vmul.f32 %v18118_v63, %v18642_v18  ;;  %v18658_v3 = vld [vmem:[#allocation47_spill] sm:$0xff]  ;;  %v18659_v17 = vld [vmem:[#allocation70_spill] sm:$0xff]  ;;  %v18662_v58 = vld [vmem:[#allocation48_spill] sm:$0xff] }
 0xdde   :  { %10767 = vrot.lane.b32.xlu1 %v10698_v22, %s13220_s4  ;;  %10765 = vrot.lane.b32.xlu0 %v10697_v6, %s13220_s4  ;;  %v10675_v26 = vadd.f32 %v18643_v28, %v10547_v10  ;;  %v10550_v35 = vadd.f32 %v17797_v48, %v10510_v53  ;;  %v10549_v61 = vadd.f32 %v17797_v48, %v10509_v8  ;;  %v18645_v22 = vld [vmem:[#allocation41_spill] sm:$0xff]  ;;  %v18648_v6 = vld [vmem:[#allocation67_spill] sm:$0xff] }
 0xddf   :  { %v10511_v37 = vmul.f32 %v18118_v63, %v18644_v56  ;;  %v10708_v4 = vmax.f32 %v10676_v54, 0.0  ;;  %v10552_v24 = vadd.f32 %v17797_v48, %v10512_v27  ;;  %v10514_v50 = vmul.f32 %v18118_v63, %v18645_v22  ;;  %v18663_v27 = vld [vmem:[#allocation85_spill] sm:$0xff]  ;;  %v18665_v56 = vld [vmem:[#allocation86_spill] sm:$0xff]  ;;  %v18666_v22 = vld [vmem:[#allocation51_spill] sm:$0xff] }
 0xde0   :  { %v10513_v11 = vmul.f32 %v18118_v63, %v18646_v43  ;;  %v10707_v45 = vmax.f32 %v10675_v26, 0.0  ;;  %v10678_v13 = vadd.f32 %v18647_v33, %v10550_v35  ;;  %v10677_v62 = vadd.f32 %v18648_v6, %v10549_v61  ;;  %v18664_v26 = vld [vmem:[#allocation71_spill] sm:$0xff] }
 0xde1   :  { %v10551_v21 = vadd.f32 %v17797_v48, %v10511_v37  ;;  %v10680_v44 = vadd.f32 %v18649_v59, %v10552_v24  ;;  %v10516_v41 = vmul.f32 %v18118_v63, %v18650_v51  ;;  %v10515_v49 = vmul.f32 %v18118_v63, %v18652_v55 }
 0xde2   :  { %10771 = vrot.lane.b32.xlu1 %v10700_v42, %s13220_s4  ;;  %10769 = vrot.lane.b32.xlu0 %v10699_v57, %s13220_s4  ;;  %v10554_v42 = vadd.f32 %v17797_v48, %v10514_v50  ;;  %v10553_v31 = vadd.f32 %v17797_v48, %v10513_v11  ;;  %v10710_v1 = vmax.f32 %v10678_v13, 0.0  ;;  %v10709_v14 = vmax.f32 %v10677_v62, 0.0  ;;  %v18651_v57 = vld [vmem:[#allocation68_spill] sm:$0xff]  ;;  %v18668_v13 = vld [vmem:[#allocation50_spill] sm:$0xff]  ;;  %v18669_v62 = vld [vmem:[#allocation87_spill] sm:$0xff] }
 0xde3   :  { %v10679_v16 = vadd.f32 %v18651_v57, %v10551_v21  ;;  %v10712_v30 = vmax.f32 %v10680_v44, 0.0  ;;  %v10556_v0 = vadd.f32 %v17797_v48, %v10516_v41  ;;  %v10555_v12 = vadd.f32 %v17797_v48, %v10515_v49 }
 0xde4   :  { %v10682_v52 = vadd.f32 %v18653_v9, %v10554_v42  ;;  %v10681_v19 = vadd.f32 %v18654_v34, %v10553_v31  ;;  %v10517_v32 = vmul.f32 %v18118_v63, %v18656_v5  ;;  %v10520_v47 = vmul.f32 %v18118_v63, %v18658_v3  ;;  %v18670_v31 = vld [vmem:[#allocation73_spill] sm:$0xff] }
 0xde5   :  { %v10711_v46 = vmax.f32 %v10679_v16, 0.0  ;;  %v10683_v7 = vadd.f32 %v18659_v17, %v10555_v12  ;;  %v10519_v53 = vmul.f32 %v18118_v63, %v18660_v39  ;;  %v10521_v54 = vmul.f32 %v18118_v63, %v18662_v58  ;;  %v18672_v16 = vld [vmem:[#allocation74_spill] sm:$0xff] }
 0xde6   :  { %10775 = vrot.lane.b32.xlu1 %v10702_v23, %s13220_s4  ;;  %10773 = vrot.lane.b32.xlu0 %v10701_v15, %s13220_s4  ;;  %v18655_v23 = vld [vmem:[#allocation45_spill] sm:$0xff]  ;;  %v10714_v60 = vmax.f32 %v10682_v52, 0.0  ;;  %v10713_v38 = vmax.f32 %v10681_v19, 0.0  ;;  %v10557_v10 = vadd.f32 %v17797_v48, %v10517_v32  ;;  %v10560_v8 = vadd.f32 %v17797_v48, %v10520_v47 }
 0xde7   :  { %v10518_v15 = vmul.f32 %v18118_v63, %v18655_v23  ;;  %v10715_v18 = vmax.f32 %v10683_v7, 0.0  ;;  %v10559_v61 = vadd.f32 %v17797_v48, %v10519_v53  ;;  %v10561_v24 = vadd.f32 %v17797_v48, %v10521_v54 }
 0xde8   :  { %v10685_v35 = vadd.f32 %v18664_v26, %v10557_v10  ;;  %v10688_v37 = vadd.f32 %v18665_v56, %v10560_v8  ;;  %v10524_v50 = vmul.f32 %v18118_v63, %v18666_v22  ;;  %v10523_v6 = vmul.f32 %v18118_v63, %v18668_v13 }
 0xde9   :  { %v10689_v51 = vadd.f32 %v18670_v31, %v10561_v24 }
 0xdea   :  { %10779 = vrot.lane.b32.xlu1 %v10704_v40, %s13220_s4  ;;  %10777 = vrot.lane.b32.xlu0 %v10703_v36, %s13220_s4  ;;  %v18657_v40 = vld [vmem:[#allocation84_spill] sm:$0xff]  ;;  %v10558_v36 = vadd.f32 %v17797_v48, %v10518_v15  ;;  %v10717_v11 = vmax.f32 %v10685_v35, 0.0  ;;  %v10564_v59 = vadd.f32 %v17797_v48, %v10524_v50  ;;  %v10720_v44 = vmax.f32 %v10688_v37, 0.0 }
 0xdeb   :  { %v10684_v20 = vadd.f32 %v18657_v40, %v10556_v0  ;;  %v10563_v41 = vadd.f32 %v17797_v48, %v10523_v6 }
 0xdec   :  { %v10686_v28 = vadd.f32 %v18663_v27, %v10558_v36 }
 0xded   :  { %v10716_v2 = vmax.f32 %v10684_v20, 0.0  ;;  %v10691_v55 = vadd.f32 %v18672_v16, %v10563_v41 }
 0xdee   :  { %10783 = vrot.lane.b32.xlu1 %v10706_v29, %s13220_s4  ;;  %10781 = vrot.lane.b32.xlu0 %v10705_v25, %s13220_s4  ;;  %v18661_v29 = vld [vmem:[#allocation49_spill] sm:$0xff]  ;;  %v10718_v43 = vmax.f32 %v10686_v28, 0.0 }
 0xdef   :  { %v10522_v25 = vmul.f32 %v18118_v63, %v18661_v29  ;;  %v10721_v63 = vmax.f32 %v10689_v51, 0.0 }
 0xdf2   :  { %10787 = vrot.lane.b32.xlu1 %v10708_v4, %s13220_s4  ;;  %10785 = vrot.lane.b32.xlu0 %v10707_v45, %s13220_s4  ;;  %v10562_v4 = vadd.f32 %v17797_v48, %v10522_v25  ;;  %v18667_v45 = vld [vmem:[#allocation72_spill] sm:$0xff] }
 0xdf3   :  { %v10687_v33 = vadd.f32 %v18667_v45, %v10559_v61 }
 0xdf4   :  { %v10690_v21 = vadd.f32 %v18669_v62, %v10562_v4 }
 0xdf5   :  { %v10719_v42 = vmax.f32 %v10687_v33, 0.0 }
 0xdf6   :  { %10791 = vrot.lane.b32.xlu1 %v10710_v1, %s13220_s4  ;;  %10789 = vrot.lane.b32.xlu0 %v10709_v14, %s13220_s4  ;;  %v10722_v1 = vmax.f32 %v10690_v21, 0.0  ;;  %v18671_v14 = vld [vmem:[#allocation88_spill] sm:$0xff] }
 0xdf7   :  { %v10692_v57 = vadd.f32 %v18671_v14, %v10564_v59 }
 0xdf9   :  { %v10724_v49 = vmax.f32 %v10692_v57, 0.0 }
 0xdfa   :  { %10795 = vrot.lane.b32.xlu1 %v10712_v30, %s13220_s4  ;;  %10793 = vrot.lane.b32.xlu0 %v10711_v46, %s13220_s4  ;;  %v10723_v30 = vmax.f32 %v10691_v55, 0.0 }
 0xdfe   :  { %10799 = vrot.lane.b32.xlu1 %v10714_v60, %s13220_s4  ;;  %10797 = vrot.lane.b32.xlu0 %v10713_v38, %s13220_s4 }
 0xe02   :  { %10803 = vrot.lane.b32.xlu1 %v10716_v2, %s13220_s4  ;;  %10801 = vrot.lane.b32.xlu0 %v10715_v18, %s13220_s4 }
 0xe06   :  { %10807 = vrot.lane.b32.xlu1 %v10718_v43, %s13220_s4  ;;  %10805 = vrot.lane.b32.xlu0 %v10717_v11, %s13220_s4 }
 0xe0a   :  { %10811 = vrot.lane.b32.xlu1 %v10720_v44, %s13220_s4  ;;  %10809 = vrot.lane.b32.xlu0 %v10719_v42, %s13220_s4 }
 0xe0e   :  { %10815 = vrot.lane.b32.xlu1 %v10722_v1, %s13220_s4  ;;  %10813 = vrot.lane.b32.xlu0 %v10721_v63, %s13220_s4 }
 0xe12   :  { %10819 = vrot.lane.b32.xlu1 %v10724_v49, %s13220_s4  ;;  %10817 = vrot.lane.b32.xlu0 %v10723_v30, %s13220_s4 }
 0xe48   :  { %v10758_v48 = vpop.permute.xlu0 %10757  ;;  %v10760_v9 = vpop.permute.xlu1 %10759 }
 0xe49   :  { %10854 = vst.msk [vmem:[%s18430_s14] sm:$0xff] %vm10853_vm8, %v10758_v48  ;;  %10855 = vst.msk [vmem:[%s18430_s14 + $0x8] sm:$0xff] %vm10853_vm8, %v10760_v9 }
 0xe4c   :  { %v10762_v52 = vpop.permute.xlu0 %10761  ;;  %v10764_v34 = vpop.permute.xlu1 %10763 }
 0xe4d   :  { %10856 = vst.msk [vmem:[%s18430_s14 + $0x10] sm:$0xff] %vm10853_vm8, %v10762_v52  ;;  %10857 = vst.msk [vmem:[%s18430_s14 + $0x18] sm:$0xff] %vm10853_vm8, %v10764_v34 }
 0xe50   :  { %v10766_v19 = vpop.permute.xlu0 %10765  ;;  %v10768_v0 = vpop.permute.xlu1 %10767 }
 0xe51   :  { %10858 = vst.msk [vmem:[%s18430_s14 + $0x20] sm:$0xff] %vm10853_vm8, %v10766_v19  ;;  %10859 = vst.msk [vmem:[%s18430_s14 + $0x28] sm:$0xff] %vm10853_vm8, %v10768_v0 }
 0xe54   :  { %v10770_v46 = vpop.permute.xlu0 %10769  ;;  %v10772_v12 = vpop.permute.xlu1 %10771 }
 0xe55   :  { %10860 = vst.msk [vmem:[%s18430_s14 + $0x30] sm:$0xff] %vm10853_vm8, %v10770_v46  ;;  %10861 = vst.msk [vmem:[%s18430_s14 + $0x38] sm:$0xff] %vm10853_vm8, %v10772_v12 }
 0xe58   :  { %v10774_v23 = vpop.permute.xlu0 %10773  ;;  %v10776_v15 = vpop.permute.xlu1 %10775 }
 0xe59   :  { %10862 = vst.msk [vmem:[%s18430_s14 + $0x40] sm:$0xff] %vm10853_vm8, %v10774_v23  ;;  %10863 = vst.msk [vmem:[%s18430_s14 + $0x48] sm:$0xff] %vm10853_vm8, %v10776_v15 }
 0xe5c   :  { %v10778_v5 = vpop.permute.xlu0 %10777  ;;  %v10780_v32 = vpop.permute.xlu1 %10779 }
 0xe5d   :  { %10864 = vst.msk [vmem:[%s18430_s14 + $0x50] sm:$0xff] %vm10853_vm8, %v10778_v5  ;;  %10865 = vst.msk [vmem:[%s18430_s14 + $0x58] sm:$0xff] %vm10853_vm8, %v10780_v32 }
 0xe60   :  { %v10782_v60 = vpop.permute.xlu0 %10781  ;;  %v10784_v38 = vpop.permute.xlu1 %10783 }
 0xe61   :  { %10866 = vst.msk [vmem:[%s18430_s14 + $0x60] sm:$0xff] %vm10853_vm8, %v10782_v60  ;;  %10867 = vst.msk [vmem:[%s18430_s14 + $0x68] sm:$0xff] %vm10853_vm8, %v10784_v38 }
 0xe64   :  { %v10786_v40 = vpop.permute.xlu0 %10785  ;;  %v10788_v20 = vpop.permute.xlu1 %10787 }
 0xe65   :  { %10868 = vst.msk [vmem:[%s18430_s14 + $0x70] sm:$0xff] %vm10853_vm8, %v10786_v40  ;;  %10869 = vst.msk [vmem:[%s18430_s14 + $0x78] sm:$0xff] %vm10853_vm8, %v10788_v20 }
 0xe68   :  { %v10790_v3 = vpop.permute.xlu0 %10789  ;;  %v10792_v47 = vpop.permute.xlu1 %10791 }
 0xe69   :  { %10870 = vst.msk [vmem:[%s18430_s14 + $0x80] sm:$0xff] %vm10853_vm8, %v10790_v3  ;;  %10871 = vst.msk [vmem:[%s18430_s14 + $0x88] sm:$0xff] %vm10853_vm8, %v10792_v47 }
 0xe6c   :  { %v10794_v17 = vpop.permute.xlu0 %10793  ;;  %v10796_v7 = vpop.permute.xlu1 %10795 }
 0xe6d   :  { %10872 = vst.msk [vmem:[%s18430_s14 + $0x90] sm:$0xff] %vm10853_vm8, %v10794_v17  ;;  %10873 = vst.msk [vmem:[%s18430_s14 + $0x98] sm:$0xff] %vm10853_vm8, %v10796_v7 }
 0xe70   :  { %v10798_v36 = vpop.permute.xlu0 %10797  ;;  %v10800_v10 = vpop.permute.xlu1 %10799 }
 0xe71   :  { %10874 = vst.msk [vmem:[%s18430_s14 + $0xa0] sm:$0xff] %vm10853_vm8, %v10798_v36  ;;  %10875 = vst.msk [vmem:[%s18430_s14 + $0xa8] sm:$0xff] %vm10853_vm8, %v10800_v10 }
 0xe74   :  { %v10802_v39 = vpop.permute.xlu0 %10801  ;;  %v10804_v53 = vpop.permute.xlu1 %10803 }
 0xe75   :  { %10876 = vst.msk [vmem:[%s18430_s14 + $0xb0] sm:$0xff] %vm10853_vm8, %v10802_v39  ;;  %10877 = vst.msk [vmem:[%s18430_s14 + $0xb8] sm:$0xff] %vm10853_vm8, %v10804_v53 }
 0xe78   :  { %v10806_v2 = vpop.permute.xlu0 %10805  ;;  %v10808_v8 = vpop.permute.xlu1 %10807 }
 0xe79   :  { %10878 = vst.msk [vmem:[%s18430_s14 + $0xc0] sm:$0xff] %vm10853_vm8, %v10806_v2  ;;  %10879 = vst.msk [vmem:[%s18430_s14 + $0xc8] sm:$0xff] %vm10853_vm8, %v10808_v8 }
 0xe7c   :  { %v10810_v29 = vpop.permute.xlu0 %10809  ;;  %v10812_v25 = vpop.permute.xlu1 %10811 }
 0xe7d   :  { %10880 = vst.msk [vmem:[%s18430_s14 + $0xd0] sm:$0xff] %vm10853_vm8, %v10810_v29  ;;  %10881 = vst.msk [vmem:[%s18430_s14 + $0xd8] sm:$0xff] %vm10853_vm8, %v10812_v25 }
 0xe80   :  { %v10814_v58 = vpop.permute.xlu0 %10813  ;;  %v10816_v54 = vpop.permute.xlu1 %10815 }
 0xe81   :  { %10882 = vst.msk [vmem:[%s18430_s14 + $0xe0] sm:$0xff] %vm10853_vm8, %v10814_v58  ;;  %10883 = vst.msk [vmem:[%s18430_s14 + $0xe8] sm:$0xff] %vm10853_vm8, %v10816_v54 }
 0xe84   :  { %v10818_v18 = vpop.permute.xlu0 %10817  ;;  %v10820_v27 = vpop.permute.xlu1 %10819 }
 0xe85   :  { %10884 = vst.msk [vmem:[%s18430_s14 + $0xf0] sm:$0xff] %vm10853_vm8, %v10818_v18  ;;  %10885 = vst.msk [vmem:[%s18430_s14 + $0xf8] sm:$0xff] %vm10853_vm8, %v10820_v27 }

</bundles_post_ra>
